<compile_context>
chip_gen: v5e
topology: v5e:2x2
jax: 0.10.0
libtpu: 0.0.40
codegen_flags: <defaults>
</compile_context>

<pallas_src>
import jax
import jax.numpy as jnp
from jax.experimental import pallas as pl
from jax.experimental.pallas import tpu as pltpu

# ---- config (small, consistent with the module) ----
N_BLOCKS = 4          # c.n_blocks
Y_DIM = 32            # c.y_dim_features
FEAT_DIM = 512        # feature width used by the sub nets
NEG_SLOPE = 0.01      # PyTorch nn.LeakyReLU default


# ---------------------------------------------------------------------------
# Fused kernel:
#   feat = x @ Wf + bf                       (synthetic bigCondNet.features)
#   h    = LeakyReLU(feat @ W1_cat + b1)     (all sub-nets, layer 1, N-concat)
#   out  = concat_i( h[:, i*512:(i+1)*512] @ W2[i] ) + b2   (lane-dense [B,128])
# ---------------------------------------------------------------------------
def _condnet_kernel(x_ref, wf_ref, bf_ref, w1_ref, b1_ref, w2_ref, b2_ref,
                    o_ref):
    # feature extractor: [tb, D_in] bf16 @ [D_in, 512] bf16 -> f32
    feat = jnp.dot(x_ref[...], wf_ref[...],
                   preferred_element_type=jnp.float32) + bf_ref[...]

    # layer 1 of every sub-net at once: [tb, 512] @ [512, n*512] -> [tb, n*512]
    h = jnp.dot(feat.astype(jnp.bfloat16), w1_ref[...],
                preferred_element_type=jnp.float32) + b1_ref[...]
    h = jnp.where(h > 0, h, NEG_SLOPE * h)                 # LeakyReLU(0.01)
    h = h.astype(jnp.bfloat16)

    # layer 2: per-block small matmul on a lane-aligned static slice of h.
    # W2 stays compact [n, 512, 32] (no zero-padded block-diagonal streamed).
    outs = []
    for i in range(N_BLOCKS):                              # static unroll, n=4
        hi = h[:, i * FEAT_DIM:(i + 1) * FEAT_DIM]         # 512-wide aligned
        outs.append(jnp.dot(hi, w2_ref[i],
                            preferred_element_type=jnp.float32))
    out = jnp.concatenate(outs, axis=-1) + b2_ref[...]     # [tb, n*32] = 128
    o_ref[...] = out.astype(o_ref.dtype)


# ---------------------------------------------------------------------------
# CondNet forward
# ---------------------------------------------------------------------------
def cond_net_forward(cond, params):
    """Returns the lane-dense [B, n_blocks * y_dim] conditioning slab."""
    B = cond.shape[0]
    n = N_BLOCKS
    x = cond.reshape(B, -1).astype(jnp.bfloat16)           # NCHW -> [B, C*H*W]
    d_in = x.shape[1]

    # batch grid axis: "parallel" so v7x's two TensorCores each take half of a
    # real batch; weights' index_map is constant (fetched once).
    tb = B if B <= 128 else 128
    assert B % tb == 0, "batch must be divisible by the batch tile"
    grid = (B // tb,)

    out = pl.pallas_call(
        _condnet_kernel,
        out_shape=jax.ShapeDtypeStruct((B, n * Y_DIM), jnp.float32),
        grid_spec=pl.GridSpec(
            grid=grid,
            in_specs=[
                pl.BlockSpec((tb, d_in), lambda i: (i, 0)),                # x
                pl.BlockSpec((d_in, FEAT_DIM), lambda i: (0, 0)),          # Wf
                pl.BlockSpec((1, FEAT_DIM), lambda i: (0, 0)),             # bf
                pl.BlockSpec((FEAT_DIM, n * FEAT_DIM), lambda i: (0, 0)),  # W1cat
                pl.BlockSpec((1, n * FEAT_DIM), lambda i: (0, 0)),         # b1cat
                pl.BlockSpec((n, FEAT_DIM, Y_DIM), lambda i: (0, 0, 0)),   # W2
                pl.BlockSpec((1, n * Y_DIM), lambda i: (0, 0)),            # b2cat
            ],
            out_specs=pl.BlockSpec((tb, n * Y_DIM), lambda i: (i, 0)),
        ),
        compiler_params=pltpu.CompilerParams(
            dimension_semantics=("parallel",),
            # ~1.6 MiB of weights (x2 for default double-buffering) + tiny
            # activations fits comfortably under this on v5e/v6e/v7x.
            vmem_limit_bytes=32 * 1024 * 1024,
        ),
    )(x, params["wf"], params["bf"], params["w1_cat"], params["b1_cat"],
      params["w2"], params["b2_cat"])
    return out


def cond_net_forward_blocks(cond, params):
    """PyTorch-style forward: python list of per-block [B, y_dim] outputs.

    Prefer `cond_net_forward` (lane-dense slab) if the consumer is another
    kernel; slice per-block there instead.
    """
    out = cond_net_forward(cond, params)
    return jnp.split(out, N_BLOCKS, axis=-1)


# ---------------------------------------------------------------------------
# Parameter construction / one-time kernel layout prep (OUTSIDE the jitted
# forward -- these re-layouts must not run per call).
# ---------------------------------------------------------------------------
def init_raw_params(key, d_in):
    """Raw per-block parameters, mirroring the PyTorch module's layout."""
    ks = jax.random.split(key, 6)

    def lin_init(k, fan_in, shape):
        bound = 1.0 / jnp.sqrt(fan_in)
        return jax.random.uniform(k, shape, jnp.float32, -bound, bound)

    return {
        "wf": lin_init(ks[0], d_in, (d_in, FEAT_DIM)),
        "bf": lin_init(ks[1], d_in, (FEAT_DIM,)),
        "w1": lin_init(ks[2], FEAT_DIM, (N_BLOCKS, FEAT_DIM, FEAT_DIM)),
        "b1": lin_init(ks[3], FEAT_DIM, (N_BLOCKS, FEAT_DIM)),
        "w2": lin_init(ks[4], FEAT_DIM, (N_BLOCKS, FEAT_DIM, Y_DIM)),
        "b2": lin_init(ks[5], FEAT_DIM, (N_BLOCKS, Y_DIM)),
    }


def prepare_params(raw):
    """One-time re-layout into kernel-friendly form (done at param-prep time)."""
    n = N_BLOCKS
    # W1: [n, 512, 512] -> [512, n*512] (concat along N); column i*512+o <-> w1[i,:,o]
    w1_cat = jnp.transpose(raw["w1"], (1, 0, 2)).reshape(FEAT_DIM, n * FEAT_DIM)
    return {
        # weights in bf16 (kernel accumulates in f32), biases in f32
        "wf": raw["wf"].astype(jnp.bfloat16),
        "bf": raw["bf"].reshape(1, FEAT_DIM).astype(jnp.float32),
        "w1_cat": w1_cat.astype(jnp.bfloat16),
        "b1_cat": raw["b1"].reshape(1, n * FEAT_DIM).astype(jnp.float32),
        "w2": raw["w2"].astype(jnp.bfloat16),               # compact [n,512,32]
        "b2_cat": raw["b2"].reshape(1, n * Y_DIM).astype(jnp.float32),
    }


# ---------------------------------------------------------------------------
# Pure-JAX per-block reference (same bf16-weight / f32-accumulate path)
# ---------------------------------------------------------------------------
def _reference(cond, raw):
    B = cond.shape[0]
    x = cond.reshape(B, -1).astype(jnp.bfloat16)
    wf = raw["wf"].astype(jnp.bfloat16)
    feat = jnp.dot(x, wf, preferred_element_type=jnp.float32) + raw["bf"]
    outs = []
    for i in range(N_BLOCKS):
        w1 = raw["w1"][i].astype(jnp.bfloat16)
        w2 = raw["w2"][i].astype(jnp.bfloat16)
        h = jnp.dot(feat.astype(jnp.bfloat16), w1,
                    preferred_element_type=jnp.float32) + raw["b1"][i]
        h = jnp.where(h > 0, h, NEG_SLOPE * h)
        o = jnp.dot(h.astype(jnp.bfloat16), w2,
                    preferred_element_type=jnp.float32) + raw["b2"][i]
        outs.append(o)
    return outs


if __name__ == "__main__":
    key = jax.random.PRNGKey(0)
    k_x, k_p = jax.random.split(key)

    B, C, H, W = 2, 4, 16, 16                 # cond: NCHW
    cond = jax.random.normal(k_x, (B, C, H, W), jnp.float32)

    raw = init_raw_params(k_p, C * H * W)
    params = jax.block_until_ready(prepare_params(raw))   # one-time, outside jit

    forward = jax.jit(cond_net_forward_blocks)
    outs = jax.block_until_ready(forward(cond, params))

    refs = _reference(cond, raw)
    for o, r in zip(outs, refs):
        assert o.shape == (B, Y_DIM)
        assert jnp.allclose(o, r, atol=5e-3, rtol=5e-3)

    print("KERNEL_OK")
</pallas_src>

<mosaic_0001>
module attributes {stable_mosaic.version = 11 : i64} {
  func.func @_condnet_kernel(%arg0: i32, %arg1: memref<2x1024xbf16, #tpu.memory_space<vmem>>, %arg2: memref<1024x512xbf16, #tpu.memory_space<vmem>>, %arg3: memref<1x512xf32, #tpu.memory_space<vmem>>, %arg4: memref<512x2048xbf16, #tpu.memory_space<vmem>>, %arg5: memref<1x2048xf32, #tpu.memory_space<vmem>>, %arg6: memref<4x512x32xbf16, #tpu.memory_space<vmem>>, %arg7: memref<1x128xf32, #tpu.memory_space<vmem>>, %arg8: memref<2x128xf32, #tpu.memory_space<vmem>>) attributes {dimension_semantics = [#tpu.dimension_semantics<parallel>], iteration_bounds = array<i64: 1>, scalar_prefetch = 0 : i64, scratch_operands = 0 : i64, tpu.core_type = #tpu.core_type<tc>, window_params = [{transform_indices = @transform_0, window_bounds = array<i64: 2, 1024>}, {pipeline_mode = #tpu.pipeline_mode<synchronous>, transform_indices = @transform_1, window_bounds = array<i64: 1024, 512>}, {pipeline_mode = #tpu.pipeline_mode<synchronous>, transform_indices = @transform_2, window_bounds = array<i64: 1, 512>}, {pipeline_mode = #tpu.pipeline_mode<synchronous>, transform_indices = @transform_3, window_bounds = array<i64: 512, 2048>}, {pipeline_mode = #tpu.pipeline_mode<synchronous>, transform_indices = @transform_4, window_bounds = array<i64: 1, 2048>}, {pipeline_mode = #tpu.pipeline_mode<synchronous>, transform_indices = @transform_5, window_bounds = array<i64: 4, 512, 32>}, {pipeline_mode = #tpu.pipeline_mode<synchronous>, transform_indices = @transform_6, window_bounds = array<i64: 1, 128>}, {transform_indices = @transform_7, window_bounds = array<i64: 2, 128>}]} {
    %c0 = arith.constant 0 : index
    %c0_0 = arith.constant 0 : index
    %0 = vector.load %arg1[%c0, %c0_0] : memref<2x1024xbf16, #tpu.memory_space<vmem>>, vector<2x1024xbf16>
    %c0_1 = arith.constant 0 : index
    %c0_2 = arith.constant 0 : index
    %1 = vector.load %arg2[%c0_1, %c0_2] : memref<1024x512xbf16, #tpu.memory_space<vmem>>, vector<1024x512xbf16>
    %cst = arith.constant dense<0.000000e+00> : vector<2x512xf32>
    %2 = tpu.matmul %0, %1, %cst {dimension_numbers = #tpu.dot_dimension_numbers<[1], [0], [0], [1], [0, 0, 1, 1], [], []>} : vector<2x1024xbf16>, vector<1024x512xbf16>, vector<2x512xf32> -> vector<2x512xf32>
    %c0_3 = arith.constant 0 : index
    %c0_4 = arith.constant 0 : index
    %3 = vector.load %arg3[%c0_3, %c0_4] : memref<1x512xf32, #tpu.memory_space<vmem>>, vector<1x512xf32>
    %4 = vector.broadcast %3 : vector<1x512xf32> to vector<2x512xf32>
    %5 = arith.addf %2, %4 : vector<2x512xf32>
    %6 = arith.truncf %5 : vector<2x512xf32> to vector<2x512xbf16>
    %c0_5 = arith.constant 0 : index
    %c0_6 = arith.constant 0 : index
    %7 = vector.load %arg4[%c0_5, %c0_6] : memref<512x2048xbf16, #tpu.memory_space<vmem>>, vector<512x2048xbf16>
    %cst_7 = arith.constant dense<0.000000e+00> : vector<2x2048xf32>
    %8 = tpu.matmul %6, %7, %cst_7 {dimension_numbers = #tpu.dot_dimension_numbers<[1], [0], [0], [1], [0, 0, 1, 1], [], []>} : vector<2x512xbf16>, vector<512x2048xbf16>, vector<2x2048xf32> -> vector<2x2048xf32>
    %c0_8 = arith.constant 0 : index
    %c0_9 = arith.constant 0 : index
    %9 = vector.load %arg5[%c0_8, %c0_9] : memref<1x2048xf32, #tpu.memory_space<vmem>>, vector<1x2048xf32>
    %10 = vector.broadcast %9 : vector<1x2048xf32> to vector<2x2048xf32>
    %11 = arith.addf %8, %10 : vector<2x2048xf32>
    %cst_10 = arith.constant 0.000000e+00 : f32
    %12 = vector.broadcast %cst_10 : f32 to vector<2x2048xf32>
    %13 = arith.cmpf ogt, %11, %12 : vector<2x2048xf32>
    %cst_11 = arith.constant 0.00999999977 : f32
    %14 = vector.broadcast %cst_11 : f32 to vector<2x2048xf32>
    %15 = arith.mulf %14, %11 : vector<2x2048xf32>
    %16 = arith.select %13, %11, %15 : vector<2x2048xi1>, vector<2x2048xf32>
    %17 = arith.truncf %16 : vector<2x2048xf32> to vector<2x2048xbf16>
    %18 = vector.extract_strided_slice %17 {offsets = [0, 0], sizes = [2, 512], strides = [1, 1]} : vector<2x2048xbf16> to vector<2x512xbf16>
    %c0_12 = arith.constant 0 : index
    %c0_13 = arith.constant 0 : index
    %c0_14 = arith.constant 0 : index
    %19 = vector.load %arg6[%c0_12, %c0_13, %c0_14] : memref<4x512x32xbf16, #tpu.memory_space<vmem>>, vector<1x512x32xbf16>
    %20 = vector.shape_cast %19 : vector<1x512x32xbf16> to vector<512x32xbf16>
    %cst_15 = arith.constant dense<0.000000e+00> : vector<2x32xf32>
    %21 = tpu.matmul %18, %20, %cst_15 {dimension_numbers = #tpu.dot_dimension_numbers<[1], [0], [0], [1], [0, 0, 1, 1], [], []>} : vector<2x512xbf16>, vector<512x32xbf16>, vector<2x32xf32> -> vector<2x32xf32>
    %22 = vector.extract_strided_slice %17 {offsets = [0, 512], sizes = [2, 512], strides = [1, 1]} : vector<2x2048xbf16> to vector<2x512xbf16>
    %c1 = arith.constant 1 : index
    %c0_16 = arith.constant 0 : index
    %c0_17 = arith.constant 0 : index
    %23 = vector.load %arg6[%c1, %c0_16, %c0_17] : memref<4x512x32xbf16, #tpu.memory_space<vmem>>, vector<1x512x32xbf16>
    %24 = vector.shape_cast %23 : vector<1x512x32xbf16> to vector<512x32xbf16>
    %cst_18 = arith.constant dense<0.000000e+00> : vector<2x32xf32>
    %25 = tpu.matmul %22, %24, %cst_18 {dimension_numbers = #tpu.dot_dimension_numbers<[1], [0], [0], [1], [0, 0, 1, 1], [], []>} : vector<2x512xbf16>, vector<512x32xbf16>, vector<2x32xf32> -> vector<2x32xf32>
    %26 = vector.extract_strided_slice %17 {offsets = [0, 1024], sizes = [2, 512], strides = [1, 1]} : vector<2x2048xbf16> to vector<2x512xbf16>
    %c2 = arith.constant 2 : index
    %c0_19 = arith.constant 0 : index
    %c0_20 = arith.constant 0 : index
    %27 = vector.load %arg6[%c2, %c0_19, %c0_20] : memref<4x512x32xbf16, #tpu.memory_space<vmem>>, vector<1x512x32xbf16>
    %28 = vector.shape_cast %27 : vector<1x512x32xbf16> to vector<512x32xbf16>
    %cst_21 = arith.constant dense<0.000000e+00> : vector<2x32xf32>
    %29 = tpu.matmul %26, %28, %cst_21 {dimension_numbers = #tpu.dot_dimension_numbers<[1], [0], [0], [1], [0, 0, 1, 1], [], []>} : vector<2x512xbf16>, vector<512x32xbf16>, vector<2x32xf32> -> vector<2x32xf32>
    %30 = vector.extract_strided_slice %17 {offsets = [0, 1536], sizes = [2, 512], strides = [1, 1]} : vector<2x2048xbf16> to vector<2x512xbf16>
    %c3 = arith.constant 3 : index
    %c0_22 = arith.constant 0 : index
    %c0_23 = arith.constant 0 : index
    %31 = vector.load %arg6[%c3, %c0_22, %c0_23] : memref<4x512x32xbf16, #tpu.memory_space<vmem>>, vector<1x512x32xbf16>
    %32 = vector.shape_cast %31 : vector<1x512x32xbf16> to vector<512x32xbf16>
    %cst_24 = arith.constant dense<0.000000e+00> : vector<2x32xf32>
    %33 = tpu.matmul %30, %32, %cst_24 {dimension_numbers = #tpu.dot_dimension_numbers<[1], [0], [0], [1], [0, 0, 1, 1], [], []>} : vector<2x512xbf16>, vector<512x32xbf16>, vector<2x32xf32> -> vector<2x32xf32>
    %34 = tpu.concatenate %21, %25, %29, %33 in 1 : vector<2x32xf32>, vector<2x32xf32>, vector<2x32xf32>, vector<2x32xf32> -> vector<2x128xf32>
    %c0_25 = arith.constant 0 : index
    %c0_26 = arith.constant 0 : index
    %35 = vector.load %arg7[%c0_25, %c0_26] : memref<1x128xf32, #tpu.memory_space<vmem>>, vector<1x128xf32>
    %36 = vector.broadcast %35 : vector<1x128xf32> to vector<2x128xf32>
    %37 = arith.addf %34, %36 : vector<2x128xf32>
    %c0_27 = arith.constant 0 : index
    %c0_28 = arith.constant 0 : index
    %38 = vector.load %arg8[%c0_27, %c0_28] : memref<2x128xf32, #tpu.memory_space<vmem>>, vector<2x128xf32>
    tpu.vector_store %arg8[%c0_27, %c0_28], %37 {strides = array<i32>} : memref<2x128xf32, #tpu.memory_space<vmem>>, vector<2x128xf32>,
    return
  }
  func.func @transform_0(%arg0: i32) -> (i32, i32) {
    %c0_i32 = arith.constant 0 : i32
    %c0_i32_0 = arith.constant 0 : i32
    return %arg0, %c0_i32 : i32, i32
  }
  func.func @transform_1(%arg0: i32) -> (i32, i32) {
    %c0_i32 = arith.constant 0 : i32
    %c0_i32_0 = arith.constant 0 : i32
    %c0_i32_1 = arith.constant 0 : i32
    return %c0_i32, %c0_i32_0 : i32, i32
  }
  func.func @transform_2(%arg0: i32) -> (i32, i32) {
    %c0_i32 = arith.constant 0 : i32
    %c0_i32_0 = arith.constant 0 : i32
    %c0_i32_1 = arith.constant 0 : i32
    return %c0_i32, %c0_i32_0 : i32, i32
  }
  func.func @transform_3(%arg0: i32) -> (i32, i32) {
    %c0_i32 = arith.constant 0 : i32
    %c0_i32_0 = arith.constant 0 : i32
    %c0_i32_1 = arith.constant 0 : i32
    return %c0_i32, %c0_i32_0 : i32, i32
  }
  func.func @transform_4(%arg0: i32) -> (i32, i32) {
    %c0_i32 = arith.constant 0 : i32
    %c0_i32_0 = arith.constant 0 : i32
    %c0_i32_1 = arith.constant 0 : i32
    return %c0_i32, %c0_i32_0 : i32, i32
  }
  func.func @transform_5(%arg0: i32) -> (i32, i32, i32) {
    %c0_i32 = arith.constant 0 : i32
    %c0_i32_0 = arith.constant 0 : i32
    %c0_i32_1 = arith.constant 0 : i32
    %c0_i32_2 = arith.constant 0 : i32
    return %c0_i32, %c0_i32_0, %c0_i32_1 : i32, i32, i32
  }
  func.func @transform_6(%arg0: i32) -> (i32, i32) {
    %c0_i32 = arith.constant 0 : i32
    %c0_i32_0 = arith.constant 0 : i32
    %c0_i32_1 = arith.constant 0 : i32
    return %c0_i32, %c0_i32_0 : i32, i32
  }
  func.func @transform_7(%arg0: i32) -> (i32, i32) {
    %c0_i32 = arith.constant 0 : i32
    %c0_i32_0 = arith.constant 0 : i32
    return %arg0, %c0_i32 : i32, i32
  }
}

</mosaic_0001>

<bundles_post_ra>
// kernel: cond_net_forward_blocks.1
= control target key start
LH: loop header
LB: loop body
LE: loop exit
PB: predicated region body
PF: predicated region fallthrough
CT: control target
= control target key end

     0   :  { %12 = vsyncpa [#allocation3], 0  ;;  %s13027_s0 = inlined_call_operand.vmem [shape: bf16[2,1024], index: 0, kind: input, shape index: {}]   ;;  %s13028_s1 = inlined_call_operand.hbm [shape: bf16[1024,512], index: 1, kind: input, shape index: {}]   ;;  %s13029_s2 = inlined_call_operand.hbm [shape: f32[1,512], index: 2, kind: input, shape index: {}]   ;;  %s13030_s3 = inlined_call_operand.hbm [shape: bf16[512,2048], index: 3, kind: input, shape index: {}]   ;;  %s13031_s4 = inlined_call_operand.hbm [shape: f32[1,2048], index: 4, kind: input, shape index: {}]   ;;  %s13032_s5 = inlined_call_operand.vmem [shape: bf16[4,512,32], index: 5, kind: input, shape index: {}]   ;;  %s13033_s6 = inlined_call_operand.hbm [shape: f32[1,128], index: 6, kind: input, shape index: {}]   ;;  %s13034_s7 = inlined_call_operand.vmem [shape: f32[2,128], index: 7, kind: output, shape index: {}]  }
   0x1   :  { %13 = vsyncpa [#allocation5], 0  ;;  %s35_s26 = sshll.u32 %s13029_s2, 4  ;;  %s36_s26 = int_to_ptr.hbm [resolvable:$true] %s35_s26 }
   0x2   :  { %14 = vsyncpa [#allocation8], 0  ;;  %s12222_s27 = smov [#allocation4]   ;;  %s59_s8 = sshll.u32 %s13031_s4, 4  ;;  %s60_s8 = int_to_ptr.hbm [resolvable:$true] %s59_s8 }
   0x3   :  { %s37_s28 = sshll.u32 %s12222_s27, 4  ;;  %s12223_s9 = smov [#allocation7]   ;;  %s38_s28 = int_to_ptr.vmem [resolvable:$true] %s37_s28 }
   0x4   :  { %40 = dma.hbm_to_vmem [thread:$0]  %s36_s26, 64, %s38_s28, [#allocation5]  }
   0x5   :  { %s61_s10 = sshll.u32 %s12223_s9, 4  ;;  %s21_s13 = sshll.u32 %s13028_s1, 4  ;;  %s62_s10 = int_to_ptr.vmem [resolvable:$true] %s61_s10  ;;  %s22_s13 = int_to_ptr.hbm [resolvable:$true] %s21_s13 }
   0x6   :  { %64 = dma.hbm_to_vmem [thread:$0]  %s60_s8, 256, %s62_s10, [#allocation8]  }
   0x7   :  { %s12224_s2 = smov [#allocation2]   ;;  %s45_s17 = sshll.u32 %s13030_s3, 4  ;;  %s46_s17 = int_to_ptr.hbm [resolvable:$true] %s45_s17 }
   0x8   :  { %s23_s14 = sshll.u32 %s12224_s2, 4  ;;  %s12225_s18 = smov 256   ;;  %s24_s14 = int_to_ptr.vmem [resolvable:$true] %s23_s14 }
   0x9   :  { %s12226_s4 = smov 16   ;;  %s12227_s19 = smov [#allocation6]  }
   0xa   :  { %29 = dma.hbm_to_vmem [thread:$0]  %s22_s13, 32768, %s24_s14, [#allocation3], %s12225_s18, %s12225_s18, %s12226_s4  }
   0xb   :  { %s47_s20 = sshll.u32 %s12227_s19, 4  ;;  %s12228_s21 = smov 1024   ;;  %s48_s20 = int_to_ptr.vmem [resolvable:$true] %s47_s20 }
   0xc   :  { %s12229_s22 = smov 64   ;;  %s72_s24 = sshll.u32 %s13033_s6, 4  ;;  %s73_s24 = int_to_ptr.hbm [resolvable:$true] %s72_s24 }
   0xd   :  { %53 = dma.hbm_to_vmem [thread:$0]  %s46_s17, 65536, %s48_s20, [#allocation5], %s12228_s21, %s12228_s21, %s12229_s22  }
   0xe   :  { %s12230_s25 = smov [#allocation9]  }
   0xf   :  { %s74_s26 = sshll.u32 %s12230_s25, 4  ;;  %s75_s26 = int_to_ptr.vmem [resolvable:$true] %s74_s26 }
  0x10   :  { %77 = dma.hbm_to_vmem [thread:$0]  %s73_s24, 16, %s75_s26, [#allocation8]  }
  0x11   :  { %12216 = dma.done.wait [#allocation3], 32768  }
  0x12   :  { %12217 = vsyncadd [#allocation3], 4294934528 }
  0x13   :  { %12218 = dma.done.wait [#allocation5], 65600  }
  0x14   :  { %12219 = vsyncadd [#allocation5], 4294901696 }
  0x15   :  { %12220 = dma.done.wait [#allocation8], 272  }
  0x16   :  { %12221 = vsyncadd [#allocation8], 4294967024  ;;  %v7515_v0 = vld [vmem:[#allocation2 + $0xe0] sm:$0xf]  ;;  %v11207_v1 = vld [vmem:[#allocation2 + $0xec] sm:$0xf0] }
  0x17   :  { %v7643_v2 = vld [vmem:[#allocation2 + $0x1e0] sm:$0xf]  ;;  %v7516_v3 = vor.u32 %v11207_v1, %v7515_v0  ;;  %v11239_v4 = vld [vmem:[#allocation2 + $0x1ec] sm:$0xf0]  ;;  %s12232_s30 = smov 96  }
  0x18   :  { %v7771_v5 = vld [vmem:[#allocation2 + $0x2e0] sm:$0xf]  ;;  %v11271_v6 = vld [vmem:[#allocation2 + $0x2ec] sm:$0xf0]  ;;  %v7644_v7 = vor.u32 %v11239_v4, %v7643_v2 }
  0x19   :  { %v7772_v8 = vor.u32 %v11271_v6, %v7771_v5  ;;  %v7899_v9 = vld [vmem:[#allocation2 + $0x3e0] sm:$0xf]  ;;  %v11303_v10 = vld [vmem:[#allocation2 + $0x3ec] sm:$0xf0]  ;;  %1663 = vmatpush.bf16.msra.mxu0 %v7516_v3 }
  0x1a   :  { %v7499_v11 = vld [vmem:[#allocation2 + $0xc0] sm:$0xf]  ;;  %v7900_v12 = vor.u32 %v11303_v10, %v7899_v9  ;;  %v11203_v13 = vld [vmem:[#allocation2 + $0xcc] sm:$0xf0]  ;;  %1676 = vmatpush.bf16.msra.mxu1 %v7644_v7 }
  0x1b   :  { %v7627_v14 = vld [vmem:[#allocation2 + $0x1c0] sm:$0xf]  ;;  %v11235_v15 = vld [vmem:[#allocation2 + $0x1cc] sm:$0xf0]  ;;  %1689 = vmatpush.bf16.msra.mxu2 %v7772_v8  ;;  %v7500_v16 = vor.u32 %v11203_v13, %v7499_v11 }
  0x1c   :  { %v7628_v17 = vor.u32 %v11235_v15, %v7627_v14  ;;  %v7755_v18 = vld [vmem:[#allocation2 + $0x2c0] sm:$0xf]  ;;  %v11267_v19 = vld [vmem:[#allocation2 + $0x2cc] sm:$0xf0]  ;;  %1702 = vmatpush.bf16.msra.mxu3 %v7900_v12 }
  0x1d   :  { %v7883_v20 = vld [vmem:[#allocation2 + $0x3c0] sm:$0xf]  ;;  %v7756_v21 = vor.u32 %v11267_v19, %v7755_v18  ;;  %v11299_v22 = vld [vmem:[#allocation2 + $0x3cc] sm:$0xf0]  ;;  %1664 = vmatpush.bf16.msra.mxu0 %v7500_v16 }
  0x1e   :  { %v7483_v23 = vld [vmem:[#allocation2 + $0xa0] sm:$0xf]  ;;  %v11199_v24 = vld [vmem:[#allocation2 + $0xac] sm:$0xf0]  ;;  %v7884_v25 = vor.u32 %v11299_v22, %v7883_v20  ;;  %1677 = vmatpush.bf16.msra.mxu1 %v7628_v17 }
  0x1f   :  { %v7611_v26 = vld [vmem:[#allocation2 + $0x1a0] sm:$0xf]  ;;  %v11231_v27 = vld [vmem:[#allocation2 + $0x1ac] sm:$0xf0]  ;;  %v7484_v29 = vor.u32 %v11199_v24, %v7483_v23  ;;  %1690 = vmatpush.bf16.msra.mxu2 %v7756_v21 }
  0x20   :  { %v7739_v28 = vld [vmem:[#allocation2 + $0x2a0] sm:$0xf]  ;;  %v11263_v30 = vld [vmem:[#allocation2 + $0x2ac] sm:$0xf0]  ;;  %v7612_v33 = vor.u32 %v11231_v27, %v7611_v26  ;;  %1703 = vmatpush.bf16.msra.mxu3 %v7884_v25 }
  0x21   :  { %v7867_v31 = vld [vmem:[#allocation2 + $0x3a0] sm:$0xf]  ;;  %v11295_v32 = vld [vmem:[#allocation2 + $0x3ac] sm:$0xf0]  ;;  %v7740_v34 = vor.u32 %v11263_v30, %v7739_v28  ;;  %1665 = vmatpush.bf16.msra.mxu0 %v7484_v29 }
  0x22   :  { %v7467_v35 = vld [vmem:[#allocation2 + $0x80] sm:$0xf]  ;;  %v11195_v36 = vld [vmem:[#allocation2 + $0x8c] sm:$0xf0]  ;;  %v7868_v38 = vor.u32 %v11295_v32, %v7867_v31  ;;  %1678 = vmatpush.bf16.msra.mxu1 %v7612_v33 }
  0x23   :  { %v7595_v37 = vld [vmem:[#allocation2 + $0x180] sm:$0xf]  ;;  %v11227_v39 = vld [vmem:[#allocation2 + $0x18c] sm:$0xf0]  ;;  %v7468_v44 = vor.u32 %v11195_v36, %v7467_v35  ;;  %1691 = vmatpush.bf16.msra.mxu2 %v7740_v34 }
  0x24   :  { %v7723_v40 = vld [vmem:[#allocation2 + $0x280] sm:$0xf]  ;;  %v11259_v41 = vld [vmem:[#allocation2 + $0x28c] sm:$0xf0]  ;;  %v7596_v45 = vor.u32 %v11227_v39, %v7595_v37  ;;  %1704 = vmatpush.bf16.msra.mxu3 %v7868_v38 }
  0x25   :  { %v7851_v42 = vld [vmem:[#allocation2 + $0x380] sm:$0xf]  ;;  %v11291_v43 = vld [vmem:[#allocation2 + $0x38c] sm:$0xf0]  ;;  %v7724_v46 = vor.u32 %v11259_v41, %v7723_v40  ;;  %1666 = vmatpush.bf16.msra.mxu0 %v7468_v44 }
  0x26   :  { %v7451_v47 = vld [vmem:[#allocation2 + $0x60] sm:$0xf]  ;;  %v11191_v48 = vld [vmem:[#allocation2 + $0x6c] sm:$0xf0]  ;;  %v7852_v50 = vor.u32 %v11291_v43, %v7851_v42  ;;  %1679 = vmatpush.bf16.msra.mxu1 %v7596_v45 }
  0x27   :  { %v7579_v49 = vld [vmem:[#allocation2 + $0x160] sm:$0xf]  ;;  %v11223_v51 = vld [vmem:[#allocation2 + $0x16c] sm:$0xf0]  ;;  %v7452_v56 = vor.u32 %v11191_v48, %v7451_v47  ;;  %1692 = vmatpush.bf16.msra.mxu2 %v7724_v46 }
  0x28   :  { %v7707_v52 = vld [vmem:[#allocation2 + $0x260] sm:$0xf]  ;;  %v11255_v53 = vld [vmem:[#allocation2 + $0x26c] sm:$0xf0]  ;;  %v7580_v57 = vor.u32 %v11223_v51, %v7579_v49  ;;  %1705 = vmatpush.bf16.msra.mxu3 %v7852_v50 }
  0x29   :  { %v7835_v54 = vld [vmem:[#allocation2 + $0x360] sm:$0xf]  ;;  %v11287_v55 = vld [vmem:[#allocation2 + $0x36c] sm:$0xf0]  ;;  %v7708_v58 = vor.u32 %v11255_v53, %v7707_v52  ;;  %1667 = vmatpush.bf16.msra.mxu0 %v7452_v56 }
  0x2a   :  { %v7435_v59 = vld [vmem:[#allocation2 + $0x40] sm:$0xf]  ;;  %v11187_v60 = vld [vmem:[#allocation2 + $0x4c] sm:$0xf0]  ;;  %v7836_v62 = vor.u32 %v11287_v55, %v7835_v54  ;;  %1680 = vmatpush.bf16.msra.mxu1 %v7580_v57 }
  0x2b   :  { %v7563_v61 = vld [vmem:[#allocation2 + $0x140] sm:$0xf]  ;;  %v11219_v63 = vld [vmem:[#allocation2 + $0x14c] sm:$0xf0]  ;;  %v7436_v4 = vor.u32 %v11187_v60, %v7435_v59  ;;  %1693 = vmatpush.bf16.msra.mxu2 %v7708_v58 }
  0x2c   :  { %v7691_v0 = vld [vmem:[#allocation2 + $0x240] sm:$0xf]  ;;  %v11251_v1 = vld [vmem:[#allocation2 + $0x24c] sm:$0xf0]  ;;  %v7564_v5 = vor.u32 %v11219_v63, %v7563_v61  ;;  %1706 = vmatpush.bf16.msra.mxu3 %v7836_v62 }
  0x2d   :  { %v7819_v2 = vld [vmem:[#allocation2 + $0x340] sm:$0xf]  ;;  %v11283_v3 = vld [vmem:[#allocation2 + $0x34c] sm:$0xf0]  ;;  %v7692_v6 = vor.u32 %v11251_v1, %v7691_v0  ;;  %1668 = vmatpush.bf16.msra.mxu0 %v7436_v4 }
  0x2e   :  { %v7419_v7 = vld [vmem:[#allocation2 + $0x20] sm:$0xf]  ;;  %v11183_v8 = vld [vmem:[#allocation2 + $0x2c] sm:$0xf0]  ;;  %v7820_v10 = vor.u32 %v11283_v3, %v7819_v2  ;;  %1681 = vmatpush.bf16.msra.mxu1 %v7564_v5  ;;  %v98_v2 = vld [vmem:[%s13027_s0] sm:$0xff] }
  0x2f   :  { %v7547_v9 = vld [vmem:[#allocation2 + $0x120] sm:$0xf]  ;;  %v11215_v11 = vld [vmem:[#allocation2 + $0x12c] sm:$0xf0]  ;;  %v7420_v16 = vor.u32 %v11183_v8, %v7419_v7  ;;  %1694 = vmatpush.bf16.msra.mxu2 %v7692_v6  ;;  %366 = vst [vmem:[#allocation1] ss:$9 sm:$0xff] %v98_v2 }
  0x30   :  { %v7675_v12 = vld [vmem:[#allocation2 + $0x220] sm:$0xf]  ;;  %v11247_v13 = vld [vmem:[#allocation2 + $0x22c] sm:$0xf0]  ;;  %v7548_v19 = vor.u32 %v11215_v11, %v7547_v9  ;;  %1707 = vmatpush.bf16.msra.mxu3 %v7820_v10  ;;  %v7517_v2 = vld [vmem:[#allocation2 + $0xf0] sm:$0xf0] }
  0x31   :  { %v7803_v14 = vld [vmem:[#allocation2 + $0x320] sm:$0xf]  ;;  %v11279_v15 = vld [vmem:[#allocation2 + $0x32c] sm:$0xf0]  ;;  %v7676_v20 = vor.u32 %v11247_v13, %v7675_v12  ;;  %1669 = vmatpush.bf16.msra.mxu0 %v7420_v16 }
  0x32   :  { %v7403_v17 = vld [vmem:[#allocation2] sm:$0xf]  ;;  %v11179_v18 = vld [vmem:[#allocation2 + $0xc] sm:$0xf0]  ;;  %v7804_v24 = vor.u32 %v11279_v15, %v7803_v14  ;;  %1682 = vmatpush.bf16.msra.mxu1 %v7548_v19 }
  0x33   :  { %v7531_v21 = vld [vmem:[#allocation2 + $0x100] sm:$0xf]  ;;  %v11211_v22 = vld [vmem:[#allocation2 + $0x10c] sm:$0xf0]  ;;  %v7404_v31 = vor.u32 %v11179_v18, %v7403_v17  ;;  %1695 = vmatpush.bf16.msra.mxu2 %v7676_v20 }
  0x34   :  { %v7659_v23 = vld [vmem:[#allocation2 + $0x200] sm:$0xf]  ;;  %v11243_v25 = vld [vmem:[#allocation2 + $0x20c] sm:$0xf0]  ;;  %v7532_v35 = vor.u32 %v11211_v22, %v7531_v21  ;;  %1708 = vmatpush.bf16.msra.mxu3 %v7804_v24 }
  0x35   :  { %v7787_v26 = vld [vmem:[#allocation2 + $0x300] sm:$0xf]  ;;  %v11275_v27 = vld [vmem:[#allocation2 + $0x30c] sm:$0xf0]  ;;  %v7660_v36 = vor.u32 %v11243_v25, %v7659_v23  ;;  %1670 = vmatpush.bf16.msra.mxu0 %v7404_v31 }
  0x36   :  { %v8027_v28 = vld [vmem:[#allocation2 + $0x4e0] sm:$0xf]  ;;  %v11335_v29 = vld [vmem:[#allocation2 + $0x4ec] sm:$0xf0]  ;;  %v7788_v39 = vor.u32 %v11275_v27, %v7787_v26  ;;  %1683 = vmatpush.bf16.msra.mxu1 %v7532_v35 }
  0x37   :  { %v8155_v30 = vld [vmem:[#allocation2 + $0x5e0] sm:$0xf]  ;;  %v11367_v32 = vld [vmem:[#allocation2 + $0x5ec] sm:$0xf0]  ;;  %v8028_v40 = vor.u32 %v11335_v29, %v8027_v28  ;;  %1696 = vmatpush.bf16.msra.mxu2 %v7660_v36  ;;  %v12294_v28 = vld [vmem:[#allocation1] sm:$0xff] }
  0x38   :  { %v8283_v33 = vld [vmem:[#allocation2 + $0x6e0] sm:$0xf]  ;;  %v11399_v34 = vld [vmem:[#allocation2 + $0x6ec] sm:$0xf0]  ;;  %v8156_v41 = vor.u32 %v11367_v32, %v8155_v30  ;;  %1709 = vmatpush.bf16.msra.mxu3 %v7788_v39  ;;  %1671 = vmatmul.bf16.vlgmr.msra.gmra.mxu0 %v12294_v28 }
  0x39   :  { %v8411_v37 = vld [vmem:[#allocation2 + $0x7e0] sm:$0xf]  ;;  %v11431_v38 = vld [vmem:[#allocation2 + $0x7ec] sm:$0xf0]  ;;  %v8284_v42 = vor.u32 %v11399_v34, %v8283_v33  ;;  %1715 = vmatpush.bf16.msrb.mxu0 %v8028_v40 }
  0x3a   :  { %v8011_v43 = vld [vmem:[#allocation2 + $0x4c0] sm:$0xf]  ;;  %v11331_v44 = vld [vmem:[#allocation2 + $0x4cc] sm:$0xf0]  ;;  %v8412_v46 = vor.u32 %v11431_v38, %v8411_v37  ;;  %1728 = vmatpush.bf16.msrb.mxu1 %v8156_v41 }
  0x3b   :  { %v8139_v45 = vld [vmem:[#allocation2 + $0x5c0] sm:$0xf]  ;;  %v11363_v47 = vld [vmem:[#allocation2 + $0x5cc] sm:$0xf0]  ;;  %v8012_v52 = vor.u32 %v11331_v44, %v8011_v43  ;;  %1741 = vmatpush.bf16.msrb.mxu2 %v8284_v42 }
  0x3c   :  { %v8267_v48 = vld [vmem:[#allocation2 + $0x6c0] sm:$0xf]  ;;  %v11395_v49 = vld [vmem:[#allocation2 + $0x6cc] sm:$0xf0]  ;;  %v8140_v53 = vor.u32 %v11363_v47, %v8139_v45  ;;  %1754 = vmatpush.bf16.msrb.mxu3 %v8412_v46 }
  0x3d   :  { %v8395_v50 = vld [vmem:[#allocation2 + $0x7c0] sm:$0xf]  ;;  %v11427_v51 = vld [vmem:[#allocation2 + $0x7cc] sm:$0xf0]  ;;  %v8268_v54 = vor.u32 %v11395_v49, %v8267_v48  ;;  %1716 = vmatpush.bf16.msrb.mxu0 %v8012_v52 }
  0x3e   :  { %v7995_v55 = vld [vmem:[#allocation2 + $0x4a0] sm:$0xf]  ;;  %v11327_v56 = vld [vmem:[#allocation2 + $0x4ac] sm:$0xf0]  ;;  %v8396_v58 = vor.u32 %v11427_v51, %v8395_v50  ;;  %1729 = vmatpush.bf16.msrb.mxu1 %v8140_v53 }
  0x3f   :  { %v8123_v57 = vld [vmem:[#allocation2 + $0x5a0] sm:$0xf]  ;;  %v11359_v59 = vld [vmem:[#allocation2 + $0x5ac] sm:$0xf0]  ;;  %v7996_v0 = vor.u32 %v11327_v56, %v7995_v55  ;;  %1742 = vmatpush.bf16.msrb.mxu2 %v8268_v54 }
  0x40   :  { %v8251_v60 = vld [vmem:[#allocation2 + $0x6a0] sm:$0xf]  ;;  %v11391_v61 = vld [vmem:[#allocation2 + $0x6ac] sm:$0xf0]  ;;  %v8124_v3 = vor.u32 %v11359_v59, %v8123_v57  ;;  %1755 = vmatpush.bf16.msrb.mxu3 %v8396_v58 }
  0x41   :  { %v8379_v62 = vld [vmem:[#allocation2 + $0x7a0] sm:$0xf]  ;;  %v11423_v63 = vld [vmem:[#allocation2 + $0x7ac] sm:$0xf0]  ;;  %v8252_v4 = vor.u32 %v11391_v61, %v8251_v60  ;;  %1717 = vmatpush.bf16.msrb.mxu0 %v7996_v0 }
  0x42   :  { %v7979_v1 = vld [vmem:[#allocation2 + $0x480] sm:$0xf]  ;;  %v11323_v5 = vld [vmem:[#allocation2 + $0x48c] sm:$0xf0]  ;;  %v8380_v7 = vor.u32 %v11423_v63, %v8379_v62  ;;  %1730 = vmatpush.bf16.msrb.mxu1 %v8124_v3  ;;  %v11237_v3 = vld [vmem:[#allocation2 + $0x1e4] sm:$0xf] }
  0x43   :  { %v8107_v6 = vld [vmem:[#allocation2 + $0x580] sm:$0xf]  ;;  %v11355_v8 = vld [vmem:[#allocation2 + $0x58c] sm:$0xf0]  ;;  %v7980_v13 = vor.u32 %v11323_v5, %v7979_v1  ;;  %1743 = vmatpush.bf16.msrb.mxu2 %v8252_v4  ;;  %v11205_v1 = vld [vmem:[#allocation2 + $0xe4] sm:$0xf] }
  0x44   :  { %v8235_v9 = vld [vmem:[#allocation2 + $0x680] sm:$0xf]  ;;  %v11387_v10 = vld [vmem:[#allocation2 + $0x68c] sm:$0xf0]  ;;  %v8108_v14 = vor.u32 %v11355_v8, %v8107_v6  ;;  %1756 = vmatpush.bf16.msrb.mxu3 %v8380_v7  ;;  %v7645_v5 = vld [vmem:[#allocation2 + $0x1f0] sm:$0xf0] }
  0x45   :  { %v8363_v11 = vld [vmem:[#allocation2 + $0x780] sm:$0xf]  ;;  %v11419_v12 = vld [vmem:[#allocation2 + $0x78c] sm:$0xf0]  ;;  %v8236_v15 = vor.u32 %v11387_v10, %v8235_v9  ;;  %1718 = vmatpush.bf16.msrb.mxu0 %v7980_v13  ;;  %v11269_v6 = vld [vmem:[#allocation2 + $0x2e4] sm:$0xf]  ;;  %v7520_v13 = vor.u32 %v11205_v1, %v7517_v2 }
  0x46   :  { %v7963_v16 = vld [vmem:[#allocation2 + $0x460] sm:$0xf]  ;;  %v11319_v17 = vld [vmem:[#allocation2 + $0x46c] sm:$0xf0]  ;;  %v8364_v19 = vor.u32 %v11419_v12, %v8363_v11  ;;  %1731 = vmatpush.bf16.msrb.mxu1 %v8108_v14  ;;  %v7773_v7 = vld [vmem:[#allocation2 + $0x2f0] sm:$0xf0]  ;;  %v7648_v14 = vor.u32 %v11237_v3, %v7645_v5 }
  0x47   :  { %v8091_v18 = vld [vmem:[#allocation2 + $0x560] sm:$0xf]  ;;  %v11351_v20 = vld [vmem:[#allocation2 + $0x56c] sm:$0xf0]  ;;  %v7964_v26 = vor.u32 %v11319_v17, %v7963_v16  ;;  %1744 = vmatpush.bf16.msrb.mxu2 %v8236_v15  ;;  %v11301_v10 = vld [vmem:[#allocation2 + $0x3e4] sm:$0xf]  ;;  %v7776_v15 = vor.u32 %v11269_v6, %v7773_v7 }
  0x48   :  { %v8219_v21 = vld [vmem:[#allocation2 + $0x660] sm:$0xf]  ;;  %v11383_v22 = vld [vmem:[#allocation2 + $0x66c] sm:$0xf0]  ;;  %v8092_v30 = vor.u32 %v11351_v20, %v8091_v18  ;;  %1757 = vmatpush.bf16.msrb.mxu3 %v8364_v19  ;;  %v7901_v11 = vld [vmem:[#allocation2 + $0x3f0] sm:$0xf0] }
  0x49   :  { %v8347_v23 = vld [vmem:[#allocation2 + $0x760] sm:$0xf]  ;;  %v11415_v24 = vld [vmem:[#allocation2 + $0x76c] sm:$0xf0]  ;;  %v8220_v31 = vor.u32 %v11383_v22, %v8219_v21  ;;  %1719 = vmatpush.bf16.msrb.mxu0 %v7964_v26  ;;  %v11201_v16 = vld [vmem:[#allocation2 + $0xc4] sm:$0xf]  ;;  %v7904_v19 = vor.u32 %v11301_v10, %v7901_v11 }
  0x4a   :  { %v7947_v25 = vld [vmem:[#allocation2 + $0x440] sm:$0xf]  ;;  %v12292_v27 = vld [vmem:[#allocation1 + $0x12] sm:$0xff]  ;;  %v12296_v29 = vld [vmem:[#allocation1 + $0x1b] sm:$0xff]  ;;  %v8348_v35 = vor.u32 %v11415_v24, %v8347_v23  ;;  %1732 = vmatpush.bf16.msrb.mxu1 %v8092_v30 }
  0x4b   :  { %v11315_v32 = vld [vmem:[#allocation2 + $0x44c] sm:$0xf0]  ;;  %v8075_v33 = vld [vmem:[#allocation2 + $0x540] sm:$0xf]  ;;  %1697 = vmatmul.bf16.vlgmr.msra.gmra.mxu2 %v12292_v27  ;;  %1710 = vmatmul.bf16.vlgmr.msra.gmra.mxu3 %v12296_v29  ;;  %v7501_v17 = vld [vmem:[#allocation2 + $0xd0] sm:$0xf0] }
  0x4c   :  { %v12298_v34 = vld [vmem:[#allocation1 + $0x9] sm:$0xff]  ;;  %v11347_v36 = vld [vmem:[#allocation2 + $0x54c] sm:$0xf0]  ;;  %v7948_v41 = vor.u32 %v11315_v32, %v7947_v25  ;;  %1745 = vmatpush.bf16.msrb.mxu2 %v8220_v31  ;;  %1758 = vmatpush.bf16.msrb.mxu3 %v8348_v35  ;;  %v7629_v20 = vld [vmem:[#allocation2 + $0x1d0] sm:$0xf0]  ;;  %v7504_v26 = vor.u32 %v11201_v16, %v7501_v17 }
  0x4d   :  { %v8203_v37 = vld [vmem:[#allocation2 + $0x640] sm:$0xf]  ;;  %v11379_v38 = vld [vmem:[#allocation2 + $0x64c] sm:$0xf0]  ;;  %1684 = vmatmul.bf16.vlgmr.msra.gmra.mxu1 %v12298_v34  ;;  %v8076_v42 = vor.u32 %v11347_v36, %v8075_v33  ;;  %v11233_v18 = vld [vmem:[#allocation2 + $0x1c4] sm:$0xf] }
  0x4e   :  { %v8331_v39 = vld [vmem:[#allocation2 + $0x740] sm:$0xf]  ;;  %v11411_v40 = vld [vmem:[#allocation2 + $0x74c] sm:$0xf0]  ;;  %v8204_v43 = vor.u32 %v11379_v38, %v8203_v37  ;;  %1720 = vmatpush.bf16.msrb.mxu0 %v7948_v41  ;;  %v11265_v21 = vld [vmem:[#allocation2 + $0x2c4] sm:$0xf]  ;;  %v7632_v33 = vor.u32 %v11233_v18, %v7629_v20 }
  0x4f   :  { %v7931_v44 = vld [vmem:[#allocation2 + $0x420] sm:$0xf]  ;;  %v11311_v45 = vld [vmem:[#allocation2 + $0x42c] sm:$0xf0]  ;;  %v8332_v47 = vor.u32 %v11411_v40, %v8331_v39  ;;  %1733 = vmatpush.bf16.msrb.mxu1 %v8076_v42  ;;  %v7757_v22 = vld [vmem:[#allocation2 + $0x2d0] sm:$0xf0] }
  0x50   :  { %v8059_v46 = vld [vmem:[#allocation2 + $0x520] sm:$0xf]  ;;  %v11343_v48 = vld [vmem:[#allocation2 + $0x52c] sm:$0xf0]  ;;  %v7932_v53 = vor.u32 %v11311_v45, %v7931_v44  ;;  %1746 = vmatpush.bf16.msrb.mxu2 %v8204_v43  ;;  %v11297_v23 = vld [vmem:[#allocation2 + $0x3c4] sm:$0xf]  ;;  %v7760_v35 = vor.u32 %v11265_v21, %v7757_v22 }
  0x51   :  { %v8187_v49 = vld [vmem:[#allocation2 + $0x620] sm:$0xf]  ;;  %v11375_v50 = vld [vmem:[#allocation2 + $0x62c] sm:$0xf0]  ;;  %v8060_v56 = vor.u32 %v11343_v48, %v8059_v46  ;;  %1759 = vmatpush.bf16.msrb.mxu3 %v8332_v47  ;;  %v7885_v24 = vld [vmem:[#allocation2 + $0x3d0] sm:$0xf0] }
  0x52   :  { %v8315_v51 = vld [vmem:[#allocation2 + $0x720] sm:$0xf]  ;;  %v11407_v52 = vld [vmem:[#allocation2 + $0x72c] sm:$0xf0]  ;;  %v8188_v57 = vor.u32 %v11375_v50, %v8187_v49  ;;  %1721 = vmatpush.bf16.msrb.mxu0 %v7932_v53  ;;  %v11197_v30 = vld [vmem:[#allocation2 + $0xa4] sm:$0xf]  ;;  %v7888_v39 = vor.u32 %v11297_v23, %v7885_v24 }
  0x53   :  { %v7915_v54 = vld [vmem:[#allocation2 + $0x400] sm:$0xf]  ;;  %v11307_v55 = vld [vmem:[#allocation2 + $0x40c] sm:$0xf0]  ;;  %v8316_v61 = vor.u32 %v11407_v52, %v8315_v51  ;;  %1734 = vmatpush.bf16.msrb.mxu1 %v8060_v56  ;;  %v12308_v32 = vld [vmem:[#allocation1 + $0x3f] sm:$0xff] }
  0x54   :  { %v8043_v58 = vld [vmem:[#allocation2 + $0x500] sm:$0xf]  ;;  %v11339_v59 = vld [vmem:[#allocation2 + $0x50c] sm:$0xf0]  ;;  %v7916_v4 = vor.u32 %v11307_v55, %v7915_v54  ;;  %1747 = vmatpush.bf16.msrb.mxu2 %v8188_v57  ;;  %v7485_v36 = vld [vmem:[#allocation2 + $0xb0] sm:$0xf0] }
  0x55   :  { %v8171_v60 = vld [vmem:[#allocation2 + $0x600] sm:$0xf]  ;;  %v11371_v62 = vld [vmem:[#allocation2 + $0x60c] sm:$0xf0]  ;;  %v8044_v8 = vor.u32 %v11339_v59, %v8043_v58  ;;  %1760 = vmatpush.bf16.msrb.mxu3 %v8316_v61  ;;  %v11229_v37 = vld [vmem:[#allocation2 + $0x1a4] sm:$0xf]  ;;  %v7488_v45 = vor.u32 %v11197_v30, %v7485_v36 }
  0x56   :  { %v8299_v63 = vld [vmem:[#allocation2 + $0x700] sm:$0xf]  ;;  %v11403_v0 = vld [vmem:[#allocation2 + $0x70c] sm:$0xf0]  ;;  %v8172_v9 = vor.u32 %v11371_v62, %v8171_v60  ;;  %1722 = vmatpush.bf16.msrb.mxu0 %v7916_v4  ;;  %v12310_v38 = vld [vmem:[#allocation1 + $0x2d] sm:$0xff] }
  0x57   :  { %v8300_v12 = vor.u32 %v11403_v0, %v8299_v63  ;;  %1735 = vmatpush.bf16.msrb.mxu1 %v8044_v8  ;;  %v12304_v25 = vld [vmem:[#allocation1 + $0x36] sm:$0xff]  ;;  %v12306_v31 = vld [vmem:[#allocation1 + $0x24] sm:$0xff]  ;;  %v11261_v41 = vld [vmem:[#allocation2 + $0x2a4] sm:$0xf] }
  0x58   :  { %1748 = vmatpush.bf16.msrb.mxu2 %v8172_v9  ;;  %v7613_v40 = vld [vmem:[#allocation2 + $0x1b0] sm:$0xf0]  ;;  %v11293_v43 = vld [vmem:[#allocation2 + $0x3a4] sm:$0xf] }
  0x59   :  { %1761 = vmatpush.bf16.msrb.mxu3 %v8300_v12  ;;  %v7741_v42 = vld [vmem:[#allocation2 + $0x2b0] sm:$0xf0]  ;;  %1723 = vmatmul.bf16.vlgmr.msrb.gmra.mxu0 %v12306_v31  ;;  %v7616_v46 = vor.u32 %v11229_v37, %v7613_v40  ;;  %v11193_v48 = vld [vmem:[#allocation2 + $0x84] sm:$0xf] }
  0x5a   :  { %1767 = vmatpush.bf16.msra.mxu0 %v7520_v13  ;;  %v7869_v44 = vld [vmem:[#allocation2 + $0x3b0] sm:$0xf0]  ;;  %v7744_v47 = vor.u32 %v11261_v41, %v7741_v42  ;;  %v11225_v50 = vld [vmem:[#allocation2 + $0x184] sm:$0xf] }
  0x5b   :  { %1780 = vmatpush.bf16.msra.mxu1 %v7648_v14  ;;  %1749 = vmatmul.bf16.vlgmr.msrb.gmra.mxu2 %v12304_v25  ;;  %v7469_v49 = vld [vmem:[#allocation2 + $0x90] sm:$0xf0]  ;;  %v7872_v51 = vor.u32 %v11293_v43, %v7869_v44  ;;  %v11257_v53 = vld [vmem:[#allocation2 + $0x284] sm:$0xf] }
  0x5c   :  { %1793 = vmatpush.bf16.msra.mxu2 %v7776_v15  ;;  %1762 = vmatmul.bf16.vlgmr.msrb.gmra.mxu3 %v12308_v32  ;;  %v7597_v52 = vld [vmem:[#allocation2 + $0x190] sm:$0xf0]  ;;  %v11289_v55 = vld [vmem:[#allocation2 + $0x384] sm:$0xf]  ;;  %v7472_v57 = vor.u32 %v11193_v48, %v7469_v49 }
  0x5d   :  { %1806 = vmatpush.bf16.msra.mxu3 %v7904_v19  ;;  %1736 = vmatmul.bf16.vlgmr.msrb.gmra.mxu1 %v12310_v38  ;;  %v7725_v54 = vld [vmem:[#allocation2 + $0x290] sm:$0xf0]  ;;  %v7600_v58 = vor.u32 %v11225_v50, %v7597_v52  ;;  %v11189_v60 = vld [vmem:[#allocation2 + $0x64] sm:$0xf] }
  0x5e   :  { %1768 = vmatpush.bf16.msra.mxu0 %v7504_v26  ;;  %v7853_v56 = vld [vmem:[#allocation2 + $0x390] sm:$0xf0]  ;;  %v7728_v59 = vor.u32 %v11257_v53, %v7725_v54  ;;  %v11221_v62 = vld [vmem:[#allocation2 + $0x164] sm:$0xf] }
  0x5f   :  { %1781 = vmatpush.bf16.msra.mxu1 %v7632_v33  ;;  %v7453_v61 = vld [vmem:[#allocation2 + $0x70] sm:$0xf0]  ;;  %v7856_v63 = vor.u32 %v11289_v55, %v7853_v56  ;;  %v11253_v1 = vld [vmem:[#allocation2 + $0x264] sm:$0xf] }
  0x60   :  { %1794 = vmatpush.bf16.msra.mxu2 %v7760_v35  ;;  %v7581_v0 = vld [vmem:[#allocation2 + $0x170] sm:$0xf0]  ;;  %v11285_v3 = vld [vmem:[#allocation2 + $0x364] sm:$0xf]  ;;  %v7456_v5 = vor.u32 %v11189_v60, %v7453_v61 }
  0x61   :  { %1807 = vmatpush.bf16.msra.mxu3 %v7888_v39  ;;  %v7709_v2 = vld [vmem:[#allocation2 + $0x270] sm:$0xf0]  ;;  %v7584_v6 = vor.u32 %v11221_v62, %v7581_v0  ;;  %v11185_v8 = vld [vmem:[#allocation2 + $0x44] sm:$0xf] }
  0x62   :  { %1769 = vmatpush.bf16.msra.mxu0 %v7488_v45  ;;  %v7837_v4 = vld [vmem:[#allocation2 + $0x370] sm:$0xf0]  ;;  %v7712_v7 = vor.u32 %v11253_v1, %v7709_v2  ;;  %v11217_v10 = vld [vmem:[#allocation2 + $0x144] sm:$0xf] }
  0x63   :  { %1782 = vmatpush.bf16.msra.mxu1 %v7616_v46  ;;  %v7437_v9 = vld [vmem:[#allocation2 + $0x50] sm:$0xf0]  ;;  %v7840_v11 = vor.u32 %v11285_v3, %v7837_v4  ;;  %v11249_v13 = vld [vmem:[#allocation2 + $0x244] sm:$0xf] }
  0x64   :  { %1795 = vmatpush.bf16.msra.mxu2 %v7744_v47  ;;  %v7565_v12 = vld [vmem:[#allocation2 + $0x150] sm:$0xf0]  ;;  %v11281_v15 = vld [vmem:[#allocation2 + $0x344] sm:$0xf]  ;;  %v7440_v17 = vor.u32 %v11185_v8, %v7437_v9 }
  0x65   :  { %1808 = vmatpush.bf16.msra.mxu3 %v7872_v51  ;;  %v7693_v14 = vld [vmem:[#allocation2 + $0x250] sm:$0xf0]  ;;  %v7568_v18 = vor.u32 %v11217_v10, %v7565_v12  ;;  %v11181_v20 = vld [vmem:[#allocation2 + $0x24] sm:$0xf] }
  0x66   :  { %1770 = vmatpush.bf16.msra.mxu0 %v7472_v57  ;;  %v7821_v16 = vld [vmem:[#allocation2 + $0x350] sm:$0xf0]  ;;  %v7696_v19 = vor.u32 %v11249_v13, %v7693_v14  ;;  %v11213_v22 = vld [vmem:[#allocation2 + $0x124] sm:$0xf] }
  0x67   :  { %1783 = vmatpush.bf16.msra.mxu1 %v7600_v58  ;;  %v7421_v21 = vld [vmem:[#allocation2 + $0x30] sm:$0xf0]  ;;  %v7824_v23 = vor.u32 %v11281_v15, %v7821_v16  ;;  %v11245_v26 = vld [vmem:[#allocation2 + $0x224] sm:$0xf] }
  0x68   :  { %1796 = vmatpush.bf16.msra.mxu2 %v7728_v59  ;;  %v7549_v24 = vld [vmem:[#allocation2 + $0x130] sm:$0xf0]  ;;  %v11277_v33 = vld [vmem:[#allocation2 + $0x324] sm:$0xf]  ;;  %v7424_v36 = vor.u32 %v11181_v20, %v7421_v21 }
  0x69   :  { %1809 = vmatpush.bf16.msra.mxu3 %v7856_v63  ;;  %v7677_v30 = vld [vmem:[#allocation2 + $0x230] sm:$0xf0]  ;;  %v11177_v37 = vld [vmem:[#allocation2 + $0x4] sm:$0xf]  ;;  %v7552_v41 = vor.u32 %v11213_v22, %v7549_v24 }
  0x6a   :  { %1771 = vmatpush.bf16.msra.mxu0 %v7456_v5  ;;  %v7805_v35 = vld [vmem:[#allocation2 + $0x330] sm:$0xf0]  ;;  %v11209_v40 = vld [vmem:[#allocation2 + $0x104] sm:$0xf]  ;;  %v7680_v42 = vor.u32 %v11245_v26, %v7677_v30 }
  0x6b   :  { %1784 = vmatpush.bf16.msra.mxu1 %v7584_v6  ;;  %v7405_v39 = vld [vmem:[#allocation2 + $0x10] sm:$0xf0]  ;;  %v11241_v44 = vld [vmem:[#allocation2 + $0x204] sm:$0xf]  ;;  %v7808_v46 = vor.u32 %v11277_v33, %v7805_v35 }
  0x6c   :  { %1797 = vmatpush.bf16.msra.mxu2 %v7712_v7  ;;  %v7533_v43 = vld [vmem:[#allocation2 + $0x110] sm:$0xf0]  ;;  %v11273_v47 = vld [vmem:[#allocation2 + $0x304] sm:$0xf]  ;;  %v7408_v52 = vor.u32 %v11177_v37, %v7405_v39 }
  0x6d   :  { %1810 = vmatpush.bf16.msra.mxu3 %v7840_v11  ;;  %v7661_v45 = vld [vmem:[#allocation2 + $0x210] sm:$0xf0]  ;;  %v11333_v49 = vld [vmem:[#allocation2 + $0x4e4] sm:$0xf]  ;;  %v7536_v56 = vor.u32 %v11209_v40, %v7533_v43 }
  0x6e   :  { %1772 = vmatpush.bf16.msra.mxu0 %v7440_v17  ;;  %v7789_v48 = vld [vmem:[#allocation2 + $0x310] sm:$0xf0]  ;;  %v11365_v51 = vld [vmem:[#allocation2 + $0x5e4] sm:$0xf]  ;;  %v7664_v57 = vor.u32 %v11241_v44, %v7661_v45 }
  0x6f   :  { %1785 = vmatpush.bf16.msra.mxu1 %v7568_v18  ;;  %v8029_v50 = vld [vmem:[#allocation2 + $0x4f0] sm:$0xf0]  ;;  %v11397_v54 = vld [vmem:[#allocation2 + $0x6e4] sm:$0xf]  ;;  %v7792_v60 = vor.u32 %v11273_v47, %v7789_v48 }
  0x70   :  { %1798 = vmatpush.bf16.msra.mxu2 %v7696_v19  ;;  %v8157_v53 = vld [vmem:[#allocation2 + $0x5f0] sm:$0xf0]  ;;  %v11429_v58 = vld [vmem:[#allocation2 + $0x7e4] sm:$0xf]  ;;  %v8032_v61 = vor.u32 %v11333_v49, %v8029_v50 }
  0x71   :  { %1811 = vmatpush.bf16.msra.mxu3 %v7824_v23  ;;  %v8285_v55 = vld [vmem:[#allocation2 + $0x6f0] sm:$0xf0]  ;;  %v8160_v62 = vor.u32 %v11365_v51, %v8157_v53  ;;  %v11329_v0 = vld [vmem:[#allocation2 + $0x4c4] sm:$0xf] }
  0x72   :  { %1773 = vmatpush.bf16.msra.mxu0 %v7424_v36  ;;  %v8413_v59 = vld [vmem:[#allocation2 + $0x7f0] sm:$0xf0]  ;;  %v8288_v63 = vor.u32 %v11397_v54, %v8285_v55  ;;  %v11361_v2 = vld [vmem:[#allocation2 + $0x5c4] sm:$0xf] }
  0x73   :  { %1786 = vmatpush.bf16.msra.mxu1 %v7552_v41  ;;  %v8013_v1 = vld [vmem:[#allocation2 + $0x4d0] sm:$0xf0]  ;;  %v8416_v3 = vor.u32 %v11429_v58, %v8413_v59  ;;  %v11393_v5 = vld [vmem:[#allocation2 + $0x6c4] sm:$0xf] }
  0x74   :  { %1799 = vmatpush.bf16.msra.mxu2 %v7680_v42  ;;  %v8141_v4 = vld [vmem:[#allocation2 + $0x5d0] sm:$0xf0]  ;;  %v11425_v7 = vld [vmem:[#allocation2 + $0x7c4] sm:$0xf]  ;;  %v8016_v9 = vor.u32 %v11329_v0, %v8013_v1 }
  0x75   :  { %1812 = vmatpush.bf16.msra.mxu3 %v7808_v46  ;;  %v8269_v6 = vld [vmem:[#allocation2 + $0x6d0] sm:$0xf0]  ;;  %v8144_v10 = vor.u32 %v11361_v2, %v8141_v4  ;;  %v11325_v12 = vld [vmem:[#allocation2 + $0x4a4] sm:$0xf] }
  0x76   :  { %1774 = vmatpush.bf16.msra.mxu0 %v7408_v52  ;;  %v8397_v8 = vld [vmem:[#allocation2 + $0x7d0] sm:$0xf0]  ;;  %v8272_v11 = vor.u32 %v11393_v5, %v8269_v6  ;;  %v11357_v14 = vld [vmem:[#allocation2 + $0x5a4] sm:$0xf] }
  0x77   :  { %1787 = vmatpush.bf16.msra.mxu1 %v7536_v56  ;;  %v7997_v13 = vld [vmem:[#allocation2 + $0x4b0] sm:$0xf0]  ;;  %v8400_v15 = vor.u32 %v11425_v7, %v8397_v8  ;;  %v11389_v17 = vld [vmem:[#allocation2 + $0x6a4] sm:$0xf] }
  0x78   :  { %1800 = vmatpush.bf16.msra.mxu2 %v7664_v57  ;;  %v8125_v16 = vld [vmem:[#allocation2 + $0x5b0] sm:$0xf0]  ;;  %v11421_v19 = vld [vmem:[#allocation2 + $0x7a4] sm:$0xf]  ;;  %v8000_v21 = vor.u32 %v11325_v12, %v7997_v13 }
  0x79   :  { %1813 = vmatpush.bf16.msra.mxu3 %v7792_v60  ;;  %v8253_v18 = vld [vmem:[#allocation2 + $0x6b0] sm:$0xf0]  ;;  %1775 = vmatmul.bf16.vlgmr.msra.gmra.mxu0 %v12294_v28  ;;  %v8128_v22 = vor.u32 %v11357_v14, %v8125_v16  ;;  %v11321_v24 = vld [vmem:[#allocation2 + $0x484] sm:$0xf] }
  0x7a   :  { %1819 = vmatpush.bf16.msrb.mxu0 %v8032_v61  ;;  %v8381_v20 = vld [vmem:[#allocation2 + $0x7b0] sm:$0xf0]  ;;  %1788 = vmatmul.bf16.vlgmr.msra.gmra.mxu1 %v12298_v34  ;;  %v8256_v23 = vor.u32 %v11389_v17, %v8253_v18  ;;  %v11353_v30 = vld [vmem:[#allocation2 + $0x584] sm:$0xf] }
  0x7b   :  { %1832 = vmatpush.bf16.msrb.mxu1 %v8160_v62  ;;  %1801 = vmatmul.bf16.vlgmr.msra.gmra.mxu2 %v12292_v27  ;;  %v7981_v26 = vld [vmem:[#allocation2 + $0x490] sm:$0xf0]  ;;  %v8384_v33 = vor.u32 %v11421_v19, %v8381_v20  ;;  %v11385_v36 = vld [vmem:[#allocation2 + $0x684] sm:$0xf] }
  0x7c   :  { %1845 = vmatpush.bf16.msrb.mxu2 %v8288_v63  ;;  %1814 = vmatmul.bf16.vlgmr.msra.gmra.mxu3 %v12296_v29  ;;  %v8109_v35 = vld [vmem:[#allocation2 + $0x590] sm:$0xf0]  ;;  %v11417_v39 = vld [vmem:[#allocation2 + $0x784] sm:$0xf]  ;;  %v7984_v41 = vor.u32 %v11321_v24, %v7981_v26  ;;  %v7523_v26 = vld [vmem:[#allocation2 + $0xe8] sm:$0xf] }
  0x7d   :  { %1858 = vmatpush.bf16.msrb.mxu3 %v8416_v3  ;;  %v8237_v37 = vld [vmem:[#allocation2 + $0x690] sm:$0xf0]  ;;  %v8112_v42 = vor.u32 %v11353_v30, %v8109_v35  ;;  %v11317_v44 = vld [vmem:[#allocation2 + $0x464] sm:$0xf]  ;;  %v11208_v30 = vld [vmem:[#allocation2 + $0xf4] sm:$0xf0] }
  0x7e   :  { %1820 = vmatpush.bf16.msrb.mxu0 %v8016_v9  ;;  %v8365_v40 = vld [vmem:[#allocation2 + $0x790] sm:$0xf0]  ;;  %v8240_v43 = vor.u32 %v11385_v36, %v8237_v37  ;;  %v11349_v46 = vld [vmem:[#allocation2 + $0x564] sm:$0xf]  ;;  %v11240_v36 = vld [vmem:[#allocation2 + $0x1f4] sm:$0xf0] }
  0x7f   :  { %1833 = vmatpush.bf16.msrb.mxu1 %v8144_v10  ;;  %v7965_v45 = vld [vmem:[#allocation2 + $0x470] sm:$0xf0]  ;;  %v8368_v47 = vor.u32 %v11417_v39, %v8365_v40  ;;  %v11381_v49 = vld [vmem:[#allocation2 + $0x664] sm:$0xf]  ;;  %v7779_v37 = vld [vmem:[#allocation2 + $0x2e8] sm:$0xf] }
  0x80   :  { %1846 = vmatpush.bf16.msrb.mxu2 %v8272_v11  ;;  %v8093_v48 = vld [vmem:[#allocation2 + $0x570] sm:$0xf0]  ;;  %v11413_v51 = vld [vmem:[#allocation2 + $0x764] sm:$0xf]  ;;  %v7968_v53 = vor.u32 %v11317_v44, %v7965_v45  ;;  %v11272_v39 = vld [vmem:[#allocation2 + $0x2f4] sm:$0xf0]  ;;  %v7524_v45 = vor.u32 %v11208_v30, %v7523_v26 }
  0x81   :  { %1859 = vmatpush.bf16.msrb.mxu3 %v8400_v15  ;;  %v8221_v50 = vld [vmem:[#allocation2 + $0x670] sm:$0xf0]  ;;  %v8096_v54 = vor.u32 %v11349_v46, %v8093_v48  ;;  %v11313_v56 = vld [vmem:[#allocation2 + $0x444] sm:$0xf]  ;;  %v7507_v48 = vld [vmem:[#allocation2 + $0xc8] sm:$0xf] }
  0x82   :  { %1821 = vmatpush.bf16.msrb.mxu0 %v8000_v21  ;;  %v8349_v52 = vld [vmem:[#allocation2 + $0x770] sm:$0xf0]  ;;  %v8224_v55 = vor.u32 %v11381_v49, %v8221_v50  ;;  %v11345_v58 = vld [vmem:[#allocation2 + $0x544] sm:$0xf]  ;;  %v11204_v49 = vld [vmem:[#allocation2 + $0xd4] sm:$0xf0] }
  0x83   :  { %1834 = vmatpush.bf16.msrb.mxu1 %v8128_v22  ;;  %v7949_v57 = vld [vmem:[#allocation2 + $0x450] sm:$0xf0]  ;;  %v8352_v59 = vor.u32 %v11413_v51, %v8349_v52  ;;  %v11377_v61 = vld [vmem:[#allocation2 + $0x644] sm:$0xf]  ;;  %v7635_v50 = vld [vmem:[#allocation2 + $0x1c8] sm:$0xf] }
  0x84   :  { %1847 = vmatpush.bf16.msrb.mxu2 %v8256_v23  ;;  %v8077_v60 = vld [vmem:[#allocation2 + $0x550] sm:$0xf0]  ;;  %v11409_v63 = vld [vmem:[#allocation2 + $0x744] sm:$0xf]  ;;  %v7952_v1 = vor.u32 %v11313_v56, %v7949_v57  ;;  %v11236_v52 = vld [vmem:[#allocation2 + $0x1d4] sm:$0xf0]  ;;  %v7508_v57 = vor.u32 %v11204_v49, %v7507_v48 }
  0x85   :  { %1860 = vmatpush.bf16.msrb.mxu3 %v8384_v33  ;;  %v8205_v62 = vld [vmem:[#allocation2 + $0x650] sm:$0xf0]  ;;  %v8080_v2 = vor.u32 %v11345_v58, %v8077_v60  ;;  %v11309_v4 = vld [vmem:[#allocation2 + $0x424] sm:$0xf]  ;;  %v7651_v33 = vld [vmem:[#allocation2 + $0x1e8] sm:$0xf]  ;;  %v7636_v58 = vor.u32 %v11236_v52, %v7635_v50 }
  0x86   :  { %1822 = vmatpush.bf16.msrb.mxu0 %v7984_v41  ;;  %v8333_v0 = vld [vmem:[#allocation2 + $0x750] sm:$0xf0]  ;;  %v8208_v3 = vor.u32 %v11377_v61, %v8205_v62  ;;  %v11341_v6 = vld [vmem:[#allocation2 + $0x524] sm:$0xf]  ;;  %v7652_v46 = vor.u32 %v11240_v36, %v7651_v33  ;;  %v11300_v56 = vld [vmem:[#allocation2 + $0x3d4] sm:$0xf0] }
  0x87   :  { %1835 = vmatpush.bf16.msrb.mxu1 %v8112_v42  ;;  %v7933_v5 = vld [vmem:[#allocation2 + $0x430] sm:$0xf0]  ;;  %v8336_v7 = vor.u32 %v11409_v63, %v8333_v0  ;;  %v11373_v9 = vld [vmem:[#allocation2 + $0x624] sm:$0xf]  ;;  %v7907_v42 = vld [vmem:[#allocation2 + $0x3e8] sm:$0xf] }
  0x88   :  { %1848 = vmatpush.bf16.msrb.mxu2 %v8240_v43  ;;  %v8061_v8 = vld [vmem:[#allocation2 + $0x530] sm:$0xf0]  ;;  %v11405_v11 = vld [vmem:[#allocation2 + $0x724] sm:$0xf]  ;;  %v7936_v13 = vor.u32 %v11309_v4, %v7933_v5  ;;  %v11304_v43 = vld [vmem:[#allocation2 + $0x3f4] sm:$0xf0] }
  0x89   :  { %1861 = vmatpush.bf16.msrb.mxu3 %v8368_v47  ;;  %v8189_v10 = vld [vmem:[#allocation2 + $0x630] sm:$0xf0]  ;;  %v11305_v14 = vld [vmem:[#allocation2 + $0x404] sm:$0xf]  ;;  %v8064_v16 = vor.u32 %v11341_v6, %v8061_v8  ;;  %v7780_v47 = vor.u32 %v11272_v39, %v7779_v37  ;;  %v7908_v51 = vor.u32 %v11304_v43, %v7907_v42  ;;  %v7491_v60 = vld [vmem:[#allocation2 + $0xa8] sm:$0xf] }
  0x8a   :  { %1823 = vmatpush.bf16.msrb.mxu0 %v7968_v53  ;;  %v8317_v12 = vld [vmem:[#allocation2 + $0x730] sm:$0xf0]  ;;  %v8192_v17 = vor.u32 %v11373_v9, %v8189_v10  ;;  %v11337_v18 = vld [vmem:[#allocation2 + $0x504] sm:$0xf]  ;;  %v7763_v53 = vld [vmem:[#allocation2 + $0x2c8] sm:$0xf] }
  0x8b   :  { %1836 = vmatpush.bf16.msrb.mxu1 %v8096_v54  ;;  %v7917_v15 = vld [vmem:[#allocation2 + $0x410] sm:$0xf0]  ;;  %v11369_v20 = vld [vmem:[#allocation2 + $0x604] sm:$0xf]  ;;  %v8320_v21 = vor.u32 %v11405_v11, %v8317_v12  ;;  %v11268_v54 = vld [vmem:[#allocation2 + $0x2d4] sm:$0xf0] }
  0x8c   :  { %1849 = vmatpush.bf16.msrb.mxu2 %v8224_v55  ;;  %v8045_v19 = vld [vmem:[#allocation2 + $0x510] sm:$0xf0]  ;;  %v11401_v23 = vld [vmem:[#allocation2 + $0x704] sm:$0xf]  ;;  %v7920_v35 = vor.u32 %v11305_v14, %v7917_v15  ;;  %v7891_v55 = vld [vmem:[#allocation2 + $0x3c8] sm:$0xf] }
  0x8d   :  { %1862 = vmatpush.bf16.msrb.mxu3 %v8352_v59  ;;  %v8173_v22 = vld [vmem:[#allocation2 + $0x610] sm:$0xf0]  ;;  %v8048_v40 = vor.u32 %v11337_v18, %v8045_v19  ;;  %v7764_v59 = vor.u32 %v11268_v54, %v7763_v53  ;;  %v11200_v61 = vld [vmem:[#allocation2 + $0xb4] sm:$0xf0]  ;;  %v7619_v62 = vld [vmem:[#allocation2 + $0x1a8] sm:$0xf]  ;;  %v7892_v63 = vor.u32 %v11300_v56, %v7891_v55 }
  0x8e   :  { %1824 = vmatpush.bf16.msrb.mxu0 %v7952_v1  ;;  %v8301_v24 = vld [vmem:[#allocation2 + $0x710] sm:$0xf0]  ;;  %v8176_v41 = vor.u32 %v11369_v20, %v8173_v22  ;;  %v11232_v0 = vld [vmem:[#allocation2 + $0x1b4] sm:$0xf0]  ;;  %v7747_v1 = vld [vmem:[#allocation2 + $0x2a8] sm:$0xf]  ;;  %v7492_v5 = vor.u32 %v11200_v61, %v7491_v60 }
  0x8f   :  { %1837 = vmatpush.bf16.msrb.mxu1 %v8080_v2  ;;  %v8304_v44 = vor.u32 %v11401_v23, %v8301_v24  ;;  %v11264_v2 = vld [vmem:[#allocation2 + $0x2b4] sm:$0xf0]  ;;  %v7620_v6 = vor.u32 %v11232_v0, %v7619_v62  ;;  %v7475_v8 = vld [vmem:[#allocation2 + $0x88] sm:$0xf] }
  0x90   :  { %1850 = vmatpush.bf16.msrb.mxu2 %v8208_v3  ;;  %v7875_v3 = vld [vmem:[#allocation2 + $0x3a8] sm:$0xf]  ;;  %v11296_v4 = vld [vmem:[#allocation2 + $0x3b4] sm:$0xf0] }
  0x91   :  { %1863 = vmatpush.bf16.msrb.mxu3 %v8336_v7  ;;  %v7748_v7 = vor.u32 %v11264_v2, %v7747_v1  ;;  %v11196_v9 = vld [vmem:[#allocation2 + $0x94] sm:$0xf0]  ;;  %v7876_v10 = vor.u32 %v11296_v4, %v7875_v3  ;;  %v7731_v12 = vld [vmem:[#allocation2 + $0x288] sm:$0xf] }
  0x92   :  { %1825 = vmatpush.bf16.msrb.mxu0 %v7936_v13  ;;  %v11228_v11 = vld [vmem:[#allocation2 + $0x194] sm:$0xf0]  ;;  %v7859_v14 = vld [vmem:[#allocation2 + $0x388] sm:$0xf] }
  0x93   :  { %1838 = vmatpush.bf16.msrb.mxu1 %v8064_v16  ;;  %v11260_v13 = vld [vmem:[#allocation2 + $0x294] sm:$0xf0]  ;;  %v7459_v16 = vld [vmem:[#allocation2 + $0x68] sm:$0xf] }
  0x94   :  { %1851 = vmatpush.bf16.msrb.mxu2 %v8192_v17  ;;  %v11192_v17 = vld [vmem:[#allocation2 + $0x74] sm:$0xf0]  ;;  %v7587_v18 = vld [vmem:[#allocation2 + $0x168] sm:$0xf] }
  0x95   :  { %1864 = vmatpush.bf16.msrb.mxu3 %v8320_v21  ;;  %v11224_v20 = vld [vmem:[#allocation2 + $0x174] sm:$0xf0]  ;;  %v7715_v21 = vld [vmem:[#allocation2 + $0x268] sm:$0xf]  ;;  %v7460_v26 = vor.u32 %v11192_v17, %v7459_v16 }
  0x96   :  { %1826 = vmatpush.bf16.msrb.mxu0 %v7920_v35  ;;  %v11256_v22 = vld [vmem:[#allocation2 + $0x274] sm:$0xf0]  ;;  %v7843_v23 = vld [vmem:[#allocation2 + $0x368] sm:$0xf]  ;;  %v7588_v30 = vor.u32 %v11224_v20, %v7587_v18 }
  0x97   :  { %1839 = vmatpush.bf16.msrb.mxu1 %v8048_v40  ;;  %v11288_v24 = vld [vmem:[#allocation2 + $0x374] sm:$0xf0]  ;;  %v7716_v33 = vor.u32 %v11256_v22, %v7715_v21  ;;  %v7443_v35 = vld [vmem:[#allocation2 + $0x48] sm:$0xf] }
  0x98   :  { %1852 = vmatpush.bf16.msrb.mxu2 %v8176_v41  ;;  %v11188_v36 = vld [vmem:[#allocation2 + $0x54] sm:$0xf0]  ;;  %v7571_v37 = vld [vmem:[#allocation2 + $0x148] sm:$0xf]  ;;  %v7844_v39 = vor.u32 %v11288_v24, %v7843_v23 }
  0x99   :  { %1865 = vmatpush.bf16.msrb.mxu3 %v8304_v44  ;;  %1827 = vmatmul.bf16.vlgmr.msrb.gmra.mxu0 %v12306_v31  ;;  %v11292_v31 = vld [vmem:[#allocation2 + $0x394] sm:$0xf0]  ;;  %v7699_v41 = vld [vmem:[#allocation2 + $0x248] sm:$0xf] }
  0x9a   :  { %1871 = vmatpush.bf16.msra.mxu0 %v7524_v45  ;;  %1840 = vmatmul.bf16.vlgmr.msrb.gmra.mxu1 %v12310_v38  ;;  %v7732_v38 = vor.u32 %v11260_v13, %v7731_v12  ;;  %v7860_v19 = vor.u32 %v11292_v31, %v7859_v14  ;;  %v11220_v40 = vld [vmem:[#allocation2 + $0x154] sm:$0xf0]  ;;  %v7827_v43 = vld [vmem:[#allocation2 + $0x348] sm:$0xf]  ;;  %v7444_v45 = vor.u32 %v11188_v36, %v7443_v35 }
  0x9b   :  { %1884 = vmatpush.bf16.msra.mxu1 %v7652_v46  ;;  %1853 = vmatmul.bf16.vlgmr.msrb.gmra.mxu2 %v12304_v25  ;;  %v7603_v25 = vld [vmem:[#allocation2 + $0x188] sm:$0xf]  ;;  %v11252_v42 = vld [vmem:[#allocation2 + $0x254] sm:$0xf0]  ;;  %v7572_v46 = vor.u32 %v11220_v40, %v7571_v37 }
  0x9c   :  { %1897 = vmatpush.bf16.msra.mxu2 %v7780_v47  ;;  %1866 = vmatmul.bf16.vlgmr.msrb.gmra.mxu3 %v12308_v32  ;;  %v7476_v32 = vor.u32 %v11196_v9, %v7475_v8  ;;  %v7604_v15 = vor.u32 %v11228_v11, %v7603_v25  ;;  %v11284_v44 = vld [vmem:[#allocation2 + $0x354] sm:$0xf0]  ;;  %v7700_v47 = vor.u32 %v11252_v42, %v7699_v41  ;;  %v7427_v48 = vld [vmem:[#allocation2 + $0x28] sm:$0xf] }
  0x9d   :  { %1910 = vmatpush.bf16.msra.mxu3 %v7908_v51  ;;  %v11184_v49 = vld [vmem:[#allocation2 + $0x34] sm:$0xf0]  ;;  %v7555_v50 = vld [vmem:[#allocation2 + $0x128] sm:$0xf]  ;;  %v7828_v51 = vor.u32 %v11284_v44, %v7827_v43 }
  0x9e   :  { %1872 = vmatpush.bf16.msra.mxu0 %v7508_v57  ;;  %v11216_v52 = vld [vmem:[#allocation2 + $0x134] sm:$0xf0]  ;;  %v7683_v53 = vld [vmem:[#allocation2 + $0x228] sm:$0xf]  ;;  %v7428_v57 = vor.u32 %v11184_v49, %v7427_v48 }
  0x9f   :  { %1885 = vmatpush.bf16.msra.mxu1 %v7636_v58  ;;  %v11248_v54 = vld [vmem:[#allocation2 + $0x234] sm:$0xf0]  ;;  %v7811_v55 = vld [vmem:[#allocation2 + $0x328] sm:$0xf]  ;;  %v7556_v60 = vor.u32 %v11216_v52, %v7555_v50 }
  0xa0   :  { %1898 = vmatpush.bf16.msra.mxu2 %v7764_v59  ;;  %v11280_v56 = vld [vmem:[#allocation2 + $0x334] sm:$0xf0]  ;;  %v7411_v58 = vld [vmem:[#allocation2 + $0x8] sm:$0xf]  ;;  %v7684_v61 = vor.u32 %v11248_v54, %v7683_v53 }
  0xa1   :  { %1911 = vmatpush.bf16.msra.mxu3 %v7892_v63  ;;  %v11180_v59 = vld [vmem:[#allocation2 + $0x14] sm:$0xf0]  ;;  %v7539_v62 = vld [vmem:[#allocation2 + $0x108] sm:$0xf]  ;;  %v7812_v1 = vor.u32 %v11280_v56, %v7811_v55 }
  0xa2   :  { %1873 = vmatpush.bf16.msra.mxu0 %v7492_v5  ;;  %v11212_v63 = vld [vmem:[#allocation2 + $0x114] sm:$0xf0]  ;;  %v7667_v0 = vld [vmem:[#allocation2 + $0x208] sm:$0xf]  ;;  %v7412_v8 = vor.u32 %v11180_v59, %v7411_v58 }
  0xa3   :  { %1886 = vmatpush.bf16.msra.mxu1 %v7620_v6  ;;  %v11244_v2 = vld [vmem:[#allocation2 + $0x214] sm:$0xf0]  ;;  %v7795_v3 = vld [vmem:[#allocation2 + $0x308] sm:$0xf]  ;;  %v7540_v11 = vor.u32 %v11212_v63, %v7539_v62 }
  0xa4   :  { %1899 = vmatpush.bf16.msra.mxu2 %v7748_v7  ;;  %v11276_v4 = vld [vmem:[#allocation2 + $0x314] sm:$0xf0]  ;;  %v8035_v5 = vld [vmem:[#allocation2 + $0x4e8] sm:$0xf]  ;;  %v7668_v12 = vor.u32 %v11244_v2, %v7667_v0 }
  0xa5   :  { %1912 = vmatpush.bf16.msra.mxu3 %v7876_v10  ;;  %v11336_v6 = vld [vmem:[#allocation2 + $0x4f4] sm:$0xf0]  ;;  %v8163_v7 = vld [vmem:[#allocation2 + $0x5e8] sm:$0xf]  ;;  %v7796_v31 = vor.u32 %v11276_v4, %v7795_v3 }
  0xa6   :  { %1874 = vmatpush.bf16.msra.mxu0 %v7476_v32  ;;  %v11368_v9 = vld [vmem:[#allocation2 + $0x5f4] sm:$0xf0]  ;;  %v8291_v25 = vld [vmem:[#allocation2 + $0x6e8] sm:$0xf]  ;;  %v8036_v32 = vor.u32 %v11336_v6, %v8035_v5 }
  0xa7   :  { %1887 = vmatpush.bf16.msra.mxu1 %v7604_v15  ;;  %v11400_v10 = vld [vmem:[#allocation2 + $0x6f4] sm:$0xf0]  ;;  %v8419_v13 = vld [vmem:[#allocation2 + $0x7e8] sm:$0xf]  ;;  %v8164_v15 = vor.u32 %v11368_v9, %v8163_v7 }
  0xa8   :  { %1900 = vmatpush.bf16.msra.mxu2 %v7732_v38  ;;  %v11432_v14 = vld [vmem:[#allocation2 + $0x7f4] sm:$0xf0]  ;;  %v8292_v38 = vor.u32 %v11400_v10, %v8291_v25  ;;  %v8019_v16 = vld [vmem:[#allocation2 + $0x4c8] sm:$0xf]  ;;  %v12328_v10 = vld [vmem:[#allocation4] sm:$0xf] }
  0xa9   :  { %1913 = vmatpush.bf16.msra.mxu3 %v7860_v19  ;;  %v11332_v17 = vld [vmem:[#allocation2 + $0x4d4] sm:$0xf0]  ;;  %v8147_v18 = vld [vmem:[#allocation2 + $0x5c8] sm:$0xf]  ;;  %v8420_v19 = vor.u32 %v11432_v14, %v8419_v13 }
  0xaa   :  { %1875 = vmatpush.bf16.msra.mxu0 %v7460_v26  ;;  %v11364_v20 = vld [vmem:[#allocation2 + $0x5d4] sm:$0xf0]  ;;  %v8275_v21 = vld [vmem:[#allocation2 + $0x6c8] sm:$0xf]  ;;  %v8020_v26 = vor.u32 %v11332_v17, %v8019_v16  ;;  %v357_v16 = vperm.slane %v12328_v10, 0 }
  0xab   :  { %1888 = vmatpush.bf16.msra.mxu1 %v7588_v30  ;;  %v11396_v22 = vld [vmem:[#allocation2 + $0x6d4] sm:$0xf0]  ;;  %v8403_v23 = vld [vmem:[#allocation2 + $0x7c8] sm:$0xf]  ;;  %v8148_v30 = vor.u32 %v11364_v20, %v8147_v18 }
  0xac   :  { %1901 = vmatpush.bf16.msra.mxu2 %v7716_v33  ;;  %v11428_v24 = vld [vmem:[#allocation2 + $0x7d4] sm:$0xf0]  ;;  %v8276_v33 = vor.u32 %v11396_v22, %v8275_v21  ;;  %v8003_v35 = vld [vmem:[#allocation2 + $0x4a8] sm:$0xf] }
  0xad   :  { %1914 = vmatpush.bf16.msra.mxu3 %v7844_v39  ;;  %v11328_v36 = vld [vmem:[#allocation2 + $0x4b4] sm:$0xf0]  ;;  %v8131_v37 = vld [vmem:[#allocation2 + $0x5a8] sm:$0xf]  ;;  %v8404_v39 = vor.u32 %v11428_v24, %v8403_v23 }
  0xae   :  { %1876 = vmatpush.bf16.msra.mxu0 %v7444_v45  ;;  %v11360_v40 = vld [vmem:[#allocation2 + $0x5b4] sm:$0xf0]  ;;  %v8259_v41 = vld [vmem:[#allocation2 + $0x6a8] sm:$0xf]  ;;  %v8004_v45 = vor.u32 %v11328_v36, %v8003_v35 }
  0xaf   :  { %1889 = vmatpush.bf16.msra.mxu1 %v7572_v46  ;;  %v11392_v42 = vld [vmem:[#allocation2 + $0x6b4] sm:$0xf0]  ;;  %v8387_v43 = vld [vmem:[#allocation2 + $0x7a8] sm:$0xf]  ;;  %v8132_v46 = vor.u32 %v11360_v40, %v8131_v37 }
  0xb0   :  { %1902 = vmatpush.bf16.msra.mxu2 %v7700_v47  ;;  %v11424_v44 = vld [vmem:[#allocation2 + $0x7b4] sm:$0xf0]  ;;  %v8260_v47 = vor.u32 %v11392_v42, %v8259_v41  ;;  %v7987_v48 = vld [vmem:[#allocation2 + $0x488] sm:$0xf] }
  0xb1   :  { %1915 = vmatpush.bf16.msra.mxu3 %v7828_v51  ;;  %v11324_v49 = vld [vmem:[#allocation2 + $0x494] sm:$0xf0]  ;;  %v8115_v50 = vld [vmem:[#allocation2 + $0x588] sm:$0xf]  ;;  %v8388_v51 = vor.u32 %v11424_v44, %v8387_v43 }
  0xb2   :  { %1877 = vmatpush.bf16.msra.mxu0 %v7428_v57  ;;  %v8243_v52 = vld [vmem:[#allocation2 + $0x688] sm:$0xf]  ;;  %v11388_v53 = vld [vmem:[#allocation2 + $0x694] sm:$0xf0] }
  0xb3   :  { %1890 = vmatpush.bf16.msra.mxu1 %v7556_v60  ;;  %v8371_v54 = vld [vmem:[#allocation2 + $0x788] sm:$0xf]  ;;  %v11320_v57 = vld [vmem:[#allocation2 + $0x474] sm:$0xf0] }
  0xb4   :  { %1903 = vmatpush.bf16.msra.mxu2 %v7684_v61  ;;  %v7971_v56 = vld [vmem:[#allocation2 + $0x468] sm:$0xf]  ;;  %v11352_v60 = vld [vmem:[#allocation2 + $0x574] sm:$0xf0] }
  0xb5   :  { %1916 = vmatpush.bf16.msra.mxu3 %v7812_v1  ;;  %v8099_v58 = vld [vmem:[#allocation2 + $0x568] sm:$0xf]  ;;  %v11384_v62 = vld [vmem:[#allocation2 + $0x674] sm:$0xf0]  ;;  %v7972_v1 = vor.u32 %v11320_v57, %v7971_v56 }
  0xb6   :  { %1878 = vmatpush.bf16.msra.mxu0 %v7412_v8  ;;  %v8227_v61 = vld [vmem:[#allocation2 + $0x668] sm:$0xf]  ;;  %v11416_v0 = vld [vmem:[#allocation2 + $0x774] sm:$0xf0]  ;;  %v8100_v3 = vor.u32 %v11352_v60, %v8099_v58 }
  0xb7   :  { %1891 = vmatpush.bf16.msra.mxu1 %v7540_v11  ;;  %v8355_v63 = vld [vmem:[#allocation2 + $0x768] sm:$0xf]  ;;  %v8228_v4 = vor.u32 %v11384_v62, %v8227_v61  ;;  %v11316_v5 = vld [vmem:[#allocation2 + $0x454] sm:$0xf0]  ;;  %v11202_v61 = vld [vmem:[#allocation2 + $0xcc] sm:$0xf] }
  0xb8   :  { %1904 = vmatpush.bf16.msra.mxu2 %v7668_v12  ;;  %v7955_v2 = vld [vmem:[#allocation2 + $0x448] sm:$0xf]  ;;  %v11348_v7 = vld [vmem:[#allocation2 + $0x554] sm:$0xf0]  ;;  %v8356_v8 = vor.u32 %v11416_v0, %v8355_v63  ;;  %v7509_v62 = vld [vmem:[#allocation2 + $0xd8] sm:$0xf0] }
  0xb9   :  { %1917 = vmatpush.bf16.msra.mxu3 %v7796_v31  ;;  %1879 = vmatmul.bf16.vlgmr.msra.gmra.mxu0 %v12294_v28  ;;  %v11420_v28 = vld [vmem:[#allocation2 + $0x794] sm:$0xf0]  ;;  %v8083_v6 = vld [vmem:[#allocation2 + $0x548] sm:$0xf]  ;;  %v7956_v13 = vor.u32 %v11316_v5, %v7955_v2  ;;  %v11234_v63 = vld [vmem:[#allocation2 + $0x1cc] sm:$0xf] }
  0xba   :  { %1923 = vmatpush.bf16.msrb.mxu0 %v8036_v32  ;;  %1892 = vmatmul.bf16.vlgmr.msra.gmra.mxu1 %v12298_v34  ;;  %v8244_v34 = vor.u32 %v11388_v53, %v8243_v52  ;;  %v8372_v59 = vor.u32 %v11420_v28, %v8371_v54  ;;  %v8211_v9 = vld [vmem:[#allocation2 + $0x648] sm:$0xf]  ;;  %v11380_v25 = vld [vmem:[#allocation2 + $0x654] sm:$0xf0]  ;;  %v8084_v31 = vor.u32 %v11348_v7, %v8083_v6  ;;  %v7781_v52 = vld [vmem:[#allocation2 + $0x2f8] sm:$0xf0] }
  0xbb   :  { %1936 = vmatpush.bf16.msrb.mxu1 %v8164_v15  ;;  %1905 = vmatmul.bf16.vlgmr.msra.gmra.mxu2 %v12292_v27  ;;  %v11356_v27 = vld [vmem:[#allocation2 + $0x594] sm:$0xf0]  ;;  %v8339_v11 = vld [vmem:[#allocation2 + $0x748] sm:$0xf]  ;;  %v8212_v32 = vor.u32 %v11380_v25, %v8211_v9  ;;  %v11302_v28 = vld [vmem:[#allocation2 + $0x3ec] sm:$0xf]  ;;  %v7512_v9 = vor.u32 %v11202_v61, %v7509_v62 }
  0xbc   :  { %1949 = vmatpush.bf16.msrb.mxu2 %v8292_v38  ;;  %1918 = vmatmul.bf16.vlgmr.msra.gmra.mxu3 %v12296_v29  ;;  %v7988_v29 = vor.u32 %v11324_v49, %v7987_v48  ;;  %v8116_v55 = vor.u32 %v11356_v27, %v8115_v50  ;;  %v11412_v12 = vld [vmem:[#allocation2 + $0x754] sm:$0xf0]  ;;  %v7939_v14 = vld [vmem:[#allocation2 + $0x428] sm:$0xf]  ;;  %v11238_v48 = vld [vmem:[#allocation2 + $0x1ec] sm:$0xf] }
  0xbd   :  { %1962 = vmatpush.bf16.msrb.mxu3 %v8420_v19  ;;  %v11312_v15 = vld [vmem:[#allocation2 + $0x434] sm:$0xf0]  ;;  %v8067_v38 = vld [vmem:[#allocation2 + $0x528] sm:$0xf]  ;;  %v8340_v17 = vor.u32 %v11412_v12, %v8339_v11  ;;  %v11270_v27 = vld [vmem:[#allocation2 + $0x2ec] sm:$0xf] }
  0xbe   :  { %1924 = vmatpush.bf16.msrb.mxu0 %v8020_v26  ;;  %v11344_v18 = vld [vmem:[#allocation2 + $0x534] sm:$0xf0]  ;;  %v8195_v19 = vld [vmem:[#allocation2 + $0x628] sm:$0xf]  ;;  %v7940_v23 = vor.u32 %v11312_v15, %v7939_v14  ;;  %v7784_v60 = vor.u32 %v11270_v27, %v7781_v52  ;;  %v11266_v2 = vld [vmem:[#allocation2 + $0x2cc] sm:$0xf] }
  0xbf   :  { %1937 = vmatpush.bf16.msrb.mxu1 %v8148_v30  ;;  %v11376_v20 = vld [vmem:[#allocation2 + $0x634] sm:$0xf0]  ;;  %v8323_v21 = vld [vmem:[#allocation2 + $0x728] sm:$0xf]  ;;  %v1672_v30 = vpop.f32.mrf.mxu0  ;;  %v11298_v6 = vld [vmem:[#allocation2 + $0x3cc] sm:$0xf] }
  0xc0   :  { %1950 = vmatpush.bf16.msrb.mxu2 %v8276_v33  ;;  %v11408_v22 = vld [vmem:[#allocation2 + $0x734] sm:$0xf0]  ;;  %v7923_v24 = vld [vmem:[#allocation2 + $0x408] sm:$0xf]  ;;  %v8068_v33 = vor.u32 %v11344_v18, %v8067_v38  ;;  %v8196_v35 = vor.u32 %v11376_v20, %v8195_v19  ;;  %v1673_v40 = vadd.f32 %v1672_v30, %v357_v16  ;;  %v7893_v7 = vld [vmem:[#allocation2 + $0x3d8] sm:$0xf0] }
  0xc1   :  { %1963 = vmatpush.bf16.msrb.mxu3 %v8404_v39  ;;  %v11308_v26 = vld [vmem:[#allocation2 + $0x414] sm:$0xf0]  ;;  %v8051_v36 = vld [vmem:[#allocation2 + $0x508] sm:$0xf]  ;;  %v8324_v42 = vor.u32 %v11408_v22, %v8323_v21  ;;  %v11198_v12 = vld [vmem:[#allocation2 + $0xac] sm:$0xf] }
  0xc2   :  { %1925 = vmatpush.bf16.msrb.mxu0 %v8004_v45  ;;  %v11340_v37 = vld [vmem:[#allocation2 + $0x514] sm:$0xf0]  ;;  %v8179_v39 = vld [vmem:[#allocation2 + $0x608] sm:$0xf]  ;;  %v7924_v50 = vor.u32 %v11308_v26, %v7923_v24  ;;  %v11230_v14 = vld [vmem:[#allocation2 + $0x1ac] sm:$0xf] }
  0xc3   :  { %1938 = vmatpush.bf16.msrb.mxu1 %v8132_v46  ;;  %v11372_v43 = vld [vmem:[#allocation2 + $0x614] sm:$0xf0]  ;;  %v8307_v44 = vld [vmem:[#allocation2 + $0x708] sm:$0xf]  ;;  %v11206_v46 = vld [vmem:[#allocation2 + $0xec] sm:$0xf]  ;;  %v8052_v53 = vor.u32 %v11340_v37, %v8051_v36 }
  0xc4   :  { %1951 = vmatpush.bf16.msrb.mxu2 %v8260_v47  ;;  %v11404_v45 = vld [vmem:[#allocation2 + $0x714] sm:$0xf0]  ;;  %v7525_v47 = vld [vmem:[#allocation2 + $0xf8] sm:$0xf0]  ;;  %v8180_v54 = vor.u32 %v11372_v43, %v8179_v39  ;;  %v11262_v38 = vld [vmem:[#allocation2 + $0x2ac] sm:$0xf] }
  0xc5   :  { %1964 = vmatpush.bf16.msrb.mxu3 %v8388_v51  ;;  %v7653_v51 = vld [vmem:[#allocation2 + $0x1f8] sm:$0xf0]  ;;  %v7528_v56 = vor.u32 %v11206_v46, %v7525_v47  ;;  %v11294_v19 = vld [vmem:[#allocation2 + $0x3ac] sm:$0xf] }
  0xc6   :  { %1926 = vmatpush.bf16.msrb.mxu0 %v7988_v29  ;;  %v7909_v29 = vld [vmem:[#allocation2 + $0x3f8] sm:$0xf0]  ;;  %v12340_v22 = vld [vmem:[#allocation1 + $0x2d] sm:$0xff] }
  0xc7   :  { %1939 = vmatpush.bf16.msrb.mxu1 %v8116_v55  ;;  %v7912_v0 = vor.u32 %v11302_v28, %v7909_v29  ;;  %v1674_v5 = vpop.f32.mrf.mxu0  ;;  %v7621_v15 = vld [vmem:[#allocation2 + $0x1b8] sm:$0xf0]  ;;  %v11226_v36 = vld [vmem:[#allocation2 + $0x18c] sm:$0xf] }
  0xc8   :  { %1952 = vmatpush.bf16.msrb.mxu2 %v8244_v34  ;;  %v8308_v34 = vor.u32 %v11404_v45, %v8307_v44  ;;  %v7749_v16 = vld [vmem:[#allocation2 + $0x2b8] sm:$0xf0]  ;;  %v7624_v26 = vor.u32 %v11230_v14, %v7621_v15  ;;  %v11286_v29 = vld [vmem:[#allocation2 + $0x36c] sm:$0xf] }
  0xc9   :  { %1965 = vmatpush.bf16.msrb.mxu3 %v8372_v59  ;;  %v7656_v59 = vor.u32 %v11238_v48, %v7653_v51  ;;  %v12337_v18 = vld [vmem:[#allocation1 + $0x3f] sm:$0xff]  ;;  %v7752_v30 = vor.u32 %v11262_v38, %v7749_v16  ;;  %v11190_v48 = vld [vmem:[#allocation2 + $0x6c] sm:$0xf] }
  0xca   :  { %1927 = vmatpush.bf16.msrb.mxu0 %v7972_v1  ;;  %v1685_v41 = vpop.f32.mrf.mxu1  ;;  %v7637_v1 = vld [vmem:[#allocation2 + $0x1d8] sm:$0xf0]  ;;  %v11218_v61 = vld [vmem:[#allocation2 + $0x14c] sm:$0xf] }
  0xcb   :  { %1940 = vmatpush.bf16.msrb.mxu1 %v8100_v3  ;;  %v1686_v49 = vadd.f32 %v1685_v41, %v1673_v40  ;;  %v7765_v3 = vld [vmem:[#allocation2 + $0x2d8] sm:$0xf0]  ;;  %v7640_v25 = vor.u32 %v11234_v63, %v7637_v1  ;;  %v11258_v40 = vld [vmem:[#allocation2 + $0x28c] sm:$0xf] }
  0xcc   :  { %1953 = vmatpush.bf16.msrb.mxu2 %v8228_v4  ;;  %v7768_v11 = vor.u32 %v11266_v2, %v7765_v3  ;;  %v7877_v20 = vld [vmem:[#allocation2 + $0x3b8] sm:$0xf0]  ;;  %v11250_v1 = vld [vmem:[#allocation2 + $0x24c] sm:$0xf] }
  0xcd   :  { %1966 = vmatpush.bf16.msrb.mxu3 %v8356_v8  ;;  %v7880_v37 = vor.u32 %v11294_v19, %v7877_v20  ;;  %v7605_v39 = vld [vmem:[#allocation2 + $0x198] sm:$0xf0]  ;;  %v11282_v5 = vld [vmem:[#allocation2 + $0x34c] sm:$0xf] }
  0xce   :  { %1928 = vmatpush.bf16.msrb.mxu0 %v7956_v13  ;;  %v1698_v55 = vpop.f32.mrf.mxu2  ;;  %v1711_v58 = vpop.f32.mrf.mxu3  ;;  %v7493_v13 = vld [vmem:[#allocation2 + $0xb8] sm:$0xf0]  ;;  %v7608_v46 = vor.u32 %v11226_v36, %v7605_v39  ;;  %v11214_v14 = vld [vmem:[#allocation2 + $0x12c] sm:$0xf] }
  0xcf   :  { %1941 = vmatpush.bf16.msrb.mxu1 %v8084_v31  ;;  %v1699_v57 = vadd.f32 %v1698_v55, %v1686_v49  ;;  %v12331_v31 = vld [vmem:[#allocation1 + $0x36] sm:$0xff]  ;;  %v7733_v41 = vld [vmem:[#allocation2 + $0x298] sm:$0xf0] }
  0xd0   :  { %1954 = vmatpush.bf16.msrb.mxu2 %v8212_v32  ;;  %v7896_v32 = vor.u32 %v11298_v6, %v7893_v7  ;;  %v7861_v43 = vld [vmem:[#allocation2 + $0x398] sm:$0xf0]  ;;  %v7736_v47 = vor.u32 %v11258_v40, %v7733_v41  ;;  %v11246_v16 = vld [vmem:[#allocation2 + $0x22c] sm:$0xf] }
  0xd1   :  { %1967 = vmatpush.bf16.msrb.mxu3 %v8340_v17  ;;  %v1712_v4 = vadd.f32 %v1711_v58, %v1699_v57  ;;  %v12334_v17 = vld [vmem:[#allocation1 + $0x24] sm:$0xff]  ;;  %v11278_v20 = vld [vmem:[#allocation2 + $0x32c] sm:$0xf] }
  0xd2   :  { %1929 = vmatpush.bf16.msrb.mxu0 %v7940_v23  ;;  %v1687_v8 = vpop.f32.mrf.mxu1  ;;  %v7496_v23 = vor.u32 %v11198_v12, %v7493_v13  ;;  %v7461_v49 = vld [vmem:[#allocation2 + $0x78] sm:$0xf0]  ;;  %v11182_v12 = vld [vmem:[#allocation2 + $0x2c] sm:$0xf] }
  0xd3   :  { %1942 = vmatpush.bf16.msrb.mxu1 %v8068_v33  ;;  %v11194_v33 = vld [vmem:[#allocation2 + $0x8c] sm:$0xf]  ;;  %v7717_v28 = vld [vmem:[#allocation2 + $0x278] sm:$0xf0] }
  0xd4   :  { %1955 = vmatpush.bf16.msrb.mxu2 %v8196_v35  ;;  %v7477_v35 = vld [vmem:[#allocation2 + $0x98] sm:$0xf0] }
  0xd5   :  { %1968 = vmatpush.bf16.msrb.mxu3 %v8324_v42  ;;  %v11290_v42 = vld [vmem:[#allocation2 + $0x38c] sm:$0xf]  ;;  %v7480_v44 = vor.u32 %v11194_v33, %v7477_v35  ;;  %v7845_v55 = vld [vmem:[#allocation2 + $0x378] sm:$0xf0] }
  0xd6   :  { %1930 = vmatpush.bf16.msrb.mxu0 %v7924_v50  ;;  %v1700_v21 = vpop.f32.mrf.mxu2  ;;  %v1713_v24 = vpop.f32.mrf.mxu3  ;;  %v11222_v50 = vld [vmem:[#allocation2 + $0x16c] sm:$0xf]  ;;  %v7864_v52 = vor.u32 %v11290_v42, %v7861_v43  ;;  %v7848_v63 = vor.u32 %v11286_v29, %v7845_v55  ;;  %v7701_v2 = vld [vmem:[#allocation2 + $0x258] sm:$0xf0] }
  0xd7   :  { %1943 = vmatpush.bf16.msrb.mxu1 %v8052_v53  ;;  %v1724_v45 = vpop.f32.mrf.mxu0  ;;  %v7589_v53 = vld [vmem:[#allocation2 + $0x178] sm:$0xf0]  ;;  %v11178_v24 = vld [vmem:[#allocation2 + $0xc] sm:$0xf] }
  0xd8   :  { %1956 = vmatpush.bf16.msrb.mxu2 %v8180_v54  ;;  %v1725_v51 = vadd.f32 %v1724_v45, %v1712_v4  ;;  %v11254_v54 = vld [vmem:[#allocation2 + $0x26c] sm:$0xf]  ;;  %v7592_v57 = vor.u32 %v11222_v50, %v7589_v53  ;;  %v7829_v6 = vld [vmem:[#allocation2 + $0x358] sm:$0xf0] }
  0xd9   :  { %1969 = vmatpush.bf16.msrb.mxu3 %v8308_v34  ;;  %1931 = vmatmul.bf16.vlgmr.msrb.gmra.mxu0 %v12334_v17  ;;  %v7720_v58 = vor.u32 %v11254_v54, %v7717_v28  ;;  %v7429_v13 = vld [vmem:[#allocation2 + $0x38] sm:$0xf0]  ;;  %v7832_v15 = vor.u32 %v11282_v5, %v7829_v6  ;;  %v11210_v35 = vld [vmem:[#allocation2 + $0x10c] sm:$0xf] }
  0xda   :  { %1975 = vmatpush.bf16.msra.mxu0 %v7528_v56  ;;  %1944 = vmatmul.bf16.vlgmr.msrb.gmra.mxu1 %v12340_v22  ;;  %v1737_v27 = vpop.f32.mrf.mxu1  ;;  %v7464_v56 = vor.u32 %v11190_v48, %v7461_v49  ;;  %v7557_v38 = vld [vmem:[#allocation2 + $0x138] sm:$0xf0]  ;;  %v11274_v42 = vld [vmem:[#allocation2 + $0x30c] sm:$0xf] }
  0xdb   :  { %1988 = vmatpush.bf16.msra.mxu1 %v7656_v59  ;;  %1957 = vmatmul.bf16.vlgmr.msrb.gmra.mxu2 %v12331_v31  ;;  %v1738_v34 = vadd.f32 %v1737_v27, %v1725_v51  ;;  %v11186_v59 = vld [vmem:[#allocation2 + $0x4c] sm:$0xf]  ;;  %v7685_v19 = vld [vmem:[#allocation2 + $0x238] sm:$0xf0] }
  0xdc   :  { %2001 = vmatpush.bf16.msra.mxu2 %v7784_v60  ;;  %1970 = vmatmul.bf16.vlgmr.msrb.gmra.mxu3 %v12337_v18  ;;  %v7445_v60 = vld [vmem:[#allocation2 + $0x58] sm:$0xf0]  ;;  %v7688_v33 = vor.u32 %v11246_v16, %v7685_v19  ;;  %v11334_v45 = vld [vmem:[#allocation2 + $0x4ec] sm:$0xf]  ;;  %v12092_v16 = vld [vmem:[#allocation1 + $0x9] sm:$0xff] }
  0xdd   :  { %2014 = vmatpush.bf16.msra.mxu3 %v7912_v0  ;;  %v7573_v0 = vld [vmem:[#allocation2 + $0x158] sm:$0xf0]  ;;  %v7448_v7 = vor.u32 %v11186_v59, %v7445_v60  ;;  %v11398_v50 = vld [vmem:[#allocation2 + $0x6ec] sm:$0xf] }
  0xde   :  { %1976 = vmatpush.bf16.msra.mxu0 %v7512_v9  ;;  %v1750_v62 = vpop.f32.mrf.mxu2  ;;  %v7813_v21 = vld [vmem:[#allocation2 + $0x338] sm:$0xf0]  ;;  %v11430_v53 = vld [vmem:[#allocation2 + $0x7ec] sm:$0xf] }
  0xdf   :  { %1989 = vmatpush.bf16.msra.mxu1 %v7640_v25  ;;  %v1751_v3 = vadd.f32 %v1750_v62, %v1738_v34  ;;  %v1763_v4 = vpop.f32.mrf.mxu3  ;;  %v1726_v9 = vpop.f32.mrf.mxu0  ;;  %v7576_v25 = vor.u32 %v11218_v61, %v7573_v0  ;;  %v7541_v36 = vld [vmem:[#allocation2 + $0x118] sm:$0xf0]  ;;  %v7816_v40 = vor.u32 %v11278_v20, %v7813_v21  ;;  %v11394_v61 = vld [vmem:[#allocation2 + $0x6cc] sm:$0xf] }
  0xe0   :  { %2002 = vmatpush.bf16.msra.mxu2 %v7768_v11  ;;  %v7704_v11 = vor.u32 %v11250_v1, %v7701_v2  ;;  %v7669_v41 = vld [vmem:[#allocation2 + $0x218] sm:$0xf0]  ;;  %v7544_v27 = vor.u32 %v11210_v35, %v7541_v36  ;;  %v11358_v6 = vld [vmem:[#allocation2 + $0x5ac] sm:$0xf] }
  0xe1   :  { %2015 = vmatpush.bf16.msra.mxu3 %v7896_v32  ;;  %v12343_v8 = vadd.f32 %v1763_v4, %v1751_v3  ;;  %v7797_v43 = vld [vmem:[#allocation2 + $0x318] sm:$0xf0]  ;;  %v11326_v4 = vld [vmem:[#allocation2 + $0x4ac] sm:$0xf] }
  0xe2   :  { %1977 = vmatpush.bf16.msra.mxu0 %v7496_v23  ;;  %v1739_v32 = vpop.f32.mrf.mxu1  ;;  %v7432_v23 = vor.u32 %v11182_v12, %v7429_v13  ;;  %v8165_v49 = vld [vmem:[#allocation2 + $0x5f8] sm:$0xf0]  ;;  %v7800_v28 = vor.u32 %v11274_v42, %v7797_v43  ;;  %v12089_v9 = vld [vmem:[#allocation1 + $0x12] sm:$0xff] }
  0xe3   :  { %1990 = vmatpush.bf16.msra.mxu1 %v7624_v26  ;;  %v7413_v26 = vld [vmem:[#allocation2 + $0x18] sm:$0xf0]  ;;  %v11422_v13 = vld [vmem:[#allocation2 + $0x7ac] sm:$0xf] }
  0xe4   :  { %2003 = vmatpush.bf16.msra.mxu2 %v7752_v30  ;;  %v7560_v30 = vor.u32 %v11214_v14, %v7557_v38  ;;  %v7416_v48 = vor.u32 %v11178_v24, %v7413_v26  ;;  %v8293_v51 = vld [vmem:[#allocation2 + $0x6f8] sm:$0xf0]  ;;  %v11322_v21 = vld [vmem:[#allocation2 + $0x48c] sm:$0xf] }
  0xe5   :  { %2016 = vmatpush.bf16.msra.mxu3 %v7880_v37  ;;  %v11242_v37 = vld [vmem:[#allocation2 + $0x20c] sm:$0xf]  ;;  %v8421_v54 = vld [vmem:[#allocation2 + $0x7f8] sm:$0xf0]  ;;  %v8296_v34 = vor.u32 %v11398_v50, %v8293_v51 }
  0xe6   :  { %1978 = vmatpush.bf16.msra.mxu0 %v7480_v44  ;;  %v1752_v39 = vpop.f32.mrf.mxu2  ;;  %v8424_v59 = vor.u32 %v11430_v53, %v8421_v54  ;;  %v8149_v60 = vld [vmem:[#allocation2 + $0x5d8] sm:$0xf0]  ;;  %v11354_v24 = vld [vmem:[#allocation2 + $0x58c] sm:$0xf] }
  0xe7   :  { %1991 = vmatpush.bf16.msra.mxu1 %v7608_v46  ;;  %v1765_v44 = vpop.f32.mrf.mxu3  ;;  %v8037_v46 = vld [vmem:[#allocation2 + $0x4f8] sm:$0xf0]  ;;  %v11418_v36 = vld [vmem:[#allocation2 + $0x78c] sm:$0xf] }
  0xe8   :  { %2004 = vmatpush.bf16.msra.mxu2 %v7736_v47  ;;  %v11366_v47 = vld [vmem:[#allocation2 + $0x5ec] sm:$0xf]  ;;  %v8040_v29 = vor.u32 %v11334_v45, %v8037_v46  ;;  %v8277_v62 = vld [vmem:[#allocation2 + $0x6d8] sm:$0xf0] }
  0xe9   :  { %2017 = vmatpush.bf16.msra.mxu3 %v7864_v52  ;;  %v7672_v52 = vor.u32 %v11242_v37, %v7669_v41  ;;  %v8168_v55 = vor.u32 %v11366_v47, %v8165_v49  ;;  %v8405_v0 = vld [vmem:[#allocation2 + $0x7d8] sm:$0xf0]  ;;  %v8280_v3 = vor.u32 %v11394_v61, %v8277_v62  ;;  %v11318_v43 = vld [vmem:[#allocation2 + $0x46c] sm:$0xf] }
  0xea   :  { %1979 = vmatpush.bf16.msra.mxu0 %v7464_v56  ;;  %v11330_v56 = vld [vmem:[#allocation2 + $0x4cc] sm:$0xf]  ;;  %v8005_v5 = vld [vmem:[#allocation2 + $0x4b8] sm:$0xf0] }
  0xeb   :  { %1992 = vmatpush.bf16.msra.mxu1 %v7592_v57  ;;  %v8021_v57 = vld [vmem:[#allocation2 + $0x4d8] sm:$0xf0]  ;;  %v8008_v38 = vor.u32 %v11326_v4, %v8005_v5  ;;  %v11350_v45 = vld [vmem:[#allocation2 + $0x56c] sm:$0xf] }
  0xec   :  { %2005 = vmatpush.bf16.msra.mxu2 %v7720_v58  ;;  %v11362_v58 = vld [vmem:[#allocation2 + $0x5cc] sm:$0xf]  ;;  %v8024_v1 = vor.u32 %v11330_v56, %v8021_v57  ;;  %v8261_v12 = vld [vmem:[#allocation2 + $0x6b8] sm:$0xf0] }
  0xed   :  { %2018 = vmatpush.bf16.msra.mxu3 %v7848_v63  ;;  %v11426_v63 = vld [vmem:[#allocation2 + $0x7cc] sm:$0xf]  ;;  %v8152_v2 = vor.u32 %v11362_v58, %v8149_v60  ;;  %v8389_v14 = vld [vmem:[#allocation2 + $0x7b8] sm:$0xf0] }
  0xee   :  { %1980 = vmatpush.bf16.msra.mxu0 %v7448_v7  ;;  %v8408_v7 = vor.u32 %v11426_v63, %v8405_v0  ;;  %v12090_v32 = vld [vmem:[#allocation1] sm:$0xff]  ;;  %v8392_v26 = vor.u32 %v11422_v13, %v8389_v14  ;;  %v11382_v49 = vld [vmem:[#allocation2 + $0x66c] sm:$0xf] }
  0xef   :  { %1993 = vmatpush.bf16.msra.mxu1 %v7576_v25  ;;  %v8133_v25 = vld [vmem:[#allocation2 + $0x5b8] sm:$0xf0]  ;;  %v11414_v51 = vld [vmem:[#allocation2 + $0x76c] sm:$0xf] }
  0xf0   :  { %2006 = vmatpush.bf16.msra.mxu2 %v7704_v11  ;;  %v11390_v11 = vld [vmem:[#allocation2 + $0x6ac] sm:$0xf]  ;;  %v8136_v19 = vor.u32 %v11358_v6, %v8133_v25  ;;  %v8245_v35 = vld [vmem:[#allocation2 + $0x698] sm:$0xf0] }
  0xf1   :  { %2019 = vmatpush.bf16.msra.mxu3 %v7832_v15  ;;  %v12091_v15 = vld [vmem:[#allocation1 + $0x1b] sm:$0xff]  ;;  %v8264_v20 = vor.u32 %v11390_v11, %v8261_v12  ;;  %v8373_v37 = vld [vmem:[#allocation2 + $0x798] sm:$0xf0]  ;;  %v11378_v58 = vld [vmem:[#allocation2 + $0x64c] sm:$0xf] }
  0xf2   :  { %1981 = vmatpush.bf16.msra.mxu0 %v7432_v23  ;;  %v7989_v23 = vld [vmem:[#allocation2 + $0x498] sm:$0xf0]  ;;  %v8376_v47 = vor.u32 %v11418_v36, %v8373_v37  ;;  %v11410_v61 = vld [vmem:[#allocation2 + $0x74c] sm:$0xf]  ;;  %v8875_v37 = vld [vmem:[#allocation6 + $0x380] sm:$0xf] }
  0xf3   :  { %1994 = vmatpush.bf16.msra.mxu1 %v7560_v30  ;;  %v8117_v30 = vld [vmem:[#allocation2 + $0x598] sm:$0xf0]  ;;  %v7992_v39 = vor.u32 %v11322_v21, %v7989_v23  ;;  %v11342_v5 = vld [vmem:[#allocation2 + $0x52c] sm:$0xf] }
  0xf4   :  { %2007 = vmatpush.bf16.msra.mxu2 %v7688_v33  ;;  %v11386_v33 = vld [vmem:[#allocation2 + $0x68c] sm:$0xf]  ;;  %v8120_v41 = vor.u32 %v11354_v24, %v8117_v30  ;;  %v7973_v44 = vld [vmem:[#allocation2 + $0x478] sm:$0xf0] }
  0xf5   :  { %2020 = vmatpush.bf16.msra.mxu3 %v7816_v40  ;;  %v8248_v42 = vor.u32 %v11386_v33, %v8245_v35  ;;  %v8229_v50 = vld [vmem:[#allocation2 + $0x678] sm:$0xf0]  ;;  %v11374_v25 = vld [vmem:[#allocation2 + $0x62c] sm:$0xf]  ;;  %v358_v33 = vperm.slane %v12328_v10, 1 }
  0xf6   :  { %1982 = vmatpush.bf16.msra.mxu0 %v7416_v48  ;;  %v12345_v40 = vpop.f32.mrf.mxu0  ;;  %v8101_v48 = vld [vmem:[#allocation2 + $0x578] sm:$0xf0]  ;;  %v8232_v54 = vor.u32 %v11382_v49, %v8229_v50  ;;  %v11406_v12 = vld [vmem:[#allocation2 + $0x72c] sm:$0xf]  ;;  %v9899_v50 = vld [vmem:[#allocation6 + $0xb80] sm:$0xf] }
  0xf7   :  { %1995 = vmatpush.bf16.msra.mxu1 %v7544_v27  ;;  %v12347_v46 = vpop.f32.mrf.mxu1  ;;  %v8357_v27 = vld [vmem:[#allocation2 + $0x778] sm:$0xf0]  ;;  %v8104_v53 = vor.u32 %v11350_v45, %v8101_v48  ;;  %v11370_v21 = vld [vmem:[#allocation2 + $0x60c] sm:$0xf]  ;;  %v1777_v49 = vadd.f32 %v12345_v40, %v358_v33 }
  0xf8   :  { %2008 = vmatpush.bf16.msra.mxu2 %v7672_v52  ;;  %v7976_v52 = vor.u32 %v11318_v43, %v7973_v44  ;;  %v8360_v56 = vor.u32 %v11414_v51, %v8357_v27  ;;  %v8085_v57 = vld [vmem:[#allocation2 + $0x558] sm:$0xf0]  ;;  %v11402_v30 = vld [vmem:[#allocation2 + $0x70c] sm:$0xf]  ;;  %v11681_v43 = vld [vmem:[#allocation6 + $0x7bc] sm:$0xf0] }
  0xf9   :  { %2021 = vmatpush.bf16.msra.mxu3 %v7800_v28  ;;  %1983 = vmatmul.bf16.vlgmr.msra.gmra.mxu0 %v12090_v32  ;;  %v11314_v28 = vld [vmem:[#allocation2 + $0x44c] sm:$0xf]  ;;  %v8341_v62 = vld [vmem:[#allocation2 + $0x758] sm:$0xf0]  ;;  %v11809_v51 = vld [vmem:[#allocation6 + $0xbbc] sm:$0xf0] }
  0xfa   :  { %2027 = vmatpush.bf16.msrb.mxu0 %v8040_v29  ;;  %1996 = vmatmul.bf16.vlgmr.msra.gmra.mxu1 %v12092_v16  ;;  %v7957_v29 = vld [vmem:[#allocation2 + $0x458] sm:$0xf0]  ;;  %v11306_v32 = vld [vmem:[#allocation2 + $0x40c] sm:$0xf]  ;;  %v8811_v27 = vld [vmem:[#allocation6 + $0x300] sm:$0xf] }
  0xfb   :  { %2040 = vmatpush.bf16.msrb.mxu1 %v8168_v55  ;;  %2009 = vmatmul.bf16.vlgmr.msra.gmra.mxu2 %v12089_v9  ;;  %v11346_v55 = vld [vmem:[#allocation2 + $0x54c] sm:$0xf]  ;;  %v7960_v63 = vor.u32 %v11314_v28, %v7957_v29  ;;  %v7941_v4 = vld [vmem:[#allocation2 + $0x438] sm:$0xf0]  ;;  %v9900_v28 = vor.u32 %v11809_v51, %v9899_v50 }
  0xfc   :  { %2053 = vmatpush.bf16.msrb.mxu2 %v8296_v34  ;;  %2022 = vmatmul.bf16.vlgmr.msra.gmra.mxu3 %v12091_v15  ;;  %v8069_v9 = vld [vmem:[#allocation2 + $0x538] sm:$0xf0] }
  0xfd   :  { %2066 = vmatpush.bf16.msrb.mxu3 %v8424_v59  ;;  %v8213_v59 = vld [vmem:[#allocation2 + $0x658] sm:$0xf0] }
  0xfe   :  { %2028 = vmatpush.bf16.msrb.mxu0 %v8024_v1  ;;  %v12349_v34 = vpop.f32.mrf.mxu2  ;;  %v1778_v0 = vpop.f32.mrf.mxu0  ;;  %v8088_v1 = vor.u32 %v11346_v55, %v8085_v57  ;;  %v8197_v11 = vld [vmem:[#allocation2 + $0x638] sm:$0xf0]  ;;  %v1790_v55 = vadd.f32 %v12347_v46, %v1777_v49  ;;  %v11793_v57 = vld [vmem:[#allocation6 + $0xb3c] sm:$0xf0] }
  0xff   :  { %2041 = vmatpush.bf16.msrb.mxu1 %v8152_v2  ;;  %v12351_v60 = vpop.f32.mrf.mxu3  ;;  %v8216_v2 = vor.u32 %v11378_v58, %v8213_v59  ;;  %v1791_v6 = vpop.f32.mrf.mxu1  ;;  %v8325_v13 = vld [vmem:[#allocation2 + $0x738] sm:$0xf0]  ;;  %v8200_v16 = vor.u32 %v11374_v25, %v8197_v11  ;;  %v8747_v58 = vld [vmem:[#allocation6 + $0x280] sm:$0xf] }
 0x100   :  { %2054 = vmatpush.bf16.msrb.mxu2 %v8280_v3  ;;  %v11310_v3 = vld [vmem:[#allocation2 + $0x42c] sm:$0xf]  ;;  %v7925_v15 = vld [vmem:[#allocation2 + $0x418] sm:$0xf0]  ;;  %v8328_v24 = vor.u32 %v11406_v12, %v8325_v13  ;;  %v11521_v59 = vld [vmem:[#allocation6 + $0x2bc] sm:$0xf0]  ;;  %v1803_v46 = vadd.f32 %v12349_v34, %v1790_v55 }
 0x101   :  { %2067 = vmatpush.bf16.msrb.mxu3 %v8408_v7  ;;  %v8344_v7 = vor.u32 %v11410_v61, %v8341_v62  ;;  %v7944_v14 = vor.u32 %v11310_v3, %v7941_v4  ;;  %v8309_v36 = vld [vmem:[#allocation2 + $0x718] sm:$0xf0]  ;;  %v9259_v61 = vld [vmem:[#allocation6 + $0x680] sm:$0xf]  ;;  %v8748_v0 = vor.u32 %v11521_v59, %v8747_v58  ;;  %v11673_v59 = vld [vmem:[#allocation6 + $0x784] sm:$0xf] }
 0x102   :  { %2029 = vmatpush.bf16.msrb.mxu0 %v8008_v38  ;;  %v8072_v38 = vor.u32 %v11342_v5, %v8069_v9  ;;  %v11649_v62 = vld [vmem:[#allocation6 + $0x6bc] sm:$0xf0]  ;;  %v1816_v6 = vadd.f32 %v12351_v60, %v1803_v46 }
 0x103   :  { %2042 = vmatpush.bf16.msrb.mxu1 %v8136_v19  ;;  %v11338_v19 = vld [vmem:[#allocation2 + $0x50c] sm:$0xf]  ;;  %v8683_v3 = vld [vmem:[#allocation6 + $0x200] sm:$0xf] }
 0x104   :  { %2055 = vmatpush.bf16.msrb.mxu2 %v8264_v20  ;;  %v8053_v20 = vld [vmem:[#allocation2 + $0x518] sm:$0xf0]  ;;  %v11505_v4 = vld [vmem:[#allocation6 + $0x23c] sm:$0xf0] }
 0x105   :  { %2068 = vmatpush.bf16.msrb.mxu3 %v8392_v26  ;;  %v8181_v26 = vld [vmem:[#allocation2 + $0x618] sm:$0xf0]  ;;  %v8056_v44 = vor.u32 %v11338_v19, %v8053_v20  ;;  %v9195_v5 = vld [vmem:[#allocation6 + $0x600] sm:$0xf] }
 0x106   :  { %2030 = vmatpush.bf16.msrb.mxu0 %v7992_v39  ;;  %v1804_v23 = vpop.f32.mrf.mxu2  ;;  %v11553_v39 = vld [vmem:[#allocation6 + $0x3bc] sm:$0xf0]  ;;  %v8184_v45 = vor.u32 %v11370_v21, %v8181_v26 }
 0x107   :  { %2043 = vmatpush.bf16.msrb.mxu1 %v8120_v41  ;;  %v1817_v35 = vpop.f32.mrf.mxu3  ;;  %v7928_v41 = vor.u32 %v11306_v32, %v7925_v15  ;;  %v8876_v48 = vor.u32 %v11553_v39, %v8875_v37  ;;  %v9707_v9 = vld [vmem:[#allocation6 + $0xa00] sm:$0xf] }
 0x108   :  { %2056 = vmatpush.bf16.msrb.mxu2 %v8248_v42  ;;  %v9387_v42 = vld [vmem:[#allocation6 + $0x780] sm:$0xf] }
 0x109   :  { %2069 = vmatpush.bf16.msrb.mxu3 %v8376_v47  ;;  %v8312_v47 = vor.u32 %v11402_v30, %v8309_v36  ;;  %v9388_v10 = vor.u32 %v11681_v43, %v9387_v42  ;;  %v11761_v25 = vld [vmem:[#allocation6 + $0xa3c] sm:$0xf0] }
 0x10a   :  { %2031 = vmatpush.bf16.msrb.mxu0 %v7976_v52  ;;  %v11537_v52 = vld [vmem:[#allocation6 + $0x33c] sm:$0xf0]  ;;  %v9708_v15 = vor.u32 %v11761_v25, %v9707_v9 }
 0x10b   :  { %2044 = vmatpush.bf16.msrb.mxu1 %v8104_v53  ;;  %v9323_v53 = vld [vmem:[#allocation6 + $0x700] sm:$0xf]  ;;  %v8812_v29 = vor.u32 %v11537_v52, %v8811_v27 }
 0x10c   :  { %2057 = vmatpush.bf16.msrb.mxu2 %v8232_v54  ;;  %v11665_v54 = vld [vmem:[#allocation6 + $0x73c] sm:$0xf0] }
 0x10d   :  { %2070 = vmatpush.bf16.msrb.mxu3 %v8360_v56  ;;  %v9835_v56 = vld [vmem:[#allocation6 + $0xb00] sm:$0xf]  ;;  %v9324_v40 = vor.u32 %v11665_v54, %v9323_v53 }
 0x10e   :  { %2032 = vmatpush.bf16.msrb.mxu0 %v7960_v63  ;;  %v9836_v63 = vor.u32 %v11793_v57, %v9835_v56  ;;  %v8619_v11 = vld [vmem:[#allocation6 + $0x180] sm:$0xf]  ;;  %v11545_v57 = vld [vmem:[#allocation6 + $0x384] sm:$0xf] }
 0x10f   :  { %2045 = vmatpush.bf16.msrb.mxu1 %v8088_v1  ;;  %v9771_v1 = vld [vmem:[#allocation6 + $0xa80] sm:$0xf] }
 0x110   :  { %2058 = vmatpush.bf16.msrb.mxu2 %v8216_v2  ;;  %v11777_v2 = vld [vmem:[#allocation6 + $0xabc] sm:$0xf0] }
 0x111   :  { %2071 = vmatpush.bf16.msrb.mxu3 %v8344_v7  ;;  %v11489_v12 = vld [vmem:[#allocation6 + $0x1bc] sm:$0xf0] }
 0x112   :  { %2033 = vmatpush.bf16.msrb.mxu0 %v7944_v14  ;;  %v9131_v14 = vld [vmem:[#allocation6 + $0x580] sm:$0xf] }
 0x113   :  { %2046 = vmatpush.bf16.msrb.mxu1 %v8072_v38  ;;  %v11617_v32 = vld [vmem:[#allocation6 + $0x5bc] sm:$0xf0]  ;;  %v8620_v38 = vor.u32 %v11489_v12, %v8619_v11  ;;  %v11785_v12 = vld [vmem:[#allocation6 + $0xb04] sm:$0xf] }
 0x114   :  { %2059 = vmatpush.bf16.msrb.mxu2 %v8200_v16  ;;  %v9643_v19 = vld [vmem:[#allocation6 + $0x980] sm:$0xf]  ;;  %v9132_v60 = vor.u32 %v11617_v32, %v9131_v14  ;;  %v11513_v32 = vld [vmem:[#allocation6 + $0x284] sm:$0xf] }
 0x115   :  { %2072 = vmatpush.bf16.msrb.mxu3 %v8328_v24  ;;  %v11745_v20 = vld [vmem:[#allocation6 + $0x9bc] sm:$0xf0] }
 0x116   :  { %2034 = vmatpush.bf16.msrb.mxu0 %v7928_v41  ;;  %v1828_v7 = vpop.f32.mrf.mxu0  ;;  %v8555_v21 = vld [vmem:[#allocation6 + $0x100] sm:$0xf]  ;;  %v9644_v35 = vor.u32 %v11745_v20, %v9643_v19  ;;  %v11769_v20 = vld [vmem:[#allocation6 + $0xa84] sm:$0xf] }
 0x117   :  { %2047 = vmatpush.bf16.msrb.mxu1 %v8056_v44  ;;  %v1841_v13 = vpop.f32.mrf.mxu1  ;;  %v1829_v16 = vadd.f32 %v1828_v7, %v1816_v6  ;;  %v11473_v23 = vld [vmem:[#allocation6 + $0x13c] sm:$0xf0]  ;;  %v11657_v6 = vld [vmem:[#allocation6 + $0x704] sm:$0xf] }
 0x118   :  { %2060 = vmatpush.bf16.msrb.mxu2 %v8184_v45  ;;  %v9067_v26 = vld [vmem:[#allocation6 + $0x500] sm:$0xf]  ;;  %v8556_v36 = vor.u32 %v11473_v23, %v8555_v21  ;;  %v11497_v23 = vld [vmem:[#allocation6 + $0x204] sm:$0xf] }
 0x119   :  { %2073 = vmatpush.bf16.msrb.mxu3 %v8312_v47  ;;  %2035 = vmatmul.bf16.vlgmr.msrb.gmra.mxu0 %v12334_v17  ;;  %v9260_v17 = vor.u32 %v11649_v62, %v9259_v61  ;;  %v11601_v30 = vld [vmem:[#allocation6 + $0x53c] sm:$0xf0]  ;;  %v1842_v37 = vadd.f32 %v1841_v13, %v1829_v16  ;;  %v9389_v61 = vld [vmem:[#allocation6 + $0x7c0] sm:$0xf0] }
 0x11a   :  { %5191 = vmatpush.bf16.msra.mxu0 %v8876_v48  ;;  %2048 = vmatmul.bf16.vlgmr.msrb.gmra.mxu1 %v12340_v22  ;;  %v11633_v22 = vld [vmem:[#allocation6 + $0x63c] sm:$0xf0]  ;;  %v9068_v43 = vor.u32 %v11601_v30, %v9067_v26  ;;  %v9837_v13 = vld [vmem:[#allocation6 + $0xb40] sm:$0xf0] }
 0x11b   :  { %5204 = vmatpush.bf16.msra.mxu1 %v9388_v10  ;;  %2061 = vmatmul.bf16.vlgmr.msrb.gmra.mxu2 %v12331_v31  ;;  %v9772_v31 = vor.u32 %v11777_v2, %v9771_v1  ;;  %v9196_v34 = vor.u32 %v11633_v22, %v9195_v5  ;;  %v9579_v41 = vld [vmem:[#allocation6 + $0x900] sm:$0xf]  ;;  %v9392_v5 = vor.u32 %v11673_v59, %v9389_v61  ;;  %v11529_v22 = vld [vmem:[#allocation6 + $0x304] sm:$0xf] }
 0x11c   :  { %2074 = vmatmul.bf16.vlgmr.msrb.gmra.mxu3 %v12337_v18  ;;  %5217 = vmatpush.bf16.msra.mxu2 %v9900_v28  ;;  %v8684_v18 = vor.u32 %v11505_v4, %v8683_v3  ;;  %v11729_v42 = vld [vmem:[#allocation6 + $0x93c] sm:$0xf0]  ;;  %v11801_v3 = vld [vmem:[#allocation6 + $0xb84] sm:$0xf]  ;;  %v9840_v19 = vor.u32 %v11785_v12, %v9837_v13  ;;  %v8883_v13 = vld [vmem:[#allocation6 + $0x388] sm:$0xf] }
 0x11d   :  { %v8491_v44 = vld [vmem:[#allocation6 + $0x80] sm:$0xf]  ;;  %v9580_v50 = vor.u32 %v11729_v42, %v9579_v41  ;;  %v9901_v4 = vld [vmem:[#allocation6 + $0xbc0] sm:$0xf0] }
 0x11e   :  { %5192 = vmatpush.bf16.msra.mxu0 %v8812_v29  ;;  %v1854_v24 = vpop.f32.mrf.mxu2  ;;  %v1830_v39 = vpop.f32.mrf.mxu0  ;;  %v11457_v45 = vld [vmem:[#allocation6 + $0xbc] sm:$0xf0]  ;;  %v9904_v25 = vor.u32 %v11801_v3, %v9901_v4  ;;  %v9261_v16 = vld [vmem:[#allocation6 + $0x6c0] sm:$0xf0] }
 0x11f   :  { %5205 = vmatpush.bf16.msra.mxu1 %v9324_v40  ;;  %v1867_v33 = vpop.f32.mrf.mxu3  ;;  %v1843_v47 = vpop.f32.mrf.mxu1  ;;  %v9003_v48 = vld [vmem:[#allocation6 + $0x480] sm:$0xf]  ;;  %v1855_v51 = vadd.f32 %v1854_v24, %v1842_v37  ;;  %v8492_v10 = vor.u32 %v11457_v45, %v8491_v44  ;;  %v8877_v40 = vld [vmem:[#allocation6 + $0x3c0] sm:$0xf0] }
 0x120   :  { %5218 = vmatpush.bf16.msra.mxu2 %v9836_v63  ;;  %v11585_v49 = vld [vmem:[#allocation6 + $0x4bc] sm:$0xf0]  ;;  %v8685_v24 = vld [vmem:[#allocation6 + $0x240] sm:$0xf0] }
 0x121   :  { %v9515_v27 = vld [vmem:[#allocation6 + $0x880] sm:$0xf]  ;;  %v9004_v53 = vor.u32 %v11585_v49, %v9003_v48  ;;  %v1868_v63 = vadd.f32 %v1867_v33, %v1855_v51  ;;  %v11625_v26 = vld [vmem:[#allocation6 + $0x604] sm:$0xf] }
 0x122   :  { %5193 = vmatpush.bf16.msra.mxu0 %v8748_v0  ;;  %v11713_v52 = vld [vmem:[#allocation6 + $0x8bc] sm:$0xf0]  ;;  %v9197_v30 = vld [vmem:[#allocation6 + $0x640] sm:$0xf0] }
 0x123   :  { %5206 = vmatpush.bf16.msra.mxu1 %v9260_v17  ;;  %v8427_v54 = vld [vmem:[#allocation6] sm:$0xf]  ;;  %v9516_v62 = vor.u32 %v11713_v52, %v9515_v27  ;;  %v8880_v17 = vor.u32 %v11545_v57, %v8877_v40  ;;  %v12362_v9 = vpack.c.bf16 %v1868_v63, %v1868_v63  ;;  %v9709_v37 = vld [vmem:[#allocation6 + $0xa40] sm:$0xf0]  ;;  %v9200_v39 = vor.u32 %v11625_v26, %v9197_v30 }
 0x124   :  { %5219 = vmatpush.bf16.msra.mxu2 %v9772_v31  ;;  %v11441_v28 = vld [vmem:[#allocation6 + $0x3c] sm:$0xf0]  ;;  %v8813_v31 = vld [vmem:[#allocation6 + $0x340] sm:$0xf0] }
 0x125   :  { %v8939_v29 = vld [vmem:[#allocation6 + $0x400] sm:$0xf]  ;;  %v8428_v46 = vor.u32 %v11441_v28, %v8427_v54  ;;  %v8816_v11 = vor.u32 %v11529_v22, %v8813_v31  ;;  %v11481_v41 = vld [vmem:[#allocation6 + $0x184] sm:$0xf] }
 0x126   :  { %5194 = vmatpush.bf16.msra.mxu0 %v8684_v18  ;;  %v1856_v55 = vpop.f32.mrf.mxu2  ;;  %v11569_v56 = vld [vmem:[#allocation6 + $0x43c] sm:$0xf0]  ;;  %v9325_v18 = vld [vmem:[#allocation6 + $0x740] sm:$0xf0] }
 0x127   :  { %5207 = vmatpush.bf16.msra.mxu1 %v9196_v34  ;;  %v1869_v58 = vpop.f32.mrf.mxu3  ;;  %v9451_v0 = vld [vmem:[#allocation6 + $0x800] sm:$0xf]  ;;  %v8940_v2 = vor.u32 %v11569_v56, %v8939_v29  ;;  %v12366_v34 = vpack.c.bf16 %v12343_v8, %v12343_v8  ;;  %v9328_v14 = vor.u32 %v11657_v6, %v9325_v18  ;;  %v8621_v42 = vld [vmem:[#allocation6 + $0x1c0] sm:$0xf0] }
 0x128   :  { %5220 = vmatpush.bf16.msra.mxu2 %v9708_v15  ;;  %v11697_v1 = vld [vmem:[#allocation6 + $0x83c] sm:$0xf0]  ;;  %v8749_v15 = vld [vmem:[#allocation6 + $0x2c0] sm:$0xf0]  ;;  %v8624_v49 = vor.u32 %v11481_v41, %v8621_v42  ;;  %v11666_v41 = vld [vmem:[#allocation6 + $0x744] sm:$0xf0] }
 0x129   :  { %v9452_v7 = vor.u32 %v11697_v1, %v9451_v0  ;;  %v8752_v8 = vor.u32 %v11513_v32, %v8749_v15  ;;  %v11609_v44 = vld [vmem:[#allocation6 + $0x584] sm:$0xf]  ;;  %v12376_v0 = vld [vmem:[#allocation4] sm:$0xf]  ;;  %v10411_v4 = vld [vmem:[#allocation6 + $0xf80] sm:$0xf] }
 0x12a   :  { %5195 = vmatpush.bf16.msra.mxu0 %v8620_v38  ;;  %v11641_v38 = vld [vmem:[#allocation6 + $0x684] sm:$0xf]  ;;  %v359_v1 = vperm.slane %v12376_v0, 2  ;;  %v10347_v15 = vld [vmem:[#allocation6 + $0xf00] sm:$0xf] }
 0x12b   :  { %5208 = vmatpush.bf16.msra.mxu1 %v9132_v60  ;;  %v9773_v60 = vld [vmem:[#allocation6 + $0xac0] sm:$0xf0]  ;;  %v9264_v21 = vor.u32 %v11641_v38, %v9261_v16  ;;  %v11921_v38 = vld [vmem:[#allocation6 + $0xf3c] sm:$0xf0]  ;;  %v9395_v16 = vld [vmem:[#allocation6 + $0x788] sm:$0xf] }
 0x12c   :  { %5221 = vmatpush.bf16.msra.mxu2 %v9644_v35  ;;  %v9776_v33 = vor.u32 %v11769_v20, %v9773_v60  ;;  %v8688_v35 = vor.u32 %v11497_v23, %v8685_v24  ;;  %v9133_v45 = vld [vmem:[#allocation6 + $0x5c0] sm:$0xf0]  ;;  %v10348_v60 = vor.u32 %v11921_v38, %v10347_v15  ;;  %v11602_v15 = vld [vmem:[#allocation6 + $0x544] sm:$0xf0]  ;;  %v10027_v38 = vld [vmem:[#allocation6 + $0xc80] sm:$0xf] }
 0x12d   :  { %v9645_v51 = vld [vmem:[#allocation6 + $0x9c0] sm:$0xf0] }
 0x12e   :  { %5196 = vmatpush.bf16.msra.mxu0 %v8556_v36  ;;  %v11753_v36 = vld [vmem:[#allocation6 + $0xa04] sm:$0xf] }
 0x12f   :  { %5209 = vmatpush.bf16.msra.mxu1 %v9068_v43  ;;  %v9712_v48 = vor.u32 %v11753_v36, %v9709_v37  ;;  %v11465_v27 = vld [vmem:[#allocation6 + $0x104] sm:$0xf]  ;;  %v8819_v36 = vld [vmem:[#allocation6 + $0x308] sm:$0xf] }
 0x130   :  { %5222 = vmatpush.bf16.msra.mxu2 %v9580_v50  ;;  %v11737_v50 = vld [vmem:[#allocation6 + $0x984] sm:$0xf]  ;;  %v11538_v37 = vld [vmem:[#allocation6 + $0x344] sm:$0xf0] }
 0x131   :  { %v8557_v52 = vld [vmem:[#allocation6 + $0x140] sm:$0xf0]  ;;  %v9648_v55 = vor.u32 %v11737_v50, %v9645_v51  ;;  %v8755_v51 = vld [vmem:[#allocation6 + $0x288] sm:$0xf] }
 0x132   :  { %5197 = vmatpush.bf16.msra.mxu0 %v8492_v10  ;;  %v9136_v10 = vor.u32 %v11609_v44, %v9133_v45  ;;  %v9069_v54 = vld [vmem:[#allocation6 + $0x540] sm:$0xf0]  ;;  %v8560_v56 = vor.u32 %v11465_v27, %v8557_v52  ;;  %v10283_v44 = vld [vmem:[#allocation6 + $0xe80] sm:$0xf]  ;;  %v9267_v27 = vld [vmem:[#allocation6 + $0x688] sm:$0xf] }
 0x133   :  { %5210 = vmatpush.bf16.msra.mxu1 %v9004_v53  ;;  %v11593_v53 = vld [vmem:[#allocation6 + $0x504] sm:$0xf]  ;;  %v11905_v45 = vld [vmem:[#allocation6 + $0xebc] sm:$0xf0]  ;;  %v11650_v52 = vld [vmem:[#allocation6 + $0x6c4] sm:$0xf0] }
 0x134   :  { %5223 = vmatpush.bf16.msra.mxu2 %v9516_v62  ;;  %v11721_v57 = vld [vmem:[#allocation6 + $0x904] sm:$0xf]  ;;  %v9072_v58 = vor.u32 %v11593_v53, %v9069_v54  ;;  %v10219_v53 = vld [vmem:[#allocation6 + $0xe00] sm:$0xf] }
 0x135   :  { %v9581_v40 = vld [vmem:[#allocation6 + $0x940] sm:$0xf0]  ;;  %v11889_v54 = vld [vmem:[#allocation6 + $0xe3c] sm:$0xf0] }
 0x136   :  { %5198 = vmatpush.bf16.msra.mxu0 %v8428_v46  ;;  %v1880_v43 = vpop.f32.mrf.mxu0  ;;  %v11449_v59 = vld [vmem:[#allocation6 + $0x84] sm:$0xf]  ;;  %v9584_v3 = vor.u32 %v11721_v57, %v9581_v40  ;;  %v9268_v57 = vor.u32 %v11650_v52, %v9267_v27  ;;  %v8691_v40 = vld [vmem:[#allocation6 + $0x208] sm:$0xf] }
 0x137   :  { %5211 = vmatpush.bf16.msra.mxu1 %v8940_v2  ;;  %v12370_v47 = vpop.f32.mrf.mxu1  ;;  %v8493_v61 = vld [vmem:[#allocation6 + $0xc0] sm:$0xf0]  ;;  %v11442_v27 = vld [vmem:[#allocation6 + $0x44] sm:$0xf0] }
 0x138   :  { %5224 = vmatpush.bf16.msra.mxu2 %v9452_v7  ;;  %v11577_v63 = vld [vmem:[#allocation6 + $0x484] sm:$0xf]  ;;  %v8496_v22 = vor.u32 %v11449_v59, %v8493_v61  ;;  %v9203_v59 = vld [vmem:[#allocation6 + $0x608] sm:$0xf] }
 0x139   :  { %5199 = vmatmul.bf16.vlgmr.msra.gmra.mxu0 %v12366_v34  ;;  %v9005_v46 = vld [vmem:[#allocation6 + $0x4c0] sm:$0xf0]  ;;  %v11634_v61 = vld [vmem:[#allocation6 + $0x644] sm:$0xf0] }
 0x13a   :  { %5243 = vmatpush.bf16.msrb.mxu0 %v8880_v17  ;;  %5212 = vmatmul.bf16.vlgmr.msra.gmra.mxu1 %v12362_v9  ;;  %v11433_v17 = vld [vmem:[#allocation6 + $0x4] sm:$0xf]  ;;  %v9843_v52 = vld [vmem:[#allocation6 + $0xb08] sm:$0xf] }
 0x13b   :  { %5256 = vmatpush.bf16.msrb.mxu1 %v9392_v5  ;;  %v11937_v5 = vld [vmem:[#allocation6 + $0xfbc] sm:$0xf0]  ;;  %v8429_v31 = vld [vmem:[#allocation6 + $0x40] sm:$0xf0] }
 0x13c   :  { %5269 = vmatpush.bf16.msrb.mxu2 %v9904_v25  ;;  %v11705_v6 = vld [vmem:[#allocation6 + $0x884] sm:$0xf]  ;;  %v10412_v7 = vor.u32 %v11937_v5, %v10411_v4  ;;  %v9008_v25 = vor.u32 %v11577_v63, %v9005_v46  ;;  %v8432_v23 = vor.u32 %v11433_v17, %v8429_v31  ;;  %v11873_v63 = vld [vmem:[#allocation6 + $0xdbc] sm:$0xf0]  ;;  %v8627_v17 = vld [vmem:[#allocation6 + $0x188] sm:$0xf] }
 0x13d   :  { %v9517_v18 = vld [vmem:[#allocation6 + $0x8c0] sm:$0xf0]  ;;  %v9139_v4 = vld [vmem:[#allocation6 + $0x588] sm:$0xf]  ;;  %v10091_v31 = vld [vmem:[#allocation6 + $0xd00] sm:$0xf] }
 0x13e   :  { %5244 = vmatpush.bf16.msrb.mxu0 %v8816_v11  ;;  %v12372_v28 = vpop.f32.mrf.mxu2  ;;  %v1882_v62 = vpop.f32.mrf.mxu0  ;;  %v11561_v11 = vld [vmem:[#allocation6 + $0x404] sm:$0xf]  ;;  %5230 = vmatpush.bf16.msra.mxu3 %v10412_v7  ;;  %v9520_v20 = vor.u32 %v11705_v6, %v9517_v18  ;;  %v11857_v6 = vld [vmem:[#allocation6 + $0xd3c] sm:$0xf0] }
 0x13f   :  { %5257 = vmatpush.bf16.msrb.mxu1 %v9328_v14  ;;  %v12374_v29 = vpop.f32.mrf.mxu3  ;;  %v1895_v2 = vpop.f32.mrf.mxu1  ;;  %v8941_v12 = vld [vmem:[#allocation6 + $0x440] sm:$0xf0]  ;;  %v11554_v14 = vld [vmem:[#allocation6 + $0x3c4] sm:$0xf0]  ;;  %v10155_v62 = vld [vmem:[#allocation6 + $0xd80] sm:$0xf] }
 0x140   :  { %5270 = vmatpush.bf16.msrb.mxu2 %v9840_v19  ;;  %v11682_v19 = vld [vmem:[#allocation6 + $0x7c4] sm:$0xf0]  ;;  %v11689_v24 = vld [vmem:[#allocation6 + $0x804] sm:$0xf]  ;;  %v8944_v30 = vor.u32 %v11561_v11, %v8941_v12 }
 0x141   :  { %v9453_v26 = vld [vmem:[#allocation6 + $0x840] sm:$0xf0] }
 0x142   :  { %5245 = vmatpush.bf16.msrb.mxu0 %v8752_v8  ;;  %5231 = vmatpush.bf16.msra.mxu3 %v10348_v60  ;;  %v9456_v42 = vor.u32 %v11689_v24, %v9453_v26  ;;  %v11810_v24 = vld [vmem:[#allocation6 + $0xbc4] sm:$0xf0] }
 0x143   :  { %5258 = vmatpush.bf16.msrb.mxu1 %v9264_v21  ;;  %v1881_v21 = vadd.f32 %v1880_v43, %v359_v1  ;;  %v10284_v43 = vor.u32 %v11905_v45, %v10283_v44  ;;  %v10156_v1 = vor.u32 %v11873_v63, %v10155_v62  ;;  %v8435_v45 = vld [vmem:[#allocation6 + $0x8] sm:$0xf]  ;;  %v11674_v62 = vld [vmem:[#allocation6 + $0x78c] sm:$0xf] }
 0x144   :  { %5271 = vmatpush.bf16.msrb.mxu2 %v9776_v33  ;;  %v8884_v33 = vor.u32 %v11554_v14, %v8883_v13  ;;  %v8563_v13 = vld [vmem:[#allocation6 + $0x108] sm:$0xf]  ;;  %v9397_v63 = vld [vmem:[#allocation6 + $0x7c8] sm:$0xf0] }
 0x145   :  { %v11474_v14 = vld [vmem:[#allocation6 + $0x144] sm:$0xf0] }
 0x146   :  { %5246 = vmatpush.bf16.msrb.mxu0 %v8688_v35  ;;  %v1908_v32 = vpop.f32.mrf.mxu2  ;;  %v9396_v35 = vor.u32 %v11682_v19, %v9395_v16  ;;  %5232 = vmatpush.bf16.msra.mxu3 %v10284_v43  ;;  %v11841_v16 = vld [vmem:[#allocation6 + $0xcbc] sm:$0xf0] }
 0x147   :  { %5259 = vmatpush.bf16.msrb.mxu1 %v9200_v39  ;;  %v1921_v8 = vpop.f32.mrf.mxu3  ;;  %v9331_v39 = vld [vmem:[#allocation6 + $0x708] sm:$0xf] }
 0x148   :  { %5272 = vmatpush.bf16.msrb.mxu2 %v9712_v48  ;;  %v1894_v48 = vadd.f32 %v12370_v47, %v1881_v21  ;;  %v9332_v50 = vor.u32 %v11666_v41, %v9331_v39  ;;  %v10220_v47 = vor.u32 %v11889_v54, %v10219_v53  ;;  %v9075_v32 = vld [vmem:[#allocation6 + $0x508] sm:$0xf]  ;;  %v10028_v8 = vor.u32 %v11841_v16, %v10027_v38  ;;  %v9963_v41 = vld [vmem:[#allocation6 + $0xc00] sm:$0xf]  ;;  %v11514_v38 = vld [vmem:[#allocation6 + $0x28c] sm:$0xf] }
 0x149   :  { %v8564_v21 = vor.u32 %v11474_v14, %v8563_v13  ;;  %v9076_v26 = vor.u32 %v11602_v15, %v9075_v32  ;;  %v11794_v53 = vld [vmem:[#allocation6 + $0xb44] sm:$0xf0]  ;;  %v8757_v16 = vld [vmem:[#allocation6 + $0x2c8] sm:$0xf0] }
 0x14a   :  { %5247 = vmatpush.bf16.msrb.mxu0 %v8624_v49  ;;  %v8820_v49 = vor.u32 %v11538_v37, %v8819_v36  ;;  %5233 = vmatpush.bf16.msra.mxu3 %v10220_v47  ;;  %v11586_v37 = vld [vmem:[#allocation6 + $0x4c4] sm:$0xf0] }
 0x14b   :  { %5260 = vmatpush.bf16.msrb.mxu1 %v9136_v10  ;;  %v11522_v10 = vld [vmem:[#allocation6 + $0x2c4] sm:$0xf0] }
 0x14c   :  { %5273 = vmatpush.bf16.msrb.mxu2 %v9648_v55  ;;  %v1907_v55 = vadd.f32 %v12372_v28, %v1894_v48  ;;  %v9204_v28 = vor.u32 %v11634_v61, %v9203_v59  ;;  %v8947_v47 = vld [vmem:[#allocation6 + $0x408] sm:$0xf]  ;;  %v10349_v59 = vld [vmem:[#allocation6 + $0xf40] sm:$0xf0]  ;;  %v9844_v61 = vor.u32 %v11794_v53, %v9843_v52  ;;  %v11610_v52 = vld [vmem:[#allocation6 + $0x58c] sm:$0xf] }
 0x14d   :  { %v11762_v13 = vld [vmem:[#allocation6 + $0xa44] sm:$0xf0] }
 0x14e   :  { %5248 = vmatpush.bf16.msrb.mxu0 %v8560_v56  ;;  %v8756_v56 = vor.u32 %v11522_v10, %v8755_v51  ;;  %v1920_v46 = vadd.f32 %v12374_v29, %v1907_v55  ;;  %5234 = vmatpush.bf16.msra.mxu3 %v10156_v1 }
 0x14f   :  { %5261 = vmatpush.bf16.msrb.mxu1 %v9072_v58  ;;  %v11506_v58 = vld [vmem:[#allocation6 + $0x244] sm:$0xf0] }
 0x150   :  { %5274 = vmatpush.bf16.msrb.mxu2 %v9584_v3  ;;  %v8692_v2 = vor.u32 %v11506_v58, %v8691_v40  ;;  %v11490_v3 = vld [vmem:[#allocation6 + $0x1c4] sm:$0xf0]  ;;  %v8885_v40 = vld [vmem:[#allocation6 + $0x3c8] sm:$0xf0]  ;;  %v11913_v58 = vld [vmem:[#allocation6 + $0xf04] sm:$0xf] }
 0x151   :  { %v8628_v11 = vor.u32 %v11490_v3, %v8627_v17  ;;  %v10352_v1 = vor.u32 %v11913_v58, %v10349_v59  ;;  %v11778_v17 = vld [vmem:[#allocation6 + $0xac4] sm:$0xf0] }
 0x152   :  { %5249 = vmatpush.bf16.msrb.mxu0 %v8496_v22  ;;  %v11618_v22 = vld [vmem:[#allocation6 + $0x5c4] sm:$0xf0] }
 0x153   :  { %5262 = vmatpush.bf16.msrb.mxu1 %v9008_v25  ;;  %v10092_v25 = vor.u32 %v11857_v6, %v10091_v31  ;;  %v9140_v12 = vor.u32 %v11618_v22, %v9139_v4  ;;  %v9400_v22 = vor.u32 %v11674_v62, %v9397_v63  ;;  %v11530_v31 = vld [vmem:[#allocation6 + $0x30c] sm:$0xf] }
 0x154   :  { %5275 = vmatpush.bf16.msrb.mxu2 %v9520_v20  ;;  %v8821_v6 = vld [vmem:[#allocation6 + $0x348] sm:$0xf0] }
 0x155   :  { %5235 = vmatpush.bf16.msra.mxu3 %v10092_v25  ;;  %v9333_v25 = vld [vmem:[#allocation6 + $0x748] sm:$0xf0]  ;;  %v8824_v32 = vor.u32 %v11530_v31, %v8821_v6 }
 0x156   :  { %5250 = vmatpush.bf16.msrb.mxu0 %v8432_v23  ;;  %v1932_v5 = vpop.f32.mrf.mxu0  ;;  %v9907_v23 = vld [vmem:[#allocation6 + $0xb88] sm:$0xf]  ;;  %v11466_v63 = vld [vmem:[#allocation6 + $0x10c] sm:$0xf] }
 0x157   :  { %5263 = vmatpush.bf16.msrb.mxu1 %v8944_v30  ;;  %v1933_v18 = vadd.f32 %v1932_v5, %v1920_v46  ;;  %v1945_v7 = vpop.f32.mrf.mxu1  ;;  %v8499_v30 = vld [vmem:[#allocation6 + $0x88] sm:$0xf]  ;;  %v9908_v44 = vor.u32 %v11810_v24, %v9907_v23 }
 0x158   :  { %5276 = vmatpush.bf16.msrb.mxu2 %v9456_v42  ;;  %v11825_v42 = vld [vmem:[#allocation6 + $0xc3c] sm:$0xf0]  ;;  %v9651_v23 = vld [vmem:[#allocation6 + $0x988] sm:$0xf] }
 0x159   :  { %5251 = vmatmul.bf16.vlgmr.msrb.gmra.mxu0 %v12366_v34  ;;  %v1946_v29 = vadd.f32 %v1945_v7, %v1933_v18  ;;  %5236 = vmatpush.bf16.msra.mxu3 %v10028_v8  ;;  %v9964_v43 = vor.u32 %v11825_v42, %v9963_v41  ;;  %v11658_v18 = vld [vmem:[#allocation6 + $0x70c] sm:$0xf]  ;;  %v11746_v24 = vld [vmem:[#allocation6 + $0x9c4] sm:$0xf0]  ;;  %v11865_v42 = vld [vmem:[#allocation6 + $0xd84] sm:$0xf] }
 0x15a   :  { %5295 = vmatpush.bf16.msra.mxu0 %v8884_v33  ;;  %5264 = vmatmul.bf16.vlgmr.msrb.gmra.mxu1 %v12362_v9  ;;  %v11458_v33 = vld [vmem:[#allocation6 + $0xc4] sm:$0xf0]  ;;  %v9336_v15 = vor.u32 %v11658_v18, %v9333_v25  ;;  %v9205_v41 = vld [vmem:[#allocation6 + $0x648] sm:$0xf0] }
 0x15b   :  { %5308 = vmatpush.bf16.msra.mxu1 %v9396_v35  ;;  %v9011_v35 = vld [vmem:[#allocation6 + $0x488] sm:$0xf]  ;;  %v8500_v10 = vor.u32 %v11458_v33, %v8499_v30  ;;  %v8760_v30 = vor.u32 %v11514_v38, %v8757_v16  ;;  %v11802_v18 = vld [vmem:[#allocation6 + $0xb8c] sm:$0xf]  ;;  %v9965_v38 = vld [vmem:[#allocation6 + $0xc40] sm:$0xf0] }
 0x15c   :  { %v9012_v55 = vor.u32 %v11586_v37, %v9011_v35  ;;  %v11498_v35 = vld [vmem:[#allocation6 + $0x20c] sm:$0xf] }
 0x15d   :  { %5237 = vmatpush.bf16.msra.mxu3 %v9964_v43  ;;  %v11626_v37 = vld [vmem:[#allocation6 + $0x60c] sm:$0xf] }
 0x15e   :  { %5296 = vmatpush.bf16.msra.mxu0 %v8820_v49  ;;  %v1958_v19 = vpop.f32.mrf.mxu2  ;;  %v1934_v39 = vpop.f32.mrf.mxu0  ;;  %v11929_v49 = vld [vmem:[#allocation6 + $0xf84] sm:$0xf] }
 0x15f   :  { %5309 = vmatpush.bf16.msra.mxu1 %v9332_v50  ;;  %v1959_v20 = vadd.f32 %v1958_v19, %v1946_v29  ;;  %v1971_v60 = vpop.f32.mrf.mxu3  ;;  %v1947_v48 = vpop.f32.mrf.mxu1  ;;  %v10413_v50 = vld [vmem:[#allocation6 + $0xfc0] sm:$0xf0]  ;;  %v11642_v19 = vld [vmem:[#allocation6 + $0x68c] sm:$0xf]  ;;  %v9652_v39 = vor.u32 %v11746_v24, %v9651_v23 }
 0x160   :  { %v10416_v54 = vor.u32 %v11929_v49, %v10413_v50  ;;  %v10285_v29 = vld [vmem:[#allocation6 + $0xec0] sm:$0xf0]  ;;  %v11730_v48 = vld [vmem:[#allocation6 + $0x944] sm:$0xf0]  ;;  %v9208_v50 = vor.u32 %v11626_v37, %v9205_v41  ;;  %v9845_v23 = vld [vmem:[#allocation6 + $0xb48] sm:$0xf0] }
 0x161   :  { %v1972_v36 = vadd.f32 %v1971_v60, %v1959_v20  ;;  %v9269_v20 = vld [vmem:[#allocation6 + $0x6c8] sm:$0xf0]  ;;  %v11881_v60 = vld [vmem:[#allocation6 + $0xe04] sm:$0xf]  ;;  %v11555_v37 = vld [vmem:[#allocation6 + $0x3cc] sm:$0xf0] }
 0x162   :  { %5297 = vmatpush.bf16.msra.mxu0 %v8756_v56  ;;  %v11570_v56 = vld [vmem:[#allocation6 + $0x444] sm:$0xf0]  ;;  %5282 = vmatpush.bf16.msrb.mxu3 %v10416_v54  ;;  %v9272_v33 = vor.u32 %v11642_v19, %v9269_v20  ;;  %v9141_v54 = vld [vmem:[#allocation6 + $0x5c8] sm:$0xf0] }
 0x163   :  { %5310 = vmatpush.bf16.msra.mxu1 %v9268_v57  ;;  %v12384_v51 = vpack.c.bf16 %v1972_v36, %v1972_v36  ;;  %v11546_v57 = vld [vmem:[#allocation6 + $0x38c] sm:$0xf]  ;;  %v8948_v4 = vor.u32 %v11570_v56, %v8947_v47  ;;  %v10093_v47 = vld [vmem:[#allocation6 + $0xd40] sm:$0xf0]  ;;  %v9144_v62 = vor.u32 %v11610_v52, %v9141_v54  ;;  %v11539_v54 = vld [vmem:[#allocation6 + $0x34c] sm:$0xf0] }
 0x164   :  { %v8888_v5 = vor.u32 %v11546_v57, %v8885_v40  ;;  %v8693_v36 = vld [vmem:[#allocation6 + $0x248] sm:$0xf0]  ;;  %v9523_v57 = vld [vmem:[#allocation6 + $0x888] sm:$0xf] }
 0x165   :  { %5225 = vmatmul.bf16.vlgmr.msra.gmra.mxu2 %v12384_v51  ;;  %v8696_v49 = vor.u32 %v11498_v35, %v8693_v36  ;;  %v11714_v40 = vld [vmem:[#allocation6 + $0x8c4] sm:$0xf0]  ;;  %v8949_v35 = vld [vmem:[#allocation6 + $0x448] sm:$0xf0]  ;;  %v8891_v36 = vld [vmem:[#allocation6 + $0x390] sm:$0xf] }
 0x166   :  { %5298 = vmatpush.bf16.msra.mxu0 %v8692_v2  ;;  %5321 = vmatpush.bf16.msra.mxu2 %v9908_v44  ;;  %v1960_v46 = vpop.f32.mrf.mxu2  ;;  %v8436_v2 = vor.u32 %v11442_v27, %v8435_v45  ;;  %v10157_v44 = vld [vmem:[#allocation6 + $0xdc0] sm:$0xf0]  ;;  %v9587_v45 = vld [vmem:[#allocation6 + $0x908] sm:$0xf]  ;;  %v8629_v27 = vld [vmem:[#allocation6 + $0x1c8] sm:$0xf0] }
 0x167   :  { %5311 = vmatpush.bf16.msra.mxu1 %v9204_v28  ;;  %v9779_v28 = vld [vmem:[#allocation6 + $0xa88] sm:$0xf]  ;;  %v1973_v3 = vpop.f32.mrf.mxu3  ;;  %5283 = vmatpush.bf16.msrb.mxu3 %v10352_v1  ;;  %v10160_v43 = vor.u32 %v11865_v42, %v10157_v44  ;;  %v9588_v53 = vor.u32 %v11730_v48, %v9587_v45  ;;  %v8565_v46 = vld [vmem:[#allocation6 + $0x148] sm:$0xf0]  ;;  %v9403_v42 = vld [vmem:[#allocation6 + $0x790] sm:$0xf] }
 0x168   :  { %v9780_v7 = vor.u32 %v11778_v17, %v9779_v28  ;;  %v11594_v1 = vld [vmem:[#allocation6 + $0x50c] sm:$0xf]  ;;  %v11833_v17 = vld [vmem:[#allocation6 + $0xc84] sm:$0xf]  ;;  %v8568_v31 = vor.u32 %v11466_v63, %v8565_v46  ;;  %v11683_v44 = vld [vmem:[#allocation6 + $0x7cc] sm:$0xf0] }
 0x169   :  { %v9077_v28 = vld [vmem:[#allocation6 + $0x548] sm:$0xf0]  ;;  %v10029_v3 = vld [vmem:[#allocation6 + $0xcc0] sm:$0xf0]  ;;  %v9404_v52 = vor.u32 %v11683_v44, %v9403_v42  ;;  %v8763_v63 = vld [vmem:[#allocation6 + $0x290] sm:$0xf] }
 0x16a   :  { %5299 = vmatpush.bf16.msra.mxu0 %v8628_v11  ;;  %5322 = vmatpush.bf16.msra.mxu2 %v9844_v61  ;;  %v11897_v11 = vld [vmem:[#allocation6 + $0xe84] sm:$0xf]  ;;  %v9080_v25 = vor.u32 %v11594_v1, %v9077_v28  ;;  %v11523_v46 = vld [vmem:[#allocation6 + $0x2cc] sm:$0xf0] }
 0x16b   :  { %5312 = vmatpush.bf16.msra.mxu1 %v9140_v12  ;;  %v9715_v12 = vld [vmem:[#allocation6 + $0xa08] sm:$0xf]  ;;  %v10288_v14 = vor.u32 %v11897_v11, %v10285_v29  ;;  %v11450_v29 = vld [vmem:[#allocation6 + $0x8c] sm:$0xf]  ;;  %v11651_v28 = vld [vmem:[#allocation6 + $0x6cc] sm:$0xf0] }
 0x16c   :  { %v9716_v8 = vor.u32 %v11762_v13, %v9715_v12  ;;  %v8501_v12 = vld [vmem:[#allocation6 + $0xc8] sm:$0xf0]  ;;  %v9915_v44 = vld [vmem:[#allocation6 + $0xb90] sm:$0xf] }
 0x16d   :  { %5284 = vmatpush.bf16.msrb.mxu3 %v10288_v14  ;;  %v11578_v13 = vld [vmem:[#allocation6 + $0x48c] sm:$0xf]  ;;  %v8504_v20 = vor.u32 %v11450_v29, %v8501_v12 }
 0x16e   :  { %5300 = vmatpush.bf16.msra.mxu0 %v8564_v21  ;;  %5323 = vmatpush.bf16.msra.mxu2 %v9780_v7  ;;  %v10221_v21 = vld [vmem:[#allocation6 + $0xe40] sm:$0xf0]  ;;  %v9909_v7 = vld [vmem:[#allocation6 + $0xbc8] sm:$0xf0] }
 0x16f   :  { %5313 = vmatpush.bf16.msra.mxu1 %v9076_v26  ;;  %v10224_v26 = vor.u32 %v11881_v60, %v10221_v21  ;;  %v9912_v16 = vor.u32 %v11802_v18, %v9909_v7  ;;  %v11786_v21 = vld [vmem:[#allocation6 + $0xb0c] sm:$0xf]  ;;  %v9211_v7 = vld [vmem:[#allocation6 + $0x610] sm:$0xf] }
 0x170   :  { %v9848_v41 = vor.u32 %v11786_v21, %v9845_v23  ;;  %v11722_v29 = vld [vmem:[#allocation6 + $0x90c] sm:$0xf] }
 0x171   :  { %5285 = vmatpush.bf16.msrb.mxu3 %v10224_v26  ;;  %v11434_v26 = vld [vmem:[#allocation6 + $0xc] sm:$0xf] }
 0x172   :  { %5301 = vmatpush.bf16.msra.mxu0 %v8500_v10  ;;  %5324 = vmatpush.bf16.msra.mxu2 %v9716_v8  ;;  %v11482_v10 = vld [vmem:[#allocation6 + $0x18c] sm:$0xf] }
 0x173   :  { %5314 = vmatpush.bf16.msra.mxu1 %v9012_v55  ;;  %v11849_v55 = vld [vmem:[#allocation6 + $0xd04] sm:$0xf]  ;;  %v8632_v59 = vor.u32 %v11482_v10, %v8629_v27  ;;  %v8892_v10 = vor.u32 %v11555_v37, %v8891_v36  ;;  %v9589_v12 = vld [vmem:[#allocation6 + $0x948] sm:$0xf0]  ;;  %v9083_v36 = vld [vmem:[#allocation6 + $0x510] sm:$0xf] }
 0x174   :  { %v10096_v58 = vor.u32 %v11849_v55, %v10093_v47  ;;  %v9339_v47 = vld [vmem:[#allocation6 + $0x710] sm:$0xf]  ;;  %v9525_v21 = vld [vmem:[#allocation6 + $0x8c8] sm:$0xf0] }
 0x175   :  { %5277 = vmatmul.bf16.vlgmr.msrb.gmra.mxu2 %v12384_v51  ;;  %5286 = vmatpush.bf16.msrb.mxu3 %v10160_v43  ;;  %v11770_v43 = vld [vmem:[#allocation6 + $0xa8c] sm:$0xf]  ;;  %v11603_v37 = vld [vmem:[#allocation6 + $0x54c] sm:$0xf0] }
 0x176   :  { %5302 = vmatpush.bf16.msra.mxu0 %v8436_v2  ;;  %5325 = vmatpush.bf16.msra.mxu2 %v9652_v39  ;;  %v12390_v56 = vpop.f32.mrf.mxu0  ;;  %v9524_v2 = vor.u32 %v11714_v40, %v9523_v57  ;;  %v360_v39 = vperm.slane %v12376_v0, 3  ;;  %v11667_v57 = vld [vmem:[#allocation6 + $0x74c] sm:$0xf0]  ;;  %v11754_v40 = vld [vmem:[#allocation6 + $0xa0c] sm:$0xf] }
 0x177   :  { %5315 = vmatpush.bf16.msra.mxu1 %v8948_v4  ;;  %v12392_v61 = vpop.f32.mrf.mxu1  ;;  %v9459_v4 = vld [vmem:[#allocation6 + $0x808] sm:$0xf] }
 0x178   :  { %v1985_v0 = vadd.f32 %v12390_v56, %v360_v39  ;;  %v9461_v39 = vld [vmem:[#allocation6 + $0x848] sm:$0xf0] }
 0x179   :  { %5303 = vmatmul.bf16.vlgmr.msra.gmra.mxu0 %v12366_v34  ;;  %5287 = vmatpush.bf16.msrb.mxu3 %v10096_v58  ;;  %v9717_v58 = vld [vmem:[#allocation6 + $0xa48] sm:$0xf0] }
 0x17a   :  { %5347 = vmatpush.bf16.msrb.mxu0 %v8888_v5  ;;  %5316 = vmatmul.bf16.vlgmr.msra.gmra.mxu1 %v12362_v9  ;;  %v11698_v5 = vld [vmem:[#allocation6 + $0x844] sm:$0xf0]  ;;  %v1998_v1 = vadd.f32 %v12392_v61, %v1985_v0  ;;  %v9720_v56 = vor.u32 %v11754_v40, %v9717_v58 }
 0x17b   :  { %5360 = vmatpush.bf16.msrb.mxu1 %v9400_v22  ;;  %5326 = vmatpush.bf16.msra.mxu2 %v9588_v53  ;;  %v10032_v22 = vor.u32 %v11833_v17, %v10029_v3  ;;  %v9460_v14 = vor.u32 %v11698_v5, %v9459_v4  ;;  %v8827_v53 = vld [vmem:[#allocation6 + $0x310] sm:$0xf]  ;;  %v11738_v17 = vld [vmem:[#allocation6 + $0x98c] sm:$0xf]  ;;  %v8764_v4 = vor.u32 %v11523_v46, %v8763_v63  ;;  %v11938_v0 = vld [vmem:[#allocation6 + $0xfc4] sm:$0xf0] }
 0x17c   :  { %v9653_v3 = vld [vmem:[#allocation6 + $0x9c8] sm:$0xf0]  ;;  %v9851_v63 = vld [vmem:[#allocation6 + $0xb10] sm:$0xf] }
 0x17d   :  { %5288 = vmatpush.bf16.msrb.mxu3 %v10032_v22  ;;  %v8699_v22 = vld [vmem:[#allocation6 + $0x210] sm:$0xf]  ;;  %v9656_v61 = vor.u32 %v11738_v17, %v9653_v3 }
 0x17e   :  { %5348 = vmatpush.bf16.msrb.mxu0 %v8824_v32  ;;  %v12394_v6 = vpop.f32.mrf.mxu2  ;;  %v9013_v32 = vld [vmem:[#allocation6 + $0x4c8] sm:$0xf0]  ;;  %v1986_v19 = vpop.f32.mrf.mxu0  ;;  %v11795_v46 = vld [vmem:[#allocation6 + $0xb4c] sm:$0xf0] }
 0x17f   :  { %5361 = vmatpush.bf16.msrb.mxu1 %v9336_v15  ;;  %v12396_v11 = vpop.f32.mrf.mxu3  ;;  %5327 = vmatpush.bf16.msra.mxu2 %v9524_v2  ;;  %v11817_v15 = vld [vmem:[#allocation6 + $0xc04] sm:$0xf]  ;;  %v1999_v60 = vpop.f32.mrf.mxu1  ;;  %v9016_v24 = vor.u32 %v11578_v13, %v9013_v32  ;;  %v9275_v2 = vld [vmem:[#allocation6 + $0x690] sm:$0xf]  ;;  %v2011_v18 = vadd.f32 %v12394_v6, %v1998_v1  ;;  %v9592_v19 = vor.u32 %v11722_v29, %v9589_v12 }
 0x180   :  { %v9968_v8 = vor.u32 %v11817_v15, %v9965_v38  ;;  %v9276_v5 = vor.u32 %v11651_v28, %v9275_v2  ;;  %v8635_v32 = vld [vmem:[#allocation6 + $0x190] sm:$0xf]  ;;  %v11706_v60 = vld [vmem:[#allocation6 + $0x88c] sm:$0xf]  ;;  %v11922_v2 = vld [vmem:[#allocation6 + $0xf44] sm:$0xf0] }
 0x181   :  { %v11491_v15 = vld [vmem:[#allocation6 + $0x1cc] sm:$0xf0]  ;;  %v2024_v38 = vadd.f32 %v12396_v11, %v2011_v18  ;;  %v11690_v11 = vld [vmem:[#allocation6 + $0x80c] sm:$0xf]  ;;  %v8893_v18 = vld [vmem:[#allocation6 + $0x3d0] sm:$0xf0] }
 0x182   :  { %5349 = vmatpush.bf16.msrb.mxu0 %v8760_v30  ;;  %v8437_v30 = vld [vmem:[#allocation6 + $0x48] sm:$0xf0]  ;;  %5289 = vmatpush.bf16.msrb.mxu3 %v9968_v8  ;;  %v9147_v8 = vld [vmem:[#allocation6 + $0x590] sm:$0xf] }
 0x183   :  { %5362 = vmatpush.bf16.msrb.mxu1 %v9272_v33  ;;  %v11562_v33 = vld [vmem:[#allocation6 + $0x40c] sm:$0xf]  ;;  %5328 = vmatpush.bf16.msra.mxu2 %v9460_v14  ;;  %v8440_v45 = vor.u32 %v11434_v26, %v8437_v30  ;;  %v8571_v30 = vld [vmem:[#allocation6 + $0x110] sm:$0xf] }
 0x184   :  { %v8443_v28 = vld [vmem:[#allocation6 + $0x10] sm:$0xf] }
 0x185   :  { %v11443_v17 = vld [vmem:[#allocation6 + $0x4c] sm:$0xf0] }
 0x186   :  { %5350 = vmatpush.bf16.msrb.mxu0 %v8696_v49  ;;  %v2012_v48 = vpop.f32.mrf.mxu2  ;;  %v9781_v49 = vld [vmem:[#allocation6 + $0xac8] sm:$0xf0]  ;;  %5329 = vmatmul.bf16.vlgmr.msra.gmra.mxu2 %v12384_v51  ;;  %v9787_v29 = vld [vmem:[#allocation6 + $0xa90] sm:$0xf] }
 0x187   :  { %5363 = vmatpush.bf16.msrb.mxu1 %v9208_v50  ;;  %5373 = vmatpush.bf16.msrb.mxu2 %v9912_v16  ;;  %v8952_v50 = vor.u32 %v11562_v33, %v8949_v35  ;;  %v2025_v27 = vpop.f32.mrf.mxu3  ;;  %v9784_v55 = vor.u32 %v11770_v43, %v9781_v49  ;;  %v11475_v33 = vld [vmem:[#allocation6 + $0x14c] sm:$0xf0]  ;;  %v9528_v35 = vor.u32 %v11706_v60, %v9525_v21  ;;  %v10419_v49 = vld [vmem:[#allocation6 + $0xf88] sm:$0xf]  ;;  %v8829_v60 = vld [vmem:[#allocation6 + $0x350] sm:$0xf0] }
 0x188   :  { %v8572_v42 = vor.u32 %v11475_v33, %v8571_v30  ;;  %v9084_v43 = vor.u32 %v11603_v37, %v9083_v36  ;;  %v10420_v1 = vor.u32 %v11938_v0, %v10419_v49  ;;  %v11779_v12 = vld [vmem:[#allocation6 + $0xacc] sm:$0xf0]  ;;  %v11659_v21 = vld [vmem:[#allocation6 + $0x714] sm:$0xf]  ;;  %v10227_v36 = vld [vmem:[#allocation6 + $0xe08] sm:$0xf] }
 0x189   :  { %v11890_v37 = vld [vmem:[#allocation6 + $0xe44] sm:$0xf0]  ;;  %v12412_v49 = vld [vmem:[#allocation7] sm:$0xff]  ;;  %v8701_v0 = vld [vmem:[#allocation6 + $0x250] sm:$0xf0] }
 0x18a   :  { %5351 = vmatpush.bf16.msrb.mxu0 %v8632_v59  ;;  %v8828_v59 = vor.u32 %v11539_v54, %v8827_v53  ;;  %v9464_v54 = vor.u32 %v11690_v11, %v9461_v39  ;;  %v11515_v11 = vld [vmem:[#allocation6 + $0x294] sm:$0xf] }
 0x18b   :  { %5364 = vmatpush.bf16.msrb.mxu1 %v9144_v62  ;;  %5374 = vmatpush.bf16.msrb.mxu2 %v9848_v41  ;;  %v9340_v62 = vor.u32 %v11667_v57, %v9339_v47  ;;  %v11587_v47 = vld [vmem:[#allocation6 + $0x4cc] sm:$0xf0] }
 0x18e   :  { %5352 = vmatpush.bf16.msrb.mxu0 %v8568_v31  ;;  %v11507_v31 = vld [vmem:[#allocation6 + $0x24c] sm:$0xf0] }
 0x18f   :  { %5365 = vmatpush.bf16.msrb.mxu1 %v9080_v25  ;;  %5375 = vmatpush.bf16.msrb.mxu2 %v9784_v55  ;;  %v11635_v25 = vld [vmem:[#allocation6 + $0x64c] sm:$0xf0]  ;;  %v8700_v13 = vor.u32 %v11507_v31, %v8699_v22  ;;  %v11547_v22 = vld [vmem:[#allocation6 + $0x394] sm:$0xf]  ;;  %v9852_v31 = vor.u32 %v11795_v46, %v9851_v63  ;;  %v10099_v46 = vld [vmem:[#allocation6 + $0xd08] sm:$0xf] }
 0x190   :  { %v9212_v14 = vor.u32 %v11635_v25, %v9211_v7  ;;  %v9019_v55 = vld [vmem:[#allocation6 + $0x490] sm:$0xf]  ;;  %v9405_v7 = vld [vmem:[#allocation6 + $0x7d0] sm:$0xf0]  ;;  %v8444_v25 = vor.u32 %v11443_v17, %v8443_v28 }
 0x191   :  { %v8637_v28 = vld [vmem:[#allocation6 + $0x1d0] sm:$0xf0] }
 0x192   :  { %5353 = vmatpush.bf16.msrb.mxu0 %v8504_v20  ;;  %v11619_v20 = vld [vmem:[#allocation6 + $0x5cc] sm:$0xf0]  ;;  %v11611_v17 = vld [vmem:[#allocation6 + $0x594] sm:$0xf] }
 0x193   :  { %5366 = vmatpush.bf16.msrb.mxu1 %v9016_v24  ;;  %5376 = vmatpush.bf16.msrb.mxu2 %v9720_v56  ;;  %v8636_v24 = vor.u32 %v11491_v15, %v8635_v32  ;;  %v9148_v26 = vor.u32 %v11619_v20, %v9147_v8  ;;  %v9020_v56 = vor.u32 %v11587_v47, %v9019_v55  ;;  %v11906_v8 = vld [vmem:[#allocation6 + $0xec4] sm:$0xf0]  ;;  %v11531_v20 = vld [vmem:[#allocation6 + $0x314] sm:$0xf] }
 0x194   :  { %v8832_v33 = vor.u32 %v11531_v20, %v8829_v60  ;;  %v11627_v55 = vld [vmem:[#allocation6 + $0x614] sm:$0xf]  ;;  %v11699_v20 = vld [vmem:[#allocation6 + $0x84c] sm:$0xf0] }
 0x195   :  { %v9213_v47 = vld [vmem:[#allocation6 + $0x650] sm:$0xf0] }
 0x196   :  { %5354 = vmatpush.bf16.msrb.mxu0 %v8440_v45  ;;  %v2036_v16 = vpop.f32.mrf.mxu0  ;;  %v11811_v45 = vld [vmem:[#allocation6 + $0xbcc] sm:$0xf0]  ;;  %v9216_v63 = vor.u32 %v11627_v55, %v9213_v47  ;;  %v11803_v60 = vld [vmem:[#allocation6 + $0xb94] sm:$0xf] }
 0x197   :  { %5367 = vmatpush.bf16.msrb.mxu1 %v8952_v50  ;;  %5377 = vmatpush.bf16.msrb.mxu2 %v9656_v61  ;;  %v2049_v6 = vpop.f32.mrf.mxu1  ;;  %v2037_v23 = vadd.f32 %v2036_v16, %v2024_v38  ;;  %v8507_v50 = vld [vmem:[#allocation6 + $0x90] sm:$0xf]  ;;  %v9916_v40 = vor.u32 %v11811_v45, %v9915_v44  ;;  %v11675_v61 = vld [vmem:[#allocation6 + $0x794] sm:$0xf]  ;;  %v8896_v38 = vor.u32 %v11547_v22, %v8893_v18 }
 0x198   :  { %v9408_v16 = vor.u32 %v11675_v61, %v9405_v7  ;;  %v9277_v44 = vld [vmem:[#allocation6 + $0x6d0] sm:$0xf0]  ;;  %v9659_v45 = vld [vmem:[#allocation6 + $0x990] sm:$0xf] }
 0x199   :  { %5355 = vmatmul.bf16.vlgmr.msrb.gmra.mxu0 %v12366_v34  ;;  %v2050_v41 = vadd.f32 %v2049_v6, %v2037_v23  ;;  %v9788_v6 = vor.u32 %v11779_v12, %v9787_v29  ;;  %v9341_v23 = vld [vmem:[#allocation6 + $0x750] sm:$0xf0]  ;;  %v9531_v22 = vld [vmem:[#allocation6 + $0x890] sm:$0xf]  ;;  %v10035_v12 = vld [vmem:[#allocation6 + $0xc88] sm:$0xf] }
 0x19a   :  { %5399 = vmatpush.bf16.msra.mxu0 %v8892_v10  ;;  %5368 = vmatmul.bf16.vlgmr.msrb.gmra.mxu1 %v12362_v9  ;;  %v11459_v10 = vld [vmem:[#allocation6 + $0xcc] sm:$0xf0]  ;;  %v8445_v55 = vld [vmem:[#allocation6 + $0x50] sm:$0xf0] }
 0x19b   :  { %5412 = vmatpush.bf16.msra.mxu1 %v9404_v52  ;;  %5378 = vmatpush.bf16.msrb.mxu2 %v9592_v19  ;;  %v10291_v19 = vld [vmem:[#allocation6 + $0xe88] sm:$0xf]  ;;  %v11563_v47 = vld [vmem:[#allocation6 + $0x414] sm:$0xf] }
 0x19c   :  { %v10292_v30 = vor.u32 %v11906_v8, %v10291_v19  ;;  %v9085_v19 = vld [vmem:[#allocation6 + $0x550] sm:$0xf0]  ;;  %v9467_v8 = vld [vmem:[#allocation6 + $0x810] sm:$0xf] }
 0x19e   :  { %5400 = vmatpush.bf16.msra.mxu0 %v8828_v59  ;;  %v2062_v48 = vpop.f32.mrf.mxu2  ;;  %v2038_v53 = vpop.f32.mrf.mxu0  ;;  %v8508_v59 = vor.u32 %v11459_v10, %v8507_v50 }
 0x19f   :  { %5413 = vmatpush.bf16.msra.mxu1 %v9340_v62  ;;  %v2063_v27 = vadd.f32 %v2062_v48, %v2050_v41  ;;  %v2075_v52 = vpop.f32.mrf.mxu3  ;;  %5379 = vmatpush.bf16.msrb.mxu2 %v9528_v35  ;;  %v2051_v57 = vpop.f32.mrf.mxu1  ;;  %v10355_v62 = vld [vmem:[#allocation6 + $0xf08] sm:$0xf]  ;;  %v9344_v35 = vor.u32 %v11659_v21, %v9341_v23  ;;  %v8765_v41 = vld [vmem:[#allocation6 + $0x2d0] sm:$0xf0]  ;;  %v11747_v48 = vld [vmem:[#allocation6 + $0x9cc] sm:$0xf0] }
 0x1a0   :  { %v8768_v50 = vor.u32 %v11515_v11, %v8765_v41  ;;  %v11499_v53 = vld [vmem:[#allocation6 + $0x214] sm:$0xf]  ;;  %v9595_v57 = vld [vmem:[#allocation6 + $0x910] sm:$0xf] }
 0x1a1   :  { %v2076_v58 = vadd.f32 %v2075_v52, %v2063_v27  ;;  %v10163_v27 = vld [vmem:[#allocation6 + $0xd88] sm:$0xf]  ;;  %v9917_v21 = vld [vmem:[#allocation6 + $0xbd0] sm:$0xf0] }
 0x1a2   :  { %5401 = vmatpush.bf16.msra.mxu0 %v8764_v4  ;;  %v8955_v4 = vld [vmem:[#allocation6 + $0x410] sm:$0xf]  ;;  %v11874_v52 = vld [vmem:[#allocation6 + $0xdc4] sm:$0xf0]  ;;  %v8509_v11 = vld [vmem:[#allocation6 + $0xd0] sm:$0xf0] }
 0x1a3   :  { %5414 = vmatpush.bf16.msra.mxu1 %v9276_v5  ;;  %v12406_v3 = vpack.c.bf16 %v2076_v58, %v2076_v58  ;;  %5380 = vmatpush.bf16.msrb.mxu2 %v9464_v54  ;;  %v11571_v5 = vld [vmem:[#allocation6 + $0x44c] sm:$0xf0]  ;;  %v9660_v54 = vor.u32 %v11747_v48, %v9659_v45  ;;  %v2599_v58 = vperm.slane %v12412_v49, 0  ;;  %v11579_v41 = vld [vmem:[#allocation6 + $0x494] sm:$0xf] }
 0x1a4   :  { %v8956_v32 = vor.u32 %v11571_v5, %v8955_v4  ;;  %v9149_v4 = vld [vmem:[#allocation6 + $0x5d0] sm:$0xf0] }
 0x1a5   :  { %5238 = vmatmul.bf16.vlgmr.msra.gmra.mxu3 %v12406_v3  ;;  %v9152_v29 = vor.u32 %v11611_v17, %v9149_v4  ;;  %v11898_v4 = vld [vmem:[#allocation6 + $0xe8c] sm:$0xf] }
 0x1a6   :  { %5402 = vmatpush.bf16.msra.mxu0 %v8700_v13  ;;  %5334 = vmatpush.bf16.msra.mxu3 %v10420_v1  ;;  %v2064_v13 = vpop.f32.mrf.mxu2  ;;  %v11858_v1 = vld [vmem:[#allocation6 + $0xd44] sm:$0xf0] }
 0x1a7   :  { %5415 = vmatpush.bf16.msra.mxu1 %v9212_v14  ;;  %5425 = vmatpush.bf16.msra.mxu2 %v9916_v40  ;;  %v10356_v14 = vor.u32 %v11922_v2, %v10355_v62  ;;  %v2077_v15 = vpop.f32.mrf.mxu3  ;;  %v11731_v40 = vld [vmem:[#allocation6 + $0x94c] sm:$0xf0]  ;;  %v8704_v62 = vor.u32 %v11499_v53, %v8701_v0  ;;  %v10100_v7 = vor.u32 %v11858_v1, %v10099_v46  ;;  %v11842_v13 = vld [vmem:[#allocation6 + $0xcc4] sm:$0xf0]  ;;  %v10357_v53 = vld [vmem:[#allocation6 + $0xf48] sm:$0xf0] }
 0x1a8   :  { %5381 = vmatmul.bf16.vlgmr.msrb.gmra.mxu2 %v12384_v51  ;;  %v9596_v2 = vor.u32 %v11731_v40, %v9595_v57  ;;  %v8957_v57 = vld [vmem:[#allocation6 + $0x450] sm:$0xf0] }
 0x1a9   :  { %v11771_v46 = vld [vmem:[#allocation6 + $0xa94] sm:$0xf] }
 0x1aa   :  { %5403 = vmatpush.bf16.msra.mxu0 %v8636_v24  ;;  %v9723_v24 = vld [vmem:[#allocation6 + $0xa10] sm:$0xf]  ;;  %5335 = vmatpush.bf16.msra.mxu3 %v10356_v14  ;;  %v11467_v14 = vld [vmem:[#allocation6 + $0x114] sm:$0xf] }
 0x1ab   :  { %5416 = vmatpush.bf16.msra.mxu1 %v9148_v26  ;;  %5426 = vmatpush.bf16.msra.mxu2 %v9852_v31  ;;  %v11763_v26 = vld [vmem:[#allocation6 + $0xa4c] sm:$0xf0]  ;;  %v9789_v1 = vld [vmem:[#allocation6 + $0xad0] sm:$0xf0] }
 0x1ac   :  { %v9724_v39 = vor.u32 %v11763_v26, %v9723_v24  ;;  %v11715_v31 = vld [vmem:[#allocation6 + $0x8cc] sm:$0xf0]  ;;  %v9971_v26 = vld [vmem:[#allocation6 + $0xc08] sm:$0xf] }
 0x1ad   :  { %v9532_v15 = vor.u32 %v11715_v31, %v9531_v22  ;;  %v9792_v31 = vor.u32 %v11771_v46, %v9789_v1  ;;  %v11834_v46 = vld [vmem:[#allocation6 + $0xc8c] sm:$0xf] }
 0x1ae   :  { %5404 = vmatpush.bf16.msra.mxu0 %v8572_v42  ;;  %v11643_v42 = vld [vmem:[#allocation6 + $0x694] sm:$0xf]  ;;  %5336 = vmatpush.bf16.msra.mxu3 %v10292_v30  ;;  %v11826_v30 = vld [vmem:[#allocation6 + $0xc44] sm:$0xf0]  ;;  %v10037_v1 = vld [vmem:[#allocation6 + $0xcc8] sm:$0xf0] }
 0x1af   :  { %5417 = vmatpush.bf16.msra.mxu1 %v9084_v43  ;;  %5427 = vmatpush.bf16.msra.mxu2 %v9788_v6  ;;  %v10228_v43 = vor.u32 %v11890_v37, %v10227_v36  ;;  %v9280_v10 = vor.u32 %v11643_v42, %v9277_v44  ;;  %v10036_v6 = vor.u32 %v11842_v13, %v10035_v12  ;;  %v10421_v36 = vld [vmem:[#allocation6 + $0xfc8] sm:$0xf0]  ;;  %v11451_v37 = vld [vmem:[#allocation6 + $0x94] sm:$0xf] }
 0x1b0   :  { %v9021_v42 = vld [vmem:[#allocation6 + $0x4d0] sm:$0xf0]  ;;  %v9920_v44 = vor.u32 %v11803_v60, %v9917_v21  ;;  %v9972_v48 = vor.u32 %v11826_v30, %v9971_v26  ;;  %v11652_v60 = vld [vmem:[#allocation6 + $0x6d4] sm:$0xf0]  ;;  %v11866_v30 = vld [vmem:[#allocation6 + $0xd8c] sm:$0xf] }
 0x1b1   :  { %v9024_v0 = vor.u32 %v11579_v41, %v9021_v42  ;;  %v9725_v12 = vld [vmem:[#allocation6 + $0xa50] sm:$0xf0]  ;;  %v11636_v41 = vld [vmem:[#allocation6 + $0x654] sm:$0xf0] }
 0x1b2   :  { %5405 = vmatpush.bf16.msra.mxu0 %v8508_v59  ;;  %5337 = vmatpush.bf16.msra.mxu3 %v10228_v43  ;;  %v10164_v59 = vor.u32 %v11874_v52, %v10163_v27  ;;  %v11787_v43 = vld [vmem:[#allocation6 + $0xb14] sm:$0xf]  ;;  %v8512_v27 = vor.u32 %v11451_v37, %v8509_v11  ;;  %v11914_v52 = vld [vmem:[#allocation6 + $0xf0c] sm:$0xf]  ;;  %v8707_v37 = vld [vmem:[#allocation6 + $0x218] sm:$0xf] }
 0x1b3   :  { %5418 = vmatpush.bf16.msra.mxu1 %v9020_v56  ;;  %5428 = vmatpush.bf16.msra.mxu2 %v9724_v39  ;;  %v11483_v56 = vld [vmem:[#allocation6 + $0x194] sm:$0xf]  ;;  %v11508_v11 = vld [vmem:[#allocation6 + $0x254] sm:$0xf0] }
 0x1b4   :  { %v11739_v21 = vld [vmem:[#allocation6 + $0x994] sm:$0xf] }
 0x1b5   :  { %5290 = vmatmul.bf16.vlgmr.msrb.gmra.mxu3 %v12406_v3  ;;  %v11723_v42 = vld [vmem:[#allocation6 + $0x914] sm:$0xf] }
 0x1b6   :  { %5406 = vmatpush.bf16.msra.mxu0 %v8444_v25  ;;  %v5200_v5 = vpop.f32.mrf.mxu0  ;;  %5338 = vmatpush.bf16.msra.mxu3 %v10164_v59  ;;  %v8640_v25 = vor.u32 %v11483_v56, %v8637_v28  ;;  %v11556_v59 = vld [vmem:[#allocation6 + $0x3d4] sm:$0xf0]  ;;  %v10360_v56 = vor.u32 %v11914_v52, %v10357_v53  ;;  %v8960_v28 = vor.u32 %v11563_v47, %v8957_v57  ;;  %v11707_v57 = vld [vmem:[#allocation6 + $0x894] sm:$0xf] }
 0x1b7   :  { %5419 = vmatpush.bf16.msra.mxu1 %v8956_v32  ;;  %5429 = vmatpush.bf16.msra.mxu2 %v9660_v54  ;;  %v5201_v18 = vadd.f32 %v5200_v5, %v2599_v58  ;;  %v5213_v61 = vpop.f32.mrf.mxu1  ;;  %v11435_v54 = vld [vmem:[#allocation6 + $0x14] sm:$0xf]  ;;  %v8899_v58 = vld [vmem:[#allocation6 + $0x398] sm:$0xf]  ;;  %v10293_v5 = vld [vmem:[#allocation6 + $0xec8] sm:$0xf0] }
 0x1b8   :  { %v8900_v17 = vor.u32 %v11556_v59, %v8899_v58  ;;  %v10296_v13 = vor.u32 %v11898_v4, %v10293_v5  ;;  %v8643_v53 = vld [vmem:[#allocation6 + $0x198] sm:$0xf] }
 0x1b9   :  { %5407 = vmatmul.bf16.vlgmr.msra.gmra.mxu0 %v12366_v34  ;;  %v12416_v32 = vadd.f32 %v5213_v61, %v5201_v18  ;;  %v8835_v18 = vld [vmem:[#allocation6 + $0x318] sm:$0xf] }
 0x1ba   :  { %5451 = vmatpush.bf16.msrb.mxu0 %v8896_v38  ;;  %5420 = vmatmul.bf16.vlgmr.msra.gmra.mxu1 %v12362_v9  ;;  %v8573_v38 = vld [vmem:[#allocation6 + $0x150] sm:$0xf0]  ;;  %v11540_v61 = vld [vmem:[#allocation6 + $0x354] sm:$0xf0] }
 0x1bb   :  { %5464 = vmatpush.bf16.msrb.mxu1 %v9408_v16  ;;  %5430 = vmatpush.bf16.msra.mxu2 %v9596_v2  ;;  %v11595_v16 = vld [vmem:[#allocation6 + $0x514] sm:$0xf]  ;;  %v8576_v23 = vor.u32 %v11467_v14, %v8573_v38  ;;  %v8448_v2 = vor.u32 %v11435_v54, %v8445_v55  ;;  %v8836_v14 = vor.u32 %v11540_v61, %v8835_v18  ;;  %v10229_v38 = vld [vmem:[#allocation6 + $0xe48] sm:$0xf0]  ;;  %v11492_v54 = vld [vmem:[#allocation6 + $0x1d4] sm:$0xf0] }
 0x1bc   :  { %5339 = vmatpush.bf16.msra.mxu3 %v10100_v7  ;;  %v9088_v24 = vor.u32 %v11595_v16, %v9085_v19  ;;  %v9347_v7 = vld [vmem:[#allocation6 + $0x718] sm:$0xf]  ;;  %v9469_v18 = vld [vmem:[#allocation6 + $0x850] sm:$0xf0]  ;;  %v10040_v61 = vor.u32 %v11834_v46, %v10037_v1  ;;  %v9349_v46 = vld [vmem:[#allocation6 + $0x758] sm:$0xf0] }
 0x1bd   :  { %v11620_v47 = vld [vmem:[#allocation6 + $0x5d4] sm:$0xf0] }
 0x1be   :  { %5452 = vmatpush.bf16.msrb.mxu0 %v8832_v33  ;;  %v11930_v33 = vld [vmem:[#allocation6 + $0xf8c] sm:$0xf]  ;;  %v5202_v39 = vpop.f32.mrf.mxu0  ;;  %v11476_v4 = vld [vmem:[#allocation6 + $0x154] sm:$0xf0] }
 0x1bf   :  { %5465 = vmatpush.bf16.msrb.mxu1 %v9344_v35  ;;  %5431 = vmatpush.bf16.msra.mxu2 %v9532_v15  ;;  %v9468_v35 = vor.u32 %v11699_v20, %v9467_v8  ;;  %v5215_v45 = vpop.f32.mrf.mxu1  ;;  %v11882_v15 = vld [vmem:[#allocation6 + $0xe0c] sm:$0xf]  ;;  %v8771_v8 = vld [vmem:[#allocation6 + $0x298] sm:$0xf] }
 0x1c0   :  { %5340 = vmatpush.bf16.msra.mxu3 %v10036_v6  ;;  %v11524_v20 = vld [vmem:[#allocation6 + $0x2d4] sm:$0xf0]  ;;  %v2600_v45 = vperm.slane %v12412_v49, 1 }
 0x1c1   :  { %v9283_v6 = vld [vmem:[#allocation6 + $0x698] sm:$0xf]  ;;  %v8772_v26 = vor.u32 %v11524_v20, %v8771_v8 }
 0x1c2   :  { %5453 = vmatpush.bf16.msrb.mxu0 %v8768_v50  ;;  %v9853_v50 = vld [vmem:[#allocation6 + $0xb50] sm:$0xf0]  ;;  %v9219_v39 = vld [vmem:[#allocation6 + $0x618] sm:$0xf] }
 0x1c3   :  { %5466 = vmatpush.bf16.msrb.mxu1 %v9280_v10  ;;  %v10424_v10 = vor.u32 %v11930_v33, %v10421_v36  ;;  %5432 = vmatpush.bf16.msra.mxu2 %v9468_v35  ;;  %v9856_v40 = vor.u32 %v11787_v43, %v9853_v50  ;;  %v10165_v33 = vld [vmem:[#allocation6 + $0xdc8] sm:$0xf0]  ;;  %v9284_v35 = vor.u32 %v11652_v60, %v9283_v6  ;;  %v9091_v5 = vld [vmem:[#allocation6 + $0x518] sm:$0xf] }
 0x1c4   :  { %5341 = vmatpush.bf16.msra.mxu3 %v9972_v48  ;;  %v10168_v48 = vor.u32 %v11866_v30, %v10165_v33  ;;  %v8708_v43 = vor.u32 %v11508_v11, %v8707_v37  ;;  %v11850_v50 = vld [vmem:[#allocation6 + $0xd0c] sm:$0xf]  ;;  %v11460_v8 = vld [vmem:[#allocation6 + $0xd4] sm:$0xf0]  ;;  %v11923_v37 = vld [vmem:[#allocation6 + $0xf4c] sm:$0xf0] }
 0x1c5   :  { %v9027_v6 = vld [vmem:[#allocation6 + $0x498] sm:$0xf] }
 0x1c6   :  { %5454 = vmatpush.bf16.msrb.mxu0 %v8704_v62  ;;  %v9411_v62 = vld [vmem:[#allocation6 + $0x798] sm:$0xf]  ;;  %5433 = vmatmul.bf16.vlgmr.msra.gmra.mxu2 %v12384_v51 }
 0x1c7   :  { %5467 = vmatpush.bf16.msrb.mxu1 %v9216_v63  ;;  %5477 = vmatpush.bf16.msrb.mxu2 %v9920_v44  ;;  %v11684_v63 = vld [vmem:[#allocation6 + $0x7d4] sm:$0xf0]  ;;  %v9597_v44 = vld [vmem:[#allocation6 + $0x950] sm:$0xf0] }
 0x1c8   :  { %5386 = vmatpush.bf16.msrb.mxu3 %v10424_v10  ;;  %v9412_v22 = vor.u32 %v11684_v63, %v9411_v62  ;;  %v10101_v10 = vld [vmem:[#allocation6 + $0xd48] sm:$0xf0]  ;;  %v9600_v52 = vor.u32 %v11723_v42, %v9597_v44  ;;  %v8644_v63 = vor.u32 %v11492_v54, %v8643_v53  ;;  %v11588_v60 = vld [vmem:[#allocation6 + $0x4d4] sm:$0xf0] }
 0x1c9   :  { %5342 = vmatmul.bf16.vlgmr.msra.gmra.mxu3 %v12406_v3  ;;  %v10104_v62 = vor.u32 %v11850_v50, %v10101_v10  ;;  %v11796_v30 = vld [vmem:[#allocation6 + $0xb54] sm:$0xf0]  ;;  %v11676_v50 = vld [vmem:[#allocation6 + $0x79c] sm:$0xf] }
 0x1ca   :  { %5455 = vmatpush.bf16.msrb.mxu0 %v8640_v25  ;;  %v11668_v25 = vld [vmem:[#allocation6 + $0x754] sm:$0xf0]  ;;  %v9413_v10 = vld [vmem:[#allocation6 + $0x7d8] sm:$0xf0] }
 0x1cb   :  { %5468 = vmatpush.bf16.msrb.mxu1 %v9152_v29  ;;  %5478 = vmatpush.bf16.msrb.mxu2 %v9856_v40  ;;  %v11755_v29 = vld [vmem:[#allocation6 + $0xa14] sm:$0xf]  ;;  %v9348_v16 = vor.u32 %v11668_v25, %v9347_v7  ;;  %v9923_v7 = vld [vmem:[#allocation6 + $0xb98] sm:$0xf] }
 0x1cc   :  { %5387 = vmatpush.bf16.msrb.mxu3 %v10360_v56  ;;  %v9728_v19 = vor.u32 %v11755_v29, %v9725_v12  ;;  %v9533_v40 = vld [vmem:[#allocation6 + $0x8d0] sm:$0xf0]  ;;  %v11812_v25 = vld [vmem:[#allocation6 + $0xbd4] sm:$0xf0]  ;;  %v11818_v12 = vld [vmem:[#allocation6 + $0xc0c] sm:$0xf] }
 0x1cd   :  { %v8451_v11 = vld [vmem:[#allocation6 + $0x18] sm:$0xf] }
 0x1ce   :  { %5456 = vmatpush.bf16.msrb.mxu0 %v8576_v23  ;;  %v9661_v23 = vld [vmem:[#allocation6 + $0x9d0] sm:$0xf0]  ;;  %v8963_v42 = vld [vmem:[#allocation6 + $0x418] sm:$0xf] }
 0x1cf   :  { %5469 = vmatpush.bf16.msrb.mxu1 %v9088_v24  ;;  %5479 = vmatpush.bf16.msrb.mxu2 %v9792_v31  ;;  %v10232_v24 = vor.u32 %v11882_v15, %v10229_v38  ;;  %v9664_v36 = vor.u32 %v11739_v21, %v9661_v23  ;;  %v11691_v31 = vld [vmem:[#allocation6 + $0x814] sm:$0xf]  ;;  %v9924_v21 = vor.u32 %v11812_v25, %v9923_v7  ;;  %v11572_v44 = vld [vmem:[#allocation6 + $0x454] sm:$0xf0]  ;;  %v11644_v7 = vld [vmem:[#allocation6 + $0x69c] sm:$0xf] }
 0x1d0   :  { %5388 = vmatpush.bf16.msrb.mxu3 %v10296_v13  ;;  %v9973_v13 = vld [vmem:[#allocation6 + $0xc48] sm:$0xf0]  ;;  %v9472_v38 = vor.u32 %v11691_v31, %v9469_v18  ;;  %v9731_v1 = vld [vmem:[#allocation6 + $0xa18] sm:$0xf]  ;;  %v11516_v18 = vld [vmem:[#allocation6 + $0x29c] sm:$0xf] }
 0x1d1   :  { %v9285_v25 = vld [vmem:[#allocation6 + $0x6d8] sm:$0xf0] }
 0x1d2   :  { %5457 = vmatpush.bf16.msrb.mxu0 %v8512_v27  ;;  %v9220_v27 = vor.u32 %v11636_v41, %v9219_v39  ;;  %v9028_v39 = vor.u32 %v11588_v60, %v9027_v6  ;;  %v11444_v41 = vld [vmem:[#allocation6 + $0x54] sm:$0xf0]  ;;  %v11628_v6 = vld [vmem:[#allocation6 + $0x61c] sm:$0xf] }
 0x1d3   :  { %5470 = vmatpush.bf16.msrb.mxu1 %v9024_v0  ;;  %5480 = vmatpush.bf16.msrb.mxu2 %v9728_v19  ;;  %v9155_v0 = vld [vmem:[#allocation6 + $0x598] sm:$0xf]  ;;  %v8452_v54 = vor.u32 %v11444_v41, %v8451_v11  ;;  %v9221_v60 = vld [vmem:[#allocation6 + $0x658] sm:$0xf0] }
 0x1d4   :  { %5389 = vmatpush.bf16.msrb.mxu3 %v10232_v24  ;;  %v8515_v19 = vld [vmem:[#allocation6 + $0x98] sm:$0xf]  ;;  %v9976_v24 = vor.u32 %v11818_v12, %v9973_v13  ;;  %v9224_v11 = vor.u32 %v11628_v6, %v9221_v60  ;;  %v11484_v41 = vld [vmem:[#allocation6 + $0x19c] sm:$0xf]  ;;  %v11915_v6 = vld [vmem:[#allocation6 + $0xf14] sm:$0xf] }
 0x1d5   :  { %v11748_v12 = vld [vmem:[#allocation6 + $0x9d4] sm:$0xf0]  ;;  %v10365_v60 = vld [vmem:[#allocation6 + $0xf50] sm:$0xf0] }
 0x1d6   :  { %5458 = vmatpush.bf16.msrb.mxu0 %v8448_v2  ;;  %v5252_v55 = vpop.f32.mrf.mxu0  ;;  %v9156_v2 = vor.u32 %v11620_v47, %v9155_v0  ;;  %v8964_v0 = vor.u32 %v11572_v44, %v8963_v42  ;;  %v10299_v47 = vld [vmem:[#allocation6 + $0xe90] sm:$0xf]  ;;  %v8645_v42 = vld [vmem:[#allocation6 + $0x1d8] sm:$0xf0] }
 0x1d7   :  { %5471 = vmatpush.bf16.msrb.mxu1 %v8960_v28  ;;  %5481 = vmatpush.bf16.msrb.mxu2 %v9664_v36  ;;  %v5253_v58 = vadd.f32 %v5252_v55, %v2600_v45  ;;  %v5265_v59 = vpop.f32.mrf.mxu1  ;;  %v9536_v28 = vor.u32 %v11707_v57, %v9533_v40  ;;  %v10363_v36 = vld [vmem:[#allocation6 + $0xf10] sm:$0xf]  ;;  %v9416_v40 = vor.u32 %v11676_v50, %v9413_v10  ;;  %v11612_v44 = vld [vmem:[#allocation6 + $0x59c] sm:$0xf]  ;;  %v11716_v50 = vld [vmem:[#allocation6 + $0x8d4] sm:$0xf0] }
 0x1d8   :  { %5390 = vmatpush.bf16.msrb.mxu3 %v10168_v48  ;;  %v11548_v48 = vld [vmem:[#allocation6 + $0x39c] sm:$0xf]  ;;  %v10364_v53 = vor.u32 %v11923_v37, %v10363_v36  ;;  %v11907_v57 = vld [vmem:[#allocation6 + $0xecc] sm:$0xf0] }
 0x1d9   :  { %5459 = vmatmul.bf16.vlgmr.msrb.gmra.mxu0 %v12366_v34  ;;  %v12423_v56 = vadd.f32 %v5265_v59, %v5253_v58  ;;  %v11532_v59 = vld [vmem:[#allocation6 + $0x31c] sm:$0xf]  ;;  %v10107_v36 = vld [vmem:[#allocation6 + $0xd10] sm:$0xf] }
 0x1da   :  { %5503 = vmatpush.bf16.msra.mxu0 %v8900_v17  ;;  %5472 = vmatmul.bf16.vlgmr.msrb.gmra.mxu1 %v12362_v9  ;;  %v8579_v17 = vld [vmem:[#allocation6 + $0x118] sm:$0xf]  ;;  %v11859_v37 = vld [vmem:[#allocation6 + $0xd4c] sm:$0xf0] }
 0x1db   :  { %5516 = vmatpush.bf16.msra.mxu1 %v9412_v22  ;;  %5482 = vmatpush.bf16.msrb.mxu2 %v9600_v52  ;;  %v11604_v22 = vld [vmem:[#allocation6 + $0x554] sm:$0xf0]  ;;  %v8580_v29 = vor.u32 %v11476_v4, %v8579_v17  ;;  %v10235_v4 = vld [vmem:[#allocation6 + $0xe10] sm:$0xf] }
 0x1dc   :  { %5391 = vmatpush.bf16.msrb.mxu3 %v10104_v62  ;;  %v9092_v15 = vor.u32 %v11604_v22, %v9091_v5  ;;  %v11780_v52 = vld [vmem:[#allocation6 + $0xad4] sm:$0xf0]  ;;  %v8837_v62 = vld [vmem:[#allocation6 + $0x358] sm:$0xf0]  ;;  %v11891_v5 = vld [vmem:[#allocation6 + $0xe4c] sm:$0xf0] }
 0x1dd   :  { %v8840_v17 = vor.u32 %v11532_v59, %v8837_v62  ;;  %v10236_v13 = vor.u32 %v11891_v5, %v10235_v4  ;;  %v9093_v59 = vld [vmem:[#allocation6 + $0x558] sm:$0xf0]  ;;  %v9475_v62 = vld [vmem:[#allocation6 + $0x818] sm:$0xf]  ;;  %v9979_v4 = vld [vmem:[#allocation6 + $0xc10] sm:$0xf] }
 0x1de   :  { %5504 = vmatpush.bf16.msra.mxu0 %v8836_v14  ;;  %v10427_v14 = vld [vmem:[#allocation6 + $0xf90] sm:$0xf]  ;;  %v5254_v20 = vpop.f32.mrf.mxu0 }
 0x1df   :  { %5517 = vmatpush.bf16.msra.mxu1 %v9348_v16  ;;  %5483 = vmatpush.bf16.msrb.mxu2 %v9536_v28  ;;  %v11939_v16 = vld [vmem:[#allocation6 + $0xfcc] sm:$0xf0]  ;;  %v5267_v23 = vpop.f32.mrf.mxu1  ;;  %v10300_v28 = vor.u32 %v11907_v57, %v10299_v47  ;;  %v8709_v20 = vld [vmem:[#allocation6 + $0x258] sm:$0xf0] }
 0x1e0   :  { %5392 = vmatpush.bf16.msrb.mxu3 %v10040_v61  ;;  %v10428_v33 = vor.u32 %v11939_v16, %v10427_v14  ;;  %v8773_v61 = vld [vmem:[#allocation6 + $0x2d8] sm:$0xf0]  ;;  %v9288_v16 = vor.u32 %v11644_v7, %v9285_v25  ;;  %v11732_v23 = vld [vmem:[#allocation6 + $0x954] sm:$0xf0]  ;;  %v11827_v5 = vld [vmem:[#allocation6 + $0xc4c] sm:$0xf0] }
 0x1e1   :  { %v8776_v14 = vor.u32 %v11516_v18, %v8773_v61  ;;  %v11468_v57 = vld [vmem:[#allocation6 + $0x11c] sm:$0xf]  ;;  %v10429_v61 = vld [vmem:[#allocation6 + $0xfd0] sm:$0xf0] }
 0x1e2   :  { %5505 = vmatpush.bf16.msra.mxu0 %v8772_v26  ;;  %v9859_v26 = vld [vmem:[#allocation6 + $0xb18] sm:$0xf]  ;;  %v11452_v7 = vld [vmem:[#allocation6 + $0x9c] sm:$0xf] }
 0x1e3   :  { %5518 = vmatpush.bf16.msra.mxu1 %v9284_v35  ;;  %v8516_v35 = vor.u32 %v11460_v8, %v8515_v19  ;;  %5484 = vmatpush.bf16.msrb.mxu2 %v9472_v38  ;;  %v9860_v45 = vor.u32 %v11796_v30, %v9859_v26  ;;  %v11875_v38 = vld [vmem:[#allocation6 + $0xdcc] sm:$0xf0]  ;;  %v11500_v8 = vld [vmem:[#allocation6 + $0x21c] sm:$0xf]  ;;  %v2601_v26 = vperm.slane %v12412_v49, 2 }
 0x1e4   :  { %5393 = vmatpush.bf16.msrb.mxu3 %v9976_v24  ;;  %v8517_v25 = vld [vmem:[#allocation6 + $0xd8] sm:$0xf0] }
 0x1e6   :  { %5506 = vmatpush.bf16.msra.mxu0 %v8708_v43  ;;  %v8901_v43 = vld [vmem:[#allocation6 + $0x3d8] sm:$0xf0]  ;;  %5485 = vmatmul.bf16.vlgmr.msrb.gmra.mxu2 %v12384_v51 }
 0x1e7   :  { %5519 = vmatpush.bf16.msra.mxu1 %v9220_v27  ;;  %5529 = vmatpush.bf16.msra.mxu2 %v9924_v21  ;;  %v9795_v27 = vld [vmem:[#allocation6 + $0xa98] sm:$0xf]  ;;  %v8904_v55 = vor.u32 %v11548_v48, %v8901_v43  ;;  %v9157_v48 = vld [vmem:[#allocation6 + $0x5d8] sm:$0xf0] }
 0x1e8   :  { %5438 = vmatpush.bf16.msra.mxu3 %v10428_v33  ;;  %v9796_v58 = vor.u32 %v11780_v52, %v9795_v27  ;;  %v9603_v21 = vld [vmem:[#allocation6 + $0x918] sm:$0xf]  ;;  %v5226_v24 = vpop.f32.mrf.mxu2  ;;  %v10108_v52 = vor.u32 %v11859_v37, %v10107_v36  ;;  %v8907_v36 = vld [vmem:[#allocation6 + $0x3a0] sm:$0xf] }
 0x1e9   :  { %5394 = vmatmul.bf16.vlgmr.msrb.gmra.mxu3 %v12406_v3  ;;  %v12431_v33 = vadd.f32 %v5226_v24, %v12416_v32  ;;  %v9539_v43 = vld [vmem:[#allocation6 + $0x898] sm:$0xf]  ;;  %v8648_v32 = vor.u32 %v11484_v41, %v8645_v42  ;;  %v8453_v24 = vld [vmem:[#allocation6 + $0x58] sm:$0xf0]  ;;  %v11557_v37 = vld [vmem:[#allocation6 + $0x3dc] sm:$0xf0] }
 0x1ea   :  { %5507 = vmatpush.bf16.msra.mxu0 %v8644_v63  ;;  %v11660_v63 = vld [vmem:[#allocation6 + $0x71c] sm:$0xf]  ;;  %v9540_v47 = vor.u32 %v11716_v50, %v9539_v43  ;;  %v11685_v41 = vld [vmem:[#allocation6 + $0x7dc] sm:$0xf0] }
 0x1eb   :  { %5520 = vmatpush.bf16.msra.mxu1 %v9156_v2  ;;  %5530 = vmatpush.bf16.msra.mxu2 %v9860_v45  ;;  %v11764_v2 = vld [vmem:[#allocation6 + $0xa54] sm:$0xf0]  ;;  %v9352_v22 = vor.u32 %v11660_v63, %v9349_v46  ;;  %v11772_v42 = vld [vmem:[#allocation6 + $0xa9c] sm:$0xf] }
 0x1ec   :  { %5439 = vmatpush.bf16.msra.mxu3 %v10364_v53  ;;  %v9732_v31 = vor.u32 %v11764_v2, %v9731_v1  ;;  %v10043_v53 = vld [vmem:[#allocation6 + $0xc90] sm:$0xf]  ;;  %v11700_v63 = vld [vmem:[#allocation6 + $0x854] sm:$0xf0]  ;;  %v11804_v2 = vld [vmem:[#allocation6 + $0xb9c] sm:$0xf] }
 0x1ed   :  { %v9476_v18 = vor.u32 %v11700_v63, %v9475_v62  ;;  %v11883_v62 = vld [vmem:[#allocation6 + $0xe14] sm:$0xf] }
 0x1ee   :  { %5508 = vmatpush.bf16.msra.mxu0 %v8580_v29  ;;  %v9667_v29 = vld [vmem:[#allocation6 + $0x998] sm:$0xf]  ;;  %v10237_v63 = vld [vmem:[#allocation6 + $0xe50] sm:$0xf0] }
 0x1ef   :  { %5521 = vmatpush.bf16.msra.mxu1 %v9092_v15  ;;  %5531 = vmatpush.bf16.msra.mxu2 %v9796_v58  ;;  %v10171_v15 = vld [vmem:[#allocation6 + $0xd90] sm:$0xf]  ;;  %v9668_v19 = vor.u32 %v11748_v12, %v9667_v29  ;;  %v11596_v58 = vld [vmem:[#allocation6 + $0x51c] sm:$0xf] }
 0x1f0   :  { %5440 = vmatpush.bf16.msra.mxu3 %v10300_v28  ;;  %v10172_v30 = vor.u32 %v11875_v38, %v10171_v15  ;;  %v5228_v46 = vpop.f32.mrf.mxu2  ;;  %v9925_v28 = vld [vmem:[#allocation6 + $0xbd8] sm:$0xf0]  ;;  %v9980_v38 = vor.u32 %v11827_v5, %v9979_v4  ;;  %v11653_v5 = vld [vmem:[#allocation6 + $0x6dc] sm:$0xf0] }
 0x1f1   :  { %v11580_v12 = vld [vmem:[#allocation6 + $0x49c] sm:$0xf] }
 0x1f2   :  { %5509 = vmatpush.bf16.msra.mxu0 %v8516_v35  ;;  %v8712_v35 = vor.u32 %v11500_v8, %v8709_v20  ;;  %v8520_v20 = vor.u32 %v11452_v7, %v8517_v25  ;;  %v11867_v7 = vld [vmem:[#allocation6 + $0xd94] sm:$0xf] }
 0x1f3   :  { %5522 = vmatpush.bf16.msra.mxu1 %v9028_v39  ;;  %5532 = vmatpush.bf16.msra.mxu2 %v9732_v31  ;;  %v9604_v39 = vor.u32 %v11732_v23, %v9603_v21  ;;  %v9096_v31 = vor.u32 %v11596_v58, %v9093_v59  ;;  %v11436_v21 = vld [vmem:[#allocation6 + $0x1c] sm:$0xf]  ;;  %v10173_v25 = vld [vmem:[#allocation6 + $0xdd0] sm:$0xf0] }
 0x1f4   :  { %5441 = vmatpush.bf16.msra.mxu3 %v10236_v13  ;;  %v9029_v13 = vld [vmem:[#allocation6 + $0x4d8] sm:$0xf0]  ;;  %v8456_v43 = vor.u32 %v11436_v21, %v8453_v24  ;;  %v10109_v21 = vld [vmem:[#allocation6 + $0xd50] sm:$0xf0] }
 0x1f5   :  { %v9032_v23 = vor.u32 %v11580_v12, %v9029_v13  ;;  %v8715_v13 = vld [vmem:[#allocation6 + $0x220] sm:$0xf] }
 0x1f6   :  { %5510 = vmatpush.bf16.msra.mxu0 %v8452_v54  ;;  %v5304_v45 = vpop.f32.mrf.mxu0  ;;  %v11843_v54 = vld [vmem:[#allocation6 + $0xccc] sm:$0xf0] }
 0x1f7   :  { %5523 = vmatpush.bf16.msra.mxu1 %v8964_v0  ;;  %5533 = vmatpush.bf16.msra.mxu2 %v9668_v19  ;;  %v5305_v10 = vadd.f32 %v5304_v45, %v2601_v26  ;;  %v5317_v27 = vpop.f32.mrf.mxu1  ;;  %v10044_v1 = vor.u32 %v11843_v54, %v10043_v53  ;;  %v9861_v19 = vld [vmem:[#allocation6 + $0xb58] sm:$0xf0]  ;;  %v8843_v54 = vld [vmem:[#allocation6 + $0x320] sm:$0xf] }
 0x1f8   :  { %5442 = vmatpush.bf16.msra.mxu3 %v10172_v30  ;;  %v11564_v26 = vld [vmem:[#allocation6 + $0x41c] sm:$0xf] }
 0x1f9   :  { %5511 = vmatmul.bf16.vlgmr.msra.gmra.mxu0 %v12366_v34  ;;  %v12433_v0 = vadd.f32 %v5317_v27, %v5305_v10  ;;  %v8965_v30 = vld [vmem:[#allocation6 + $0x458] sm:$0xf0]  ;;  %v8908_v10 = vor.u32 %v11557_v37, %v8907_v36  ;;  %v11899_v27 = vld [vmem:[#allocation6 + $0xe94] sm:$0xf] }
 0x1fa   :  { %5555 = vmatpush.bf16.msrb.mxu0 %v8904_v55  ;;  %5524 = vmatmul.bf16.vlgmr.msra.gmra.mxu1 %v12362_v9  ;;  %v9160_v55 = vor.u32 %v11612_v44, %v9157_v48  ;;  %v9797_v44 = vld [vmem:[#allocation6 + $0xad8] sm:$0xf0]  ;;  %v10368_v48 = vor.u32 %v11915_v6, %v10365_v60  ;;  %v8968_v50 = vor.u32 %v11564_v26, %v8965_v30  ;;  %v11851_v60 = vld [vmem:[#allocation6 + $0xd14] sm:$0xf]  ;;  %v8651_v26 = vld [vmem:[#allocation6 + $0x1a0] sm:$0xf] }
 0x1fb   :  { %5568 = vmatpush.bf16.msrb.mxu1 %v9416_v40  ;;  %5534 = vmatpush.bf16.msra.mxu2 %v9604_v39  ;;  %v8581_v40 = vld [vmem:[#allocation6 + $0x158] sm:$0xf0]  ;;  %v5278_v39 = vpop.f32.mrf.mxu2  ;;  %v9800_v53 = vor.u32 %v11772_v42, %v9797_v44  ;;  %v11493_v30 = vld [vmem:[#allocation6 + $0x1dc] sm:$0xf0] }
 0x1fc   :  { %5443 = vmatpush.bf16.msra.mxu3 %v10108_v52  ;;  %v12436_v45 = vadd.f32 %v5278_v39, %v12423_v56  ;;  %v10301_v52 = vld [vmem:[#allocation6 + $0xed0] sm:$0xf0]  ;;  %v11756_v56 = vld [vmem:[#allocation6 + $0xa1c] sm:$0xf] }
 0x1fd   :  { %v10304_v58 = vor.u32 %v11899_v27, %v10301_v52  ;;  %v11708_v39 = vld [vmem:[#allocation6 + $0x89c] sm:$0xf] }
 0x1fe   :  { %5556 = vmatpush.bf16.msrb.mxu0 %v8840_v17  ;;  %v8584_v17 = vor.u32 %v11468_v57, %v8581_v40  ;;  %v5306_v29 = vpop.f32.mrf.mxu0  ;;  %v11669_v57 = vld [vmem:[#allocation6 + $0x75c] sm:$0xf0]  ;;  %v9733_v40 = vld [vmem:[#allocation6 + $0xa58] sm:$0xf0] }
 0x1ff   :  { %5569 = vmatpush.bf16.msrb.mxu1 %v9352_v22  ;;  %v11931_v22 = vld [vmem:[#allocation6 + $0xf94] sm:$0xf]  ;;  %5535 = vmatpush.bf16.msra.mxu2 %v9540_v47  ;;  %v5319_v15 = vpop.f32.mrf.mxu1  ;;  %v9355_v47 = vld [vmem:[#allocation6 + $0x720] sm:$0xf] }
 0x200   :  { %5444 = vmatpush.bf16.msra.mxu3 %v10044_v1  ;;  %v10432_v8 = vor.u32 %v11931_v22, %v10429_v61  ;;  %v9356_v46 = vor.u32 %v11669_v57, %v9355_v47  ;;  %v9736_v1 = vor.u32 %v11756_v56, %v9733_v40  ;;  %v11740_v22 = vld [vmem:[#allocation6 + $0x99c] sm:$0xf]  ;;  %v9227_v15 = vld [vmem:[#allocation6 + $0x620] sm:$0xf] }
 0x201   :  { %v11605_v47 = vld [vmem:[#allocation6 + $0x55c] sm:$0xf0]  ;;  %v11692_v57 = vld [vmem:[#allocation6 + $0x81c] sm:$0xf] }
 0x202   :  { %5557 = vmatpush.bf16.msrb.mxu0 %v8776_v14  ;;  %v9928_v14 = vor.u32 %v11804_v2, %v9925_v28  ;;  %v8779_v2 = vld [vmem:[#allocation6 + $0x2a0] sm:$0xf]  ;;  %v9477_v56 = vld [vmem:[#allocation6 + $0x858] sm:$0xf0] }
 0x203   :  { %5570 = vmatpush.bf16.msrb.mxu1 %v9288_v16  ;;  %v11788_v16 = vld [vmem:[#allocation6 + $0xb1c] sm:$0xf]  ;;  %5536 = vmatpush.bf16.msra.mxu2 %v9476_v18  ;;  %v11525_v28 = vld [vmem:[#allocation6 + $0x2dc] sm:$0xf0]  ;;  %v5280_v4 = vpop.f32.mrf.mxu2  ;;  %v10240_v18 = vor.u32 %v11883_v62, %v10237_v63  ;;  %v11819_v62 = vld [vmem:[#allocation6 + $0xc14] sm:$0xf] }
 0x204   :  { %5445 = vmatpush.bf16.msra.mxu3 %v9980_v38  ;;  %v8780_v61 = vor.u32 %v11525_v28, %v8779_v2  ;;  %v11637_v38 = vld [vmem:[#allocation6 + $0x65c] sm:$0xf0]  ;;  %v9981_v63 = vld [vmem:[#allocation6 + $0xc50] sm:$0xf0]  ;;  %v9480_v2 = vor.u32 %v11692_v57, %v9477_v56  ;;  %v11940_v28 = vld [vmem:[#allocation6 + $0xfd4] sm:$0xf0] }
 0x205   :  { %v9931_v40 = vld [vmem:[#allocation6 + $0xba0] sm:$0xf]  ;;  %v11892_v57 = vld [vmem:[#allocation6 + $0xe54] sm:$0xf0] }
 0x206   :  { %5558 = vmatpush.bf16.msrb.mxu0 %v8712_v35  ;;  %v9864_v35 = vor.u32 %v11788_v16, %v9861_v19  ;;  %5537 = vmatmul.bf16.vlgmr.msra.gmra.mxu2 %v12384_v51  ;;  %v11724_v16 = vld [vmem:[#allocation6 + $0x91c] sm:$0xf]  ;;  %v11461_v4 = vld [vmem:[#allocation6 + $0xdc] sm:$0xf0] }
 0x207   :  { %5571 = vmatpush.bf16.msrb.mxu1 %v9224_v11  ;;  %5581 = vmatpush.bf16.msrb.mxu2 %v9928_v14  ;;  %v9419_v11 = vld [vmem:[#allocation6 + $0x7a0] sm:$0xf]  ;;  %v9605_v19 = vld [vmem:[#allocation6 + $0x958] sm:$0xf0] }
 0x208   :  { %5490 = vmatpush.bf16.msrb.mxu3 %v10432_v8  ;;  %v11509_v14 = vld [vmem:[#allocation6 + $0x25c] sm:$0xf0]  ;;  %v2602_v8 = vperm.slane %v12412_v49, 3  ;;  %v9608_v24 = vor.u32 %v11724_v16, %v9605_v19 }
 0x209   :  { %5446 = vmatmul.bf16.vlgmr.msra.gmra.mxu3 %v12406_v3  ;;  %v8716_v6 = vor.u32 %v11509_v14, %v8715_v13  ;;  %v8459_v16 = vld [vmem:[#allocation6 + $0x20] sm:$0xf] }
 0x20a   :  { %5559 = vmatpush.bf16.msrb.mxu0 %v8648_v32  ;;  %v9420_v32 = vor.u32 %v11685_v41, %v9419_v11  ;;  %v11621_v11 = vld [vmem:[#allocation6 + $0x5dc] sm:$0xf0]  ;;  %v9541_v41 = vld [vmem:[#allocation6 + $0x8d8] sm:$0xf0] }
 0x20b   :  { %5572 = vmatpush.bf16.msrb.mxu1 %v9160_v55  ;;  %5582 = vmatpush.bf16.msrb.mxu2 %v9864_v35  ;;  %v11541_v55 = vld [vmem:[#allocation6 + $0x35c] sm:$0xf0]  ;;  %v5330_v37 = vpop.f32.mrf.mxu2 }
 0x20c   :  { %5491 = vmatpush.bf16.msrb.mxu3 %v10368_v48  ;;  %v8844_v59 = vor.u32 %v11541_v55, %v8843_v54  ;;  %v9163_v35 = vld [vmem:[#allocation6 + $0x5a0] sm:$0xf]  ;;  %v12444_v49 = vadd.f32 %v5330_v37, %v12433_v0  ;;  %v10112_v48 = vor.u32 %v11851_v60, %v10109_v21  ;;  %v11549_v21 = vld [vmem:[#allocation6 + $0x3a4] sm:$0xf] }
 0x20d   :  { %v9164_v52 = vor.u32 %v11621_v11, %v9163_v35  ;;  %v11477_v54 = vld [vmem:[#allocation6 + $0x15c] sm:$0xf0] }
 0x20e   :  { %5560 = vmatpush.bf16.msrb.mxu0 %v8584_v17  ;;  %v9291_v17 = vld [vmem:[#allocation6 + $0x6a0] sm:$0xf] }
 0x20f   :  { %5573 = vmatpush.bf16.msrb.mxu1 %v9096_v31  ;;  %5583 = vmatpush.bf16.msrb.mxu2 %v9800_v53  ;;  %v9669_v31 = vld [vmem:[#allocation6 + $0x9d8] sm:$0xf0]  ;;  %v9292_v29 = vor.u32 %v11653_v5, %v9291_v17  ;;  %v8587_v53 = vld [vmem:[#allocation6 + $0x120] sm:$0xf] }
 0x210   :  { %5492 = vmatpush.bf16.msrb.mxu3 %v10304_v58  ;;  %v9672_v12 = vor.u32 %v11740_v22, %v9669_v31  ;;  %v9099_v55 = vld [vmem:[#allocation6 + $0x520] sm:$0xf] }
 0x211   :  { %v11813_v58 = vld [vmem:[#allocation6 + $0xbdc] sm:$0xf0] }
 0x212   :  { %5561 = vmatpush.bf16.msrb.mxu0 %v8520_v20  ;;  %v10176_v20 = vor.u32 %v11867_v7, %v10173_v25  ;;  %v8523_v17 = vld [vmem:[#allocation6 + $0xa0] sm:$0xf]  ;;  %v9984_v25 = vor.u32 %v11819_v62, %v9981_v63  ;;  %v9293_v62 = vld [vmem:[#allocation6 + $0x6e0] sm:$0xf0] }
 0x213   :  { %5574 = vmatpush.bf16.msrb.mxu1 %v9032_v23  ;;  %5584 = vmatpush.bf16.msrb.mxu2 %v9736_v1  ;;  %v9228_v23 = vor.u32 %v11637_v38, %v9227_v15  ;;  %v9100_v1 = vor.u32 %v11605_v47, %v9099_v55  ;;  %v5332_v22 = vpop.f32.mrf.mxu2  ;;  %v9035_v31 = vld [vmem:[#allocation6 + $0x4a0] sm:$0xf]  ;;  %v8524_v14 = vor.u32 %v11461_v4, %v8523_v17  ;;  %v10371_v15 = vld [vmem:[#allocation6 + $0xf18] sm:$0xf] }
 0x214   :  { %5493 = vmatpush.bf16.msrb.mxu3 %v10240_v18  ;;  %v11589_v18 = vld [vmem:[#allocation6 + $0x4dc] sm:$0xf0]  ;;  %v11924_v38 = vld [vmem:[#allocation6 + $0xf54] sm:$0xf0]  ;;  %v11501_v22 = vld [vmem:[#allocation6 + $0x224] sm:$0xf] }
 0x215   :  { %v9036_v19 = vor.u32 %v11589_v18, %v9035_v31  ;;  %v11781_v35 = vld [vmem:[#allocation6 + $0xadc] sm:$0xf0]  ;;  %v10243_v47 = vld [vmem:[#allocation6 + $0xe18] sm:$0xf]  ;;  %v8717_v31 = vld [vmem:[#allocation6 + $0x260] sm:$0xf0] }
 0x216   :  { %5562 = vmatpush.bf16.msrb.mxu0 %v8456_v43  ;;  %v5356_v36 = vpop.f32.mrf.mxu0  ;;  %v8652_v43 = vor.u32 %v11493_v30, %v8651_v26  ;;  %v9421_v26 = vld [vmem:[#allocation6 + $0x7e0] sm:$0xf0]  ;;  %v9803_v30 = vld [vmem:[#allocation6 + $0xaa0] sm:$0xf]  ;;  %v11876_v17 = vld [vmem:[#allocation6 + $0xdd4] sm:$0xf0] }
 0x217   :  { %5575 = vmatpush.bf16.msrb.mxu1 %v8968_v50  ;;  %5585 = vmatpush.bf16.msrb.mxu2 %v9672_v12  ;;  %v5357_v42 = vadd.f32 %v5356_v36, %v2602_v8  ;;  %v5369_v44 = vpop.f32.mrf.mxu1  ;;  %v11835_v50 = vld [vmem:[#allocation6 + $0xc94] sm:$0xf]  ;;  %v11797_v12 = vld [vmem:[#allocation6 + $0xb5c] sm:$0xf0]  ;;  %v10372_v36 = vor.u32 %v11924_v38, %v10371_v15  ;;  %v11629_v18 = vld [vmem:[#allocation6 + $0x624] sm:$0xf] }
 0x218   :  { %5494 = vmatpush.bf16.msrb.mxu3 %v10176_v20  ;;  %v11445_v8 = vld [vmem:[#allocation6 + $0x5c] sm:$0xf0]  ;;  %v10115_v15 = vld [vmem:[#allocation6 + $0xd18] sm:$0xf] }
 0x219   :  { %5563 = vmatmul.bf16.vlgmr.msrb.gmra.mxu0 %v12366_v34  ;;  %v12446_v27 = vadd.f32 %v5369_v44, %v5357_v42  ;;  %v8971_v20 = vld [vmem:[#allocation6 + $0x420] sm:$0xf]  ;;  %v8460_v37 = vor.u32 %v11445_v8, %v8459_v16  ;;  %v11908_v42 = vld [vmem:[#allocation6 + $0xed4] sm:$0xf0] }
 0x21a   :  { %5607 = vmatpush.bf16.msra.mxu0 %v8908_v10  ;;  %5576 = vmatmul.bf16.vlgmr.msrb.gmra.mxu1 %v12362_v9  ;;  %v10045_v10 = vld [vmem:[#allocation6 + $0xcd0] sm:$0xf0]  ;;  %v9675_v63 = vld [vmem:[#allocation6 + $0x9a0] sm:$0xf]  ;;  %v11860_v38 = vld [vmem:[#allocation6 + $0xd54] sm:$0xf0] }
 0x21b   :  { %5620 = vmatpush.bf16.msra.mxu1 %v9420_v32  ;;  %5586 = vmatpush.bf16.msrb.mxu2 %v9608_v24  ;;  %v9544_v32 = vor.u32 %v11708_v39, %v9541_v41  ;;  %v10048_v0 = vor.u32 %v11835_v50, %v10045_v10  ;;  %v11677_v24 = vld [vmem:[#allocation6 + $0x7a4] sm:$0xf]  ;;  %v10307_v41 = vld [vmem:[#allocation6 + $0xe98] sm:$0xf] }
 0x21c   :  { %5495 = vmatpush.bf16.msrb.mxu3 %v10112_v48  ;;  %v9424_v44 = vor.u32 %v11677_v24, %v9421_v26  ;;  %v9804_v48 = vor.u32 %v11781_v35, %v9803_v30  ;;  %v8845_v50 = vld [vmem:[#allocation6 + $0x360] sm:$0xf0]  ;;  %v9547_v26 = vld [vmem:[#allocation6 + $0x8a0] sm:$0xf] }
 0x21d   :  { %v11661_v10 = vld [vmem:[#allocation6 + $0x724] sm:$0xf]  ;;  %v11717_v30 = vld [vmem:[#allocation6 + $0x8dc] sm:$0xf0] }
 0x21e   :  { %5608 = vmatpush.bf16.msra.mxu0 %v8844_v59  ;;  %v8588_v59 = vor.u32 %v11477_v54, %v8587_v53  ;;  %v5358_v5 = vpop.f32.mrf.mxu0  ;;  %v11765_v53 = vld [vmem:[#allocation6 + $0xa5c] sm:$0xf0]  ;;  %v10308_v54 = vor.u32 %v11908_v42, %v10307_v41  ;;  %v9165_v24 = vld [vmem:[#allocation6 + $0x5e0] sm:$0xf0]  ;;  %v10051_v42 = vld [vmem:[#allocation6 + $0xc98] sm:$0xf] }
 0x21f   :  { %5621 = vmatpush.bf16.msra.mxu1 %v9356_v46  ;;  %v10435_v46 = vld [vmem:[#allocation6 + $0xf98] sm:$0xf]  ;;  %5587 = vmatpush.bf16.msrb.mxu2 %v9544_v32  ;;  %v5371_v7 = vpop.f32.mrf.mxu1  ;;  %v9739_v32 = vld [vmem:[#allocation6 + $0xa20] sm:$0xf] }
 0x220   :  { %5496 = vmatpush.bf16.msrb.mxu3 %v10048_v0  ;;  %v10436_v13 = vor.u32 %v11940_v28, %v10435_v46  ;;  %v9740_v0 = vor.u32 %v11765_v53, %v9739_v32  ;;  %v11749_v46 = vld [vmem:[#allocation6 + $0x9dc] sm:$0xf0]  ;;  %v10179_v28 = vld [vmem:[#allocation6 + $0xd98] sm:$0xf]  ;;  %v9101_v32 = vld [vmem:[#allocation6 + $0x560] sm:$0xf0] }
 0x221   :  { %v9676_v5 = vor.u32 %v11749_v46, %v9675_v63  ;;  %v9611_v7 = vld [vmem:[#allocation6 + $0x920] sm:$0xf]  ;;  %v10437_v63 = vld [vmem:[#allocation6 + $0xfd8] sm:$0xf0]  ;;  %v11453_v46 = vld [vmem:[#allocation6 + $0xa4] sm:$0xf] }
 0x222   :  { %5609 = vmatpush.bf16.msra.mxu0 %v8780_v61  ;;  %v9932_v61 = vor.u32 %v11813_v58, %v9931_v40  ;;  %v11517_v40 = vld [vmem:[#allocation6 + $0x2a4] sm:$0xf]  ;;  %v9483_v53 = vld [vmem:[#allocation6 + $0x820] sm:$0xf] }
 0x223   :  { %5622 = vmatpush.bf16.msra.mxu1 %v9292_v29  ;;  %v9867_v29 = vld [vmem:[#allocation6 + $0xb20] sm:$0xf]  ;;  %5588 = vmatpush.bf16.msrb.mxu2 %v9480_v2  ;;  %v8781_v58 = vld [vmem:[#allocation6 + $0x2e0] sm:$0xf0] }
 0x224   :  { %v9868_v60 = vor.u32 %v11797_v12, %v9867_v29  ;;  %5497 = vmatpush.bf16.msrb.mxu3 %v9984_v25  ;;  %v8784_v2 = vor.u32 %v11517_v40, %v8781_v58  ;;  %v11733_v25 = vld [vmem:[#allocation6 + $0x95c] sm:$0xf0]  ;;  %v11932_v40 = vld [vmem:[#allocation6 + $0xf9c] sm:$0xf] }
 0x225   :  { %v12452_v29 = vld [vmem:[#allocation7] sm:$0xff]  ;;  %v9612_v8 = vor.u32 %v11733_v25, %v9611_v7  ;;  %v10440_v7 = vor.u32 %v11932_v40, %v10437_v63  ;;  %v11526_v63 = vld [vmem:[#allocation6 + $0x2e4] sm:$0xf0] }
 0x226   :  { %5610 = vmatpush.bf16.msra.mxu0 %v8716_v6  ;;  %v11573_v6 = vld [vmem:[#allocation6 + $0x45c] sm:$0xf0]  ;;  %5589 = vmatmul.bf16.vlgmr.msrb.gmra.mxu2 %v12384_v51  ;;  %v2603_v12 = vperm.slane %v12452_v29, 4 }
 0x227   :  { %5623 = vmatpush.bf16.msra.mxu1 %v9228_v23  ;;  %5633 = vmatpush.bf16.msra.mxu2 %v9932_v61  ;;  %v8909_v23 = vld [vmem:[#allocation6 + $0x3e0] sm:$0xf0]  ;;  %v8972_v11 = vor.u32 %v11573_v6, %v8971_v20 }
 0x228   :  { %5542 = vmatpush.bf16.msra.mxu3 %v10436_v13  ;;  %v8912_v39 = vor.u32 %v11549_v21, %v8909_v23  ;;  %v9229_v61 = vld [vmem:[#allocation6 + $0x660] sm:$0xf0]  ;;  %v10180_v13 = vor.u32 %v11876_v17, %v10179_v28  ;;  %v5239_v16 = vpop.f32.mrf.mxu3 }
 0x229   :  { %5498 = vmatmul.bf16.vlgmr.msrb.gmra.mxu3 %v12406_v3  ;;  %v11485_v20 = vld [vmem:[#allocation6 + $0x1a4] sm:$0xf]  ;;  %v12456_v21 = vadd.f32 %v5239_v16, %v12431_v33 }
 0x22a   :  { %5611 = vmatpush.bf16.msra.mxu0 %v8652_v43  ;;  %v11533_v43 = vld [vmem:[#allocation6 + $0x324] sm:$0xf] }
 0x22b   :  { %5624 = vmatpush.bf16.msra.mxu1 %v9164_v52  ;;  %5634 = vmatpush.bf16.msra.mxu2 %v9868_v60  ;;  %v9357_v52 = vld [vmem:[#allocation6 + $0x760] sm:$0xf0]  ;;  %v8848_v55 = vor.u32 %v11533_v43, %v8845_v50  ;;  %v9548_v43 = vor.u32 %v11717_v30, %v9547_v26  ;;  %vm6023_vm0 = vcmp.gt.f32.partialorder %v12456_v21, 0.0 }
 0x22c   :  { %5543 = vmatpush.bf16.msra.mxu3 %v10372_v36  ;;  %v9360_v56 = vor.u32 %v11661_v10, %v9357_v52  ;;  %v8653_v6 = vld [vmem:[#allocation6 + $0x1e0] sm:$0xf0] }
 0x22d   :  { %v11613_v60 = vld [vmem:[#allocation6 + $0x5a4] sm:$0xf]  ;;  %v8656_v41 = vor.u32 %v11485_v20, %v8653_v6  ;;  %v8915_v20 = vld [vmem:[#allocation6 + $0x3a8] sm:$0xf] }
 0x22e   :  { %5612 = vmatpush.bf16.msra.mxu0 %v8588_v59  ;;  %v11645_v59 = vld [vmem:[#allocation6 + $0x6a4] sm:$0xf]  ;;  %v9168_v33 = vor.u32 %v11613_v60, %v9165_v24  ;;  %v11558_v6 = vld [vmem:[#allocation6 + $0x3e4] sm:$0xf0] }
 0x22f   :  { %5625 = vmatpush.bf16.msra.mxu1 %v9100_v1  ;;  %5635 = vmatpush.bf16.msra.mxu2 %v9804_v48  ;;  %v10244_v1 = vor.u32 %v11892_v57, %v10243_v47  ;;  %v9296_v4 = vor.u32 %v11645_v59, %v9293_v62  ;;  %v11469_v50 = vld [vmem:[#allocation6 + $0x124] sm:$0xf]  ;;  %v9427_v60 = vld [vmem:[#allocation6 + $0x7a8] sm:$0xf] }
 0x230   :  { %5544 = vmatpush.bf16.msra.mxu3 %v10308_v54  ;;  %v8589_v10 = vld [vmem:[#allocation6 + $0x160] sm:$0xf0]  ;;  %v11701_v54 = vld [vmem:[#allocation6 + $0x85c] sm:$0xf0]  ;;  %v5241_v58 = vpop.f32.mrf.mxu3 }
 0x231   :  { %v11597_v52 = vld [vmem:[#allocation6 + $0x524] sm:$0xf]  ;;  %v8592_v57 = vor.u32 %v11469_v50, %v8589_v10  ;;  %v9484_v62 = vor.u32 %v11701_v54, %v9483_v53  ;;  %v11670_v53 = vld [vmem:[#allocation6 + $0x764] sm:$0xf0] }
 0x232   :  { %5613 = vmatpush.bf16.msra.mxu0 %v8524_v14  ;;  %v8720_v14 = vor.u32 %v11501_v22, %v8717_v31  ;;  %v9933_v47 = vld [vmem:[#allocation6 + $0xbe0] sm:$0xf0]  ;;  %v9104_v59 = vor.u32 %v11597_v52, %v9101_v32  ;;  %v9363_v32 = vld [vmem:[#allocation6 + $0x728] sm:$0xf] }
 0x233   :  { %5626 = vmatpush.bf16.msra.mxu1 %v9036_v19  ;;  %5636 = vmatpush.bf16.msra.mxu2 %v9740_v0  ;;  %v9232_v19 = vor.u32 %v11629_v18, %v9229_v61  ;;  %v11828_v0 = vld [vmem:[#allocation6 + $0xc54] sm:$0xf0]  ;;  %v11581_v28 = vld [vmem:[#allocation6 + $0x4a4] sm:$0xf] }
 0x234   :  { %5545 = vmatpush.bf16.msra.mxu3 %v10244_v1  ;;  %v8525_v1 = vld [vmem:[#allocation6 + $0xe0] sm:$0xf0] }
 0x235   :  { %v9037_v17 = vld [vmem:[#allocation6 + $0x4e0] sm:$0xf0]  ;;  %v8528_v25 = vor.u32 %v11453_v46, %v8525_v1  ;;  %v9299_v46 = vld [vmem:[#allocation6 + $0x6a8] sm:$0xf] }
 0x236   :  { %5614 = vmatpush.bf16.msra.mxu0 %v8460_v37  ;;  %v5408_v23 = vpop.f32.mrf.mxu0  ;;  %v5382_v37 = vpop.f32.mrf.mxu2  ;;  %v11789_v18 = vld [vmem:[#allocation6 + $0xb24] sm:$0xf] }
 0x237   :  { %5627 = vmatpush.bf16.msra.mxu1 %v8972_v11  ;;  %5637 = vmatpush.bf16.msra.mxu2 %v9676_v5  ;;  %v5409_v35 = vadd.f32 %v5408_v23, %v2603_v12  ;;  %v5421_v36 = vpop.f32.mrf.mxu1  ;;  %v10116_v11 = vor.u32 %v11860_v38, %v10115_v15  ;;  %v9869_v61 = vld [vmem:[#allocation6 + $0xb60] sm:$0xf0]  ;;  %v11916_v12 = vld [vmem:[#allocation6 + $0xf1c] sm:$0xf]  ;;  %v9040_v15 = vor.u32 %v11581_v28, %v9037_v17  ;;  %v11686_v23 = vld [vmem:[#allocation6 + $0x7e4] sm:$0xf0] }
 0x238   :  { %5546 = vmatpush.bf16.msra.mxu3 %v10180_v13  ;;  %v10373_v13 = vld [vmem:[#allocation6 + $0xf58] sm:$0xf0]  ;;  %v8461_v38 = vld [vmem:[#allocation6 + $0x60] sm:$0xf0]  ;;  %v9428_v10 = vor.u32 %v11686_v23, %v9427_v60  ;;  %v8659_v23 = vld [vmem:[#allocation6 + $0x1a8] sm:$0xf] }
 0x239   :  { %5615 = vmatmul.bf16.vlgmr.msra.gmra.mxu0 %v12366_v34  ;;  %v12461_v48 = vadd.f32 %v5421_v36, %v5409_v35  ;;  %v11565_v16 = vld [vmem:[#allocation6 + $0x424] sm:$0xf]  ;;  %v10376_v30 = vor.u32 %v11916_v12, %v10373_v13  ;;  %v11900_v36 = vld [vmem:[#allocation6 + $0xe9c] sm:$0xf]  ;;  %v9235_v12 = vld [vmem:[#allocation6 + $0x628] sm:$0xf] }
 0x23a   :  { %5659 = vmatpush.bf16.msrb.mxu0 %v8912_v39  ;;  %5628 = vmatmul.bf16.vlgmr.msra.gmra.mxu1 %v12362_v9  ;;  %v12459_v39 = vadd.f32 %v5382_v37, %v12446_v27  ;;  %v11805_v27 = vld [vmem:[#allocation6 + $0xba4] sm:$0xf]  ;;  %v5291_v37 = vpop.f32.mrf.mxu3  ;;  %v11638_v13 = vld [vmem:[#allocation6 + $0x664] sm:$0xf0] }
 0x23b   :  { %5672 = vmatpush.bf16.msrb.mxu1 %v9424_v44  ;;  %v11844_v44 = vld [vmem:[#allocation6 + $0xcd4] sm:$0xf0]  ;;  %5638 = vmatpush.bf16.msra.mxu2 %v9612_v8  ;;  %v9872_v8 = vor.u32 %v11789_v18, %v9869_v61  ;;  %v11773_v24 = vld [vmem:[#allocation6 + $0xaa4] sm:$0xf]  ;;  %v5292_v50 = vadd.f32 %v5291_v37, %v12436_v45  ;;  %v9364_v45 = vor.u32 %v11670_v53, %v9363_v32 }
 0x23c   :  { %5547 = vmatpush.bf16.msra.mxu3 %v10116_v11  ;;  %v9805_v26 = vld [vmem:[#allocation6 + $0xae0] sm:$0xf0] }
 0x23d   :  { %v9808_v52 = vor.u32 %v11773_v24, %v9805_v26  ;;  %v11757_v54 = vld [vmem:[#allocation6 + $0xa24] sm:$0xf]  ;;  %vm6024_vm1 = vcmp.gt.f32.partialorder %v5292_v50, 0.0  ;;  %v11494_v24 = vld [vmem:[#allocation6 + $0x1e4] sm:$0xf0] }
 0x23e   :  { %5660 = vmatpush.bf16.msrb.mxu0 %v8848_v55  ;;  %v10052_v55 = vor.u32 %v11844_v44, %v10051_v42  ;;  %v5384_v22 = vpop.f32.mrf.mxu2  ;;  %v10309_v42 = vld [vmem:[#allocation6 + $0xed8] sm:$0xf0]  ;;  %v8851_v44 = vld [vmem:[#allocation6 + $0x328] sm:$0xf]  ;;  %v11741_v28 = vld [vmem:[#allocation6 + $0x9a4] sm:$0xf] }
 0x23f   :  { %5673 = vmatpush.bf16.msrb.mxu1 %v9360_v56  ;;  %v9987_v56 = vld [vmem:[#allocation6 + $0xc18] sm:$0xf]  ;;  %5639 = vmatpush.bf16.msra.mxu2 %v9548_v43  ;;  %v5423_v5 = vpop.f32.mrf.mxu1  ;;  %v6039_v43 = vmul.f32 0.01, %v12456_v21  ;;  %v9677_v17 = vld [vmem:[#allocation6 + $0x9e0] sm:$0xf0] }
 0x240   :  { %5548 = vmatpush.bf16.msra.mxu3 %v10052_v55  ;;  %v9988_v31 = vor.u32 %v11828_v0, %v9987_v56  ;;  %v9741_v55 = vld [vmem:[#allocation6 + $0xa60] sm:$0xf0]  ;;  %v11884_v56 = vld [vmem:[#allocation6 + $0xe1c] sm:$0xf]  ;;  %v9680_v61 = vor.u32 %v11741_v28, %v9677_v17  ;;  %v9171_v26 = vld [vmem:[#allocation6 + $0x5a8] sm:$0xf] }
 0x241   :  { %v10245_v0 = vld [vmem:[#allocation6 + $0xe58] sm:$0xf0]  ;;  %v6055_v40 = vsel %vm6023_vm0, %v12456_v21, %v6039_v43  ;;  %v11941_v28 = vld [vmem:[#allocation6 + $0xfdc] sm:$0xf0]  ;;  %v8531_v17 = vld [vmem:[#allocation6 + $0xa8] sm:$0xf] }
 0x242   :  { %5661 = vmatpush.bf16.msrb.mxu0 %v8784_v2  ;;  %v5410_v2 = vpop.f32.mrf.mxu0  ;;  %v5293_v21 = vpop.f32.mrf.mxu3  ;;  %v11868_v22 = vld [vmem:[#allocation6 + $0xd9c] sm:$0xf]  ;;  %vm7382_vm0 = vcmask 261120  }
 0x243   :  { %5674 = vmatpush.bf16.msrb.mxu1 %v9296_v4  ;;  %v9936_v4 = vor.u32 %v11805_v27, %v9933_v47  ;;  %5640 = vmatpush.bf16.msra.mxu2 %v9484_v62  ;;  %v6040_v27 = vmul.f32 0.01, %v5292_v50  ;;  %v10312_v47 = vor.u32 %v11900_v36, %v10309_v42  ;;  %v8787_v62 = vld [vmem:[#allocation6 + $0x2a8] sm:$0xf]  ;;  %v9549_v36 = vld [vmem:[#allocation6 + $0x8e0] sm:$0xf0] }
 0x244   :  { %5549 = vmatpush.bf16.msra.mxu3 %v9988_v31  ;;  %v11654_v2 = vld [vmem:[#allocation6 + $0x6e4] sm:$0xf0]  ;;  %v8788_v5 = vor.u32 %v11526_v63, %v8787_v62  ;;  %v10181_v31 = vld [vmem:[#allocation6 + $0xdd8] sm:$0xf0]  ;;  %v10443_v63 = vld [vmem:[#allocation6 + $0xfa0] sm:$0xf] }
 0x245   :  { %v6056_v58 = vsel %vm6024_vm1, %v5292_v50, %v6040_v27  ;;  %v9300_v18 = vor.u32 %v11654_v2, %v9299_v46  ;;  %v8660_v50 = vor.u32 %v11494_v24, %v8659_v23  ;;  %v11478_v27 = vld [vmem:[#allocation6 + $0x164] sm:$0xf0]  ;;  %v11820_v62 = vld [vmem:[#allocation6 + $0xc1c] sm:$0xf]  ;;  %v11550_v24 = vld [vmem:[#allocation6 + $0x3ac] sm:$0xf] }
 0x246   :  { %5662 = vmatpush.bf16.msrb.mxu0 %v8720_v14  ;;  %v11437_v14 = vld [vmem:[#allocation6 + $0x24] sm:$0xf]  ;;  %5641 = vmatmul.bf16.vlgmr.msra.gmra.mxu2 %v12384_v51  ;;  %v12469_v1 = vpack.c.bf16 %v6056_v58, %v6055_v40  ;;  %v9939_v40 = vld [vmem:[#allocation6 + $0xba8] sm:$0xf]  ;;  %vm7384_vm1 = vcmask 523264  }
 0x247   :  { %5675 = vmatpush.bf16.msrb.mxu1 %v9232_v19  ;;  %v8973_v19 = vld [vmem:[#allocation6 + $0x460] sm:$0xf0]  ;;  %5685 = vmatpush.bf16.msrb.mxu2 %v9936_v4  ;;  %v8464_v35 = vor.u32 %v11437_v14, %v8461_v38  ;;  %v10248_v4 = vor.u32 %v11884_v56, %v10245_v0  ;;  %v10184_v38 = vor.u32 %v11868_v22, %v10181_v31  ;;  %v11814_v58 = vld [vmem:[#allocation6 + $0xbe4] sm:$0xf0] }
 0x248   :  { %5594 = vmatpush.bf16.msrb.mxu3 %v10440_v7  ;;  %v8976_v11 = vor.u32 %v11565_v16, %v8973_v19  ;;  %v8723_v7 = vld [vmem:[#allocation6 + $0x228] sm:$0xf]  ;;  %v11725_v14 = vld [vmem:[#allocation6 + $0x924] sm:$0xf]  ;;  %v2604_v16 = vperm.slane %v12452_v29, 5  ;;  %v9940_v22 = vor.u32 %v11814_v58, %v9939_v40 }
 0x249   :  { %5550 = vmatmul.bf16.vlgmr.msra.gmra.mxu3 %v12406_v3  ;;  %v9485_v56 = vld [vmem:[#allocation6 + $0x860] sm:$0xf0]  ;;  %v9043_v21 = vld [vmem:[#allocation6 + $0x4a8] sm:$0xf]  ;;  %v11893_v40 = vld [vmem:[#allocation6 + $0xe5c] sm:$0xf0] }
 0x24a   :  { %5663 = vmatpush.bf16.msrb.mxu0 %v8656_v41  ;;  %v8916_v41 = vor.u32 %v11558_v6, %v8915_v20  ;;  %v10117_v20 = vld [vmem:[#allocation6 + $0xd58] sm:$0xf0]  ;;  %v9236_v6 = vor.u32 %v11638_v13, %v9235_v12 }
 0x24b   :  { %5676 = vmatpush.bf16.msrb.mxu1 %v9168_v33  ;;  %v11542_v33 = vld [vmem:[#allocation6 + $0x364] sm:$0xf0]  ;;  %5686 = vmatpush.bf16.msrb.mxu2 %v9872_v8  ;;  %v11852_v8 = vld [vmem:[#allocation6 + $0xd1c] sm:$0xf] }
 0x24c   :  { %5595 = vmatpush.bf16.msrb.mxu3 %v10376_v30  ;;  %v11622_v30 = vld [vmem:[#allocation6 + $0x5e4] sm:$0xf0]  ;;  %v5343_v43 = vpop.f32.mrf.mxu3 }
 0x24d   :  { %v12478_v32 = vadd.f32 %v5343_v43, %v12444_v49  ;;  %v9172_v53 = vor.u32 %v11622_v30, %v9171_v26  ;;  %v9989_v49 = vld [vmem:[#allocation6 + $0xc58] sm:$0xf0]  ;;  %v8917_v26 = vld [vmem:[#allocation6 + $0x3e8] sm:$0xf0]  ;;  %v10315_v43 = vld [vmem:[#allocation6 + $0xea0] sm:$0xf] }
 0x24e   :  { %5664 = vmatpush.bf16.msrb.mxu0 %v8592_v57  ;;  %v8852_v57 = vor.u32 %v11542_v33, %v8851_v44  ;;  %v11678_v30 = vld [vmem:[#allocation6 + $0x7ac] sm:$0xf] }
 0x24f   :  { %5677 = vmatpush.bf16.msrb.mxu1 %v9104_v59  ;;  %5687 = vmatpush.bf16.msrb.mxu2 %v9808_v52  ;;  %v9744_v59 = vor.u32 %v11757_v54, %v9741_v55  ;;  %v10053_v52 = vld [vmem:[#allocation6 + $0xcd8] sm:$0xf0]  ;;  %v8595_v55 = vld [vmem:[#allocation6 + $0x128] sm:$0xf]  ;;  %vm6025_vm2 = vcmp.gt.f32.partialorder %v12478_v32, 0.0 }
 0x250   :  { %5596 = vmatpush.bf16.msrb.mxu3 %v10312_v47  ;;  %v9107_v47 = vld [vmem:[#allocation6 + $0x528] sm:$0xf] }
 0x252   :  { %5665 = vmatpush.bf16.msrb.mxu0 %v8528_v25  ;;  %v11510_v25 = vld [vmem:[#allocation6 + $0x264] sm:$0xf0] }
 0x253   :  { %5678 = vmatpush.bf16.msrb.mxu1 %v9040_v15  ;;  %5688 = vmatpush.bf16.msrb.mxu2 %v9744_v59  ;;  %v9613_v15 = vld [vmem:[#allocation6 + $0x960] sm:$0xf0]  ;;  %v8724_v19 = vor.u32 %v11510_v25, %v8723_v7  ;;  %v8596_v59 = vor.u32 %v11478_v27, %v8595_v55  ;;  %v9875_v7 = vld [vmem:[#allocation6 + $0xb28] sm:$0xf]  ;;  %v11662_v55 = vld [vmem:[#allocation6 + $0x72c] sm:$0xf] }
 0x254   :  { %5597 = vmatpush.bf16.msrb.mxu3 %v10248_v4  ;;  %v9616_v60 = vor.u32 %v11725_v14, %v9613_v15  ;;  %v11462_v4 = vld [vmem:[#allocation6 + $0xe4] sm:$0xf0]  ;;  %v5345_v13 = vpop.f32.mrf.mxu3  ;;  %v10444_v14 = vor.u32 %v11941_v28, %v10443_v63  ;;  %v9365_v27 = vld [vmem:[#allocation6 + $0x768] sm:$0xf0] }
 0x255   :  { %v11798_v25 = vld [vmem:[#allocation6 + $0xb64] sm:$0xf0]  ;;  %v8532_v15 = vor.u32 %v11462_v4, %v8531_v17  ;;  %v9368_v58 = vor.u32 %v11662_v55, %v9365_v27  ;;  %v11646_v63 = vld [vmem:[#allocation6 + $0x6ac] sm:$0xf] }
 0x256   :  { %5666 = vmatpush.bf16.msrb.mxu0 %v8464_v35  ;;  %v11709_v35 = vld [vmem:[#allocation6 + $0x8a4] sm:$0xf]  ;;  %v5460_v37 = vpop.f32.mrf.mxu0  ;;  %v9876_v23 = vor.u32 %v11798_v25, %v9875_v7  ;;  %v11750_v28 = vld [vmem:[#allocation6 + $0x9e4] sm:$0xf0]  ;;  %v11630_v7 = vld [vmem:[#allocation6 + $0x62c] sm:$0xf] }
 0x257   :  { %5679 = vmatpush.bf16.msrb.mxu1 %v8976_v11  ;;  %5689 = vmatpush.bf16.msrb.mxu2 %v9680_v61  ;;  %v5434_v11 = vpop.f32.mrf.mxu2  ;;  %v5461_v42 = vadd.f32 %v5460_v37, %v2604_v16  ;;  %v5473_v44 = vpop.f32.mrf.mxu1  ;;  %v9552_v54 = vor.u32 %v11709_v35, %v9549_v36  ;;  %v9992_v61 = vor.u32 %v11820_v62, %v9989_v49  ;;  %v11925_v16 = vld [vmem:[#allocation6 + $0xf5c] sm:$0xf0]  ;;  %v9429_v35 = vld [vmem:[#allocation6 + $0x7e8] sm:$0xf0]  ;;  %v9811_v36 = vld [vmem:[#allocation6 + $0xaa8] sm:$0xf] }
 0x258   :  { %5598 = vmatpush.bf16.msrb.mxu3 %v10184_v38  ;;  %v12475_v33 = vadd.f32 %v5434_v11, %v12461_v48  ;;  %v11693_v48 = vld [vmem:[#allocation6 + $0x824] sm:$0xf]  ;;  %v10379_v38 = vld [vmem:[#allocation6 + $0xf20] sm:$0xf]  ;;  %v11782_v37 = vld [vmem:[#allocation6 + $0xae4] sm:$0xf0] }
 0x259   :  { %5667 = vmatmul.bf16.vlgmr.msrb.gmra.mxu0 %v12366_v34  ;;  %v9488_v2 = vor.u32 %v11693_v48, %v9485_v56  ;;  %v10380_v11 = vor.u32 %v11925_v16, %v10379_v38  ;;  %v11518_v62 = vld [vmem:[#allocation6 + $0x2ac] sm:$0xf]  ;;  %v11734_v13 = vld [vmem:[#allocation6 + $0x964] sm:$0xf0]  ;;  %v10123_v38 = vld [vmem:[#allocation6 + $0xd20] sm:$0xf] }
 0x25a   :  { %5711 = vmatpush.bf16.msra.mxu0 %v8916_v41  ;;  %5680 = vmatmul.bf16.vlgmr.msrb.gmra.mxu1 %v12362_v9  ;;  %v10120_v41 = vor.u32 %v11852_v8, %v10117_v20  ;;  %v11446_v20 = vld [vmem:[#allocation6 + $0x64] sm:$0xf0]  ;;  %v8789_v49 = vld [vmem:[#allocation6 + $0x2e8] sm:$0xf0] }
 0x25b   :  { %5724 = vmatpush.bf16.msra.mxu1 %v9428_v10  ;;  %v11836_v10 = vld [vmem:[#allocation6 + $0xc9c] sm:$0xf]  ;;  %5690 = vmatpush.bf16.msrb.mxu2 %v9616_v60  ;;  %v11574_v60 = vld [vmem:[#allocation6 + $0x464] sm:$0xf0]  ;;  %v8792_v4 = vor.u32 %v11518_v62, %v8789_v49  ;;  %v9237_v25 = vld [vmem:[#allocation6 + $0x668] sm:$0xf0] }
 0x25c   :  { %5599 = vmatpush.bf16.msrb.mxu3 %v10120_v41  ;;  %v10056_v0 = vor.u32 %v11836_v10, %v10053_v52  ;;  %v9432_v10 = vor.u32 %v11678_v30, %v9429_v35  ;;  %v9812_v52 = vor.u32 %v11782_v37, %v9811_v36  ;;  %v11718_v30 = vld [vmem:[#allocation6 + $0x8e4] sm:$0xf0]  ;;  %v9941_v62 = vld [vmem:[#allocation6 + $0xbe8] sm:$0xf0] }
 0x25e   :  { %5712 = vmatpush.bf16.msra.mxu0 %v8852_v57  ;;  %v12480_v57 = vadd.f32 %v5473_v44, %v5461_v42  ;;  %v5462_v31 = vpop.f32.mrf.mxu0  ;;  %v8920_v44 = vor.u32 %v11550_v24, %v8917_v26  ;;  %v9173_v24 = vld [vmem:[#allocation6 + $0x5e8] sm:$0xf0]  ;;  %v9555_v26 = vld [vmem:[#allocation6 + $0x8a8] sm:$0xf] }
 0x25f   :  { %5725 = vmatpush.bf16.msra.mxu1 %v9364_v45  ;;  %v11606_v45 = vld [vmem:[#allocation6 + $0x564] sm:$0xf0]  ;;  %5691 = vmatpush.bf16.msrb.mxu2 %v9552_v54  ;;  %v5475_v12 = vpop.f32.mrf.mxu1  ;;  %v8853_v54 = vld [vmem:[#allocation6 + $0x368] sm:$0xf0]  ;;  %v9556_v27 = vor.u32 %v11718_v30, %v9555_v26 }
 0x260   :  { %v9108_v46 = vor.u32 %v11606_v45, %v9107_v47  ;;  %5600 = vmatpush.bf16.msrb.mxu3 %v10056_v0  ;;  %v9747_v47 = vld [vmem:[#allocation6 + $0xa28] sm:$0xf]  ;;  %v10251_v0 = vld [vmem:[#allocation6 + $0xe20] sm:$0xf]  ;;  %v8981_v26 = vld [vmem:[#allocation6 + $0x468] sm:$0xf0] }
 0x261   :  { %v11766_v45 = vld [vmem:[#allocation6 + $0xa64] sm:$0xf0]  ;;  %v10252_v17 = vor.u32 %v11893_v40, %v10251_v0 }
 0x262   :  { %5713 = vmatpush.bf16.msra.mxu0 %v8788_v5  ;;  %v11590_v5 = vld [vmem:[#allocation6 + $0x4e4] sm:$0xf0] }
 0x263   :  { %5726 = vmatpush.bf16.msra.mxu1 %v9300_v18  ;;  %v5436_v18 = vpop.f32.mrf.mxu2  ;;  %5692 = vmatpush.bf16.msrb.mxu2 %v9488_v2  ;;  %v9044_v8 = vor.u32 %v11590_v5, %v9043_v21  ;;  %v9683_v2 = vld [vmem:[#allocation6 + $0x9a8] sm:$0xf]  ;;  %v10187_v21 = vld [vmem:[#allocation6 + $0xda0] sm:$0xf] }
 0x264   :  { %5601 = vmatpush.bf16.msrb.mxu3 %v9992_v61  ;;  %v11877_v5 = vld [vmem:[#allocation6 + $0xddc] sm:$0xf0]  ;;  %v9684_v31 = vor.u32 %v11750_v28, %v9683_v2  ;;  %v11502_v18 = vld [vmem:[#allocation6 + $0x22c] sm:$0xf]  ;;  %v9619_v12 = vld [vmem:[#allocation6 + $0x928] sm:$0xf] }
 0x265   :  { %v8725_v61 = vld [vmem:[#allocation6 + $0x268] sm:$0xf0]  ;;  %v9491_v0 = vld [vmem:[#allocation6 + $0x828] sm:$0xf]  ;;  %v11933_v2 = vld [vmem:[#allocation6 + $0xfa4] sm:$0xf] }
 0x266   :  { %5714 = vmatpush.bf16.msra.mxu0 %v8724_v19  ;;  %v8467_v19 = vld [vmem:[#allocation6 + $0x28] sm:$0xf]  ;;  %5693 = vmatmul.bf16.vlgmr.msrb.gmra.mxu2 %v12384_v51  ;;  %v8728_v16 = vor.u32 %v11502_v18, %v8725_v61  ;;  %v11582_v18 = vld [vmem:[#allocation6 + $0x4ac] sm:$0xf] }
 0x267   :  { %5727 = vmatpush.bf16.msra.mxu1 %v9236_v6  ;;  %v8979_v6 = vld [vmem:[#allocation6 + $0x428] sm:$0xf]  ;;  %5737 = vmatpush.bf16.msra.mxu2 %v9940_v22  ;;  %v8468_v41 = vor.u32 %v11446_v20, %v8467_v19  ;;  %v11861_v19 = vld [vmem:[#allocation6 + $0xd5c] sm:$0xf0]  ;;  %v8661_v20 = vld [vmem:[#allocation6 + $0x1e8] sm:$0xf0] }
 0x268   :  { %5646 = vmatpush.bf16.msra.mxu3 %v10444_v14  ;;  %v8980_v42 = vor.u32 %v11574_v60, %v8979_v6  ;;  %v2605_v14 = vperm.slane %v12452_v29, 6  ;;  %v9240_v6 = vor.u32 %v11630_v7, %v9237_v25  ;;  %v9620_v60 = vor.u32 %v11734_v13, %v9619_v12  ;;  %v11702_v40 = vld [vmem:[#allocation6 + $0x864] sm:$0xf0]  ;;  %v9045_v61 = vld [vmem:[#allocation6 + $0x4e8] sm:$0xf0] }
 0x269   :  { %5602 = vmatmul.bf16.vlgmr.msrb.gmra.mxu3 %v12406_v3  ;;  %v10124_v37 = vor.u32 %v11861_v19, %v10123_v38  ;;  %v11790_v13 = vld [vmem:[#allocation6 + $0xb2c] sm:$0xf] }
 0x26a   :  { %5715 = vmatpush.bf16.msra.mxu0 %v8660_v50  ;;  %v11909_v50 = vld [vmem:[#allocation6 + $0xedc] sm:$0xf0] }
 0x26b   :  { %5728 = vmatpush.bf16.msra.mxu1 %v9172_v53  ;;  %5738 = vmatpush.bf16.msra.mxu2 %v9876_v23  ;;  %v11534_v53 = vld [vmem:[#allocation6 + $0x32c] sm:$0xf]  ;;  %v10316_v48 = vor.u32 %v11909_v50, %v10315_v43  ;;  %v5486_v36 = vpop.f32.mrf.mxu2 }
 0x26c   :  { %5647 = vmatpush.bf16.msra.mxu3 %v10380_v11  ;;  %v8856_v56 = vor.u32 %v11534_v53, %v8853_v54  ;;  %v11614_v23 = vld [vmem:[#allocation6 + $0x5ac] sm:$0xf] }
 0x26d   :  { %v11470_v53 = vld [vmem:[#allocation6 + $0x12c] sm:$0xf]  ;;  %v9176_v55 = vor.u32 %v11614_v23, %v9173_v24 }
 0x26e   :  { %5716 = vmatpush.bf16.msra.mxu0 %v8596_v59  ;;  %v9748_v59 = vor.u32 %v11766_v45, %v9747_v47  ;;  %v8597_v47 = vld [vmem:[#allocation6 + $0x168] sm:$0xf0] }
 0x26f   :  { %5729 = vmatpush.bf16.msra.mxu1 %v9108_v46  ;;  %5739 = vmatpush.bf16.msra.mxu2 %v9812_v52  ;;  %v9301_v46 = vld [vmem:[#allocation6 + $0x6e8] sm:$0xf0]  ;;  %v12490_v52 = vadd.f32 %v5486_v36, %v12480_v57  ;;  %v8600_v49 = vor.u32 %v11470_v53, %v8597_v47  ;;  %v11559_v36 = vld [vmem:[#allocation6 + $0x3ec] sm:$0xf0]  ;;  %v11901_v53 = vld [vmem:[#allocation6 + $0xea4] sm:$0xf] }
 0x270   :  { %5648 = vmatpush.bf16.msra.mxu3 %v10316_v48  ;;  %v9304_v22 = vor.u32 %v11646_v63, %v9301_v46  ;;  %v11598_v45 = vld [vmem:[#allocation6 + $0x52c] sm:$0xf]  ;;  %v9995_v63 = vld [vmem:[#allocation6 + $0xc20] sm:$0xf]  ;;  %v8859_v47 = vld [vmem:[#allocation6 + $0x330] sm:$0xf] }
 0x271   :  { %v9109_v48 = vld [vmem:[#allocation6 + $0x568] sm:$0xf0]  ;;  %v11829_v46 = vld [vmem:[#allocation6 + $0xc5c] sm:$0xf0] }
 0x272   :  { %5717 = vmatpush.bf16.msra.mxu0 %v8532_v15  ;;  %v10188_v15 = vor.u32 %v11877_v5, %v10187_v21  ;;  %v10445_v21 = vld [vmem:[#allocation6 + $0xfe0] sm:$0xf0]  ;;  %v11454_v5 = vld [vmem:[#allocation6 + $0xac] sm:$0xf]  ;;  %v9996_v12 = vor.u32 %v11829_v46, %v9995_v63  ;;  %v8795_v46 = vld [vmem:[#allocation6 + $0x2b0] sm:$0xf] }
 0x273   :  { %5730 = vmatpush.bf16.msra.mxu1 %v9044_v8  ;;  %5740 = vmatpush.bf16.msra.mxu2 %v9748_v59  ;;  %v11486_v8 = vld [vmem:[#allocation6 + $0x1ac] sm:$0xf] }
 0x274   :  { %5649 = vmatpush.bf16.msra.mxu3 %v10252_v17  ;;  %v8664_v11 = vor.u32 %v11486_v8, %v8661_v20  ;;  %v9112_v17 = vor.u32 %v11598_v45, %v9109_v48  ;;  %v11917_v8 = vld [vmem:[#allocation6 + $0xf24] sm:$0xf]  ;;  %v8469_v23 = vld [vmem:[#allocation6 + $0x68] sm:$0xf0]  ;;  %v11543_v45 = vld [vmem:[#allocation6 + $0x36c] sm:$0xf0] }
 0x275   :  { %v10381_v20 = vld [vmem:[#allocation6 + $0xf60] sm:$0xf0]  ;;  %v11566_v24 = vld [vmem:[#allocation6 + $0x42c] sm:$0xf]  ;;  %v9371_v48 = vld [vmem:[#allocation6 + $0x730] sm:$0xf] }
 0x276   :  { %5718 = vmatpush.bf16.msra.mxu0 %v8468_v41  ;;  %v5512_v35 = vpop.f32.mrf.mxu0  ;;  %v10059_v41 = vld [vmem:[#allocation6 + $0xca0] sm:$0xf] }
 0x277   :  { %5731 = vmatpush.bf16.msra.mxu1 %v8980_v42  ;;  %5741 = vmatpush.bf16.msra.mxu2 %v9684_v31  ;;  %v11845_v42 = vld [vmem:[#allocation6 + $0xcdc] sm:$0xf0]  ;;  %v5513_v43 = vadd.f32 %v5512_v35, %v2605_v14  ;;  %v5525_v50 = vpop.f32.mrf.mxu1  ;;  %v9877_v14 = vld [vmem:[#allocation6 + $0xb68] sm:$0xf0]  ;;  %v8923_v35 = vld [vmem:[#allocation6 + $0x3b0] sm:$0xf] }
 0x278   :  { %5650 = vmatpush.bf16.msra.mxu3 %v10188_v15  ;;  %v10060_v57 = vor.u32 %v11845_v42, %v10059_v41  ;;  %v9880_v30 = vor.u32 %v11790_v13, %v9877_v14  ;;  %v11774_v41 = vld [vmem:[#allocation6 + $0xaac] sm:$0xf]  ;;  %v9243_v13 = vld [vmem:[#allocation6 + $0x630] sm:$0xf] }
 0x279   :  { %5719 = vmatmul.bf16.vlgmr.msra.gmra.mxu0 %v12366_v34  ;;  %v9813_v42 = vld [vmem:[#allocation6 + $0xae8] sm:$0xf0]  ;;  %v11639_v14 = vld [vmem:[#allocation6 + $0x66c] sm:$0xf0] }
 0x27a   :  { %5763 = vmatpush.bf16.msrb.mxu0 %v8920_v44  ;;  %5732 = vmatmul.bf16.vlgmr.msra.gmra.mxu1 %v12362_v9  ;;  %v6041_v44 = vmul.f32 0.01, %v12478_v32 }
 0x27b   :  { %5776 = vmatpush.bf16.msrb.mxu1 %v9432_v10  ;;  %v5395_v10 = vpop.f32.mrf.mxu3  ;;  %5742 = vmatpush.bf16.msra.mxu2 %v9620_v60  ;;  %v9048_v60 = vor.u32 %v11582_v18, %v9045_v61  ;;  %v11869_v18 = vld [vmem:[#allocation6 + $0xda4] sm:$0xf] }
 0x27c   :  { %v5396_v54 = vadd.f32 %v5395_v10, %v12459_v39  ;;  %5651 = vmatpush.bf16.msra.mxu3 %v10124_v37  ;;  %v6057_v39 = vsel %vm6025_vm2, %v12478_v32, %v6041_v44  ;;  %v5488_v32 = vpop.f32.mrf.mxu2  ;;  %v9435_v37 = vld [vmem:[#allocation6 + $0x7b0] sm:$0xf]  ;;  %v10384_v44 = vor.u32 %v11917_v8, %v10381_v20  ;;  %v8924_v10 = vor.u32 %v11559_v36, %v8923_v35  ;;  %v10189_v61 = vld [vmem:[#allocation6 + $0xde0] sm:$0xf0]  ;;  %v11710_v36 = vld [vmem:[#allocation6 + $0x8ac] sm:$0xf] }
 0x27d   :  { %v8731_v32 = vld [vmem:[#allocation6 + $0x230] sm:$0xf]  ;;  %v11853_v20 = vld [vmem:[#allocation6 + $0xd24] sm:$0xf]  ;;  %vm7386_vm2 = vcmask 785408  }
 0x27e   :  { %5764 = vmatpush.bf16.msrb.mxu0 %v8856_v56  ;;  %v12493_v56 = vadd.f32 %v5525_v50, %v5513_v43  ;;  %vm6026_vm3 = vcmp.gt.f32.partialorder %v5396_v54, 0.0  ;;  %v6042_v59 = vmul.f32 0.01, %v5396_v54  ;;  %v5514_v25 = vpop.f32.mrf.mxu0  ;;  %v8984_v50 = vor.u32 %v11566_v24, %v8981_v26  ;;  %v8667_v24 = vld [vmem:[#allocation6 + $0x1b0] sm:$0xf] }
 0x27f   :  { %5777 = vmatpush.bf16.msrb.mxu1 %v9368_v58  ;;  %v11806_v58 = vld [vmem:[#allocation6 + $0xbac] sm:$0xf]  ;;  %5743 = vmatpush.bf16.msra.mxu2 %v9556_v27  ;;  %v5527_v15 = vpop.f32.mrf.mxu1  ;;  %v9816_v27 = vor.u32 %v11774_v41, %v9813_v42  ;;  %v11495_v26 = vld [vmem:[#allocation6 + $0x1ec] sm:$0xf0] }
 0x280   :  { %v6058_v28 = vsel %vm6026_vm3, %v5396_v54, %v6042_v59  ;;  %v9944_v7 = vor.u32 %v11806_v58, %v9941_v62  ;;  %5652 = vmatpush.bf16.msra.mxu3 %v10060_v57  ;;  %v10317_v54 = vld [vmem:[#allocation6 + $0xee0] sm:$0xf0]  ;;  %v9749_v58 = vld [vmem:[#allocation6 + $0xa68] sm:$0xf0]  ;;  %v8860_v57 = vor.u32 %v11543_v45, %v8859_v47  ;;  %v11623_v35 = vld [vmem:[#allocation6 + $0x5ec] sm:$0xf0] }
 0x281   :  { %v12498_v31 = vpack.c.bf16 %v6058_v28, %v6057_v39  ;;  %v10320_v59 = vor.u32 %v11901_v53, %v10317_v54  ;;  %v11885_v62 = vld [vmem:[#allocation6 + $0xe24] sm:$0xf]  ;;  %v9307_v28 = vld [vmem:[#allocation6 + $0x6b0] sm:$0xf]  ;;  %v11726_v15 = vld [vmem:[#allocation6 + $0x92c] sm:$0xf] }
 0x282   :  { %5765 = vmatpush.bf16.msrb.mxu0 %v8792_v4  ;;  %v9492_v4 = vor.u32 %v11702_v40, %v9491_v0  ;;  %v11671_v0 = vld [vmem:[#allocation6 + $0x76c] sm:$0xf0]  ;;  %v11758_v40 = vld [vmem:[#allocation6 + $0xa2c] sm:$0xf]  ;;  %v10253_v39 = vld [vmem:[#allocation6 + $0xe60] sm:$0xf0] }
 0x283   :  { %5778 = vmatpush.bf16.msrb.mxu1 %v9304_v22  ;;  %v8533_v22 = vld [vmem:[#allocation6 + $0xe8] sm:$0xf0]  ;;  %v5397_v38 = vpop.f32.mrf.mxu3  ;;  %v9752_v63 = vor.u32 %v11758_v40, %v9749_v58  ;;  %v11837_v53 = vld [vmem:[#allocation6 + $0xca4] sm:$0xf]  ;;  %v8603_v45 = vld [vmem:[#allocation6 + $0x130] sm:$0xf] }
 0x284   :  { %v8536_v19 = vor.u32 %v11454_v5, %v8533_v22  ;;  %5744 = vmatpush.bf16.msra.mxu2 %v9492_v4  ;;  %5653 = vmatpush.bf16.msra.mxu3 %v9996_v12  ;;  %v11742_v4 = vld [vmem:[#allocation6 + $0x9ac] sm:$0xf]  ;;  %v10256_v5 = vor.u32 %v11885_v62, %v10253_v39  ;;  %v11511_v12 = vld [vmem:[#allocation6 + $0x26c] sm:$0xf0]  ;;  %v10061_v54 = vld [vmem:[#allocation6 + $0xce0] sm:$0xf0] }
 0x285   :  { %v9621_v38 = vld [vmem:[#allocation6 + $0x968] sm:$0xf0]  ;;  %v8732_v8 = vor.u32 %v11511_v12, %v8731_v32  ;;  %v11607_v58 = vld [vmem:[#allocation6 + $0x56c] sm:$0xf0] }
 0x286   :  { %5766 = vmatpush.bf16.msrb.mxu0 %v8728_v16  ;;  %v10448_v16 = vor.u32 %v11933_v2, %v10445_v21  ;;  %v11527_v2 = vld [vmem:[#allocation6 + $0x2ec] sm:$0xf0]  ;;  %v9685_v21 = vld [vmem:[#allocation6 + $0x9e8] sm:$0xf0] }
 0x287   :  { %5779 = vmatpush.bf16.msrb.mxu1 %v9240_v6  ;;  %v11438_v6 = vld [vmem:[#allocation6 + $0x2c] sm:$0xf]  ;;  %5745 = vmatmul.bf16.vlgmr.msra.gmra.mxu2 %v12384_v51  ;;  %v8796_v22 = vor.u32 %v11527_v2, %v8795_v46  ;;  %v9688_v25 = vor.u32 %v11742_v4, %v9685_v21  ;;  %v9947_v62 = vld [vmem:[#allocation6 + $0xbb0] sm:$0xf]  ;;  %v10451_v46 = vld [vmem:[#allocation6 + $0xfa8] sm:$0xf] }
 0x288   :  { %5789 = vmatpush.bf16.msrb.mxu2 %v9944_v7  ;;  %5698 = vmatpush.bf16.msrb.mxu3 %v10448_v16  ;;  %v8472_v43 = vor.u32 %v11438_v6, %v8469_v23  ;;  %v10192_v16 = vor.u32 %v11869_v18, %v10189_v61  ;;  %v10125_v6 = vld [vmem:[#allocation6 + $0xd60] sm:$0xf0]  ;;  %v9624_v23 = vor.u32 %v11726_v15, %v9621_v38  ;;  %v11815_v39 = vld [vmem:[#allocation6 + $0xbec] sm:$0xf0] }
 0x289   :  { %5654 = vmatmul.bf16.vlgmr.msra.gmra.mxu3 %v12406_v3  ;;  %v5538_v41 = vpop.f32.mrf.mxu2  ;;  %v10128_v42 = vor.u32 %v11853_v20, %v10125_v6  ;;  %v8539_v4 = vld [vmem:[#allocation6 + $0xb0] sm:$0xf]  ;;  %v9948_v18 = vor.u32 %v11815_v39, %v9947_v62  ;;  %v11894_v62 = vld [vmem:[#allocation6 + $0xe64] sm:$0xf0] }
 0x28a   :  { %5767 = vmatpush.bf16.msrb.mxu0 %v8664_v11  ;;  %v11687_v11 = vld [vmem:[#allocation6 + $0x7ec] sm:$0xf0] }
 0x28b   :  { %5780 = vmatpush.bf16.msrb.mxu1 %v9176_v55  ;;  %v9436_v55 = vor.u32 %v11687_v11, %v9435_v37  ;;  %v9557_v37 = vld [vmem:[#allocation6 + $0x8e8] sm:$0xf0]  ;;  %v11463_v21 = vld [vmem:[#allocation6 + $0xec] sm:$0xf0] }
 0x28c   :  { %5790 = vmatpush.bf16.msrb.mxu2 %v9880_v30  ;;  %5699 = vmatpush.bf16.msrb.mxu3 %v10384_v44  ;;  %v9179_v30 = vld [vmem:[#allocation6 + $0x5b0] sm:$0xf]  ;;  %v9560_v47 = vor.u32 %v11710_v36, %v9557_v37  ;;  %v8540_v38 = vor.u32 %v11463_v21, %v8539_v4  ;;  %v9437_v36 = vld [vmem:[#allocation6 + $0x7f0] sm:$0xf0] }
 0x28d   :  { %v9883_v32 = vld [vmem:[#allocation6 + $0xb30] sm:$0xf] }
 0x28e   :  { %5768 = vmatpush.bf16.msrb.mxu0 %v8600_v49  ;;  %v9372_v49 = vor.u32 %v11671_v0, %v9371_v48  ;;  %v11479_v48 = vld [vmem:[#allocation6 + $0x16c] sm:$0xf0] }
 0x28f   :  { %5781 = vmatpush.bf16.msrb.mxu1 %v9112_v17  ;;  %v11655_v17 = vld [vmem:[#allocation6 + $0x6ec] sm:$0xf0] }
 0x290   :  { %5791 = vmatpush.bf16.msrb.mxu2 %v9816_v27  ;;  %5700 = vmatpush.bf16.msrb.mxu3 %v10320_v59  ;;  %v9308_v7 = vor.u32 %v11655_v17, %v9307_v28  ;;  %v9180_v27 = vor.u32 %v11623_v35, %v9179_v30  ;;  %v9115_v0 = vld [vmem:[#allocation6 + $0x530] sm:$0xf]  ;;  %v11694_v59 = vld [vmem:[#allocation6 + $0x82c] sm:$0xf]  ;;  %v11942_v17 = vld [vmem:[#allocation6 + $0xfe4] sm:$0xf0] }
 0x291   :  { %v9116_v2 = vor.u32 %v11607_v58, %v9115_v0  ;;  %v11799_v12 = vld [vmem:[#allocation6 + $0xb6c] sm:$0xf0]  ;;  %v10452_v15 = vor.u32 %v11942_v17, %v10451_v46  ;;  %v8925_v30 = vld [vmem:[#allocation6 + $0x3f0] sm:$0xf0] }
 0x292   :  { %5769 = vmatpush.bf16.msrb.mxu0 %v8536_v19  ;;  %v2606_v19 = vperm.slane %v12452_v29, 7  ;;  %v5447_v29 = vpop.f32.mrf.mxu3  ;;  %v11447_v6 = vld [vmem:[#allocation6 + $0x6c] sm:$0xf0]  ;;  %v11679_v35 = vld [vmem:[#allocation6 + $0x7b4] sm:$0xf] }
 0x293   :  { %5782 = vmatpush.bf16.msrb.mxu1 %v9048_v60  ;;  %v9244_v60 = vor.u32 %v11639_v14, %v9243_v13  ;;  %v9819_v37 = vld [vmem:[#allocation6 + $0xab0] sm:$0xf]  ;;  %v11647_v46 = vld [vmem:[#allocation6 + $0x6b4] sm:$0xf] }
 0x294   :  { %5792 = vmatpush.bf16.msrb.mxu2 %v9752_v63  ;;  %5701 = vmatpush.bf16.msrb.mxu3 %v10256_v5  ;;  %v9997_v63 = vld [vmem:[#allocation6 + $0xc60] sm:$0xf0]  ;;  %v9051_v5 = vld [vmem:[#allocation6 + $0x4b0] sm:$0xf] }
 0x295   :  { %v9755_v0 = vld [vmem:[#allocation6 + $0xa30] sm:$0xf] }
 0x296   :  { %5770 = vmatpush.bf16.msrb.mxu0 %v8472_v43  ;;  %v5564_v11 = vpop.f32.mrf.mxu0  ;;  %v11767_v58 = vld [vmem:[#allocation6 + $0xa6c] sm:$0xf0] }
 0x297   :  { %5783 = vmatpush.bf16.msrb.mxu1 %v8984_v50  ;;  %v5565_v44 = vadd.f32 %v5564_v11, %v2606_v19  ;;  %v5577_v43 = vpop.f32.mrf.mxu1  ;;  %v12506_v50 = vadd.f32 %v5538_v41, %v12493_v56  ;;  %v9493_v56 = vld [vmem:[#allocation6 + $0x868] sm:$0xf0]  ;;  %v11926_v19 = vld [vmem:[#allocation6 + $0xf64] sm:$0xf0]  ;;  %v11783_v11 = vld [vmem:[#allocation6 + $0xaec] sm:$0xf0] }
 0x298   :  { %5793 = vmatpush.bf16.msrb.mxu2 %v9688_v25  ;;  %5702 = vmatpush.bf16.msrb.mxu3 %v10192_v16  ;;  %v9496_v28 = vor.u32 %v11694_v59, %v9493_v56  ;;  %v10387_v16 = vld [vmem:[#allocation6 + $0xf28] sm:$0xf]  ;;  %v11751_v17 = vld [vmem:[#allocation6 + $0x9ec] sm:$0xf0] }
 0x299   :  { %5771 = vmatmul.bf16.vlgmr.msrb.gmra.mxu0 %v12366_v34  ;;  %v12511_v40 = vadd.f32 %v5577_v43, %v5565_v44  ;;  %v10388_v41 = vor.u32 %v11926_v19, %v10387_v16  ;;  %v10131_v19 = vld [vmem:[#allocation6 + $0xd28] sm:$0xf] }
 0x29a   :  { %5815 = vmatpush.bf16.msra.mxu0 %v8924_v10  ;;  %5784 = vmatmul.bf16.vlgmr.msrb.gmra.mxu1 %v12362_v9  ;;  %v8668_v10 = vor.u32 %v11495_v26, %v8667_v24  ;;  %v5449_v14 = vpop.f32.mrf.mxu3  ;;  %v9884_v24 = vor.u32 %v11799_v12, %v9883_v32  ;;  %v11551_v26 = vld [vmem:[#allocation6 + $0x3b4] sm:$0xf] }
 0x29b   :  { %5828 = vmatpush.bf16.msra.mxu1 %v9436_v55  ;;  %v12509_v55 = vadd.f32 %v5447_v29, %v12475_v33  ;;  %v11821_v33 = vld [vmem:[#allocation6 + $0xc24] sm:$0xf]  ;;  %v8928_v43 = vor.u32 %v11551_v26, %v8925_v30  ;;  %v10323_v29 = vld [vmem:[#allocation6 + $0xea8] sm:$0xf]  ;;  %v8733_v32 = vld [vmem:[#allocation6 + $0x270] sm:$0xf0] }
 0x29c   :  { %5794 = vmatpush.bf16.msrb.mxu2 %v9624_v23  ;;  %5703 = vmatpush.bf16.msrb.mxu3 %v10128_v42  ;;  %v10000_v25 = vor.u32 %v11821_v33, %v9997_v63  ;;  %v11575_v23 = vld [vmem:[#allocation6 + $0x46c] sm:$0xf0]  ;;  %v11519_v33 = vld [vmem:[#allocation6 + $0x2b4] sm:$0xf] }
 0x29d   :  { %v8797_v63 = vld [vmem:[#allocation6 + $0x2f0] sm:$0xf0]  ;;  %v9627_v14 = vld [vmem:[#allocation6 + $0x930] sm:$0xf]  ;;  %vm6027_vm4 = vcmp.gt.f32.partialorder %v12509_v55, 0.0 }
 0x29e   :  { %5816 = vmatpush.bf16.msra.mxu0 %v8860_v57  ;;  %v10064_v57 = vor.u32 %v11837_v53, %v10061_v54  ;;  %v5566_v61 = vpop.f32.mrf.mxu0  ;;  %v9440_v53 = vor.u32 %v11679_v35, %v9437_v36  ;;  %v9820_v54 = vor.u32 %v11783_v11, %v9819_v37  ;;  %v8800_v21 = vor.u32 %v11519_v33, %v8797_v63  ;;  %v11631_v12 = vld [vmem:[#allocation6 + $0x634] sm:$0xf]  ;;  %v9563_v35 = vld [vmem:[#allocation6 + $0x8b0] sm:$0xf] }
 0x29f   :  { %5829 = vmatpush.bf16.msra.mxu1 %v9372_v49  ;;  %v8604_v49 = vor.u32 %v11479_v48, %v8603_v45  ;;  %v5579_v13 = vpop.f32.mrf.mxu1  ;;  %v11663_v45 = vld [vmem:[#allocation6 + $0x734] sm:$0xf]  ;;  %v11719_v36 = vld [vmem:[#allocation6 + $0x8ec] sm:$0xf0] }
 0x2a0   :  { %5795 = vmatpush.bf16.msrb.mxu2 %v9560_v47  ;;  %5704 = vmatpush.bf16.msrb.mxu3 %v10064_v57  ;;  %v8861_v47 = vld [vmem:[#allocation6 + $0x370] sm:$0xf0]  ;;  %v10259_v57 = vld [vmem:[#allocation6 + $0xe28] sm:$0xf] }
 0x2a1   :  { %v9373_v48 = vld [vmem:[#allocation6 + $0x770] sm:$0xf0]  ;;  %v10260_v4 = vor.u32 %v11894_v62, %v10259_v57  ;;  %v9499_v62 = vld [vmem:[#allocation6 + $0x830] sm:$0xf] }
 0x2a2   :  { %5817 = vmatpush.bf16.msra.mxu0 %v8796_v22  ;;  %v11591_v22 = vld [vmem:[#allocation6 + $0x4ec] sm:$0xf0]  ;;  %v9376_v39 = vor.u32 %v11663_v45, %v9373_v48  ;;  %v9245_v13 = vld [vmem:[#allocation6 + $0x670] sm:$0xf0] }
 0x2a3   :  { %5830 = vmatpush.bf16.msra.mxu1 %v9308_v7  ;;  %v5540_v7 = vpop.f32.mrf.mxu2  ;;  %v9052_v20 = vor.u32 %v11591_v22, %v9051_v5  ;;  %v12517_v5 = vld [vmem:[#allocation7 + $0x8] sm:$0xff]  ;;  %v11615_v26 = vld [vmem:[#allocation6 + $0x5b4] sm:$0xf] }
 0x2a4   :  { %5796 = vmatpush.bf16.msrb.mxu2 %v9496_v28  ;;  %5705 = vmatpush.bf16.msrb.mxu3 %v10000_v25  ;;  %v9691_v28 = vld [vmem:[#allocation6 + $0x9b0] sm:$0xf]  ;;  %v10195_v22 = vld [vmem:[#allocation6 + $0xda8] sm:$0xf]  ;;  %v11503_v25 = vld [vmem:[#allocation6 + $0x234] sm:$0xf] }
 0x2a5   :  { %v9692_v7 = vor.u32 %v11751_v17, %v9691_v28  ;;  %v9181_v30 = vld [vmem:[#allocation6 + $0x5f0] sm:$0xf0]  ;;  %v11830_v28 = vld [vmem:[#allocation6 + $0xc64] sm:$0xf0]  ;;  %v11934_v17 = vld [vmem:[#allocation6 + $0xfac] sm:$0xf] }
 0x2a6   :  { %5818 = vmatpush.bf16.msra.mxu0 %v8732_v8  ;;  %v8475_v8 = vld [vmem:[#allocation6 + $0x30] sm:$0xf]  ;;  %v9184_v48 = vor.u32 %v11615_v26, %v9181_v30  ;;  %v9949_v63 = vld [vmem:[#allocation6 + $0xbf0] sm:$0xf0] }
 0x2a7   :  { %5831 = vmatpush.bf16.msra.mxu1 %v9244_v60  ;;  %v8987_v60 = vld [vmem:[#allocation6 + $0x430] sm:$0xf]  ;;  %v8476_v42 = vor.u32 %v11447_v6, %v8475_v8  ;;  %5797 = vmatmul.bf16.vlgmr.msrb.gmra.mxu2 %v12384_v51  ;;  %v8736_v8 = vor.u32 %v11503_v25, %v8733_v32  ;;  %v11487_v6 = vld [vmem:[#allocation6 + $0x1b4] sm:$0xf] }
 0x2a8   :  { %5841 = vmatpush.bf16.msra.mxu2 %v9948_v18  ;;  %5750 = vmatpush.bf16.msra.mxu3 %v10452_v15  ;;  %v8988_v44 = vor.u32 %v11575_v23, %v8987_v60  ;;  %v11878_v18 = vld [vmem:[#allocation6 + $0xde4] sm:$0xf0]  ;;  %v11735_v15 = vld [vmem:[#allocation6 + $0x96c] sm:$0xf0]  ;;  %v8669_v60 = vld [vmem:[#allocation6 + $0x1f0] sm:$0xf0]  ;;  %v9248_v23 = vor.u32 %v11631_v12, %v9245_v13 }
 0x2a9   :  { %5706 = vmatmul.bf16.vlgmr.msrb.gmra.mxu3 %v12406_v3  ;;  %v10196_v16 = vor.u32 %v11878_v18, %v10195_v22  ;;  %v10453_v18 = vld [vmem:[#allocation6 + $0xfe8] sm:$0xf0]  ;;  %v11583_v32 = vld [vmem:[#allocation6 + $0x4b4] sm:$0xf] }
 0x2aa   :  { %5819 = vmatpush.bf16.msra.mxu0 %v8668_v10  ;;  %v11910_v10 = vld [vmem:[#allocation6 + $0xee4] sm:$0xf0]  ;;  %v9053_v12 = vld [vmem:[#allocation6 + $0x4f0] sm:$0xf0] }
 0x2ab   :  { %5832 = vmatpush.bf16.msra.mxu1 %v9180_v27  ;;  %v11535_v27 = vld [vmem:[#allocation6 + $0x334] sm:$0xf]  ;;  %v10324_v59 = vor.u32 %v11910_v10, %v10323_v29  ;;  %v5590_v11 = vpop.f32.mrf.mxu2  ;;  %v6043_v29 = vmul.f32 0.01, %v12509_v55  ;;  %v9056_v26 = vor.u32 %v11583_v32, %v9053_v12  ;;  %v11870_v12 = vld [vmem:[#allocation6 + $0xdac] sm:$0xf] }
 0x2ac   :  { %5842 = vmatpush.bf16.msra.mxu2 %v9884_v24  ;;  %5751 = vmatpush.bf16.msra.mxu3 %v10388_v41  ;;  %v8864_v56 = vor.u32 %v11535_v27, %v8861_v47  ;;  %v9628_v24 = vor.u32 %v11735_v15, %v9627_v14  ;;  %v12523_v27 = vadd.f32 %v5590_v11, %v12511_v40  ;;  %v11471_v47 = vld [vmem:[#allocation6 + $0x134] sm:$0xf]  ;;  %v8931_v11 = vld [vmem:[#allocation6 + $0x3b8] sm:$0xf] }
 0x2ad   :  { %v8477_v30 = vld [vmem:[#allocation6 + $0x70] sm:$0xf0] }
 0x2ae   :  { %5820 = vmatpush.bf16.msra.mxu0 %v8604_v49  ;;  %v9756_v49 = vor.u32 %v11767_v58, %v9755_v0  ;;  %v9564_v0 = vor.u32 %v11719_v36, %v9563_v35  ;;  %v8605_v58 = vld [vmem:[#allocation6 + $0x170] sm:$0xf0] }
 0x2af   :  { %5833 = vmatpush.bf16.msra.mxu1 %v9116_v2  ;;  %v9309_v2 = vld [vmem:[#allocation6 + $0x6f0] sm:$0xf0] }
 0x2b0   :  { %5843 = vmatpush.bf16.msra.mxu2 %v9820_v54  ;;  %5752 = vmatpush.bf16.msra.mxu3 %v10324_v59  ;;  %v9312_v61 = vor.u32 %v11647_v46, %v9309_v2  ;;  %v5499_v54 = vpop.f32.mrf.mxu3  ;;  %v11599_v59 = vld [vmem:[#allocation6 + $0x534] sm:$0xf]  ;;  %v8608_v46 = vor.u32 %v11471_v47, %v8605_v58  ;;  %v10003_v2 = vld [vmem:[#allocation6 + $0xc28] sm:$0xf] }
 0x2b1   :  { %v5500_v45 = vadd.f32 %v5499_v54, %v12490_v52  ;;  %v6059_v52 = vsel %vm6027_vm4, %v12509_v55, %v6043_v29  ;;  %v10004_v15 = vor.u32 %v11830_v28, %v10003_v2  ;;  %v11567_v35 = vld [vmem:[#allocation6 + $0x434] sm:$0xf] }
 0x2b2   :  { %5821 = vmatpush.bf16.msra.mxu0 %v8540_v38  ;;  %v2607_v38 = vperm.slane %v12517_v5, 0  ;;  %v8989_v36 = vld [vmem:[#allocation6 + $0x470] sm:$0xf0] }
 0x2b3   :  { %5834 = vmatpush.bf16.msra.mxu1 %v9052_v20  ;;  %v11862_v20 = vld [vmem:[#allocation6 + $0xd64] sm:$0xf0]  ;;  %vm6028_vm5 = vcmp.gt.f32.partialorder %v5500_v45, 0.0  ;;  %v6044_v33 = vmul.f32 0.01, %v5500_v45  ;;  %v5592_v55 = vpop.f32.mrf.mxu2  ;;  %v8992_v54 = vor.u32 %v11567_v35, %v8989_v36 }
 0x2b4   :  { %5844 = vmatpush.bf16.msra.mxu2 %v9756_v49  ;;  %5753 = vmatpush.bf16.msra.mxu3 %v10260_v4  ;;  %v10132_v41 = vor.u32 %v11862_v20, %v10131_v19  ;;  %v11807_v49 = vld [vmem:[#allocation6 + $0xbb4] sm:$0xf]  ;;  %v10456_v20 = vor.u32 %v11934_v17, %v10453_v18  ;;  %v8803_v17 = vld [vmem:[#allocation6 + $0x2b8] sm:$0xf] }
 0x2b5   :  { %v6060_v4 = vsel %vm6028_vm5, %v5500_v45, %v6044_v33  ;;  %v9952_v13 = vor.u32 %v11807_v49, %v9949_v63  ;;  %v9821_v29 = vld [vmem:[#allocation6 + $0xaf0] sm:$0xf0]  ;;  %v11902_v45 = vld [vmem:[#allocation6 + $0xeac] sm:$0xf]  ;;  %v8675_v36 = vld [vmem:[#allocation6 + $0x1b8] sm:$0xf] }
 0x2b6   :  { %5822 = vmatpush.bf16.msra.mxu0 %v8476_v42  ;;  %v5616_v37 = vpop.f32.mrf.mxu0  ;;  %v8672_v42 = vor.u32 %v11487_v6, %v8669_v60  ;;  %v12531_v25 = vpack.c.bf16 %v6060_v4, %v6059_v52  ;;  %v11918_v60 = vld [vmem:[#allocation6 + $0xf2c] sm:$0xf]  ;;  %v11759_v49 = vld [vmem:[#allocation6 + $0xa34] sm:$0xf]  ;;  %v11528_v4 = vld [vmem:[#allocation6 + $0x2f4] sm:$0xf0] }
 0x2b7   :  { %5835 = vmatpush.bf16.msra.mxu1 %v8988_v44  ;;  %v10067_v44 = vld [vmem:[#allocation6 + $0xca8] sm:$0xf]  ;;  %v5617_v10 = vadd.f32 %v5616_v37, %v2607_v38  ;;  %v11791_v38 = vld [vmem:[#allocation6 + $0xb34] sm:$0xf]  ;;  %v11886_v52 = vld [vmem:[#allocation6 + $0xe2c] sm:$0xf]  ;;  %v8804_v32 = vor.u32 %v11528_v4, %v8803_v17 }
 0x2b8   :  { %5845 = vmatpush.bf16.msra.mxu2 %v9692_v7  ;;  %5754 = vmatpush.bf16.msra.mxu3 %v10196_v16  ;;  %v8541_v7 = vld [vmem:[#allocation6 + $0xf0] sm:$0xf0]  ;;  %v10005_v4 = vld [vmem:[#allocation6 + $0xc68] sm:$0xf0] }
 0x2b9   :  { %5823 = vmatmul.bf16.vlgmr.msra.gmra.mxu0 %v12366_v34  ;;  %v9885_v16 = vld [vmem:[#allocation6 + $0xb70] sm:$0xf0] }
 0x2ba   :  { %5867 = vmatpush.bf16.msrb.mxu0 %v8928_v43  ;;  %5836 = vmatmul.bf16.vlgmr.msra.gmra.mxu1 %v12362_v9  ;;  %v11846_v43 = vld [vmem:[#allocation6 + $0xce4] sm:$0xf0]  ;;  %v9888_v37 = vor.u32 %v11791_v38, %v9885_v16  ;;  %v9757_v33 = vld [vmem:[#allocation6 + $0xa70] sm:$0xf0]  ;;  %v11512_v38 = vld [vmem:[#allocation6 + $0x274] sm:$0xf0] }
 0x2bb   :  { %5880 = vmatpush.bf16.msrb.mxu1 %v9440_v53  ;;  %v5629_v53 = vpop.f32.mrf.mxu1  ;;  %v10068_v40 = vor.u32 %v11846_v43, %v10067_v44  ;;  %v11688_v44 = vld [vmem:[#allocation6 + $0x7f4] sm:$0xf0]  ;;  %v11775_v43 = vld [vmem:[#allocation6 + $0xab4] sm:$0xf]  ;;  %v9760_v28 = vor.u32 %v11759_v49, %v9757_v33 }
 0x2bc   :  { %5846 = vmatpush.bf16.msra.mxu2 %v9628_v24  ;;  %v12526_v57 = vadd.f32 %v5629_v53, %v5617_v10  ;;  %5755 = vmatpush.bf16.msra.mxu3 %v10132_v41  ;;  %v11439_v24 = vld [vmem:[#allocation6 + $0x34] sm:$0xf]  ;;  %v11560_v41 = vld [vmem:[#allocation6 + $0x3f4] sm:$0xf0]  ;;  %v9824_v58 = vor.u32 %v11775_v43, %v9821_v29 }
 0x2bd   :  { %v8480_v53 = vor.u32 %v11439_v24, %v8477_v30  ;;  %v8932_v47 = vor.u32 %v11560_v41, %v8931_v11  ;;  %v11743_v18 = vld [vmem:[#allocation6 + $0x9b4] sm:$0xf]  ;;  %v9251_v16 = vld [vmem:[#allocation6 + $0x638] sm:$0xf]  ;;  %v11854_v24 = vld [vmem:[#allocation6 + $0xd2c] sm:$0xf] }
 0x2be   :  { %5868 = vmatpush.bf16.msrb.mxu0 %v8864_v56  ;;  %v9117_v56 = vld [vmem:[#allocation6 + $0x570] sm:$0xf0]  ;;  %v5618_v14 = vpop.f32.mrf.mxu0  ;;  %v9187_v11 = vld [vmem:[#allocation6 + $0x5b8] sm:$0xf] }
 0x2bf   :  { %5881 = vmatpush.bf16.msrb.mxu1 %v9376_v39  ;;  %v11703_v39 = vld [vmem:[#allocation6 + $0x86c] sm:$0xf0]  ;;  %v11624_v41 = vld [vmem:[#allocation6 + $0x5f4] sm:$0xf0] }
 0x2c0   :  { %5847 = vmatpush.bf16.msra.mxu2 %v9564_v0  ;;  %v9500_v22 = vor.u32 %v11703_v39, %v9499_v62  ;;  %5756 = vmatpush.bf16.msra.mxu3 %v10068_v40  ;;  %v9379_v62 = vld [vmem:[#allocation6 + $0x738] sm:$0xf] }
 0x2c1   :  { %v11672_v39 = vld [vmem:[#allocation6 + $0x774] sm:$0xf0] }
 0x2c2   :  { %5869 = vmatpush.bf16.msrb.mxu0 %v8800_v21  ;;  %v9120_v21 = vor.u32 %v11599_v59, %v9117_v56  ;;  %v8867_v59 = vld [vmem:[#allocation6 + $0x338] sm:$0xf]  ;;  %v9380_v2 = vor.u32 %v11672_v39, %v9379_v62 }
 0x2c3   :  { %5882 = vmatpush.bf16.msrb.mxu1 %v9312_v61  ;;  %v11455_v61 = vld [vmem:[#allocation6 + $0xb4] sm:$0xf]  ;;  %v5631_v19 = vpop.f32.mrf.mxu1  ;;  %v11544_v56 = vld [vmem:[#allocation6 + $0x374] sm:$0xf0] }
 0x2c4   :  { %v8544_v6 = vor.u32 %v11455_v61, %v8541_v7  ;;  %5848 = vmatpush.bf16.msra.mxu2 %v9500_v22  ;;  %5757 = vmatpush.bf16.msra.mxu3 %v10004_v15  ;;  %v8868_v63 = vor.u32 %v11544_v56, %v8867_v59  ;;  %v11656_v22 = vld [vmem:[#allocation6 + $0x6f4] sm:$0xf0]  ;;  %v9693_v61 = vld [vmem:[#allocation6 + $0x9f0] sm:$0xf0]  ;;  %v9188_v56 = vor.u32 %v11624_v41, %v9187_v11  ;;  %v11552_v41 = vld [vmem:[#allocation6 + $0x3bc] sm:$0xf] }
 0x2c5   :  { %v9696_v55 = vor.u32 %v11743_v18, %v9693_v61  ;;  %v8739_v15 = vld [vmem:[#allocation6 + $0x238] sm:$0xf]  ;;  %v11943_v61 = vld [vmem:[#allocation6 + $0xfec] sm:$0xf0] }
 0x2c6   :  { %5870 = vmatpush.bf16.msrb.mxu0 %v8736_v8  ;;  %v5501_v8 = vpop.f32.mrf.mxu3  ;;  %v11640_v19 = vld [vmem:[#allocation6 + $0x674] sm:$0xf0] }
 0x2c7   :  { %5883 = vmatpush.bf16.msrb.mxu1 %v9248_v23  ;;  %v10389_v23 = vld [vmem:[#allocation6 + $0xf68] sm:$0xf0]  ;;  %5849 = vmatmul.bf16.vlgmr.msra.gmra.mxu2 %v12384_v51  ;;  %v11727_v8 = vld [vmem:[#allocation6 + $0x934] sm:$0xf]  ;;  %v9252_v30 = vor.u32 %v11640_v19, %v9251_v16  ;;  %v8611_v39 = vld [vmem:[#allocation6 + $0x138] sm:$0xf] }
 0x2c8   :  { %5893 = vmatpush.bf16.msrb.mxu2 %v9952_v13  ;;  %5802 = vmatpush.bf16.msrb.mxu3 %v10456_v20  ;;  %v10392_v10 = vor.u32 %v11918_v60, %v10389_v23  ;;  %v10197_v13 = vld [vmem:[#allocation6 + $0xde8] sm:$0xf0]  ;;  %v9629_v20 = vld [vmem:[#allocation6 + $0x970] sm:$0xf0]  ;;  %v2608_v60 = vperm.slane %v12517_v5, 1  ;;  %v8740_v23 = vor.u32 %v11512_v38, %v8739_v15 }
 0x2c9   :  { %5758 = vmatmul.bf16.vlgmr.msra.gmra.mxu3 %v12406_v3  ;;  %v9632_v35 = vor.u32 %v11727_v8, %v9629_v20  ;;  %v5642_v29 = vpop.f32.mrf.mxu2  ;;  %v11480_v49 = vld [vmem:[#allocation6 + $0x174] sm:$0xf0] }
 0x2ca   :  { %5871 = vmatpush.bf16.msrb.mxu0 %v8672_v42  ;;  %v9443_v42 = vld [vmem:[#allocation6 + $0x7b8] sm:$0xf]  ;;  %v8612_v17 = vor.u32 %v11480_v49, %v8611_v39  ;;  %v11536_v39 = vld [vmem:[#allocation6 + $0x33c] sm:$0xf] }
 0x2cb   :  { %5884 = vmatpush.bf16.msrb.mxu1 %v9184_v48  ;;  %v10325_v48 = vld [vmem:[#allocation6 + $0xee8] sm:$0xf0]  ;;  %v9444_v0 = vor.u32 %v11688_v44, %v9443_v42  ;;  %v11711_v42 = vld [vmem:[#allocation6 + $0x8b4] sm:$0xf]  ;;  %v9123_v33 = vld [vmem:[#allocation6 + $0x538] sm:$0xf] }
 0x2cc   :  { %5894 = vmatpush.bf16.msrb.mxu2 %v9888_v37  ;;  %5803 = vmatpush.bf16.msrb.mxu3 %v10392_v10  ;;  %v10328_v40 = vor.u32 %v11902_v45, %v10325_v48  ;;  %v11496_v37 = vld [vmem:[#allocation6 + $0x1f4] sm:$0xf0]  ;;  %v9565_v44 = vld [vmem:[#allocation6 + $0x8f0] sm:$0xf0]  ;;  %v12539_v45 = vadd.f32 %v5642_v29, %v12526_v57  ;;  %v8869_v49 = vld [vmem:[#allocation6 + $0x378] sm:$0xf0] }
 0x2cd   :  { %v8676_v48 = vor.u32 %v11496_v37, %v8675_v36  ;;  %v9568_v62 = vor.u32 %v11711_v42, %v9565_v44  ;;  %v9501_v57 = vld [vmem:[#allocation6 + $0x870] sm:$0xf0]  ;;  %v9891_v16 = vld [vmem:[#allocation6 + $0xb38] sm:$0xf]  ;;  %v8933_v42 = vld [vmem:[#allocation6 + $0x3f8] sm:$0xf0] }
 0x2ce   :  { %5872 = vmatpush.bf16.msrb.mxu0 %v8608_v46  ;;  %v10261_v46 = vld [vmem:[#allocation6 + $0xe68] sm:$0xf0]  ;;  %v11800_v19 = vld [vmem:[#allocation6 + $0xb74] sm:$0xf0]  ;;  %v11680_v44 = vld [vmem:[#allocation6 + $0x7bc] sm:$0xf] }
 0x2cf   :  { %5885 = vmatpush.bf16.msrb.mxu1 %v9120_v21  ;;  %v9315_v21 = vld [vmem:[#allocation6 + $0x6b8] sm:$0xf]  ;;  %v10264_v7 = vor.u32 %v11886_v52, %v10261_v46  ;;  %v11695_v52 = vld [vmem:[#allocation6 + $0x834] sm:$0xf]  ;;  %v9892_v11 = vor.u32 %v11800_v19, %v9891_v16  ;;  %v11504_v16 = vld [vmem:[#allocation6 + $0x23c] sm:$0xf] }
 0x2d0   :  { %5895 = vmatpush.bf16.msrb.mxu2 %v9824_v58  ;;  %5804 = vmatpush.bf16.msrb.mxu3 %v10328_v40  ;;  %v9316_v14 = vor.u32 %v11656_v22, %v9315_v21  ;;  %v10069_v58 = vld [vmem:[#allocation6 + $0xce8] sm:$0xf0]  ;;  %v10459_v21 = vld [vmem:[#allocation6 + $0xfb0] sm:$0xf]  ;;  %v9504_v18 = vor.u32 %v11695_v52, %v9501_v57  ;;  %v8995_v36 = vld [vmem:[#allocation6 + $0x438] sm:$0xf] }
 0x2d1   :  { %v5644_v15 = vpop.f32.mrf.mxu2  ;;  %v11576_v37 = vld [vmem:[#allocation6 + $0x474] sm:$0xf0]  ;;  %v8741_v19 = vld [vmem:[#allocation6 + $0x278] sm:$0xf0] }
 0x2d2   :  { %5873 = vmatpush.bf16.msrb.mxu0 %v8544_v6  ;;  %v10200_v6 = vor.u32 %v11870_v12, %v10197_v13  ;;  %v9059_v12 = vld [vmem:[#allocation6 + $0x4b8] sm:$0xf] }
 0x2d3   :  { %5886 = vmatpush.bf16.msrb.mxu1 %v9056_v26  ;;  %v10133_v26 = vld [vmem:[#allocation6 + $0xd68] sm:$0xf0]  ;;  %v11592_v13 = vld [vmem:[#allocation6 + $0x4f4] sm:$0xf0] }
 0x2d4   :  { %5896 = vmatpush.bf16.msrb.mxu2 %v9760_v28  ;;  %5805 = vmatpush.bf16.msrb.mxu3 %v10264_v7  ;;  %v10136_v10 = vor.u32 %v11854_v24, %v10133_v26  ;;  %v11816_v28 = vld [vmem:[#allocation6 + $0xbf4] sm:$0xf0]  ;;  %v11927_v24 = vld [vmem:[#allocation6 + $0xf6c] sm:$0xf0] }
 0x2d5   :  { %v8547_v7 = vld [vmem:[#allocation6 + $0xb8] sm:$0xf] }
 0x2d6   :  { %5874 = vmatpush.bf16.msrb.mxu0 %v8480_v53  ;;  %v5668_v43 = vpop.f32.mrf.mxu0  ;;  %v8483_v26 = vld [vmem:[#allocation6 + $0x38] sm:$0xf] }
 0x2d7   :  { %5887 = vmatpush.bf16.msrb.mxu1 %v8992_v54  ;;  %v5669_v53 = vadd.f32 %v5668_v43, %v2608_v60  ;;  %v5681_v54 = vpop.f32.mrf.mxu1  ;;  %v9445_v43 = vld [vmem:[#allocation6 + $0x7f8] sm:$0xf0]  ;;  %v9827_v29 = vld [vmem:[#allocation6 + $0xab8] sm:$0xf] }
 0x2d8   :  { %5897 = vmatpush.bf16.msrb.mxu2 %v9696_v55  ;;  %5806 = vmatpush.bf16.msrb.mxu3 %v10200_v6  ;;  %v10460_v6 = vor.u32 %v11943_v61, %v10459_v21  ;;  %v9763_v52 = vld [vmem:[#allocation6 + $0xa38] sm:$0xf]  ;;  %v11520_v21 = vld [vmem:[#allocation6 + $0x2bc] sm:$0xf] }
 0x2d9   :  { %5875 = vmatmul.bf16.vlgmr.msrb.gmra.mxu0 %v12366_v34  ;;  %v12544_v40 = vadd.f32 %v5681_v54, %v5669_v53  ;;  %v11768_v57 = vld [vmem:[#allocation6 + $0xa74] sm:$0xf0]  ;;  %v9317_v61 = vld [vmem:[#allocation6 + $0x6f8] sm:$0xf0] }
 0x2da   :  { %5919 = vmatpush.bf16.msra.mxu0 %v8932_v47  ;;  %5888 = vmatmul.bf16.vlgmr.msrb.gmra.mxu1 %v12362_v9  ;;  %v5551_v47 = vpop.f32.mrf.mxu3 }
 0x2db   :  { %5932 = vmatpush.bf16.msra.mxu1 %v9444_v0  ;;  %v11838_v0 = vld [vmem:[#allocation6 + $0xcac] sm:$0xf]  ;;  %v12542_v59 = vadd.f32 %v5551_v47, %v12506_v50  ;;  %v8996_v47 = vor.u32 %v11576_v37, %v8995_v36  ;;  %v11488_v36 = vld [vmem:[#allocation6 + $0x1bc] sm:$0xf] }
 0x2dc   :  { %5898 = vmatpush.bf16.msrb.mxu2 %v9632_v35  ;;  %5807 = vmatpush.bf16.msrb.mxu3 %v10136_v10  ;;  %v10072_v46 = vor.u32 %v11838_v0, %v10069_v58  ;;  %v11822_v50 = vld [vmem:[#allocation6 + $0xc2c] sm:$0xf]  ;;  %v11448_v35 = vld [vmem:[#allocation6 + $0x74] sm:$0xf0]  ;;  %v10331_v0 = vld [vmem:[#allocation6 + $0xeb0] sm:$0xf] }
 0x2dd   :  { %v10008_v38 = vor.u32 %v11822_v50, %v10005_v4  ;;  %v11784_v10 = vld [vmem:[#allocation6 + $0xaf4] sm:$0xf0]  ;;  %v8484_v54 = vor.u32 %v11448_v35, %v8483_v26  ;;  %v11911_v58 = vld [vmem:[#allocation6 + $0xeec] sm:$0xf0]  ;;  %v9764_v4 = vor.u32 %v11768_v57, %v9763_v52  ;;  %v8677_v37 = vld [vmem:[#allocation6 + $0x1f8] sm:$0xf0] }
 0x2de   :  { %5920 = vmatpush.bf16.msra.mxu0 %v8868_v63  ;;  %v11608_v63 = vld [vmem:[#allocation6 + $0x574] sm:$0xf0]  ;;  %v5670_v55 = vpop.f32.mrf.mxu0  ;;  %v10139_v26 = vld [vmem:[#allocation6 + $0xd30] sm:$0xf]  ;;  %vm6029_vm6 = vcmp.gt.f32.partialorder %v12542_v59, 0.0 }
 0x2df   :  { %5933 = vmatpush.bf16.msra.mxu1 %v9380_v2  ;;  %v9955_v2 = vld [vmem:[#allocation6 + $0xbb8] sm:$0xf]  ;;  %v9124_v22 = vor.u32 %v11608_v63, %v9123_v33  ;;  %v5683_v8 = vpop.f32.mrf.mxu1  ;;  %v11664_v33 = vld [vmem:[#allocation6 + $0x73c] sm:$0xf]  ;;  %v11879_v55 = vld [vmem:[#allocation6 + $0xdec] sm:$0xf0] }
 0x2e0   :  { %5899 = vmatpush.bf16.msrb.mxu2 %v9568_v62  ;;  %5808 = vmatpush.bf16.msrb.mxu3 %v10072_v46  ;;  %v9828_v62 = vor.u32 %v11784_v10, %v9827_v29  ;;  %v9381_v63 = vld [vmem:[#allocation6 + $0x778] sm:$0xf0]  ;;  %v10332_v46 = vor.u32 %v11911_v58, %v10331_v0  ;;  %v11863_v35 = vld [vmem:[#allocation6 + $0xd6c] sm:$0xf0]  ;;  %v11720_v29 = vld [vmem:[#allocation6 + $0x8f4] sm:$0xf0] }
 0x2e1   :  { %v9384_v50 = vor.u32 %v11664_v33, %v9381_v63  ;;  %v11632_v8 = vld [vmem:[#allocation6 + $0x63c] sm:$0xf]  ;;  %v11847_v0 = vld [vmem:[#allocation6 + $0xcec] sm:$0xf0]  ;;  %v6045_v58 = vmul.f32 0.01, %v12542_v59 }
 0x2e2   :  { %5921 = vmatpush.bf16.msra.mxu0 %v8804_v32  ;;  %v11464_v32 = vld [vmem:[#allocation6 + $0xf4] sm:$0xf0]  ;;  %v5553_v20 = vpop.f32.mrf.mxu3  ;;  %v11472_v33 = vld [vmem:[#allocation6 + $0x13c] sm:$0xf] }
 0x2e3   :  { %5934 = vmatpush.bf16.msra.mxu1 %v9316_v14  ;;  %v9956_v14 = vor.u32 %v11816_v28, %v9955_v2  ;;  %v8548_v60 = vor.u32 %v11464_v32, %v8547_v7  ;;  %v8872_v2 = vor.u32 %v11536_v39, %v8869_v49  ;;  %v10267_v28 = vld [vmem:[#allocation6 + $0xe30] sm:$0xf]  ;;  %v9699_v7 = vld [vmem:[#allocation6 + $0x9b8] sm:$0xf]  ;;  %v9253_v20 = vld [vmem:[#allocation6 + $0x678] sm:$0xf0] }
 0x2e4   :  { %5900 = vmatpush.bf16.msrb.mxu2 %v9504_v18  ;;  %5809 = vmatpush.bf16.msrb.mxu3 %v10008_v38  ;;  %v11648_v18 = vld [vmem:[#allocation6 + $0x6bc] sm:$0xf]  ;;  %v11752_v32 = vld [vmem:[#allocation6 + $0x9f4] sm:$0xf0] }
 0x2e5   :  { %v9320_v15 = vor.u32 %v11648_v18, %v9317_v61  ;;  %v9700_v38 = vor.u32 %v11752_v32, %v9699_v7  ;;  %v9957_v18 = vld [vmem:[#allocation6 + $0xbf8] sm:$0xf0]  ;;  %v10011_v7 = vld [vmem:[#allocation6 + $0xc30] sm:$0xf] }
 0x2e6   :  { %5922 = vmatpush.bf16.msra.mxu0 %v8740_v23  ;;  %v10395_v23 = vld [vmem:[#allocation6 + $0xf30] sm:$0xf] }
 0x2e7   :  { %5935 = vmatpush.bf16.msra.mxu1 %v9252_v30  ;;  %v9060_v30 = vor.u32 %v11592_v13, %v9059_v12  ;;  %v10396_v53 = vor.u32 %v11927_v24, %v10395_v23  ;;  %5901 = vmatmul.bf16.vlgmr.msrb.gmra.mxu2 %v12384_v51  ;;  %v2609_v23 = vperm.slane %v12517_v5, 2  ;;  %v11831_v32 = vld [vmem:[#allocation6 + $0xc6c] sm:$0xf0] }
 0x2e8   :  { %5945 = vmatpush.bf16.msra.mxu2 %v9956_v14  ;;  %5854 = vmatpush.bf16.msra.mxu3 %v10460_v6  ;;  %v10203_v14 = vld [vmem:[#allocation6 + $0xdb0] sm:$0xf]  ;;  %v9635_v6 = vld [vmem:[#allocation6 + $0x938] sm:$0xf] }
 0x2e9   :  { %5810 = vmatmul.bf16.vlgmr.msrb.gmra.mxu3 %v12406_v3  ;;  %v10204_v24 = vor.u32 %v11879_v55, %v10203_v14 }
 0x2ea   :  { %5923 = vmatpush.bf16.msra.mxu0 %v8676_v48  ;;  %v8936_v48 = vor.u32 %v11552_v41, %v8933_v42  ;;  %v11616_v42 = vld [vmem:[#allocation6 + $0x5bc] sm:$0xf] }
 0x2eb   :  { %5936 = vmatpush.bf16.msra.mxu1 %v9188_v56  ;;  %v9448_v56 = vor.u32 %v11680_v44, %v9445_v43  ;;  %v9189_v44 = vld [vmem:[#allocation6 + $0x5f8] sm:$0xf0]  ;;  %v9571_v43 = vld [vmem:[#allocation6 + $0x8b8] sm:$0xf] }
 0x2ec   :  { %5946 = vmatpush.bf16.msra.mxu2 %v9892_v11  ;;  %5855 = vmatpush.bf16.msra.mxu3 %v10396_v53  ;;  %v9256_v11 = vor.u32 %v11632_v8, %v9253_v20  ;;  %v5694_v53 = vpop.f32.mrf.mxu2  ;;  %v5603_v39 = vpop.f32.mrf.mxu3  ;;  %v9192_v52 = vor.u32 %v11616_v42, %v9189_v44  ;;  %v9572_v57 = vor.u32 %v11720_v29, %v9571_v43  ;;  %v11584_v8 = vld [vmem:[#allocation6 + $0x4bc] sm:$0xf]  ;;  %v10397_v42 = vld [vmem:[#allocation6 + $0xf70] sm:$0xf0] }
 0x2ed   :  { %v12554_v49 = vadd.f32 %v5694_v53, %v12544_v40  ;;  %v5604_v63 = vadd.f32 %v5603_v39, %v12523_v27  ;;  %v6061_v27 = vsel %vm6029_vm6, %v12542_v59, %v6045_v58  ;;  %v9061_v20 = vld [vmem:[#allocation6 + $0x4f8] sm:$0xf0]  ;;  %v10333_v39 = vld [vmem:[#allocation6 + $0xef0] sm:$0xf0] }
 0x2ee   :  { %5924 = vmatpush.bf16.msra.mxu0 %v8612_v17  ;;  %v11895_v17 = vld [vmem:[#allocation6 + $0xe6c] sm:$0xf0]  ;;  %v11440_v44 = vld [vmem:[#allocation6 + $0x3c] sm:$0xf] }
 0x2ef   :  { %5937 = vmatpush.bf16.msra.mxu1 %v9124_v22  ;;  %v8805_v22 = vld [vmem:[#allocation6 + $0x2f8] sm:$0xf0]  ;;  %v10268_v12 = vor.u32 %v11895_v17, %v10267_v28  ;;  %vm6030_vm7 = vcmp.gt.f32.partialorder %v5604_v63, 0.0 }
 0x2f0   :  { %5947 = vmatpush.bf16.msra.mxu2 %v9828_v62  ;;  %5856 = vmatpush.bf16.msra.mxu3 %v10332_v46  ;;  %v8808_v13 = vor.u32 %v11520_v21, %v8805_v22  ;;  %v8613_v46 = vld [vmem:[#allocation6 + $0x178] sm:$0xf0]  ;;  %v6046_v22 = vmul.f32 0.01, %v5604_v63 }
 0x2f1   :  { %v9125_v28 = vld [vmem:[#allocation6 + $0x578] sm:$0xf0]  ;;  %v8616_v61 = vor.u32 %v11472_v33, %v8613_v46  ;;  %v11960_v33 = vld [vmem:[%s13032_s5 + $0x78] sm:$0xff] }
 0x2f2   :  { %5925 = vmatpush.bf16.msra.mxu0 %v8548_v60  ;;  %v11736_v60 = vld [vmem:[#allocation6 + $0x974] sm:$0xf0]  ;;  %v11808_v21 = vld [vmem:[#allocation6 + $0xbbc] sm:$0xf] }
 0x2f3   :  { %5938 = vmatpush.bf16.msra.mxu1 %v9060_v30  ;;  %v8744_v30 = vor.u32 %v11504_v16, %v8741_v19  ;;  %v9636_v41 = vor.u32 %v11736_v60, %v9635_v6  ;;  %v8549_v16 = vld [vmem:[#allocation6 + $0xf8] sm:$0xf0]  ;;  %v9960_v6 = vor.u32 %v11808_v21, %v9957_v18 }
 0x2f4   :  { %5948 = vmatpush.bf16.msra.mxu2 %v9764_v4  ;;  %5857 = vmatpush.bf16.msra.mxu3 %v10268_v12  ;;  %v11704_v4 = vld [vmem:[#allocation6 + $0x874] sm:$0xf0]  ;;  %v11935_v12 = vld [vmem:[#allocation6 + $0xfb4] sm:$0xf]  ;;  %v5696_v59 = vpop.f32.mrf.mxu2  ;;  %v8485_v43 = vld [vmem:[#allocation6 + $0x78] sm:$0xf0] }
 0x2f5   :  { %v11568_v29 = vld [vmem:[#allocation6 + $0x43c] sm:$0xf] }
 0x2f6   :  { %5926 = vmatpush.bf16.msra.mxu0 %v8484_v54  ;;  %v5720_v10 = vpop.f32.mrf.mxu0  ;;  %v10140_v54 = vor.u32 %v11863_v35, %v10139_v26  ;;  %v9893_v26 = vld [vmem:[#allocation6 + $0xb78] sm:$0xf0]  ;;  %v5605_v35 = vpop.f32.mrf.mxu3 }
 0x2f7   :  { %5939 = vmatpush.bf16.msra.mxu1 %v8996_v47  ;;  %v8680_v47 = vor.u32 %v11488_v36, %v8677_v37  ;;  %v5733_v62 = vpop.f32.mrf.mxu1  ;;  %v11948_v35 = vld [vmem:[%s13032_s5 + $0x18] sm:$0xff] }
 0x2f8   :  { %5949 = vmatpush.bf16.msra.mxu2 %v9700_v38  ;;  %5858 = vmatpush.bf16.msra.mxu3 %v10204_v24  ;;  %v11456_v38 = vld [vmem:[#allocation6 + $0xbc] sm:$0xf] }
 0x2f9   :  { %5927 = vmatmul.bf16.vlgmr.msra.gmra.mxu0 %v12366_v34  ;;  %v11792_v24 = vld [vmem:[#allocation6 + $0xb3c] sm:$0xf]  ;;  %v8552_v37 = vor.u32 %v11456_v38, %v8549_v16  ;;  %v10141_v38 = vld [vmem:[#allocation6 + $0xd70] sm:$0xf0] }
 0x2fa   :  { %5971 = vmatpush.bf16.msrb.mxu0 %v8936_v48  ;;  %5940 = vmatmul.bf16.vlgmr.msra.gmra.mxu1 %v12362_v9  ;;  %v10075_v48 = vld [vmem:[#allocation6 + $0xcb0] sm:$0xf]  ;;  %v9896_v53 = vor.u32 %v11792_v24, %v9893_v26  ;;  %v11957_v16 = vld [vmem:[%s13032_s5 + $0x60] sm:$0xff] }
 0x2fb   :  { %5984 = vmatpush.bf16.msrb.mxu1 %v9448_v56  ;;  %v5721_v56 = vadd.f32 %v5720_v10, %v2609_v23  ;;  %v10076_v40 = vor.u32 %v11847_v0, %v10075_v48  ;;  %v10012_v23 = vor.u32 %v11831_v32, %v10011_v7  ;;  %v8997_v10 = vld [vmem:[#allocation6 + $0x478] sm:$0xf0]  ;;  %v8488_v0 = vor.u32 %v11440_v44, %v8485_v43  ;;  %v10205_v7 = vld [vmem:[#allocation6 + $0xdf0] sm:$0xf0] }
 0x2fc   :  { %5950 = vmatpush.bf16.msra.mxu2 %v9636_v41  ;;  %5859 = vmatpush.bf16.msra.mxu3 %v10140_v54  ;;  %v9064_v41 = vor.u32 %v11584_v8, %v9061_v20  ;;  %v11776_v54 = vld [vmem:[#allocation6 + $0xabc] sm:$0xf]  ;;  %v9000_v58 = vor.u32 %v11568_v29, %v8997_v10  ;;  %v11947_v10 = vld [vmem:[%s13032_s5 + $0x10] sm:$0xff] }
 0x2fd   :  { %v12557_v17 = vadd.f32 %v5733_v62, %v5721_v56  ;;  %v11952_v56 = vld [vmem:[%s13032_s5 + $0x38] sm:$0xff]  ;;  %v11903_v62 = vld [vmem:[#allocation6 + $0xeb4] sm:$0xf]  ;;  %v11958_v32 = vld [vmem:[%s13032_s5 + $0x68] sm:$0xff] }
 0x2fe   :  { %5972 = vmatpush.bf16.msrb.mxu0 %v8872_v2  ;;  %v11600_v2 = vld [vmem:[#allocation6 + $0x53c] sm:$0xf]  ;;  %v5722_v60 = vpop.f32.mrf.mxu0  ;;  %v10336_v46 = vor.u32 %v11903_v62, %v10333_v39 }
 0x2ff   :  { %5985 = vmatpush.bf16.msrb.mxu1 %v9384_v50  ;;  %v9507_v50 = vld [vmem:[#allocation6 + $0x838] sm:$0xf]  ;;  %v9128_v14 = vor.u32 %v11600_v2, %v9125_v28  ;;  %v11951_v2 = vld [vmem:[%s13032_s5 + $0x30] sm:$0xff]  ;;  %v11887_v28 = vld [vmem:[#allocation6 + $0xe34] sm:$0xf] }
 0x300   :  { %5951 = vmatpush.bf16.msra.mxu2 %v9572_v57  ;;  %v9508_v55 = vor.u32 %v11704_v4, %v9507_v50  ;;  %5860 = vmatpush.bf16.msra.mxu3 %v10076_v40  ;;  %v9765_v57 = vld [vmem:[#allocation6 + $0xa78] sm:$0xf0]  ;;  %v10269_v50 = vld [vmem:[#allocation6 + $0xe70] sm:$0xf0]  ;;  %v11959_v4 = vld [vmem:[%s13032_s5 + $0x70] sm:$0xff] }
 0x301   :  { %v9701_v40 = vld [vmem:[#allocation6 + $0x9f8] sm:$0xf0]  ;;  %v10272_v18 = vor.u32 %v11887_v28, %v10269_v50  ;;  %v11928_v28 = vld [vmem:[#allocation6 + $0xf74] sm:$0xf0]  ;;  %v11967_v50 = vld [vmem:[%s13032_s5 + $0xb0] sm:$0xff] }
 0x302   :  { %5973 = vmatpush.bf16.msrb.mxu0 %v8808_v13  ;;  %v6062_v13 = vsel %vm6030_vm7, %v5604_v63, %v6046_v22  ;;  %v11744_v22 = vld [vmem:[#allocation6 + $0x9bc] sm:$0xf] }
 0x303   :  { %5986 = vmatpush.bf16.msrb.mxu1 %v9320_v15  ;;  %v10461_v15 = vld [vmem:[#allocation6 + $0xff0] sm:$0xf0]  ;;  %v12562_v19 = vpack.c.bf16 %v6062_v13, %v6061_v27  ;;  %v11950_v27 = vld [vmem:[%s13032_s5 + $0x28] sm:$0xff] }
 0x304   :  { %v10464_v36 = vor.u32 %v11935_v12, %v10461_v15  ;;  %5952 = vmatpush.bf16.msra.mxu2 %v9508_v55  ;;  %5861 = vmatpush.bf16.msra.mxu3 %v10012_v23  ;;  %v11728_v12 = vld [vmem:[#allocation6 + $0x93c] sm:$0xf]  ;;  %v11949_v55 = vld [vmem:[%s13032_s5 + $0x20] sm:$0xff] }
 0x305   :  { %v9637_v13 = vld [vmem:[#allocation6 + $0x978] sm:$0xf0]  ;;  %v11855_v15 = vld [vmem:[#allocation6 + $0xd34] sm:$0xf] }
 0x306   :  { %5974 = vmatpush.bf16.msrb.mxu0 %v8744_v30  ;;  %v5735_v30 = vpop.f32.mrf.mxu1  ;;  %v9640_v8 = vor.u32 %v11728_v12, %v9637_v13  ;;  %v11712_v20 = vld [vmem:[#allocation6 + $0x8bc] sm:$0xf]  ;;  %v10144_v23 = vor.u32 %v11855_v15, %v10141_v38  ;;  %v10275_v13 = vld [vmem:[#allocation6 + $0xe38] sm:$0xf] }
 0x307   :  { %5987 = vmatpush.bf16.msrb.mxu1 %v9256_v11  ;;  %v11919_v11 = vld [vmem:[#allocation6 + $0xf34] sm:$0xf]  ;;  %5953 = vmatmul.bf16.vlgmr.msra.gmra.mxu2 %v12384_v51  ;;  %v9509_v43 = vld [vmem:[#allocation6 + $0x878] sm:$0xf0] }
 0x308   :  { %5997 = vmatpush.bf16.msrb.mxu2 %v9960_v6  ;;  %5906 = vmatpush.bf16.msrb.mxu3 %v10464_v36  ;;  %v10400_v48 = vor.u32 %v11919_v11, %v10397_v42  ;;  %v9573_v6 = vld [vmem:[#allocation6 + $0x8f8] sm:$0xf0]  ;;  %v11839_v36 = vld [vmem:[#allocation6 + $0xcb4] sm:$0xf] }
 0x309   :  { %5862 = vmatmul.bf16.vlgmr.msra.gmra.mxu3 %v12406_v3  ;;  %v9576_v42 = vor.u32 %v11712_v20, %v9573_v6  ;;  %v11965_v15 = vld [vmem:[%s13032_s5 + $0xa0] sm:$0xff]  ;;  %v11990_v6 = vld [vmem:[%s13032_s5 + $0x168] sm:$0xff] }
 0x30a   :  { %5975 = vmatpush.bf16.msrb.mxu0 %v8680_v47  ;;  %v9829_v47 = vld [vmem:[#allocation6 + $0xaf8] sm:$0xf0]  ;;  %v5746_v59 = vpop.f32.mrf.mxu2  ;;  %v11880_v20 = vld [vmem:[#allocation6 + $0xdf4] sm:$0xf0] }
 0x30b   :  { %5988 = vmatpush.bf16.msrb.mxu1 %v9192_v52  ;;  %v9832_v63 = vor.u32 %v11776_v54, %v9829_v47  ;;  %v11760_v52 = vld [vmem:[#allocation6 + $0xa3c] sm:$0xf]  ;;  %v12594_v30 = vadd.f32 %v5746_v59, %v12557_v17  ;;  %v11955_v54 = vld [vmem:[%s13032_s5 + $0x50] sm:$0xff] }
 0x30c   :  { %5998 = vmatpush.bf16.msrb.mxu2 %v9896_v53  ;;  %5907 = vmatpush.bf16.msrb.mxu3 %v10400_v48  ;;  %v9768_v21 = vor.u32 %v11760_v52, %v9765_v57  ;;  %v5655_v26 = vpop.f32.mrf.mxu3  ;;  %v11696_v17 = vld [vmem:[#allocation6 + $0x83c] sm:$0xf]  ;;  %v10013_v53 = vld [vmem:[#allocation6 + $0xc70] sm:$0xf0]  ;;  %v10467_v48 = vld [vmem:[#allocation6 + $0xfb8] sm:$0xf] }
 0x30d   :  { %v12600_v11 = vadd.f32 %v5655_v26, %v12539_v45  ;;  %v11823_v45 = vld [vmem:[#allocation6 + $0xc34] sm:$0xf]  ;;  %v9512_v47 = vor.u32 %v11696_v17, %v9509_v43  ;;  %v11946_v57 = vld [vmem:[%s13032_s5 + $0x8] sm:$0xff]  ;;  %v10147_v26 = vld [vmem:[#allocation6 + $0xd38] sm:$0xf] }
 0x30e   :  { %5976 = vmatpush.bf16.msrb.mxu0 %v8616_v61  ;;  %v11871_v61 = vld [vmem:[#allocation6 + $0xdb4] sm:$0xf]  ;;  %v10016_v39 = vor.u32 %v11823_v45, %v10013_v53  ;;  %v11980_v45 = vld [vmem:[%s13032_s5 + $0x118] sm:$0xff]  ;;  %v10083_v53 = vld [vmem:[#allocation6 + $0xcb8] sm:$0xf] }
 0x30f   :  { %5989 = vmatpush.bf16.msrb.mxu1 %v9128_v14  ;;  %v2610_v14 = vperm.slane %v12517_v5, 3  ;;  %vm6031_vm8 = vcmp.gt.f32.partialorder %v12600_v11, 0.0 }
 0x310   :  { %5999 = vmatpush.bf16.msrb.mxu2 %v9832_v63  ;;  %5908 = vmatpush.bf16.msrb.mxu3 %v10336_v46  ;;  %v11954_v46 = vld [vmem:[%s13032_s5 + $0x48] sm:$0xff] }
 0x312   :  { %5977 = vmatpush.bf16.msrb.mxu0 %v8552_v37  ;;  %v10077_v37 = vld [vmem:[#allocation6 + $0xcf0] sm:$0xf0]  ;;  %v5748_v62 = vpop.f32.mrf.mxu2 }
 0x313   :  { %5990 = vmatpush.bf16.msrb.mxu1 %v9064_v41  ;;  %v11956_v41 = vld [vmem:[%s13032_s5 + $0x58] sm:$0xff]  ;;  %v10080_v29 = vor.u32 %v11839_v36, %v10077_v37  ;;  %v11989_v36 = vld [vmem:[%s13032_s5 + $0x160] sm:$0xff]  ;;  %v11963_v37 = vld [vmem:[%s13032_s5 + $0x90] sm:$0xff] }
 0x314   :  { %6000 = vmatpush.bf16.msrb.mxu2 %v9768_v21  ;;  %5909 = vmatpush.bf16.msrb.mxu3 %v10272_v18  ;;  %v5657_v63 = vpop.f32.mrf.mxu3  ;;  %v11945_v21 = vld [vmem:[%s13032_s5] sm:$0xff]  ;;  %v11984_v18 = vld [vmem:[%s13032_s5 + $0x138] sm:$0xff] }
 0x315   :  { %v10019_v63 = vld [vmem:[#allocation6 + $0xc38] sm:$0xf] }
 0x316   :  { %5978 = vmatpush.bf16.msrb.mxu0 %v8488_v0  ;;  %v5772_v60 = vpop.f32.mrf.mxu0  ;;  %v11944_v0 = vld [vmem:[#allocation6 + $0xff4] sm:$0xf0] }
 0x317   :  { %5991 = vmatpush.bf16.msrb.mxu1 %v9000_v58  ;;  %v5773_v5 = vadd.f32 %v5772_v60, %v2610_v14  ;;  %v5785_v24 = vpop.f32.mrf.mxu1  ;;  %v11968_v58 = vld [vmem:[%s13032_s5 + $0xb8] sm:$0xff]  ;;  %v10468_v52 = vor.u32 %v11944_v0, %v10467_v48 }
 0x318   :  { %v11964_v60 = vld [vmem:[%s13032_s5 + $0x98] sm:$0xff] }
 0x319   :  { %5979 = vmatmul.bf16.vlgmr.msrb.gmra.mxu0 %v12366_v34  ;;  %v9704_v34 = vor.u32 %v11744_v22, %v9701_v40  ;;  %v12605_v44 = vadd.f32 %v5785_v24, %v5773_v5  ;;  %v11953_v22 = vld [vmem:[%s13032_s5 + $0x40] sm:$0xff]  ;;  %v6145_v40 = vunpack.c.l.b16 %v12469_v1  ;;  %v11988_v0 = vld [vmem:[%s13032_s5 + $0x158] sm:$0xff] }
 0x31a   :  { %6349 = vmatpush.bf16.msra.mxu0 %v11952_v56  ;;  %5992 = vmatmul.bf16.vlgmr.msrb.gmra.mxu1 %v12362_v9  ;;  %v10208_v9 = vor.u32 %v11871_v61, %v10205_v7  ;;  %v11912_v61 = vld [vmem:[#allocation6 + $0xef4] sm:$0xf0]  ;;  %v6146_v7 = vunpack.c.h.b16 %v12469_v1  ;;  %v11983_v1 = vld [vmem:[%s13032_s5 + $0x130] sm:$0xff] }
 0x31b   :  { %6362 = vmatpush.bf16.msra.mxu1 %v11960_v33  ;;  %6001 = vmatpush.bf16.msrb.mxu2 %v9704_v34  ;;  %v11966_v34 = vld [vmem:[%s13032_s5 + $0xa8] sm:$0xff]  ;;  %v6149_v12 = vpack.c.b16 %v6145_v40, %v6145_v40  ;;  %v11981_v24 = vld [vmem:[%s13032_s5 + $0x120] sm:$0xff] }
 0x31c   :  { %5910 = vmatpush.bf16.msrb.mxu3 %v10208_v9  ;;  %v11896_v9 = vld [vmem:[#allocation6 + $0xe74] sm:$0xf0]  ;;  %v6150_v14 = vpack.c.b16 %v6146_v7, %v6146_v7 }
 0x31d   :  { %v10276_v38 = vor.u32 %v11896_v9, %v10275_v13 }
 0x31e   :  { %6350 = vmatpush.bf16.msra.mxu0 %v11951_v2  ;;  %v5774_v56 = vpop.f32.mrf.mxu0  ;;  %v10403_v2 = vld [vmem:[#allocation6 + $0xf38] sm:$0xf] }
 0x31f   :  { %6363 = vmatpush.bf16.msra.mxu1 %v11959_v4  ;;  %6002 = vmatpush.bf16.msrb.mxu2 %v9640_v8  ;;  %v5787_v33 = vpop.f32.mrf.mxu1  ;;  %v10404_v4 = vor.u32 %v11928_v28, %v10403_v2  ;;  %v10211_v8 = vld [vmem:[#allocation6 + $0xdb8] sm:$0xf]  ;;  %v11936_v28 = vld [vmem:[#allocation6 + $0xfbc] sm:$0xf] }
 0x320   :  { %5911 = vmatpush.bf16.msrb.mxu3 %v10144_v23  ;;  %v10212_v59 = vor.u32 %v11880_v20, %v10211_v8  ;;  %v12662_v23 = vld [vmem:[#allocation7 + $0x8] sm:$0xff]  ;;  %v11961_v2 = vld [vmem:[%s13032_s5 + $0x80] sm:$0xff]  ;;  %v10341_v8 = vld [vmem:[#allocation6 + $0xef8] sm:$0xf0]  ;;  %v6469_v20 = vunpack.c.h.b16 %v12531_v25 }
 0x321   :  { %v2611_v5 = vperm.slane %v12662_v23, 4  ;;  %v11987_v33 = vld [vmem:[%s13032_s5 + $0x150] sm:$0xff] }
 0x322   :  { %6351 = vmatpush.bf16.msra.mxu0 %v11950_v27  ;;  %v10339_v27 = vld [vmem:[#allocation6 + $0xeb8] sm:$0xf] }
 0x323   :  { %6364 = vmatpush.bf16.msra.mxu1 %v11958_v32  ;;  %6003 = vmatpush.bf16.msrb.mxu2 %v9576_v42  ;;  %v11992_v32 = vld [vmem:[%s13032_s5 + $0x178] sm:$0xff] }
 0x324   :  { %5912 = vmatpush.bf16.msrb.mxu3 %v10080_v29 }
 0x326   :  { %6352 = vmatpush.bf16.msra.mxu0 %v11949_v55  ;;  %v11991_v55 = vld [vmem:[%s13032_s5 + $0x170] sm:$0xff] }
 0x327   :  { %6365 = vmatpush.bf16.msra.mxu1 %v11957_v16  ;;  %6004 = vmatpush.bf16.msrb.mxu2 %v9512_v47  ;;  %v11982_v16 = vld [vmem:[%s13032_s5 + $0x128] sm:$0xff]  ;;  %v6047_v47 = vmul.f32 0.01, %v12600_v11 }
 0x328   :  { %5913 = vmatpush.bf16.msrb.mxu3 %v10016_v39 }
 0x32a   :  { %6353 = vmatpush.bf16.msra.mxu0 %v11948_v35  ;;  %6005 = vmatmul.bf16.vlgmr.msrb.gmra.mxu2 %v12384_v51  ;;  %v10340_v51 = vor.u32 %v11912_v61, %v10339_v27  ;;  %v11864_v35 = vld [vmem:[#allocation6 + $0xd74] sm:$0xf0]  ;;  %v12674_v42 = vpop.f32.mrf.mxu2 }
 0x32b   :  { %6366 = vmatpush.bf16.msra.mxu1 %v11956_v41  ;;  %6375 = vmatpush.bf16.msra.mxu2 %v11968_v58  ;;  %v10148_v17 = vor.u32 %v11864_v35, %v10147_v26  ;;  %v11962_v58 = vld [vmem:[%s13032_s5 + $0x88] sm:$0xff]  ;;  %v6473_v35 = vpack.c.b16 %v6469_v20, %v6469_v20  ;;  %v12009_v20 = vld [vmem:[%s13032_s5 + $0x200] sm:$0xff] }
 0x32c   :  { %5958 = vmatpush.bf16.msra.mxu3 %v10468_v52  ;;  %v11832_v52 = vld [vmem:[#allocation6 + $0xc74] sm:$0xf0]  ;;  %v10277_v26 = vld [vmem:[#allocation6 + $0xe78] sm:$0xf0] }
 0x32d   :  { %5914 = vmatmul.bf16.vlgmr.msrb.gmra.mxu3 %v12406_v3 }
 0x32e   :  { %6354 = vmatpush.bf16.msra.mxu0 %v11947_v10  ;;  %v5707_v10 = vpop.f32.mrf.mxu3 }
 0x32f   :  { %6367 = vmatpush.bf16.msra.mxu1 %v11955_v54  ;;  %6376 = vmatpush.bf16.msra.mxu2 %v11967_v50  ;;  %v11848_v54 = vld [vmem:[#allocation6 + $0xcf4] sm:$0xf0]  ;;  %v5708_v48 = vadd.f32 %v5707_v10, %v12554_v49  ;;  %v11979_v49 = vld [vmem:[%s13032_s5 + $0x110] sm:$0xff]  ;;  %v10469_v50 = vld [vmem:[#allocation6 + $0xff8] sm:$0xf0] }
 0x330   :  { %5959 = vmatpush.bf16.msra.mxu3 %v10404_v4  ;;  %v10084_v39 = vor.u32 %v11848_v54, %v10083_v53  ;;  %v10472_v7 = vor.u32 %v11936_v28, %v10469_v50  ;;  %v12022_v10 = vld [vmem:[%s13032_s5 + $0x268] sm:$0xff]  ;;  %v2612_v54 = vperm.slane %v12662_v23, 5 }
 0x331   :  { %vm6032_vm9 = vcmp.gt.f32.partialorder %v5708_v48, 0.0  ;;  %v6048_v62 = vmul.f32 0.01, %v5708_v48  ;;  %v11840_v28 = vld [vmem:[#allocation6 + $0xcbc] sm:$0xf] }
 0x332   :  { %6355 = vmatpush.bf16.msra.mxu0 %v11946_v57  ;;  %v6063_v57 = vsel %vm6031_vm8, %v12600_v11, %v6047_v47  ;;  %v5800_v11 = vpop.f32.mrf.mxu2  ;;  %v12013_v47 = vld [vmem:[%s13032_s5 + $0x220] sm:$0xff]  ;;  %v10085_v50 = vld [vmem:[#allocation6 + $0xcf8] sm:$0xf0] }
 0x333   :  { %6368 = vmatpush.bf16.msra.mxu1 %v11954_v46  ;;  %6377 = vmatpush.bf16.msra.mxu2 %v11966_v34  ;;  %v6064_v46 = vsel %vm6032_vm9, %v5708_v48, %v6048_v62  ;;  %v11986_v34 = vld [vmem:[%s13032_s5 + $0x148] sm:$0xff]  ;;  %v11995_v62 = vld [vmem:[%s13032_s5 + $0x190] sm:$0xff] }
 0x334   :  { %5960 = vmatpush.bf16.msra.mxu3 %v10340_v51  ;;  %v12700_v4 = vpack.c.bf16 %v6064_v46, %v6063_v57  ;;  %v11920_v51 = vld [vmem:[#allocation6 + $0xf3c] sm:$0xf]  ;;  %v12011_v11 = vld [vmem:[%s13032_s5 + $0x210] sm:$0xff] }
 0x335   :  { %v11856_v48 = vld [vmem:[#allocation6 + $0xd3c] sm:$0xf] }
 0x336   :  { %6356 = vmatpush.bf16.msra.mxu0 %v11945_v21  ;;  %v5824_v41 = vpop.f32.mrf.mxu0  ;;  %v12000_v21 = vld [vmem:[%s13032_s5 + $0x1b8] sm:$0xff]  ;;  %v5709_v61 = vpop.f32.mrf.mxu3 }
 0x337   :  { %6369 = vmatpush.bf16.msra.mxu1 %v11953_v22  ;;  %6378 = vmatpush.bf16.msra.mxu2 %v11965_v15  ;;  %v5825_v43 = vadd.f32 %v5824_v41, %v2611_v5  ;;  %v5837_v29 = vpop.f32.mrf.mxu1  ;;  %v6147_v22 = vunpack.c.l.b16 %v12498_v31  ;;  %v6468_v15 = vunpack.c.l.b16 %v12531_v25  ;;  %v12015_v25 = vld [vmem:[%s13032_s5 + $0x230] sm:$0xff] }
 0x338   :  { %5961 = vmatpush.bf16.msra.mxu3 %v10276_v38  ;;  %v12016_v38 = vld [vmem:[%s13032_s5 + $0x238] sm:$0xff]  ;;  %v12019_v61 = vld [vmem:[%s13032_s5 + $0x250] sm:$0xff] }
 0x339   :  { %6357 = vmatmul.bf16.vlgmr.msra.gmra.mxu0 %v6149_v12  ;;  %v12688_v56 = vadd.f32 %v5837_v29, %v5825_v43  ;;  %v10405_v12 = vld [vmem:[#allocation6 + $0xf78] sm:$0xf0]  ;;  %v6151_v13 = vpack.c.b16 %v6147_v22, %v6147_v22  ;;  %v6472_v5 = vpack.c.b16 %v6468_v15, %v6468_v15 }
 0x33a   :  { %6672 = vmatpush.bf16.msrb.mxu0 %v11984_v18  ;;  %6370 = vmatmul.bf16.vlgmr.msra.gmra.mxu1 %v6150_v14  ;;  %v10020_v18 = vor.u32 %v11832_v52, %v10019_v63  ;;  %v10408_v9 = vor.u32 %v11920_v51, %v10405_v12  ;;  %v11977_v14 = vld [vmem:[%s13032_s5 + $0x100] sm:$0xff]  ;;  %v11872_v43 = vld [vmem:[#allocation6 + $0xdbc] sm:$0xf] }
 0x33b   :  { %6685 = vmatpush.bf16.msrb.mxu1 %v11992_v32  ;;  %6379 = vmatpush.bf16.msra.mxu2 %v11964_v60  ;;  %v11978_v32 = vld [vmem:[%s13032_s5 + $0x108] sm:$0xff] }
 0x33c   :  { %5962 = vmatpush.bf16.msra.mxu3 %v10212_v59  ;;  %v11998_v60 = vld [vmem:[%s13032_s5 + $0x1a8] sm:$0xff] }
 0x33d   :  { %v10213_v29 = vld [vmem:[#allocation6 + $0xdf8] sm:$0xf0] }
 0x33e   :  { %6673 = vmatpush.bf16.msrb.mxu0 %v11983_v1  ;;  %v5826_v40 = vpop.f32.mrf.mxu0  ;;  %v11999_v1 = vld [vmem:[%s13032_s5 + $0x1b0] sm:$0xff]  ;;  %v10216_v53 = vor.u32 %v11872_v43, %v10213_v29  ;;  %v11994_v22 = vld [vmem:[%s13032_s5 + $0x188] sm:$0xff]  ;;  %v5799_v43 = vadd.f32 %v12674_v42, %v12605_v44 }
 0x33f   :  { %6686 = vmatpush.bf16.msrb.mxu1 %v11991_v55  ;;  %6380 = vmatpush.bf16.msra.mxu2 %v11963_v37  ;;  %v5839_v27 = vpop.f32.mrf.mxu1  ;;  %v11985_v55 = vld [vmem:[%s13032_s5 + $0x140] sm:$0xff]  ;;  %v12018_v15 = vld [vmem:[%s13032_s5 + $0x248] sm:$0xff] }
 0x340   :  { %5963 = vmatpush.bf16.msra.mxu3 %v10148_v17  ;;  %v11997_v37 = vld [vmem:[%s13032_s5 + $0x1a0] sm:$0xff]  ;;  %v12014_v17 = vld [vmem:[%s13032_s5 + $0x228] sm:$0xff] }
 0x341   :  { %v10021_v27 = vld [vmem:[#allocation6 + $0xc78] sm:$0xf0] }
 0x342   :  { %6674 = vmatpush.bf16.msrb.mxu0 %v11982_v16  ;;  %v11904_v16 = vld [vmem:[#allocation6 + $0xebc] sm:$0xf] }
 0x343   :  { %6687 = vmatpush.bf16.msrb.mxu1 %v11990_v6  ;;  %6381 = vmatpush.bf16.msra.mxu2 %v11962_v58  ;;  %v12024_v6 = vld [vmem:[%s13032_s5 + $0x278] sm:$0xff]  ;;  %v10344_v59 = vor.u32 %v11904_v16, %v10341_v8  ;;  %v12021_v58 = vld [vmem:[%s13032_s5 + $0x260] sm:$0xff]  ;;  %v11975_v8 = vld [vmem:[%s13032_s5 + $0xf0] sm:$0xff] }
 0x344   :  { %5964 = vmatpush.bf16.msra.mxu3 %v10084_v39 }
 0x346   :  { %6675 = vmatpush.bf16.msrb.mxu0 %v11981_v24  ;;  %v11888_v24 = vld [vmem:[#allocation6 + $0xe3c] sm:$0xf] }
 0x347   :  { %6688 = vmatpush.bf16.msrb.mxu1 %v11989_v36  ;;  %6382 = vmatpush.bf16.msra.mxu2 %v11961_v2  ;;  %v12023_v36 = vld [vmem:[%s13032_s5 + $0x270] sm:$0xff]  ;;  %v10280_v41 = vor.u32 %v11888_v24, %v10277_v26  ;;  %v12012_v2 = vld [vmem:[%s13032_s5 + $0x218] sm:$0xff] }
 0x348   :  { %5965 = vmatpush.bf16.msra.mxu3 %v10020_v18  ;;  %v11824_v18 = vld [vmem:[#allocation6 + $0xc3c] sm:$0xf] }
 0x34a   :  { %6676 = vmatpush.bf16.msrb.mxu0 %v11980_v45  ;;  %6383 = vmatmul.bf16.vlgmr.msra.gmra.mxu2 %v6151_v13  ;;  %v11996_v45 = vld [vmem:[%s13032_s5 + $0x198] sm:$0xff] }
 0x34b   :  { %6689 = vmatpush.bf16.msrb.mxu1 %v11988_v0  ;;  %6698 = vmatpush.bf16.msrb.mxu2 %v12000_v21  ;;  %v10149_v0 = vld [vmem:[#allocation6 + $0xd78] sm:$0xf0]  ;;  %v12020_v21 = vld [vmem:[%s13032_s5 + $0x258] sm:$0xff] }
 0x34c   :  { %6010 = vmatpush.bf16.msrb.mxu3 %v10472_v7  ;;  %v12761_v57 = vpop.f32.mrf.mxu3  ;;  %v11993_v7 = vld [vmem:[%s13032_s5 + $0x180] sm:$0xff] }
 0x34d   :  { %5966 = vmatmul.bf16.vlgmr.msra.gmra.mxu3 %v12406_v3 }
 0x34e   :  { %6677 = vmatpush.bf16.msrb.mxu0 %v11979_v49  ;;  %v5850_v49 = vpop.f32.mrf.mxu2 }
 0x34f   :  { %6690 = vmatpush.bf16.msrb.mxu1 %v11987_v33  ;;  %6699 = vmatpush.bf16.msrb.mxu2 %v11999_v1  ;;  %v10152_v33 = vor.u32 %v11856_v48, %v10149_v0  ;;  %v12764_v46 = vadd.f32 %v5850_v49, %v12688_v56  ;;  %v10088_v56 = vor.u32 %v11840_v28, %v10085_v50  ;;  %v12026_v0 = vld [vmem:[%s13032_s5 + $0x288] sm:$0xff]  ;;  %v12025_v49 = vld [vmem:[%s13032_s5 + $0x280] sm:$0xff]  ;;  %v6148_v50 = vunpack.c.h.b16 %v12498_v31 }
 0x350   :  { %6011 = vmatpush.bf16.msrb.mxu3 %v10408_v9  ;;  %v10024_v1 = vor.u32 %v11824_v18, %v10021_v27  ;;  %v11969_v28 = vld [vmem:[%s13032_s5 + $0xc0] sm:$0xff]  ;;  %v12047_v27 = vld [vmem:[%s13032_s5 + $0x330] sm:$0xff] }
 0x351   :  { %v6152_v31 = vpack.c.b16 %v6148_v50, %v6148_v50 }
 0x352   :  { %6678 = vmatpush.bf16.msrb.mxu0 %v11978_v32  ;;  %v12032_v32 = vld [vmem:[%s13032_s5 + $0x2b8] sm:$0xff] }
 0x353   :  { %6691 = vmatpush.bf16.msrb.mxu1 %v11986_v34  ;;  %6700 = vmatpush.bf16.msrb.mxu2 %v11998_v60  ;;  %v6470_v34 = vunpack.c.l.b16 %v12562_v19  ;;  %v12017_v60 = vld [vmem:[%s13032_s5 + $0x240] sm:$0xff] }
 0x354   :  { %6012 = vmatpush.bf16.msrb.mxu3 %v10344_v59  ;;  %v5761_v9 = vpop.f32.mrf.mxu3  ;;  %v6792_v59 = vunpack.c.h.b16 %v12700_v4 }
 0x355   :  { %v6474_v16 = vpack.c.b16 %v6470_v34, %v6470_v34  ;;  %v12054_v34 = vld [vmem:[%s13032_s5 + $0x368] sm:$0xff]  ;;  %v12044_v9 = vld [vmem:[%s13032_s5 + $0x318] sm:$0xff] }
 0x356   :  { %6679 = vmatpush.bf16.msrb.mxu0 %v11977_v14  ;;  %v5876_v39 = vpop.f32.mrf.mxu0  ;;  %v5852_v12 = vpop.f32.mrf.mxu2  ;;  %v11976_v14 = vld [vmem:[%s13032_s5 + $0xf8] sm:$0xff]  ;;  %v6796_v26 = vpack.c.b16 %v6792_v59, %v6792_v59 }
 0x357   :  { %6692 = vmatpush.bf16.msrb.mxu1 %v11985_v55  ;;  %6701 = vmatpush.bf16.msrb.mxu2 %v11997_v37  ;;  %v5877_v63 = vadd.f32 %v5876_v39, %v2612_v54  ;;  %v5889_v52 = vpop.f32.mrf.mxu1  ;;  %v12010_v55 = vld [vmem:[%s13032_s5 + $0x208] sm:$0xff]  ;;  %v2613_v37 = vperm.slane %v12662_v23, 6  ;;  %v12045_v12 = vld [vmem:[%s13032_s5 + $0x320] sm:$0xff] }
 0x358   :  { %6013 = vmatpush.bf16.msrb.mxu3 %v10280_v41  ;;  %v5760_v41 = vadd.f32 %v12761_v57, %v12594_v30 }
 0x359   :  { %6680 = vmatmul.bf16.vlgmr.msrb.gmra.mxu0 %v6472_v5  ;;  %v12775_v40 = vadd.f32 %v5889_v52, %v5877_v63  ;;  %v12030_v5 = vld [vmem:[%s13032_s5 + $0x2a8] sm:$0xff]  ;;  %v12056_v63 = vld [vmem:[%s13032_s5 + $0x378] sm:$0xff] }
 0x35a   :  { %6995 = vmatpush.bf16.msra.mxu0 %v12016_v38  ;;  %6693 = vmatmul.bf16.vlgmr.msrb.gmra.mxu1 %v6473_v35  ;;  %v12031_v38 = vld [vmem:[%s13032_s5 + $0x2b0] sm:$0xff]  ;;  %v12028_v35 = vld [vmem:[%s13032_s5 + $0x298] sm:$0xff]  ;;  %v6049_v30 = vmul.f32 0.01, %v5760_v41  ;;  %vm6033_vm10 = vcmp.gt.f32.partialorder %v5760_v41, 0.0 }
 0x35b   :  { %7008 = vmatpush.bf16.msra.mxu1 %v12024_v6  ;;  %6702 = vmatpush.bf16.msrb.mxu2 %v11996_v45  ;;  %v6791_v6 = vunpack.c.l.b16 %v12700_v4  ;;  %v12029_v4 = vld [vmem:[%s13032_s5 + $0x2a0] sm:$0xff]  ;;  %v11971_v45 = vld [vmem:[%s13032_s5 + $0xd0] sm:$0xff] }
 0x35c   :  { %6014 = vmatpush.bf16.msrb.mxu3 %v10216_v53 }
 0x35d   :  { %v6795_v24 = vpack.c.b16 %v6791_v6, %v6791_v6  ;;  %v12003_v6 = vld [vmem:[%s13032_s5 + $0x1d0] sm:$0xff] }
 0x35e   :  { %6996 = vmatpush.bf16.msra.mxu0 %v12015_v25  ;;  %v5878_v51 = vpop.f32.mrf.mxu0  ;;  %v11974_v25 = vld [vmem:[%s13032_s5 + $0xe8] sm:$0xff] }
 0x35f   :  { %7009 = vmatpush.bf16.msra.mxu1 %v12023_v36  ;;  %6703 = vmatpush.bf16.msrb.mxu2 %v11995_v62  ;;  %v5891_v13 = vpop.f32.mrf.mxu1  ;;  %v11972_v36 = vld [vmem:[%s13032_s5 + $0xd8] sm:$0xff]  ;;  %v6065_v62 = vsel %vm6033_vm10, %v5760_v41, %v6049_v30  ;;  %v12006_v51 = vld [vmem:[%s13032_s5 + $0x1e8] sm:$0xff]  ;;  %v12001_v41 = vld [vmem:[%s13032_s5 + $0x1c0] sm:$0xff] }
 0x360   :  { %6015 = vmatpush.bf16.msrb.mxu3 %v10152_v33  ;;  %v12048_v33 = vld [vmem:[%s13032_s5 + $0x338] sm:$0xff]  ;;  %v12005_v13 = vld [vmem:[%s13032_s5 + $0x1e0] sm:$0xff] }
 0x361   :  { %v12036_v30 = vld [vmem:[%s13032_s5 + $0x2d8] sm:$0xff] }
 0x362   :  { %6997 = vmatpush.bf16.msra.mxu0 %v12014_v17  ;;  %v12027_v17 = vld [vmem:[%s13032_s5 + $0x290] sm:$0xff] }
 0x363   :  { %7010 = vmatpush.bf16.msra.mxu1 %v12022_v10  ;;  %6704 = vmatpush.bf16.msrb.mxu2 %v11994_v22 }
 0x364   :  { %6016 = vmatpush.bf16.msrb.mxu3 %v10088_v56 }
 0x366   :  { %6998 = vmatpush.bf16.msra.mxu0 %v12013_v47 }
 0x367   :  { %7011 = vmatpush.bf16.msra.mxu1 %v12021_v58  ;;  %6705 = vmatpush.bf16.msrb.mxu2 %v11993_v7  ;;  %v11970_v58 = vld [vmem:[%s13032_s5 + $0xc8] sm:$0xff]  ;;  %v12007_v7 = vld [vmem:[%s13032_s5 + $0x1f0] sm:$0xff] }
 0x368   :  { %6017 = vmatpush.bf16.msrb.mxu3 %v10024_v1  ;;  %v12053_v1 = vld [vmem:[%s13032_s5 + $0x360] sm:$0xff] }
 0x36a   :  { %6999 = vmatpush.bf16.msra.mxu0 %v12012_v2  ;;  %6706 = vmatmul.bf16.vlgmr.msrb.gmra.mxu2 %v6474_v16  ;;  %v12840_v10 = vpop.f32.mrf.mxu2  ;;  %v12051_v16 = vld [vmem:[%s13032_s5 + $0x350] sm:$0xff] }
 0x36b   :  { %7012 = vmatpush.bf16.msra.mxu1 %v12020_v21  ;;  %7021 = vmatpush.bf16.msra.mxu2 %v12032_v32  ;;  %v12046_v32 = vld [vmem:[%s13032_s5 + $0x328] sm:$0xff] }
 0x36c   :  { %6388 = vmatpush.bf16.msra.mxu3 %v11976_v14  ;;  %v5811_v47 = vpop.f32.mrf.mxu3  ;;  %v12052_v14 = vld [vmem:[%s13032_s5 + $0x358] sm:$0xff] }
 0x36d   :  { %6018 = vmatmul.bf16.vlgmr.msrb.gmra.mxu3 %v12406_v3  ;;  %v11973_v3 = vld [vmem:[%s13032_s5 + $0xe0] sm:$0xff]  ;;  %v5812_v48 = vadd.f32 %v5811_v47, %v5799_v43 }
 0x36e   :  { %7000 = vmatpush.bf16.msra.mxu0 %v12011_v11  ;;  %v12008_v11 = vld [vmem:[%s13032_s5 + $0x1f8] sm:$0xff]  ;;  %v12037_v47 = vld [vmem:[%s13032_s5 + $0x2e0] sm:$0xff] }
 0x36f   :  { %7013 = vmatpush.bf16.msra.mxu1 %v12019_v61  ;;  %7022 = vmatpush.bf16.msra.mxu2 %v12031_v38  ;;  %vm6034_vm11 = vcmp.gt.f32.partialorder %v5812_v48, 0.0  ;;  %v6050_v42 = vmul.f32 0.01, %v5812_v48  ;;  %v12055_v61 = vld [vmem:[%s13032_s5 + $0x370] sm:$0xff] }
 0x370   :  { %6389 = vmatpush.bf16.msra.mxu3 %v11975_v8  ;;  %v12043_v38 = vld [vmem:[%s13032_s5 + $0x310] sm:$0xff] }
 0x371   :  { %v6066_v39 = vsel %vm6034_vm11, %v5812_v48, %v6050_v42 }
 0x372   :  { %7001 = vmatpush.bf16.msra.mxu0 %v12010_v55  ;;  %v12862_v52 = vpack.c.bf16 %v6066_v39, %v6065_v62  ;;  %v5904_v2 = vpop.f32.mrf.mxu2  ;;  %v12004_v55 = vld [vmem:[%s13032_s5 + $0x1d8] sm:$0xff] }
 0x373   :  { %7014 = vmatpush.bf16.msra.mxu1 %v12018_v15  ;;  %7023 = vmatpush.bf16.msra.mxu2 %v12030_v5  ;;  %v2614_v15 = vperm.slane %v12662_v23, 7  ;;  %v12064_v2 = vld [vmem:[%s13032_s5 + $0x3b8] sm:$0xff] }
 0x374   :  { %6390 = vmatpush.bf16.msra.mxu3 %v11974_v25  ;;  %v6793_v21 = vunpack.c.l.b16 %v12862_v52  ;;  %v5813_v56 = vpop.f32.mrf.mxu3  ;;  %v12042_v25 = vld [vmem:[%s13032_s5 + $0x308] sm:$0xff] }
 0x375   :  { %v12063_v56 = vld [vmem:[%s13032_s5 + $0x3b0] sm:$0xff] }
 0x376   :  { %7002 = vmatpush.bf16.msra.mxu0 %v12009_v20  ;;  %v5928_v29 = vpop.f32.mrf.mxu0  ;;  %v6797_v18 = vpack.c.b16 %v6793_v21, %v6793_v21 }
 0x377   :  { %7015 = vmatpush.bf16.msra.mxu1 %v12017_v60  ;;  %7024 = vmatpush.bf16.msra.mxu2 %v12029_v4  ;;  %v5929_v53 = vadd.f32 %v5928_v29, %v2613_v37  ;;  %v5941_v54 = vpop.f32.mrf.mxu1  ;;  %v12002_v4 = vld [vmem:[%s13032_s5 + $0x1c8] sm:$0xff] }
 0x378   :  { %6391 = vmatpush.bf16.msra.mxu3 %v11973_v3  ;;  %v12041_v3 = vld [vmem:[%s13032_s5 + $0x300] sm:$0xff] }
 0x379   :  { %7003 = vmatmul.bf16.vlgmr.msra.gmra.mxu0 %v6795_v24  ;;  %v12848_v44 = vadd.f32 %v5941_v54, %v5929_v53  ;;  %v12050_v24 = vld [vmem:[%s13032_s5 + $0x348] sm:$0xff]  ;;  %v12039_v54 = vld [vmem:[%s13032_s5 + $0x2f0] sm:$0xff] }
 0x37a   :  { %7016 = vmatmul.bf16.vlgmr.msra.gmra.mxu1 %v6796_v26  ;;  %7318 = vmatpush.bf16.msrb.mxu0 %v12048_v33 }
 0x37b   :  { %7025 = vmatpush.bf16.msra.mxu2 %v12028_v35  ;;  %7331 = vmatpush.bf16.msrb.mxu1 %v12056_v63  ;;  %v12049_v35 = vld [vmem:[%s13032_s5 + $0x340] sm:$0xff] }
 0x37c   :  { %6392 = vmatpush.bf16.msra.mxu3 %v11972_v36 }
 0x37e   :  { %v5930_v57 = vpop.f32.mrf.mxu0  ;;  %7319 = vmatpush.bf16.msrb.mxu0 %v12047_v27 }
 0x37f   :  { %7026 = vmatpush.bf16.msra.mxu2 %v12027_v17  ;;  %v5943_v22 = vpop.f32.mrf.mxu1  ;;  %7332 = vmatpush.bf16.msrb.mxu1 %v12055_v61  ;;  %v6471_v17 = vunpack.c.h.b16 %v12562_v19  ;;  %v12038_v19 = vld [vmem:[%s13032_s5 + $0x2e8] sm:$0xff] }
 0x380   :  { %6393 = vmatpush.bf16.msra.mxu3 %v11971_v45  ;;  %v12040_v45 = vld [vmem:[%s13032_s5 + $0x2f8] sm:$0xff]  ;;  %v12033_v22 = vld [vmem:[%s13032_s5 + $0x2c0] sm:$0xff] }
 0x381   :  { %v6475_v53 = vpack.c.b16 %v6471_v17, %v6471_v17 }
 0x382   :  { %7320 = vmatpush.bf16.msrb.mxu0 %v12046_v32 }
 0x383   :  { %7027 = vmatpush.bf16.msra.mxu2 %v12026_v0  ;;  %7333 = vmatpush.bf16.msrb.mxu1 %v12054_v34  ;;  %v5903_v0 = vadd.f32 %v12840_v10, %v12775_v40 }
 0x384   :  { %6394 = vmatpush.bf16.msra.mxu3 %v11970_v58  ;;  %v12035_v58 = vld [vmem:[%s13032_s5 + $0x2d0] sm:$0xff] }
 0x386   :  { %7321 = vmatpush.bf16.msrb.mxu0 %v12045_v12 }
 0x387   :  { %7028 = vmatpush.bf16.msra.mxu2 %v12025_v49  ;;  %7334 = vmatpush.bf16.msrb.mxu1 %v12053_v1  ;;  %v12061_v1 = vld [vmem:[%s13032_s5 + $0x3a0] sm:$0xff] }
 0x388   :  { %6395 = vmatpush.bf16.msra.mxu3 %v11969_v28 }
 0x38a   :  { %7029 = vmatmul.bf16.vlgmr.msra.gmra.mxu2 %v6797_v18  ;;  %7322 = vmatpush.bf16.msrb.mxu0 %v12044_v9  ;;  %v5954_v20 = vpop.f32.mrf.mxu2  ;;  %v12060_v9 = vld [vmem:[%s13032_s5 + $0x398] sm:$0xff] }
 0x38b   :  { %6396 = vmatmul.bf16.vlgmr.msra.gmra.mxu3 %v6152_v31  ;;  %7335 = vmatpush.bf16.msrb.mxu1 %v12052_v14  ;;  %v12919_v5 = vadd.f32 %v5954_v20, %v12848_v44  ;;  %v12069_v14 = vld [vmem:[%s13032_s5 + $0x3e0] sm:$0xff] }
 0x38c   :  { %6711 = vmatpush.bf16.msrb.mxu3 %v12008_v11  ;;  %v5863_v23 = vpop.f32.mrf.mxu3  ;;  %7344 = vmatpush.bf16.msrb.mxu2 %v12064_v2  ;;  %v6794_v11 = vunpack.c.h.b16 %v12862_v52  ;;  %v12071_v52 = vld [vmem:[%s13032_s5 + $0x3f0] sm:$0xff] }
 0x38d   :  { %v5864_v48 = vadd.f32 %v5863_v23, %v12764_v46  ;;  %v12034_v46 = vld [vmem:[%s13032_s5 + $0x2c8] sm:$0xff] }
 0x38e   :  { %7323 = vmatpush.bf16.msrb.mxu0 %v12043_v38  ;;  %v6798_v12 = vpack.c.b16 %v6794_v11, %v6794_v11  ;;  %v12058_v23 = vld [vmem:[%s13032_s5 + $0x388] sm:$0xff] }
 0x38f   :  { %7336 = vmatpush.bf16.msrb.mxu1 %v12051_v16  ;;  %v6051_v49 = vmul.f32 0.01, %v5864_v48  ;;  %vm6035_vm12 = vcmp.gt.f32.partialorder %v5864_v48, 0.0 }
 0x390   :  { %6712 = vmatpush.bf16.msrb.mxu3 %v12007_v7  ;;  %v12072_v7 = vld [vmem:[%s13032_s5 + $0x3f8] sm:$0xff]  ;;  %7345 = vmatpush.bf16.msrb.mxu2 %v12063_v56 }
 0x391   :  { %v6067_v40 = vsel %vm6035_vm12, %v5864_v48, %v6051_v49 }
 0x392   :  { %7324 = vmatpush.bf16.msrb.mxu0 %v12042_v25  ;;  %v5956_v37 = vpop.f32.mrf.mxu2  ;;  %v12066_v25 = vld [vmem:[%s13032_s5 + $0x3c8] sm:$0xff] }
 0x393   :  { %7337 = vmatpush.bf16.msrb.mxu1 %v12050_v24  ;;  %v12057_v24 = vld [vmem:[%s13032_s5 + $0x380] sm:$0xff] }
 0x394   :  { %6713 = vmatpush.bf16.msrb.mxu3 %v12006_v51  ;;  %v5865_v29 = vpop.f32.mrf.mxu3  ;;  %v12062_v51 = vld [vmem:[%s13032_s5 + $0x3a8] sm:$0xff]  ;;  %v12065_v37 = vld [vmem:[%s13032_s5 + $0x3c0] sm:$0xff] }
 0x395   :  { %7346 = vmatpush.bf16.msrb.mxu2 %v12062_v51 }
 0x396   :  { %v5980_v8 = vpop.f32.mrf.mxu0  ;;  %7325 = vmatpush.bf16.msrb.mxu0 %v12041_v3 }
 0x397   :  { %v5981_v60 = vadd.f32 %v5980_v8, %v2614_v15  ;;  %v5993_v59 = vpop.f32.mrf.mxu1  ;;  %7338 = vmatpush.bf16.msrb.mxu1 %v12049_v35  ;;  %v12059_v15 = vld [vmem:[%s13032_s5 + $0x390] sm:$0xff] }
 0x398   :  { %6714 = vmatpush.bf16.msrb.mxu3 %v12005_v13  ;;  %v12070_v13 = vld [vmem:[%s13032_s5 + $0x3e8] sm:$0xff] }
 0x399   :  { %v12927_v26 = vadd.f32 %v5993_v59, %v5981_v60  ;;  %7347 = vmatpush.bf16.msrb.mxu2 %v12061_v1  ;;  %v12067_v60 = vld [vmem:[%s13032_s5 + $0x3d0] sm:$0xff] }
 0x39c   :  { %6715 = vmatpush.bf16.msrb.mxu3 %v12004_v55  ;;  %v12068_v55 = vld [vmem:[%s13032_s5 + $0x3d8] sm:$0xff]  ;;  %s12231_s5 = smov 32  }
 0x39d   :  { %7348 = vmatpush.bf16.msrb.mxu2 %v12060_v9 }
 0x39e   :  { %v5982_v36 = vpop.f32.mrf.mxu0 }
 0x39f   :  { %v5995_v43 = vpop.f32.mrf.mxu1 }
 0x3a0   :  { %6716 = vmatpush.bf16.msrb.mxu3 %v12003_v6 }
 0x3a1   :  { %7349 = vmatpush.bf16.msrb.mxu2 %v12059_v15 }
 0x3a4   :  { %6717 = vmatpush.bf16.msrb.mxu3 %v12002_v4 }
 0x3a5   :  { %7350 = vmatpush.bf16.msrb.mxu2 %v12058_v23 }
 0x3a8   :  { %6718 = vmatpush.bf16.msrb.mxu3 %v12001_v41 }
 0x3a9   :  { %7351 = vmatpush.bf16.msrb.mxu2 %v12057_v24 }
 0x3ab   :  { %6719 = vmatmul.bf16.vlgmr.msrb.gmra.mxu3 %v6475_v53 }
 0x3ac   :  { %7034 = vmatpush.bf16.msra.mxu3 %v12040_v45 }
 0x3ad   :  { %v12960_v42 = vpop.f32.mrf.mxu2 }
 0x3ae   :  { %v6007_v17 = vadd.f32 %v12960_v42, %v12927_v26 }
 0x3b0   :  { %7035 = vmatpush.bf16.msra.mxu3 %v12039_v54  ;;  %v5915_v39 = vpop.f32.mrf.mxu3 }
 0x3b1   :  { %v5916_v63 = vadd.f32 %v5915_v39, %v5903_v0 }
 0x3b3   :  { %vm6036_vm13 = vcmp.gt.f32.partialorder %v5916_v63, 0.0  ;;  %v6052_v57 = vmul.f32 0.01, %v5916_v63 }
 0x3b4   :  { %7036 = vmatpush.bf16.msra.mxu3 %v12038_v19 }
 0x3b5   :  { %v6068_v10 = vsel %vm6036_vm13, %v5916_v63, %v6052_v57  ;;  %v6008_v21 = vpop.f32.mrf.mxu2 }
 0x3b6   :  { %v6358_v44 = vpop.f32.mrf.mxu0  ;;  %v6077_v28 = vpack.c.bf16 %v6068_v10, %v6067_v40 }
 0x3b7   :  { %v6371_v62 = vpop.f32.mrf.mxu1 }
 0x3b8   :  { %7037 = vmatpush.bf16.msra.mxu3 %v12037_v47  ;;  %v6372_v33 = vadd.f32 %v6371_v62, %v6358_v44  ;;  %v7114_v18 = vunpack.c.l.b16 %v6077_v28  ;;  %v7115_v27 = vunpack.c.h.b16 %v6077_v28  ;;  %v5917_v31 = vpop.f32.mrf.mxu3 }
 0x3ba   :  { %v7118_v32 = vpack.c.b16 %v7114_v18, %v7114_v18  ;;  %v7119_v34 = vpack.c.b16 %v7115_v27, %v7115_v27 }
 0x3bc   :  { %7038 = vmatpush.bf16.msra.mxu3 %v12036_v30  ;;  %7326 = vmatmul.bf16.vlgmr.msrb.gmra.mxu0 %v7118_v32 }
 0x3bd   :  { %7339 = vmatmul.bf16.vlgmr.msrb.gmra.mxu1 %v7119_v34 }
 0x3be   :  { %v6360_v50 = vpop.f32.mrf.mxu0 }
 0x3bf   :  { %v6373_v61 = vpop.f32.mrf.mxu1 }
 0x3c0   :  { %7039 = vmatpush.bf16.msra.mxu3 %v12035_v58 }
 0x3c4   :  { %7040 = vmatpush.bf16.msra.mxu3 %v12034_v46 }
 0x3c8   :  { %7041 = vmatpush.bf16.msra.mxu3 %v12033_v22 }
 0x3cb   :  { %7042 = vmatmul.bf16.vlgmr.msra.gmra.mxu3 %v6798_v12 }
 0x3cc   :  { %7357 = vmatpush.bf16.msrb.mxu3 %v12072_v7 }
 0x3cd   :  { %v6384_v16 = vpop.f32.mrf.mxu2 }
 0x3ce   :  { %v6385_v6 = vadd.f32 %v6384_v16, %v6372_v33 }
 0x3d0   :  { %7358 = vmatpush.bf16.msrb.mxu3 %v12071_v52  ;;  %v5967_v20 = vpop.f32.mrf.mxu3 }
 0x3d1   :  { %v5968_v41 = vadd.f32 %v5967_v20, %v12919_v5 }
 0x3d3   :  { %v6053_v54 = vmul.f32 0.01, %v5968_v41  ;;  %vm6037_vm14 = vcmp.gt.f32.partialorder %v5968_v41, 0.0 }
 0x3d4   :  { %7359 = vmatpush.bf16.msrb.mxu3 %v12070_v13 }
 0x3d5   :  { %v6386_v3 = vpop.f32.mrf.mxu2  ;;  %v6069_v48 = vsel %vm6037_vm14, %v5968_v41, %v6053_v54 }
 0x3d6   :  { %v6681_v38 = vpop.f32.mrf.mxu0 }
 0x3d7   :  { %v6694_v8 = vpop.f32.mrf.mxu1 }
 0x3d8   :  { %7360 = vmatpush.bf16.msrb.mxu3 %v12069_v14  ;;  %v6695_v59 = vadd.f32 %v6694_v8, %v6681_v38  ;;  %v5969_v36 = vpop.f32.mrf.mxu3 }
 0x3dc   :  { %7361 = vmatpush.bf16.msrb.mxu3 %v12068_v55  ;;  %v12084_v55 = vld [vmem:[#allocation9] ss:$0 sm:$0xff] }
 0x3de   :  { %v6683_v4 = vpop.f32.mrf.mxu0 }
 0x3df   :  { %v6696_v35 = vpop.f32.mrf.mxu1 }
 0x3e0   :  { %7362 = vmatpush.bf16.msrb.mxu3 %v12067_v60 }
 0x3e4   :  { %7363 = vmatpush.bf16.msrb.mxu3 %v12066_v25 }
 0x3e8   :  { %7364 = vmatpush.bf16.msrb.mxu3 %v12065_v37 }
 0x3ed   :  { %v6707_v29 = vpop.f32.mrf.mxu2 }
 0x3ee   :  { %v6708_v2 = vadd.f32 %v6707_v29, %v6695_v59 }
 0x3f0   :  { %v6019_v53 = vpop.f32.mrf.mxu3 }
 0x3f1   :  { %v6020_v47 = vadd.f32 %v6019_v53, %v6007_v17 }
 0x3f3   :  { %vm6038_vm15 = vcmp.gt.f32.partialorder %v6020_v47, 0.0  ;;  %v6054_v30 = vmul.f32 0.01, %v6020_v47 }
 0x3f5   :  { %v6070_v0 = vsel %vm6038_vm15, %v6020_v47, %v6054_v30  ;;  %v6709_v62 = vpop.f32.mrf.mxu2 }
 0x3f6   :  { %v7004_v43 = vpop.f32.mrf.mxu0  ;;  %v6078_v44 = vpack.c.bf16 %v6070_v0, %v6069_v48 }
 0x3f7   :  { %v7017_v45 = vpop.f32.mrf.mxu1 }
 0x3f8   :  { %v7018_v19 = vadd.f32 %v7017_v45, %v7004_v43  ;;  %v7116_v39 = vunpack.c.l.b16 %v6078_v44  ;;  %v7117_v5 = vunpack.c.h.b16 %v6078_v44  ;;  %v6021_v33 = vpop.f32.mrf.mxu3 }
 0x3fa   :  { %v7120_v26 = vpack.c.b16 %v7116_v39, %v7116_v39  ;;  %v7121_v42 = vpack.c.b16 %v7117_v5, %v7117_v5 }
 0x3fc   :  { %7352 = vmatmul.bf16.vlgmr.msrb.gmra.mxu2 %v7120_v26  ;;  %7365 = vmatmul.bf16.vlgmr.msrb.gmra.mxu3 %v7121_v42 }
 0x3fe   :  { %v7006_v58 = vpop.f32.mrf.mxu0 }
 0x3ff   :  { %v7019_v49 = vpop.f32.mrf.mxu1 }
 0x40d   :  { %v7030_v63 = vpop.f32.mrf.mxu2 }
 0x40e   :  { %v6397_v57 = vpop.f32.mrf.mxu3  ;;  %v7031_v11 = vadd.f32 %v7030_v63, %v7018_v19 }
 0x40f   :  { %v6398_v46 = vadd.f32 %v6397_v57, %v6385_v6 }
 0x415   :  { %v7032_v40 = vpop.f32.mrf.mxu2 }
 0x416   :  { %v6399_v10 = vpop.f32.mrf.mxu3 }
 0x42e   :  { %v6720_v28 = vpop.f32.mrf.mxu3 }
 0x42f   :  { %v6721_v50 = vadd.f32 %v6720_v28, %v6708_v2 }
 0x431   :  { %7371 = vrot.lane.b32.xlu0 %v6721_v50, %s12231_s5 }
 0x436   :  { %v6722_v21 = vpop.f32.mrf.mxu3 }
 0x439   :  { %v7327_v22 = vpop.f32.mrf.mxu0 }
 0x43a   :  { %v7340_v56 = vpop.f32.mrf.mxu1 }
 0x43b   :  { %v7341_v32 = vadd.f32 %v7340_v56, %v7327_v22 }
 0x441   :  { %v7329_v27 = vpop.f32.mrf.mxu0 }
 0x442   :  { %v7342_v31 = vpop.f32.mrf.mxu1 }
 0x44e   :  { %v7043_v18 = vpop.f32.mrf.mxu3 }
 0x44f   :  { %v7044_v61 = vadd.f32 %v7043_v18, %v7031_v11 }
 0x451   :  { %7375 = vrot.lane.b32.xlu0 %v7044_v61, %s12229_s22 }
 0x456   :  { %v7045_v7 = vpop.f32.mrf.mxu3 }
 0x47f   :  { %v7353_v34 = vpop.f32.mrf.mxu2  ;;  %v7366_v51 = vpop.f32.mrf.mxu3 }
 0x480   :  { %v7354_v12 = vadd.f32 %v7353_v34, %v7341_v32 }
 0x482   :  { %v7367_v52 = vadd.f32 %v7366_v51, %v7354_v12 }
 0x484   :  { %7379 = vrot.lane.b32.xlu1 %v7367_v52, %s12232_s30 }
 0x487   :  { %v7355_v1 = vpop.f32.mrf.mxu2  ;;  %v7368_v13 = vpop.f32.mrf.mxu3 }
 0x4a3   :  { %v7372_v9 = vpop.permute.xlu0 %7371 }
 0x4a4   :  { %v7383_v15 = vsel %vm7382_vm0, %v6398_v46, %v7372_v9 }
 0x4c3   :  { %v7376_v14 = vpop.permute.xlu0 %7375 }
 0x4c4   :  { %v7385_v38 = vsel %vm7384_vm1, %v7383_v15, %v7376_v14 }
 0x4f6   :  { %v7380_v16 = vpop.permute.xlu1 %7379 }
 0x4f7   :  { %v7387_v8 = vsel %vm7386_vm2, %v7385_v38, %v7380_v16 }
 0x4f8   :  { %v7392_v20 = vadd.f32 %v12084_v55, %v7387_v8 }
 0x4fa   :  { %7393 = vst [vmem:[%s13034_s7] sm:$0x3] %v7392_v20 }
 0x4fb   :  { %7398 = vsyncpa [#allocation3], 1 }
 0x4fc   :  { %7399 = vsyncpa [#allocation5], 1 }
 0x4fd   :  { %7400 = vsyncpa [#allocation8], 1 }

</bundles_post_ra>
